<compile_context>
chip_gen: v6e
topology: v6e:2x2x1
jax: 0.10.0
libtpu: 0.0.40
codegen_flags: <defaults>
</compile_context>

<pallas_src>
import jax
import jax.numpy as jnp
from jax.experimental import pallas as pl
from jax.experimental.pallas import tpu as pltpu


def _round_up(a, m):
    return ((a + m - 1) // m) * m


def fc_encoder_kernel(x_ref, w1_ref, b1_ref, w2_ref, b2_ref,
                      w3_ref, b3_ref, w4_ref, b4_ref, z_ref):
    """One row-tile of the fused 4-layer MLP.  All refs live in VMEM.

    x_ref:            [TB, Kp]                 f32
    w1/w2/w3/w4_ref:  [Kp,Hp]/[Hp,Hp]/[Hp,Hp]/[Hp,Lp]   bf16 (VMEM-resident)
    b1/b2/b3/b4_ref:  [1, Hp] / [1, Lp]        f32
    z_ref:            [TB, Lp]                 f32
    """
    h = x_ref[...].astype(jnp.bfloat16)

    h = jnp.dot(h, w1_ref[...], preferred_element_type=jnp.float32)
    h = jnp.maximum(h + b1_ref[...], 0.0).astype(jnp.bfloat16)

    h = jnp.dot(h, w2_ref[...], preferred_element_type=jnp.float32)
    h = jnp.maximum(h + b2_ref[...], 0.0).astype(jnp.bfloat16)

    h = jnp.dot(h, w3_ref[...], preferred_element_type=jnp.float32)
    h = jnp.maximum(h + b3_ref[...], 0.0).astype(jnp.bfloat16)

    z = jnp.dot(h, w4_ref[...], preferred_element_type=jnp.float32)
    z_ref[...] = (z + b4_ref[...]).astype(z_ref.dtype)


def fc_encoder_forward(x, prepared_params, *, n_latent, row_tile=256):
    """x: [B, C, H, W] float32. Returns z: [B, n_latent] float32."""
    w1, b1, w2, b2, w3, b3, w4, b4 = prepared_params
    B = x.shape[0]
    n_dims_in = x.shape[1] * x.shape[2] * x.shape[3]
    Kp = w1.shape[0]                      # padded input width (mult. of 128)
    Lp = w4.shape[1]                      # padded latent width (128)

    x_flat = x.reshape(B, n_dims_in)      # same semantics as torch reshape

    # Zero-pad: columns up to Kp (matches zero-padded w1 rows -> contributes 0),
    # rows up to a multiple of the row tile (padded rows are discarded).
    B_pad = _round_up(B, 8)
    tb = B_pad if B_pad < row_tile else row_tile
    B_pad = _round_up(B_pad, tb)
    x_pad = jnp.pad(x_flat, ((0, B_pad - B), (0, Kp - n_dims_in)))

    grid = (B_pad // tb,)

    def resident(a):
        # Constant index map -> fetched once, kept VMEM-resident across tiles.
        return pl.BlockSpec(a.shape, lambda i: (0,) * a.ndim)

    z_pad = pl.pallas_call(
        fc_encoder_kernel,
        out_shape=jax.ShapeDtypeStruct((B_pad, Lp), jnp.float32),
        grid=grid,
        in_specs=[
            pl.BlockSpec((tb, Kp), lambda i: (i, 0)),   # x row tile
            resident(w1), resident(b1),
            resident(w2), resident(b2),
            resident(w3), resident(b3),
            resident(w4), resident(b4),
        ],
        out_specs=pl.BlockSpec((tb, Lp), lambda i: (i, 0)),
        compiler_params=pltpu.CompilerParams(
            dimension_semantics=("parallel",),
            vmem_limit_bytes=40 * 1024 * 1024,   # actual use ~24 MiB << 64 MiB
        ),
    )(x_pad, w1, b1, w2, b2, w3, b3, w4, b4)

    return z_pad[:B, :n_latent]


def init_params(key, n_dims_in, n_hidden, n_latent):
    """PyTorch-style uniform(-1/sqrt(fan_in), 1/sqrt(fan_in)) init, f32.
    Weights stored as [in, out] (transposed vs nn.Linear); biases as [1, out]."""
    dims = [(n_dims_in, n_hidden), (n_hidden, n_hidden),
            (n_hidden, n_hidden), (n_hidden, n_latent)]
    params = []
    for fan_in, fan_out in dims:
        key, kw, kb = jax.random.split(key, 3)
        bound = 1.0 / jnp.sqrt(float(fan_in))
        w = jax.random.uniform(kw, (fan_in, fan_out), jnp.float32, -bound, bound)
        b = jax.random.uniform(kb, (1, fan_out), jnp.float32, -bound, bound)
        params += [w, b]
    return params


def prepare_params(params, weight_dtype=jnp.bfloat16):
    """Zero-pad dims to multiples of 128 and cast weights to bf16 (biases f32).

    Padding is exact-zero, so the 1200-unit / n_latent forward semantics are
    preserved: padded hidden units are 0 through ReLU and contribute nothing
    downstream; padded latent columns are 0 and sliced off by the wrapper."""
    w1, b1, w2, b2, w3, b3, w4, b4 = params
    Kp = _round_up(w1.shape[0], 128)
    Hp = _round_up(w2.shape[0], 128)
    Lp = _round_up(w4.shape[1], 128)

    def pad_to(a, shape):
        return jnp.pad(a, [(0, t - s) for s, t in zip(a.shape, shape)])

    return (
        pad_to(w1, (Kp, Hp)).astype(weight_dtype), pad_to(b1, (1, Hp)),
        pad_to(w2, (Hp, Hp)).astype(weight_dtype), pad_to(b2, (1, Hp)),
        pad_to(w3, (Hp, Hp)).astype(weight_dtype), pad_to(b3, (1, Hp)),
        pad_to(w4, (Hp, Lp)).astype(weight_dtype), pad_to(b4, (1, Lp)),
    )


def reference_forward_bf16(x, params):
    """Pure-JAX reference mirroring the kernel numerics (bf16 weights/acts,
    f32 accumulation), using the original unpadded f32 params."""
    w1, b1, w2, b2, w3, b3, w4, b4 = params
    h = x.reshape(x.shape[0], -1).astype(jnp.bfloat16)
    for w, b in ((w1, b1), (w2, b2), (w3, b3)):
        h = jnp.dot(h, w.astype(jnp.bfloat16),
                    preferred_element_type=jnp.float32) + b
        h = jnp.maximum(h, 0.0).astype(jnp.bfloat16)
    return jnp.dot(h, w4.astype(jnp.bfloat16),
                   preferred_element_type=jnp.float32) + b4


def reference_forward_f32(x, params):
    """Original FCEncoder numerics (all f32)."""
    w1, b1, w2, b2, w3, b3, w4, b4 = params
    hp = jax.lax.Precision.HIGHEST
    h = x.reshape(x.shape[0], -1)
    h = jnp.maximum(jnp.dot(h, w1, precision=hp) + b1, 0.0)
    h = jnp.maximum(jnp.dot(h, w2, precision=hp) + b2, 0.0)
    h = jnp.maximum(jnp.dot(h, w3, precision=hp) + b3, 0.0)
    return jnp.dot(h, w4, precision=hp) + b4


if __name__ == "__main__":
    # FCEncoder(channels_in=4, size_in=16, n_latent=32)
    B, C, S = 2, 4, 16
    n_latent = 32
    n_dims_in = C * S * S          # 1024
    n_hidden = 1200                # module spec; padded to 1280 internally

    key = jax.random.PRNGKey(0)
    key, kx = jax.random.split(key)
    x = jax.random.normal(kx, (B, C, S, S), jnp.float32)

    params = init_params(key, n_dims_in, n_hidden, n_latent)
    prep = prepare_params(params)

    z = fc_encoder_forward(x, prep, n_latent=n_latent)
    z = jax.block_until_ready(z)
    assert z.shape == (B, n_latent)

    # Tight check vs a reference mirroring the kernel's own (bf16) numerics.
    z_bf16 = reference_forward_bf16(x, params)
    assert jnp.allclose(z, z_bf16, atol=1e-3, rtol=1e-3), \
        float(jnp.max(jnp.abs(z - z_bf16)))

    # One-off looser check vs the original all-f32 module numerics.
    z_f32 = reference_forward_f32(x, params)
    assert jnp.allclose(z, z_f32, atol=3e-2, rtol=3e-2), \
        float(jnp.max(jnp.abs(z - z_f32)))

    print("KERNEL_OK")
</pallas_src>

<mosaic_0001>
module attributes {stable_mosaic.version = 11 : i64} {
  func.func @fc_encoder_kernel(%arg0: i32, %arg1: memref<8x1024xf32, #tpu.memory_space<vmem>>, %arg2: memref<1024x1280xbf16, #tpu.memory_space<vmem>>, %arg3: memref<1x1280xf32, #tpu.memory_space<vmem>>, %arg4: memref<1280x1280xbf16, #tpu.memory_space<vmem>>, %arg5: memref<1x1280xf32, #tpu.memory_space<vmem>>, %arg6: memref<1280x1280xbf16, #tpu.memory_space<vmem>>, %arg7: memref<1x1280xf32, #tpu.memory_space<vmem>>, %arg8: memref<1280x128xbf16, #tpu.memory_space<vmem>>, %arg9: memref<1x128xf32, #tpu.memory_space<vmem>>, %arg10: memref<8x128xf32, #tpu.memory_space<vmem>>) attributes {dimension_semantics = [#tpu.dimension_semantics<parallel>], iteration_bounds = array<i64: 1>, scalar_prefetch = 0 : i64, scratch_operands = 0 : i64, tpu.core_type = #tpu.core_type<tc>, window_params = [{transform_indices = @transform_0, window_bounds = array<i64: 8, 1024>}, {pipeline_mode = #tpu.pipeline_mode<synchronous>, transform_indices = @transform_1, window_bounds = array<i64: 1024, 1280>}, {pipeline_mode = #tpu.pipeline_mode<synchronous>, transform_indices = @transform_2, window_bounds = array<i64: 1, 1280>}, {pipeline_mode = #tpu.pipeline_mode<synchronous>, transform_indices = @transform_3, window_bounds = array<i64: 1280, 1280>}, {pipeline_mode = #tpu.pipeline_mode<synchronous>, transform_indices = @transform_4, window_bounds = array<i64: 1, 1280>}, {pipeline_mode = #tpu.pipeline_mode<synchronous>, transform_indices = @transform_5, window_bounds = array<i64: 1280, 1280>}, {pipeline_mode = #tpu.pipeline_mode<synchronous>, transform_indices = @transform_6, window_bounds = array<i64: 1, 1280>}, {pipeline_mode = #tpu.pipeline_mode<synchronous>, transform_indices = @transform_7, window_bounds = array<i64: 1280, 128>}, {pipeline_mode = #tpu.pipeline_mode<synchronous>, transform_indices = @transform_8, window_bounds = array<i64: 1, 128>}, {transform_indices = @transform_9, window_bounds = array<i64: 8, 128>}]} {
    %c0 = arith.constant 0 : index
    %c0_0 = arith.constant 0 : index
    %0 = vector.load %arg1[%c0, %c0_0] : memref<8x1024xf32, #tpu.memory_space<vmem>>, vector<8x1024xf32>
    %1 = arith.truncf %0 : vector<8x1024xf32> to vector<8x1024xbf16>
    %c0_1 = arith.constant 0 : index
    %c0_2 = arith.constant 0 : index
    %2 = vector.load %arg2[%c0_1, %c0_2] : memref<1024x1280xbf16, #tpu.memory_space<vmem>>, vector<1024x1280xbf16>
    %cst = arith.constant dense<0.000000e+00> : vector<8x1280xf32>
    %3 = tpu.matmul %1, %2, %cst {dimension_numbers = #tpu.dot_dimension_numbers<[1], [0], [0], [1], [0, 0, 1, 1], [], []>} : vector<8x1024xbf16>, vector<1024x1280xbf16>, vector<8x1280xf32> -> vector<8x1280xf32>
    %c0_3 = arith.constant 0 : index
    %c0_4 = arith.constant 0 : index
    %4 = vector.load %arg3[%c0_3, %c0_4] : memref<1x1280xf32, #tpu.memory_space<vmem>>, vector<1x1280xf32>
    %5 = vector.broadcast %4 : vector<1x1280xf32> to vector<8x1280xf32>
    %6 = arith.addf %3, %5 : vector<8x1280xf32>
    %cst_5 = arith.constant 0.000000e+00 : f32
    %7 = vector.broadcast %cst_5 : f32 to vector<8x1280xf32>
    %8 = arith.maximumf %6, %7 : vector<8x1280xf32>
    %9 = arith.truncf %8 : vector<8x1280xf32> to vector<8x1280xbf16>
    %c0_6 = arith.constant 0 : index
    %c0_7 = arith.constant 0 : index
    %10 = vector.load %arg4[%c0_6, %c0_7] : memref<1280x1280xbf16, #tpu.memory_space<vmem>>, vector<1280x1280xbf16>
    %cst_8 = arith.constant dense<0.000000e+00> : vector<8x1280xf32>
    %11 = tpu.matmul %9, %10, %cst_8 {dimension_numbers = #tpu.dot_dimension_numbers<[1], [0], [0], [1], [0, 0, 1, 1], [], []>} : vector<8x1280xbf16>, vector<1280x1280xbf16>, vector<8x1280xf32> -> vector<8x1280xf32>
    %c0_9 = arith.constant 0 : index
    %c0_10 = arith.constant 0 : index
    %12 = vector.load %arg5[%c0_9, %c0_10] : memref<1x1280xf32, #tpu.memory_space<vmem>>, vector<1x1280xf32>
    %13 = vector.broadcast %12 : vector<1x1280xf32> to vector<8x1280xf32>
    %14 = arith.addf %11, %13 : vector<8x1280xf32>
    %cst_11 = arith.constant 0.000000e+00 : f32
    %15 = vector.broadcast %cst_11 : f32 to vector<8x1280xf32>
    %16 = arith.maximumf %14, %15 : vector<8x1280xf32>
    %17 = arith.truncf %16 : vector<8x1280xf32> to vector<8x1280xbf16>
    %c0_12 = arith.constant 0 : index
    %c0_13 = arith.constant 0 : index
    %18 = vector.load %arg6[%c0_12, %c0_13] : memref<1280x1280xbf16, #tpu.memory_space<vmem>>, vector<1280x1280xbf16>
    %cst_14 = arith.constant dense<0.000000e+00> : vector<8x1280xf32>
    %19 = tpu.matmul %17, %18, %cst_14 {dimension_numbers = #tpu.dot_dimension_numbers<[1], [0], [0], [1], [0, 0, 1, 1], [], []>} : vector<8x1280xbf16>, vector<1280x1280xbf16>, vector<8x1280xf32> -> vector<8x1280xf32>
    %c0_15 = arith.constant 0 : index
    %c0_16 = arith.constant 0 : index
    %20 = vector.load %arg7[%c0_15, %c0_16] : memref<1x1280xf32, #tpu.memory_space<vmem>>, vector<1x1280xf32>
    %21 = vector.broadcast %20 : vector<1x1280xf32> to vector<8x1280xf32>
    %22 = arith.addf %19, %21 : vector<8x1280xf32>
    %cst_17 = arith.constant 0.000000e+00 : f32
    %23 = vector.broadcast %cst_17 : f32 to vector<8x1280xf32>
    %24 = arith.maximumf %22, %23 : vector<8x1280xf32>
    %25 = arith.truncf %24 : vector<8x1280xf32> to vector<8x1280xbf16>
    %c0_18 = arith.constant 0 : index
    %c0_19 = arith.constant 0 : index
    %26 = vector.load %arg8[%c0_18, %c0_19] : memref<1280x128xbf16, #tpu.memory_space<vmem>>, vector<1280x128xbf16>
    %cst_20 = arith.constant dense<0.000000e+00> : vector<8x128xf32>
    %27 = tpu.matmul %25, %26, %cst_20 {dimension_numbers = #tpu.dot_dimension_numbers<[1], [0], [0], [1], [0, 0, 1, 1], [], []>} : vector<8x1280xbf16>, vector<1280x128xbf16>, vector<8x128xf32> -> vector<8x128xf32>
    %c0_21 = arith.constant 0 : index
    %c0_22 = arith.constant 0 : index
    %28 = vector.load %arg9[%c0_21, %c0_22] : memref<1x128xf32, #tpu.memory_space<vmem>>, vector<1x128xf32>
    %29 = vector.broadcast %28 : vector<1x128xf32> to vector<8x128xf32>
    %30 = arith.addf %27, %29 : vector<8x128xf32>
    %c0_23 = arith.constant 0 : index
    %c0_24 = arith.constant 0 : index
    %31 = vector.load %arg10[%c0_23, %c0_24] : memref<8x128xf32, #tpu.memory_space<vmem>>, vector<8x128xf32>
    tpu.vector_store %arg10[%c0_23, %c0_24], %30 {strides = array<i32>} : memref<8x128xf32, #tpu.memory_space<vmem>>, vector<8x128xf32>,
    return
  }
  func.func @transform_0(%arg0: i32) -> (i32, i32) {
    %c0_i32 = arith.constant 0 : i32
    %c0_i32_0 = arith.constant 0 : i32
    return %arg0, %c0_i32 : i32, i32
  }
  func.func @transform_1(%arg0: i32) -> (i32, i32) {
    %c0_i32 = arith.constant 0 : i32
    %c0_i32_0 = arith.constant 0 : i32
    %c0_i32_1 = arith.constant 0 : i32
    return %c0_i32, %c0_i32_0 : i32, i32
  }
  func.func @transform_2(%arg0: i32) -> (i32, i32) {
    %c0_i32 = arith.constant 0 : i32
    %c0_i32_0 = arith.constant 0 : i32
    %c0_i32_1 = arith.constant 0 : i32
    return %c0_i32, %c0_i32_0 : i32, i32
  }
  func.func @transform_3(%arg0: i32) -> (i32, i32) {
    %c0_i32 = arith.constant 0 : i32
    %c0_i32_0 = arith.constant 0 : i32
    %c0_i32_1 = arith.constant 0 : i32
    return %c0_i32, %c0_i32_0 : i32, i32
  }
  func.func @transform_4(%arg0: i32) -> (i32, i32) {
    %c0_i32 = arith.constant 0 : i32
    %c0_i32_0 = arith.constant 0 : i32
    %c0_i32_1 = arith.constant 0 : i32
    return %c0_i32, %c0_i32_0 : i32, i32
  }
  func.func @transform_5(%arg0: i32) -> (i32, i32) {
    %c0_i32 = arith.constant 0 : i32
    %c0_i32_0 = arith.constant 0 : i32
    %c0_i32_1 = arith.constant 0 : i32
    return %c0_i32, %c0_i32_0 : i32, i32
  }
  func.func @transform_6(%arg0: i32) -> (i32, i32) {
    %c0_i32 = arith.constant 0 : i32
    %c0_i32_0 = arith.constant 0 : i32
    %c0_i32_1 = arith.constant 0 : i32
    return %c0_i32, %c0_i32_0 : i32, i32
  }
  func.func @transform_7(%arg0: i32) -> (i32, i32) {
    %c0_i32 = arith.constant 0 : i32
    %c0_i32_0 = arith.constant 0 : i32
    %c0_i32_1 = arith.constant 0 : i32
    return %c0_i32, %c0_i32_0 : i32, i32
  }
  func.func @transform_8(%arg0: i32) -> (i32, i32) {
    %c0_i32 = arith.constant 0 : i32
    %c0_i32_0 = arith.constant 0 : i32
    %c0_i32_1 = arith.constant 0 : i32
    return %c0_i32, %c0_i32_0 : i32, i32
  }
  func.func @transform_9(%arg0: i32) -> (i32, i32) {
    %c0_i32 = arith.constant 0 : i32
    %c0_i32_0 = arith.constant 0 : i32
    return %arg0, %c0_i32 : i32, i32
  }
}

</mosaic_0001>

<bundles_post_ra>
// kernel: tpu_custom_call.1
= control target key start
LH: loop header
LB: loop body
LE: loop exit
PB: predicated region body
PF: predicated region fallthrough
CT: control target
= control target key end

     0   :  { %14 = vsyncpa [#allocation3], 0  ;;  %s24254_s0 = inlined_call_operand.hbm [shape: f32[8,1024], index: 0, kind: input, shape index: {}]   ;;  %s24255_s1 = inlined_call_operand.hbm [shape: bf16[1024,1280], index: 1, kind: input, shape index: {}]   ;;  %s24256_s2 = inlined_call_operand.hbm [shape: f32[1,1280], index: 2, kind: input, shape index: {}]   ;;  %s24257_s3 = inlined_call_operand.hbm [shape: bf16[1280,1280], index: 3, kind: input, shape index: {}]   ;;  %s24258_s4 = inlined_call_operand.hbm [shape: f32[1,1280], index: 4, kind: input, shape index: {}]   ;;  %s24259_s5 = inlined_call_operand.hbm [shape: bf16[1280,1280], index: 5, kind: input, shape index: {}]   ;;  %s24260_s6 = inlined_call_operand.hbm [shape: f32[1,1280], index: 6, kind: input, shape index: {}]   ;;  %s24261_s7 = inlined_call_operand.hbm [shape: bf16[1280,128], index: 7, kind: input, shape index: {}]   ;;  %s24262_s8 = inlined_call_operand.hbm [shape: f32[1,128], index: 8, kind: input, shape index: {}]   ;;  %s24263_s9 = inlined_call_operand.hbm [shape: f32[8,128], index: 9, kind: output, shape index: {}]  }
   0x1   :  { %15 = vsyncpa [#allocation6], 0 }
   0x2   :  { %16 = vsyncpa [#allocation9], 0 }
   0x3   :  { %17 = vsyncpa [#allocation12], 0 }
   0x4   :  { %18 = vsyncpa [#allocation15], 0 }
   0x5   :  { %19 = vsyncpa [#allocation4], 0  ;;  %s23664_s30 = smov [#allocation5]  }
   0x6   :  { %s35_s10 = sshll.u32 %s23664_s30, 4  ;;  %s36_s10 = int_to_ptr.vmem [resolvable:$true] %s35_s10 }
   0x7   :  { %s23460_s11 = scalar_lea.vmem %s36_s10, 81920  ;;  %p23465_p1 = scmp.lt.s32.totalorder %s36_s10, %s36_s10 }
   0x8   :  { %p23461_p0 = scmp.ne.s32.totalorder %s36_s10, %s23460_s11  ;;  %p23466_p2 = scmp.lt.s32.totalorder %s23460_s11, %s23460_s11 }
   0xa   :  { %p23467_p3 = por %p23466_p2, %p23465_p1 }
   0xc   :  { %p23468_p4 = pnand %p23467_p3, %p23461_p0 }
   0xe   :  { %23471 = shalt.err (!%p23468_p4)
}
   0xf   :  { %s23665_s12 = smov 640   ;;  %s23666_s13 = smov 40  }
  0x10   :  { %41 = dma.hbm_to_vmem [thread:$0]  %s24255_s1, 81920, %s36_s10, [#allocation6], %s23665_s12, %s23665_s12, %s23666_s13  }
  0x11   :  { %s23667_s16 = smov [#allocation8]   ;;  %s23668_s18 = smov [#allocation11]  }
  0x12   :  { %s57_s17 = sshll.u32 %s23667_s16, 4  ;;  %s79_s19 = sshll.u32 %s23668_s18, 4  ;;  %s58_s17 = int_to_ptr.vmem [resolvable:$true] %s57_s17  ;;  %s80_s19 = int_to_ptr.vmem [resolvable:$true] %s79_s19 }
  0x13   :  { %s23480_s20 = scalar_lea.vmem %s58_s17, 102400  ;;  %p23485_p6 = scmp.lt.s32.totalorder %s58_s17, %s58_s17 }
  0x14   :  { %p23481_p5 = scmp.ne.s32.totalorder %s58_s17, %s23480_s20  ;;  %p23486_p7 = scmp.lt.s32.totalorder %s23480_s20, %s23480_s20 }
  0x16   :  { %p23487_p8 = por %p23486_p7, %p23485_p6 }
  0x18   :  { %p23488_p9 = pnand %p23487_p8, %p23481_p5 }
  0x1a   :  { %23491 = shalt.err (!%p23488_p9)
}
  0x1b   :  { %63 = dma.hbm_to_vmem [thread:$0]  %s24257_s3, 102400, %s58_s17, [#allocation9], %s23665_s12, %s23665_s12, %s23666_s13  }
  0x1c   :  { %s23500_s23 = scalar_lea.vmem %s80_s19, 102400  ;;  %p23505_p11 = scmp.lt.s32.totalorder %s80_s19, %s80_s19 }
  0x1d   :  { %p23501_p10 = scmp.ne.s32.totalorder %s80_s19, %s23500_s23  ;;  %p23506_p12 = scmp.lt.s32.totalorder %s23500_s23, %s23500_s23 }
  0x1f   :  { %p23507_p13 = por %p23506_p12, %p23505_p11 }
  0x21   :  { %p23508_p0 = pnand %p23507_p13, %p23501_p10 }
  0x23   :  { %23511 = shalt.err (!%p23508_p0)
}
  0x24   :  { %85 = dma.hbm_to_vmem [thread:$0]  %s24259_s5, 102400, %s80_s19, [#allocation12], %s23665_s12, %s23665_s12, %s23666_s13  }
  0x25   :  { %s23669_s25 = smov [#allocation14]  }
  0x26   :  { %s101_s26 = sshll.u32 %s23669_s25, 4  ;;  %s102_s26 = int_to_ptr.vmem [resolvable:$true] %s101_s26 }
  0x27   :  { %s23520_s27 = scalar_lea.vmem %s102_s26, 10240  ;;  %p23525_p2 = scmp.lt.s32.totalorder %s102_s26, %s102_s26 }
  0x28   :  { %p23521_p1 = scmp.ne.s32.totalorder %s102_s26, %s23520_s27  ;;  %p23526_p3 = scmp.lt.s32.totalorder %s23520_s27, %s23520_s27 }
  0x2a   :  { %p23527_p4 = por %p23526_p3, %p23525_p2 }
  0x2c   :  { %p23528_p5 = pnand %p23527_p4, %p23521_p1 }
  0x2e   :  { %23531 = shalt.err (!%p23528_p5)
}
  0x2f   :  { %s23670_s3 = smov 64   ;;  %s23671_s28 = smov 4  }
  0x30   :  { %107 = dma.hbm_to_vmem [thread:$0]  %s24261_s7, 10240, %s102_s26, [#allocation15], %s23670_s3, %s23670_s3, %s23671_s28  }
  0x31   :  { %s23672_s10 = smov [#allocation2]   ;;  %s23673_s14 = smov [#allocation7]  }
  0x32   :  { %s26_s11 = sshll.u32 %s23672_s10, 4  ;;  %s48_s5 = sshll.u32 %s23673_s14, 4  ;;  %s27_s11 = int_to_ptr.vmem [resolvable:$true] %s26_s11  ;;  %s49_s5 = int_to_ptr.vmem [resolvable:$true] %s48_s5 }
  0x33   :  { %s23540_s12 = scalar_lea.vmem %s27_s11, 1024  ;;  %p23545_p7 = scmp.lt.s32.totalorder %s27_s11, %s27_s11 }
  0x34   :  { %p23541_p6 = scmp.ne.s32.totalorder %s27_s11, %s23540_s12  ;;  %p23546_p8 = scmp.lt.s32.totalorder %s23540_s12, %s23540_s12 }
  0x36   :  { %p23547_p9 = por %p23546_p8, %p23545_p7 }
  0x38   :  { %p23548_p10 = pnand %p23547_p9, %p23541_p6 }
  0x3a   :  { %23551 = shalt.err (!%p23548_p10)
}
  0x3b   :  { %29 = dma.hbm_to_vmem [thread:$0]  %s24254_s0, 1024, %s27_s11, [#allocation3]  }
  0x3c   :  { %s23560_s16 = scalar_lea.vmem %s49_s5, 160  ;;  %p23565_p12 = scmp.lt.s32.totalorder %s49_s5, %s49_s5 }
  0x3d   :  { %p23561_p11 = scmp.ne.s32.totalorder %s49_s5, %s23560_s16  ;;  %p23566_p13 = scmp.lt.s32.totalorder %s23560_s16, %s23560_s16 }
  0x3f   :  { %p23567_p0 = por %p23566_p13, %p23565_p12 }
  0x41   :  { %p23568_p1 = pnand %p23567_p0, %p23561_p11 }
  0x43   :  { %23571 = shalt.err (!%p23568_p1)
}
  0x44   :  { %51 = dma.hbm_to_vmem [thread:$0]  %s24256_s2, 160, %s49_s5, [#allocation6]  }
  0x45   :  { %s23674_s18 = smov [#allocation10]   ;;  %s23675_s20 = smov [#allocation13]  }
  0x46   :  { %s70_s19 = sshll.u32 %s23674_s18, 4  ;;  %s92_s21 = sshll.u32 %s23675_s20, 4  ;;  %s71_s19 = int_to_ptr.vmem [resolvable:$true] %s70_s19  ;;  %s93_s21 = int_to_ptr.vmem [resolvable:$true] %s92_s21 }
  0x47   :  { %s23580_s22 = scalar_lea.vmem %s71_s19, 160  ;;  %p23585_p3 = scmp.lt.s32.totalorder %s71_s19, %s71_s19 }
  0x48   :  { %p23581_p2 = scmp.ne.s32.totalorder %s71_s19, %s23580_s22  ;;  %p23586_p4 = scmp.lt.s32.totalorder %s23580_s22, %s23580_s22 }
  0x4a   :  { %p23587_p5 = por %p23586_p4, %p23585_p3 }
  0x4c   :  { %p23588_p6 = pnand %p23587_p5, %p23581_p2 }
  0x4e   :  { %23591 = shalt.err (!%p23588_p6)
}
  0x4f   :  { %73 = dma.hbm_to_vmem [thread:$0]  %s24258_s4, 160, %s71_s19, [#allocation9]  }
  0x50   :  { %s23600_s1 = scalar_lea.vmem %s93_s21, 160  ;;  %p23605_p8 = scmp.lt.s32.totalorder %s93_s21, %s93_s21 }
  0x51   :  { %p23601_p7 = scmp.ne.s32.totalorder %s93_s21, %s23600_s1  ;;  %p23606_p9 = scmp.lt.s32.totalorder %s23600_s1, %s23600_s1 }
  0x53   :  { %p23607_p10 = por %p23606_p9, %p23605_p8 }
  0x55   :  { %p23608_p11 = pnand %p23607_p10, %p23601_p7 }
  0x57   :  { %23611 = shalt.err (!%p23608_p11)
}
  0x58   :  { %95 = dma.hbm_to_vmem [thread:$0]  %s24260_s6, 160, %s93_s21, [#allocation12]  }
  0x59   :  { %s23676_s25 = smov [#allocation16]  }
  0x5a   :  { %s114_s26 = sshll.u32 %s23676_s25, 4  ;;  %s115_s26 = int_to_ptr.vmem [resolvable:$true] %s114_s26 }
  0x5b   :  { %s23620_s27 = scalar_lea.vmem %s115_s26, 16  ;;  %s23624_s3 = scalar_lea.vmem %s115_s26, 32 }
  0x5c   :  { %p23621_p12 = scmp.ne.s32.totalorder %s115_s26, %s23620_s27  ;;  %p23625_p13 = scmp.lt.s32.totalorder %s115_s26, %s115_s26 }
  0x5d   :  { %p23626_p0 = scmp.lt.s32.totalorder %s23624_s3, %s23620_s27 }
  0x5f   :  { %p23627_p1 = por %p23626_p0, %p23625_p13 }
  0x61   :  { %p23628_p2 = pnand %p23627_p1, %p23621_p12 }
  0x63   :  { %23631 = shalt.err (!%p23628_p2)
}
  0x64   :  { %117 = dma.hbm_to_vmem [thread:$0]  %s24262_s8, 16, %s115_s26, [#allocation15]  }
  0x65   :  { %23652 = dma.done.wait [#allocation3], 1024  }
  0x66   :  { %23653 = vsyncadd [#allocation3], 4294966272 }
  0x67   :  { %23654 = dma.done.wait [#allocation6], 82080  }
  0x68   :  { %23655 = vsyncadd [#allocation6], 4294885216 }
  0x69   :  { %23656 = dma.done.wait [#allocation9], 102560  }
  0x6a   :  { %23657 = vsyncadd [#allocation9], 4294864736 }
  0x6b   :  { %23658 = dma.done.wait [#allocation12], 102560  }
  0x6c   :  { %23659 = vsyncadd [#allocation12], 4294864736 }
  0x6d   :  { %23660 = dma.done.wait [#allocation15], 10256  }
  0x6e   :  { %23661 = vsyncadd [#allocation15], 4294957040  ;;  %v20006_v0 = vld [vmem:[#allocation5 + $0x234] ss:$40 sps:$4 sm:$0xff]   ;;  %v20010_v2 = vld [vmem:[#allocation5 + $0x230] ss:$40 sps:$4 sm:$0xff]  }
  0x6f   :  { %v20008_v1 = vld [vmem:[#allocation5 + $0x734] ss:$40 sps:$4 sm:$0xff]   ;;  %4056 = vmatprep.subr.bf16.mxu0 %v20006_v0  ;;  %v20011_v3 = vld [vmem:[#allocation5 + $0x730] ss:$40 sps:$4 sm:$0xff]   ;;  %v20012_v4 = vld [vmem:[#allocation5 + $0x1e4] ss:$40 sps:$4 sm:$0xff]  }
  0x70   :  { %4097 = vmatprep.subr.bf16.mxu1 %v20008_v1  ;;  %4057 = vmatpush1.bf16.msra.mxu0 %v20010_v2  ;;  %v20014_v5 = vld [vmem:[#allocation5 + $0x6e4] ss:$40 sps:$4 sm:$0xff]   ;;  %v20016_v6 = vld [vmem:[#allocation5 + $0x1e0] ss:$40 sps:$4 sm:$0xff]   ;;  %v20018_v8 = vld [vmem:[#allocation5 + $0x194] ss:$40 sps:$4 sm:$0xff]  }
  0x71   :  { %4098 = vmatpush1.bf16.msra.mxu1 %v20011_v3  ;;  %4058 = vmatprep.subr.bf16.mxu0 %v20012_v4  ;;  %v20017_v7 = vld [vmem:[#allocation5 + $0x6e0] ss:$40 sps:$4 sm:$0xff]   ;;  %v20020_v9 = vld [vmem:[#allocation5 + $0x694] ss:$40 sps:$4 sm:$0xff]   ;;  %v20022_v10 = vld [vmem:[#allocation5 + $0x190] ss:$40 sps:$4 sm:$0xff]  }
  0x72   :  { %4099 = vmatprep.subr.bf16.mxu1 %v20014_v5  ;;  %v20023_v11 = vld [vmem:[#allocation5 + $0x690] ss:$40 sps:$4 sm:$0xff]   ;;  %v20024_v12 = vld [vmem:[#allocation5 + $0x144] ss:$40 sps:$4 sm:$0xff]   ;;  %v20028_v14 = vld [vmem:[#allocation5 + $0x140] ss:$40 sps:$4 sm:$0xff]  }
  0x73   :  { %v20026_v13 = vld [vmem:[#allocation5 + $0x644] ss:$40 sps:$4 sm:$0xff]   ;;  %v20029_v15 = vld [vmem:[#allocation5 + $0x640] ss:$40 sps:$4 sm:$0xff]   ;;  %v20030_v16 = vld [vmem:[#allocation5 + $0xf4] ss:$40 sps:$4 sm:$0xff]  }
  0x74   :  { %4059 = vmatpush1.bf16.msra.mxu0 %v20016_v6  ;;  %v20032_v17 = vld [vmem:[#allocation5 + $0x5f4] ss:$40 sps:$4 sm:$0xff]   ;;  %v20034_v18 = vld [vmem:[#allocation5 + $0xf0] ss:$40 sps:$4 sm:$0xff]   ;;  %v20036_v20 = vld [vmem:[#allocation5 + $0xa4] ss:$40 sps:$4 sm:$0xff]  }
  0x75   :  { %4100 = vmatpush1.bf16.msra.mxu1 %v20017_v7  ;;  %4060 = vmatprep.subr.bf16.mxu0 %v20018_v8  ;;  %v20035_v19 = vld [vmem:[#allocation5 + $0x5f0] ss:$40 sps:$4 sm:$0xff]   ;;  %v20038_v21 = vld [vmem:[#allocation5 + $0x5a4] ss:$40 sps:$4 sm:$0xff]   ;;  %v20040_v22 = vld [vmem:[#allocation5 + $0xa0] ss:$40 sps:$4 sm:$0xff]  }
  0x76   :  { %4101 = vmatprep.subr.bf16.mxu1 %v20020_v9  ;;  %v20041_v23 = vld [vmem:[#allocation5 + $0x5a0] ss:$40 sps:$4 sm:$0xff]   ;;  %v20042_v24 = vld [vmem:[#allocation5 + $0x54] ss:$40 sps:$4 sm:$0xff]   ;;  %v20046_v26 = vld [vmem:[#allocation5 + $0x50] ss:$40 sps:$4 sm:$0xff]  }
  0x77   :  { %v20044_v25 = vld [vmem:[#allocation5 + $0x554] ss:$40 sps:$4 sm:$0xff]   ;;  %v20047_v27 = vld [vmem:[#allocation5 + $0x550] ss:$40 sps:$4 sm:$0xff]   ;;  %v20048_v28 = vld [vmem:[#allocation5 + $0x4] ss:$40 sps:$4 sm:$0xff]  }
  0x78   :  { %4061 = vmatpush1.bf16.msra.mxu0 %v20022_v10  ;;  %v20050_v29 = vld [vmem:[#allocation5 + $0x504] ss:$40 sps:$4 sm:$0xff]   ;;  %v20052_v30 = vld [vmem:[#allocation5] ss:$40 sps:$4 sm:$0xff]   ;;  %v20054_v32 = vld [vmem:[#allocation5 + $0x4b4] ss:$40 sps:$4 sm:$0xff]  }
  0x79   :  { %4102 = vmatpush1.bf16.msra.mxu1 %v20023_v11  ;;  %4062 = vmatprep.subr.bf16.mxu0 %v20024_v12  ;;  %v20053_v31 = vld [vmem:[#allocation5 + $0x500] ss:$40 sps:$4 sm:$0xff]   ;;  %v20056_v33 = vld [vmem:[#allocation5 + $0x9b4] ss:$40 sps:$4 sm:$0xff]   ;;  %v20058_v34 = vld [vmem:[#allocation5 + $0x4b0] ss:$40 sps:$4 sm:$0xff]  }
  0x7a   :  { %4103 = vmatprep.subr.bf16.mxu1 %v20026_v13  ;;  %v20059_v35 = vld [vmem:[#allocation5 + $0x9b0] ss:$40 sps:$4 sm:$0xff]   ;;  %v20060_v36 = vld [vmem:[#allocation5 + $0x464] ss:$40 sps:$4 sm:$0xff]   ;;  %v20064_v38 = vld [vmem:[#allocation5 + $0x460] ss:$40 sps:$4 sm:$0xff]  }
  0x7b   :  { %v20062_v37 = vld [vmem:[#allocation5 + $0x964] ss:$40 sps:$4 sm:$0xff]   ;;  %v20065_v39 = vld [vmem:[#allocation5 + $0x960] ss:$40 sps:$4 sm:$0xff]   ;;  %v20066_v40 = vld [vmem:[#allocation5 + $0x414] ss:$40 sps:$4 sm:$0xff]  }
  0x7c   :  { %4063 = vmatpush1.bf16.msra.mxu0 %v20028_v14  ;;  %v20068_v41 = vld [vmem:[#allocation5 + $0x914] ss:$40 sps:$4 sm:$0xff]   ;;  %v20070_v42 = vld [vmem:[#allocation5 + $0x410] ss:$40 sps:$4 sm:$0xff]   ;;  %v20072_v44 = vld [vmem:[#allocation5 + $0x3c4] ss:$40 sps:$4 sm:$0xff]  }
  0x7d   :  { %4104 = vmatpush1.bf16.msra.mxu1 %v20029_v15  ;;  %4064 = vmatprep.subr.bf16.mxu0 %v20030_v16  ;;  %v20071_v43 = vld [vmem:[#allocation5 + $0x910] ss:$40 sps:$4 sm:$0xff]   ;;  %v20074_v45 = vld [vmem:[#allocation5 + $0x8c4] ss:$40 sps:$4 sm:$0xff]   ;;  %v20076_v47 = vld [vmem:[#allocation5 + $0x3c0] ss:$40 sps:$4 sm:$0xff]  }
  0x7e   :  { %4105 = vmatprep.subr.bf16.mxu1 %v20032_v17  ;;  %v147_v46 = vld [vmem:[#allocation2 + $0x8] sm:$0xff]  ;;  %v149_v50 = vld [vmem:[#allocation2 + $0x18] sm:$0xff]  ;;  %v146_v4 = vld [vmem:[#allocation2] sm:$0xff]  ;;  %s23677_s6 = smov [#allocation17]  }
  0x7f   :  { %v20077_v48 = vld [vmem:[#allocation5 + $0x8c0] ss:$40 sps:$4 sm:$0xff]   ;;  %v23755_v49 = vpack.c.bf16 %v147_v46, %v147_v46  ;;  %v20078_v51 = vld [vmem:[#allocation5 + $0x374] ss:$40 sps:$4 sm:$0xff]   ;;  %v23757_v52 = vpack.c.bf16 %v149_v50, %v149_v50  ;;  %v20082_v54 = vld [vmem:[#allocation5 + $0x370] ss:$40 sps:$4 sm:$0xff]   ;;  %v23761_v8 = vpack.c.bf16 %v146_v4, %v146_v4 }
  0x80   :  { %4065 = vmatpush1.bf16.msra.mxu0 %v20034_v18  ;;  %v20080_v53 = vld [vmem:[#allocation5 + $0x874] ss:$40 sps:$4 sm:$0xff]   ;;  %v20083_v55 = vld [vmem:[#allocation5 + $0x870] ss:$40 sps:$4 sm:$0xff]   ;;  %v20084_v56 = vld [vmem:[#allocation5 + $0x324] ss:$40 sps:$4 sm:$0xff]  }
  0x81   :  { %4106 = vmatpush1.bf16.msra.mxu1 %v20035_v19  ;;  %4066 = vmatprep.subr.bf16.mxu0 %v20036_v20  ;;  %v20086_v57 = vld [vmem:[#allocation5 + $0x824] ss:$40 sps:$4 sm:$0xff]   ;;  %v20088_v58 = vld [vmem:[#allocation5 + $0x320] ss:$40 sps:$4 sm:$0xff]   ;;  %v20090_v60 = vld [vmem:[#allocation5 + $0x2d4] ss:$40 sps:$4 sm:$0xff]  }
  0x82   :  { %4107 = vmatprep.subr.bf16.mxu1 %v20038_v21  ;;  %4088 = vmatprep.mubr.bf16.mxu0 %v23755_v49  ;;  %v20089_v59 = vld [vmem:[#allocation5 + $0x820] ss:$40 sps:$4 sm:$0xff]   ;;  %v20092_v61 = vld [vmem:[#allocation5 + $0x7d4] ss:$40 sps:$4 sm:$0xff]   ;;  %v20094_v62 = vld [vmem:[#allocation5 + $0x2d0] ss:$40 sps:$4 sm:$0xff]  }
  0x83   :  { %4129 = vmatprep.mubr.bf16.mxu1 %v23757_v52  ;;  %v20095_v63 = vld [vmem:[#allocation5 + $0x7d0] ss:$40 sps:$4 sm:$0xff]   ;;  %v20096_v0 = vld [vmem:[#allocation5 + $0x284] ss:$40 sps:$4 sm:$0xff]   ;;  %v20100_v2 = vld [vmem:[#allocation5 + $0x280] ss:$40 sps:$4 sm:$0xff]  }
  0x84   :  { %4067 = vmatpush1.bf16.msra.mxu0 %v20040_v22  ;;  %v20098_v1 = vld [vmem:[#allocation5 + $0x784] ss:$40 sps:$4 sm:$0xff]   ;;  %v20101_v3 = vld [vmem:[#allocation5 + $0x780] ss:$40 sps:$4 sm:$0xff]   ;;  %v148_v5 = vld [vmem:[#allocation2 + $0x10] sm:$0xff]  ;;  %s17548_s8 = sshll.u32 %s23677_s6, 4  ;;  %s17549_s8 = int_to_ptr.vmem [resolvable:$true] %s17548_s8 }
  0x85   :  { %4108 = vmatpush1.bf16.msra.mxu1 %v20041_v23  ;;  %4068 = vmatprep.subr.bf16.mxu0 %v20042_v24  ;;  %v20104_v6 = vld [vmem:[#allocation5 + $0xc34] ss:$40 sps:$4 sm:$0xff]   ;;  %v23763_v9 = vpack.c.bf16 %v148_v5, %v148_v5  ;;  %v20102_v10 = vld [vmem:[#allocation5 + $0xc30] ss:$40 sps:$4 sm:$0xff]   ;;  %v20110_v12 = vld [vmem:[#allocation5 + $0xbe4] ss:$40 sps:$4 sm:$0xff]   ;;  %p23637_p4 = scmp.lt.s32.totalorder %s17549_s8, %s17549_s8 }
  0x86   :  { %4109 = vmatprep.subr.bf16.mxu1 %v20044_v25  ;;  %v20107_v7 = vld [vmem:[#allocation5 + $0x1134] ss:$40 sps:$4 sm:$0xff]   ;;  %v20105_v11 = vld [vmem:[#allocation5 + $0x1130] ss:$40 sps:$4 sm:$0xff]   ;;  %v20113_v13 = vld [vmem:[#allocation5 + $0x10e4] ss:$40 sps:$4 sm:$0xff]  }
  0x87   :  { %v20108_v14 = vld [vmem:[#allocation5 + $0xbe0] ss:$40 sps:$4 sm:$0xff]   ;;  %v20116_v16 = vld [vmem:[#allocation5 + $0xb94] ss:$40 sps:$4 sm:$0xff]   ;;  %v20114_v18 = vld [vmem:[#allocation5 + $0xb90] ss:$40 sps:$4 sm:$0xff]  }
  0x88   :  { %4069 = vmatpush1.bf16.msra.mxu0 %v20046_v26  ;;  %v20111_v15 = vld [vmem:[#allocation5 + $0x10e0] ss:$40 sps:$4 sm:$0xff]   ;;  %v20119_v17 = vld [vmem:[#allocation5 + $0x1094] ss:$40 sps:$4 sm:$0xff]   ;;  %v20117_v19 = vld [vmem:[#allocation5 + $0x1090] ss:$40 sps:$4 sm:$0xff]  }
  0x89   :  { %4110 = vmatpush1.bf16.msra.mxu1 %v20047_v27  ;;  %4070 = vmatprep.subr.bf16.mxu0 %v20048_v28  ;;  %v20122_v20 = vld [vmem:[#allocation5 + $0xb44] ss:$40 sps:$4 sm:$0xff]   ;;  %v20120_v22 = vld [vmem:[#allocation5 + $0xb40] ss:$40 sps:$4 sm:$0xff]   ;;  %v20128_v24 = vld [vmem:[#allocation5 + $0xaf4] ss:$40 sps:$4 sm:$0xff]  }
  0x8a   :  { %4111 = vmatprep.subr.bf16.mxu1 %v20050_v29  ;;  %v20125_v21 = vld [vmem:[#allocation5 + $0x1044] ss:$40 sps:$4 sm:$0xff]   ;;  %v20123_v23 = vld [vmem:[#allocation5 + $0x1040] ss:$40 sps:$4 sm:$0xff]   ;;  %v20131_v25 = vld [vmem:[#allocation5 + $0xff4] ss:$40 sps:$4 sm:$0xff]  }
  0x8b   :  { %v20126_v26 = vld [vmem:[#allocation5 + $0xaf0] ss:$40 sps:$4 sm:$0xff]   ;;  %v20134_v28 = vld [vmem:[#allocation5 + $0xaa4] ss:$40 sps:$4 sm:$0xff]   ;;  %v20180_v4 = vld [vmem:[#allocation5 + $0xd20] ss:$40 sps:$4 sm:$0xff]  }
  0x8c   :  { %4071 = vmatpush1.bf16.msra.mxu0 %v20052_v30  ;;  %v20129_v27 = vld [vmem:[#allocation5 + $0xff0] ss:$40 sps:$4 sm:$0xff]   ;;  %v20137_v29 = vld [vmem:[#allocation5 + $0xfa4] ss:$40 sps:$4 sm:$0xff]   ;;  %v20132_v30 = vld [vmem:[#allocation5 + $0xaa0] ss:$40 sps:$4 sm:$0xff]  }
  0x8d   :  { %4112 = vmatpush1.bf16.msra.mxu1 %v20053_v31  ;;  %4072 = vmatprep.subr.bf16.mxu0 %v20054_v32  ;;  %v20135_v31 = vld [vmem:[#allocation5 + $0xfa0] ss:$40 sps:$4 sm:$0xff]   ;;  %v20140_v32 = vld [vmem:[#allocation5 + $0xa54] ss:$40 sps:$4 sm:$0xff]   ;;  %v20150_v46 = vld [vmem:[#allocation5 + $0xeb0] ss:$40 sps:$4 sm:$0xff]  }
  0x8e   :  { %4113 = vmatprep.subr.bf16.mxu1 %v20056_v33  ;;  %v20143_v33 = vld [vmem:[#allocation5 + $0xf54] ss:$40 sps:$4 sm:$0xff]   ;;  %v20161_v50 = vld [vmem:[#allocation5 + $0x1364] ss:$40 sps:$4 sm:$0xff]   ;;  %v20183_v5 = vld [vmem:[#allocation5 + $0x1220] ss:$40 sps:$4 sm:$0xff]  }
  0x8f   :  { %s23632_s29 = scalar_lea.vmem %s17549_s8, 128 }
  0x90   :  { %4073 = vmatpush2.bf16.msra.mxu0 %v20058_v34  ;;  %v151_v34 = vld [vmem:[#allocation2 + $0x28] sm:$0xff]  ;;  %p23633_p3 = scmp.ne.s32.totalorder %s17549_s8, %s23632_s29  ;;  %p23638_p5 = scmp.lt.s32.totalorder %s23632_s29, %s23632_s29 }
  0x91   :  { %4114 = vmatpush2.bf16.msra.mxu1 %v20059_v35  ;;  %4074 = vmatprep.subr.bf16.mxu0 %v20060_v36  ;;  %v20138_v35 = vld [vmem:[#allocation5 + $0xa50] ss:$40 sps:$4 sm:$0xff]  }
  0x92   :  { %4115 = vmatprep.subr.bf16.mxu1 %v20062_v37  ;;  %v20141_v36 = vld [vmem:[#allocation5 + $0xf50] ss:$40 sps:$4 sm:$0xff]   ;;  %v23767_v37 = vpack.c.bf16 %v151_v34, %v151_v34  ;;  %p23639_p6 = por %p23638_p5, %p23637_p4 }
  0x93   :  { %v20216_v34 = vld [vmem:[#allocation5 + $0x148] ss:$40 sps:$4 sm:$0xff]  }
  0x94   :  { %4075 = vmatpush2.bf16.msra.mxu0 %v20064_v38  ;;  %v153_v38 = vld [vmem:[#allocation2 + $0x38] sm:$0xff]  ;;  %p23640_p7 = pnand %p23639_p6, %p23633_p3 }
  0x95   :  { %4116 = vmatpush2.bf16.msra.mxu1 %v20065_v39  ;;  %4076 = vmatprep.subr.bf16.mxu0 %v20066_v40  ;;  %v20146_v39 = vld [vmem:[#allocation5 + $0xa04] ss:$40 sps:$4 sm:$0xff]   ;;  %v23769_v40 = vpack.c.bf16 %v153_v38, %v153_v38 }
  0x96   :  { %4117 = vmatprep.subr.bf16.mxu1 %v20068_v41  ;;  %v20149_v41 = vld [vmem:[#allocation5 + $0xf04] ss:$40 sps:$4 sm:$0xff]  }
  0x97   :  { %v20227_v38 = vld [vmem:[#allocation5 + $0x5fc] ss:$40 sps:$4 sm:$0xff]  }
  0x98   :  { %4077 = vmatpush2.bf16.msra.mxu0 %v20070_v42  ;;  %v20144_v42 = vld [vmem:[#allocation5 + $0xa00] ss:$40 sps:$4 sm:$0xff]  }
  0x99   :  { %4118 = vmatpush2.bf16.msra.mxu1 %v20071_v43  ;;  %4078 = vmatprep.subr.bf16.mxu0 %v20072_v44  ;;  %v20147_v43 = vld [vmem:[#allocation5 + $0xf00] ss:$40 sps:$4 sm:$0xff]   ;;  %v20152_v44 = vld [vmem:[#allocation5 + $0xeb4] ss:$40 sps:$4 sm:$0xff]  }
  0x9a   :  { %4119 = vmatprep.subr.bf16.mxu1 %v20074_v45  ;;  %v20155_v45 = vld [vmem:[#allocation5 + $0x13b4] ss:$40 sps:$4 sm:$0xff]  }
  0x9c   :  { %4079 = vmatpush2.bf16.msra.mxu0 %v20076_v47  ;;  %v20153_v47 = vld [vmem:[#allocation5 + $0x13b0] ss:$40 sps:$4 sm:$0xff]  }
  0x9d   :  { %4120 = vmatpush2.bf16.msra.mxu1 %v20077_v48  ;;  %4080 = vmatprep.subr.bf16.mxu0 %v20078_v51  ;;  %v20158_v48 = vld [vmem:[#allocation5 + $0xe64] ss:$40 sps:$4 sm:$0xff]   ;;  %v20156_v51 = vld [vmem:[#allocation5 + $0xe60] ss:$40 sps:$4 sm:$0xff]  }
  0x9e   :  { %4121 = vmatprep.subr.bf16.mxu1 %v20080_v53  ;;  %v20159_v53 = vld [vmem:[#allocation5 + $0x1360] ss:$40 sps:$4 sm:$0xff]  }
  0xa0   :  { %4081 = vmatpush2.bf16.msra.mxu0 %v20082_v54  ;;  %v20164_v54 = vld [vmem:[#allocation5 + $0xe14] ss:$40 sps:$4 sm:$0xff]  }
  0xa1   :  { %4122 = vmatpush2.bf16.msra.mxu1 %v20083_v55  ;;  %4082 = vmatprep.subr.bf16.mxu0 %v20084_v56  ;;  %v20167_v55 = vld [vmem:[#allocation5 + $0x1314] ss:$40 sps:$4 sm:$0xff]   ;;  %v20162_v56 = vld [vmem:[#allocation5 + $0xe10] ss:$40 sps:$4 sm:$0xff]  }
  0xa2   :  { %4123 = vmatprep.subr.bf16.mxu1 %v20086_v57  ;;  %v20165_v57 = vld [vmem:[#allocation5 + $0x1310] ss:$40 sps:$4 sm:$0xff]  }
  0xa4   :  { %4083 = vmatpush2.bf16.msra.mxu0 %v20088_v58  ;;  %v20170_v58 = vld [vmem:[#allocation5 + $0xdc4] ss:$40 sps:$4 sm:$0xff]  }
  0xa5   :  { %4124 = vmatpush2.bf16.msra.mxu1 %v20089_v59  ;;  %4084 = vmatprep.subr.bf16.mxu0 %v20090_v60  ;;  %v20173_v59 = vld [vmem:[#allocation5 + $0x12c4] ss:$40 sps:$4 sm:$0xff]   ;;  %v20168_v60 = vld [vmem:[#allocation5 + $0xdc0] ss:$40 sps:$4 sm:$0xff]  }
  0xa6   :  { %4125 = vmatprep.subr.bf16.mxu1 %v20092_v61  ;;  %v20171_v61 = vld [vmem:[#allocation5 + $0x12c0] ss:$40 sps:$4 sm:$0xff]  }
  0xa8   :  { %4085 = vmatpush2.bf16.msra.mxu0 %v20094_v62  ;;  %v20176_v62 = vld [vmem:[#allocation5 + $0xd74] ss:$40 sps:$4 sm:$0xff]  }
  0xa9   :  { %4126 = vmatpush2.bf16.msra.mxu1 %v20095_v63  ;;  %4086 = vmatprep.subr.bf16.mxu0 %v20096_v0  ;;  %v20179_v63 = vld [vmem:[#allocation5 + $0x1274] ss:$40 sps:$4 sm:$0xff]   ;;  %v20174_v0 = vld [vmem:[#allocation5 + $0xd70] ss:$40 sps:$4 sm:$0xff]  }
  0xaa   :  { %4127 = vmatprep.subr.bf16.mxu1 %v20098_v1  ;;  %v20177_v1 = vld [vmem:[#allocation5 + $0x1270] ss:$40 sps:$4 sm:$0xff]  }
  0xac   :  { %4087 = vmatpush2.bf16.msra.mxu0 %v20100_v2  ;;  %v20182_v2 = vld [vmem:[#allocation5 + $0xd24] ss:$40 sps:$4 sm:$0xff]  }
  0xad   :  { %4128 = vmatpush2.bf16.msra.mxu1 %v20101_v3  ;;  %4138 = vmatprep.subr.bf16.mxu0 %v20104_v6  ;;  %v20185_v3 = vld [vmem:[#allocation5 + $0x1224] ss:$40 sps:$4 sm:$0xff]   ;;  %v20188_v6 = vld [vmem:[#allocation5 + $0xcd4] ss:$40 sps:$4 sm:$0xff]  }
  0xae   :  { %4179 = vmatprep.subr.bf16.mxu1 %v20107_v7  ;;  %v20191_v7 = vld [vmem:[#allocation5 + $0x11d4] ss:$40 sps:$4 sm:$0xff]  }
  0xaf   :  { %4089 = vmatmul.mubr.bf16.vlgmr.msra.gmra.mxu0 %v23761_v8 }
  0xb0   :  { %4130 = vmatmul.mubr.bf16.vlgmr.msra.gmra.mxu1 %v23763_v9  ;;  %4139 = vmatpush1.bf16.msra.mxu0 %v20102_v10  ;;  %v20186_v10 = vld [vmem:[#allocation5 + $0xcd0] ss:$40 sps:$4 sm:$0xff]  }
  0xb1   :  { %4180 = vmatpush1.bf16.msra.mxu1 %v20105_v11  ;;  %4140 = vmatprep.subr.bf16.mxu0 %v20110_v12  ;;  %v20189_v11 = vld [vmem:[#allocation5 + $0x11d0] ss:$40 sps:$4 sm:$0xff]   ;;  %v20194_v12 = vld [vmem:[#allocation5 + $0xc84] ss:$40 sps:$4 sm:$0xff]  }
  0xb2   :  { %4181 = vmatprep.subr.bf16.mxu1 %v20113_v13  ;;  %4170 = vmatprep.mubr.bf16.mxu0 %v23767_v37  ;;  %v20197_v13 = vld [vmem:[#allocation5 + $0x1184] ss:$40 sps:$4 sm:$0xff]  }
  0xb3   :  { %4211 = vmatprep.mubr.bf16.mxu1 %v23769_v40 }
  0xb4   :  { %4141 = vmatpush1.bf16.msra.mxu0 %v20108_v14  ;;  %v20192_v14 = vld [vmem:[#allocation5 + $0xc80] ss:$40 sps:$4 sm:$0xff]  }
  0xb5   :  { %4182 = vmatpush1.bf16.msra.mxu1 %v20111_v15  ;;  %4142 = vmatprep.subr.bf16.mxu0 %v20116_v16  ;;  %v20195_v15 = vld [vmem:[#allocation5 + $0x1180] ss:$40 sps:$4 sm:$0xff]  }
  0xb6   :  { %4183 = vmatprep.subr.bf16.mxu1 %v20119_v17  ;;  %v150_v16 = vld [vmem:[#allocation2 + $0x20] sm:$0xff]  ;;  %v152_v17 = vld [vmem:[#allocation2 + $0x30] sm:$0xff] }
  0xb8   :  { %4143 = vmatpush1.bf16.msra.mxu0 %v20114_v18  ;;  %v20200_v18 = vld [vmem:[#allocation5 + $0x23c] ss:$40 sps:$4 sm:$0xff]  }
  0xb9   :  { %4184 = vmatpush1.bf16.msra.mxu1 %v20117_v19  ;;  %4144 = vmatprep.subr.bf16.mxu0 %v20122_v20  ;;  %v20203_v19 = vld [vmem:[#allocation5 + $0x73c] ss:$40 sps:$4 sm:$0xff]   ;;  %v23773_v20 = vpack.c.bf16 %v150_v16, %v150_v16  ;;  %v20276_v16 = vld [vmem:[#allocation5 + $0x328] ss:$40 sps:$4 sm:$0xff]  }
  0xba   :  { %4185 = vmatprep.subr.bf16.mxu1 %v20125_v21  ;;  %v23775_v21 = vpack.c.bf16 %v152_v17, %v152_v17  ;;  %v20279_v17 = vld [vmem:[#allocation5 + $0x828] ss:$40 sps:$4 sm:$0xff]  }
  0xbc   :  { %4145 = vmatpush1.bf16.msra.mxu0 %v20120_v22  ;;  %v20198_v22 = vld [vmem:[#allocation5 + $0x238] ss:$40 sps:$4 sm:$0xff]  }
  0xbd   :  { %4186 = vmatpush1.bf16.msra.mxu1 %v20123_v23  ;;  %4146 = vmatprep.subr.bf16.mxu0 %v20128_v24  ;;  %v20201_v23 = vld [vmem:[#allocation5 + $0x738] ss:$40 sps:$4 sm:$0xff]   ;;  %v20206_v24 = vld [vmem:[#allocation5 + $0x1ec] ss:$40 sps:$4 sm:$0xff]  }
  0xbe   :  { %4187 = vmatprep.subr.bf16.mxu1 %v20131_v25  ;;  %v20209_v25 = vld [vmem:[#allocation5 + $0x6ec] ss:$40 sps:$4 sm:$0xff]  }
  0xc0   :  { %4147 = vmatpush1.bf16.msra.mxu0 %v20126_v26  ;;  %v20204_v26 = vld [vmem:[#allocation5 + $0x1e8] ss:$40 sps:$4 sm:$0xff]  }
  0xc1   :  { %4188 = vmatpush1.bf16.msra.mxu1 %v20129_v27  ;;  %4148 = vmatprep.subr.bf16.mxu0 %v20134_v28  ;;  %v20207_v27 = vld [vmem:[#allocation5 + $0x6e8] ss:$40 sps:$4 sm:$0xff]   ;;  %v20212_v28 = vld [vmem:[#allocation5 + $0x19c] ss:$40 sps:$4 sm:$0xff]  }
  0xc2   :  { %4189 = vmatprep.subr.bf16.mxu1 %v20137_v29  ;;  %v20215_v29 = vld [vmem:[#allocation5 + $0x69c] ss:$40 sps:$4 sm:$0xff]  }
  0xc4   :  { %4149 = vmatpush1.bf16.msra.mxu0 %v20132_v30  ;;  %v20210_v30 = vld [vmem:[#allocation5 + $0x198] ss:$40 sps:$4 sm:$0xff]  }
  0xc5   :  { %4190 = vmatpush1.bf16.msra.mxu1 %v20135_v31  ;;  %4150 = vmatprep.subr.bf16.mxu0 %v20140_v32  ;;  %v20213_v31 = vld [vmem:[#allocation5 + $0x698] ss:$40 sps:$4 sm:$0xff]   ;;  %v20218_v32 = vld [vmem:[#allocation5 + $0x14c] ss:$40 sps:$4 sm:$0xff]  }
  0xc6   :  { %4191 = vmatprep.subr.bf16.mxu1 %v20143_v33  ;;  %v20221_v33 = vld [vmem:[#allocation5 + $0x64c] ss:$40 sps:$4 sm:$0xff]  }
  0xc8   :  { %4151 = vmatpush1.bf16.msra.mxu0 %v20138_v35  ;;  %v20219_v35 = vld [vmem:[#allocation5 + $0x648] ss:$40 sps:$4 sm:$0xff]  }
  0xc9   :  { %4192 = vmatpush1.bf16.msra.mxu1 %v20141_v36  ;;  %4152 = vmatprep.subr.bf16.mxu0 %v20146_v39  ;;  %v20224_v36 = vld [vmem:[#allocation5 + $0xfc] ss:$40 sps:$4 sm:$0xff]   ;;  %v20222_v39 = vld [vmem:[#allocation5 + $0xf8] ss:$40 sps:$4 sm:$0xff]  }
  0xca   :  { %4193 = vmatprep.subr.bf16.mxu1 %v20149_v41  ;;  %v20225_v41 = vld [vmem:[#allocation5 + $0x5f8] ss:$40 sps:$4 sm:$0xff]  }
  0xcc   :  { %4153 = vmatpush1.bf16.msra.mxu0 %v20144_v42  ;;  %v20230_v42 = vld [vmem:[#allocation5 + $0xac] ss:$40 sps:$4 sm:$0xff]  }
  0xcd   :  { %4194 = vmatpush1.bf16.msra.mxu1 %v20147_v43  ;;  %4154 = vmatprep.subr.bf16.mxu0 %v20152_v44  ;;  %v20233_v43 = vld [vmem:[#allocation5 + $0x5ac] ss:$40 sps:$4 sm:$0xff]   ;;  %v20228_v44 = vld [vmem:[#allocation5 + $0xa8] ss:$40 sps:$4 sm:$0xff]  }
  0xce   :  { %4195 = vmatprep.subr.bf16.mxu1 %v20155_v45  ;;  %v20231_v45 = vld [vmem:[#allocation5 + $0x5a8] ss:$40 sps:$4 sm:$0xff]  }
  0xd0   :  { %4155 = vmatpush2.bf16.msra.mxu0 %v20150_v46  ;;  %v20236_v46 = vld [vmem:[#allocation5 + $0x5c] ss:$40 sps:$4 sm:$0xff]  }
  0xd1   :  { %4196 = vmatpush2.bf16.msra.mxu1 %v20153_v47  ;;  %4156 = vmatprep.subr.bf16.mxu0 %v20158_v48  ;;  %v20239_v47 = vld [vmem:[#allocation5 + $0x55c] ss:$40 sps:$4 sm:$0xff]   ;;  %v20234_v48 = vld [vmem:[#allocation5 + $0x58] ss:$40 sps:$4 sm:$0xff]  }
  0xd2   :  { %4197 = vmatprep.subr.bf16.mxu1 %v20161_v50  ;;  %v20237_v50 = vld [vmem:[#allocation5 + $0x558] ss:$40 sps:$4 sm:$0xff]  }
  0xd4   :  { %4157 = vmatpush2.bf16.msra.mxu0 %v20156_v51  ;;  %v20242_v51 = vld [vmem:[#allocation5 + $0xc] ss:$40 sps:$4 sm:$0xff]  }
  0xd5   :  { %4198 = vmatpush2.bf16.msra.mxu1 %v20159_v53  ;;  %4158 = vmatprep.subr.bf16.mxu0 %v20164_v54  ;;  %v20245_v53 = vld [vmem:[#allocation5 + $0x50c] ss:$40 sps:$4 sm:$0xff]   ;;  %v20240_v54 = vld [vmem:[#allocation5 + $0x8] ss:$40 sps:$4 sm:$0xff]  }
  0xd6   :  { %4199 = vmatprep.subr.bf16.mxu1 %v20167_v55  ;;  %v20243_v55 = vld [vmem:[#allocation5 + $0x508] ss:$40 sps:$4 sm:$0xff]  }
  0xd8   :  { %4159 = vmatpush2.bf16.msra.mxu0 %v20162_v56  ;;  %v20248_v56 = vld [vmem:[#allocation5 + $0x4bc] ss:$40 sps:$4 sm:$0xff]  }
  0xd9   :  { %4200 = vmatpush2.bf16.msra.mxu1 %v20165_v57  ;;  %4160 = vmatprep.subr.bf16.mxu0 %v20170_v58  ;;  %v20251_v57 = vld [vmem:[#allocation5 + $0x9bc] ss:$40 sps:$4 sm:$0xff]   ;;  %v20246_v58 = vld [vmem:[#allocation5 + $0x4b8] ss:$40 sps:$4 sm:$0xff]  }
  0xda   :  { %4201 = vmatprep.subr.bf16.mxu1 %v20173_v59  ;;  %v20249_v59 = vld [vmem:[#allocation5 + $0x9b8] ss:$40 sps:$4 sm:$0xff]  }
  0xdc   :  { %4161 = vmatpush2.bf16.msra.mxu0 %v20168_v60  ;;  %v20254_v60 = vld [vmem:[#allocation5 + $0x46c] ss:$40 sps:$4 sm:$0xff]  }
  0xdd   :  { %4202 = vmatpush2.bf16.msra.mxu1 %v20171_v61  ;;  %4162 = vmatprep.subr.bf16.mxu0 %v20176_v62  ;;  %v20257_v61 = vld [vmem:[#allocation5 + $0x96c] ss:$40 sps:$4 sm:$0xff]   ;;  %v20252_v62 = vld [vmem:[#allocation5 + $0x468] ss:$40 sps:$4 sm:$0xff]  }
  0xde   :  { %4203 = vmatprep.subr.bf16.mxu1 %v20179_v63  ;;  %v20255_v63 = vld [vmem:[#allocation5 + $0x968] ss:$40 sps:$4 sm:$0xff]  }
  0xe0   :  { %4163 = vmatpush2.bf16.msra.mxu0 %v20174_v0  ;;  %v20260_v0 = vld [vmem:[#allocation5 + $0x41c] ss:$40 sps:$4 sm:$0xff]  }
  0xe1   :  { %4204 = vmatpush2.bf16.msra.mxu1 %v20177_v1  ;;  %4164 = vmatprep.subr.bf16.mxu0 %v20182_v2  ;;  %v20263_v1 = vld [vmem:[#allocation5 + $0x91c] ss:$40 sps:$4 sm:$0xff]   ;;  %v20258_v2 = vld [vmem:[#allocation5 + $0x418] ss:$40 sps:$4 sm:$0xff]  }
  0xe2   :  { %4205 = vmatprep.subr.bf16.mxu1 %v20185_v3  ;;  %v20261_v3 = vld [vmem:[#allocation5 + $0x918] ss:$40 sps:$4 sm:$0xff]  }
  0xe4   :  { %4165 = vmatpush2.bf16.msra.mxu0 %v20180_v4  ;;  %v20266_v4 = vld [vmem:[#allocation5 + $0x3cc] ss:$40 sps:$4 sm:$0xff]  }
  0xe5   :  { %4206 = vmatpush2.bf16.msra.mxu1 %v20183_v5  ;;  %4166 = vmatprep.subr.bf16.mxu0 %v20188_v6  ;;  %v20269_v5 = vld [vmem:[#allocation5 + $0x8cc] ss:$40 sps:$4 sm:$0xff]   ;;  %v20264_v6 = vld [vmem:[#allocation5 + $0x3c8] ss:$40 sps:$4 sm:$0xff]  }
  0xe6   :  { %4207 = vmatprep.subr.bf16.mxu1 %v20191_v7  ;;  %v20267_v7 = vld [vmem:[#allocation5 + $0x8c8] ss:$40 sps:$4 sm:$0xff]  }
  0xe8   :  { %4167 = vmatpush2.bf16.msra.mxu0 %v20186_v10  ;;  %v20272_v10 = vld [vmem:[#allocation5 + $0x37c] ss:$40 sps:$4 sm:$0xff]  }
  0xe9   :  { %4208 = vmatpush2.bf16.msra.mxu1 %v20189_v11  ;;  %4168 = vmatprep.subr.bf16.mxu0 %v20194_v12  ;;  %v20275_v11 = vld [vmem:[#allocation5 + $0x87c] ss:$40 sps:$4 sm:$0xff]   ;;  %v20270_v12 = vld [vmem:[#allocation5 + $0x378] ss:$40 sps:$4 sm:$0xff]  }
  0xea   :  { %4209 = vmatprep.subr.bf16.mxu1 %v20197_v13  ;;  %v20273_v13 = vld [vmem:[#allocation5 + $0x878] ss:$40 sps:$4 sm:$0xff]  }
  0xec   :  { %4169 = vmatpush2.bf16.msra.mxu0 %v20192_v14  ;;  %v20278_v14 = vld [vmem:[#allocation5 + $0x32c] ss:$40 sps:$4 sm:$0xff]  }
  0xed   :  { %4210 = vmatpush2.bf16.msra.mxu1 %v20195_v15  ;;  %4220 = vmatprep.subr.bf16.mxu0 %v20200_v18  ;;  %v20281_v15 = vld [vmem:[#allocation5 + $0x82c] ss:$40 sps:$4 sm:$0xff]   ;;  %v20284_v18 = vld [vmem:[#allocation5 + $0x2dc] ss:$40 sps:$4 sm:$0xff]  }
  0xee   :  { %4261 = vmatprep.subr.bf16.mxu1 %v20203_v19  ;;  %v20287_v19 = vld [vmem:[#allocation5 + $0x7dc] ss:$40 sps:$4 sm:$0xff]  }
  0xef   :  { %4171 = vmatmul.mubr.bf16.vlgmr.msra.gmra.mxu0 %v23773_v20 }
  0xf0   :  { %4212 = vmatmul.mubr.bf16.vlgmr.msra.gmra.mxu1 %v23775_v21  ;;  %4221 = vmatpush1.bf16.msra.mxu0 %v20198_v22  ;;  %v20282_v22 = vld [vmem:[#allocation5 + $0x2d8] ss:$40 sps:$4 sm:$0xff]  }
  0xf1   :  { %4262 = vmatpush1.bf16.msra.mxu1 %v20201_v23  ;;  %4222 = vmatprep.subr.bf16.mxu0 %v20206_v24  ;;  %v20285_v23 = vld [vmem:[#allocation5 + $0x7d8] ss:$40 sps:$4 sm:$0xff]   ;;  %v20290_v24 = vld [vmem:[#allocation5 + $0x28c] ss:$40 sps:$4 sm:$0xff]  }
  0xf2   :  { %4263 = vmatprep.subr.bf16.mxu1 %v20209_v25  ;;  %4252 = vmatprep.mubr.bf16.mxu0 %v23755_v49  ;;  %v20293_v25 = vld [vmem:[#allocation5 + $0x78c] ss:$40 sps:$4 sm:$0xff]  }
  0xf3   :  { %4293 = vmatprep.mubr.bf16.mxu1 %v23757_v52 }
  0xf4   :  { %4223 = vmatpush1.bf16.msra.mxu0 %v20204_v26  ;;  %v20288_v26 = vld [vmem:[#allocation5 + $0x288] ss:$40 sps:$4 sm:$0xff]  }
  0xf5   :  { %4264 = vmatpush1.bf16.msra.mxu1 %v20207_v27  ;;  %4224 = vmatprep.subr.bf16.mxu0 %v20212_v28  ;;  %v20291_v27 = vld [vmem:[#allocation5 + $0x788] ss:$40 sps:$4 sm:$0xff]   ;;  %v20296_v28 = vld [vmem:[#allocation5 + $0xc3c] ss:$40 sps:$4 sm:$0xff]  }
  0xf6   :  { %4265 = vmatprep.subr.bf16.mxu1 %v20215_v29  ;;  %v20299_v29 = vld [vmem:[#allocation5 + $0x113c] ss:$40 sps:$4 sm:$0xff]  }
  0xf8   :  { %4225 = vmatpush1.bf16.msra.mxu0 %v20210_v30  ;;  %v20294_v30 = vld [vmem:[#allocation5 + $0xc38] ss:$40 sps:$4 sm:$0xff]  }
  0xf9   :  { %4266 = vmatpush1.bf16.msra.mxu1 %v20213_v31  ;;  %4226 = vmatprep.subr.bf16.mxu0 %v20218_v32  ;;  %v20297_v31 = vld [vmem:[#allocation5 + $0x1138] ss:$40 sps:$4 sm:$0xff]   ;;  %v20302_v32 = vld [vmem:[#allocation5 + $0xbec] ss:$40 sps:$4 sm:$0xff]  }
  0xfa   :  { %4267 = vmatprep.subr.bf16.mxu1 %v20221_v33  ;;  %v20305_v33 = vld [vmem:[#allocation5 + $0x10ec] ss:$40 sps:$4 sm:$0xff]  }
  0xfc   :  { %4227 = vmatpush1.bf16.msra.mxu0 %v20216_v34  ;;  %v20300_v34 = vld [vmem:[#allocation5 + $0xbe8] ss:$40 sps:$4 sm:$0xff]  }
  0xfd   :  { %4268 = vmatpush1.bf16.msra.mxu1 %v20219_v35  ;;  %4228 = vmatprep.subr.bf16.mxu0 %v20224_v36  ;;  %v20303_v35 = vld [vmem:[#allocation5 + $0x10e8] ss:$40 sps:$4 sm:$0xff]   ;;  %v20308_v36 = vld [vmem:[#allocation5 + $0xb9c] ss:$40 sps:$4 sm:$0xff]  }
  0xfe   :  { %4269 = vmatprep.subr.bf16.mxu1 %v20227_v38  ;;  %v20311_v38 = vld [vmem:[#allocation5 + $0x109c] ss:$40 sps:$4 sm:$0xff]  }
 0x100   :  { %4229 = vmatpush1.bf16.msra.mxu0 %v20222_v39  ;;  %v20306_v39 = vld [vmem:[#allocation5 + $0xb98] ss:$40 sps:$4 sm:$0xff]  }
 0x101   :  { %4270 = vmatpush1.bf16.msra.mxu1 %v20225_v41  ;;  %4230 = vmatprep.subr.bf16.mxu0 %v20230_v42  ;;  %v20309_v41 = vld [vmem:[#allocation5 + $0x1098] ss:$40 sps:$4 sm:$0xff]   ;;  %v20314_v42 = vld [vmem:[#allocation5 + $0xb4c] ss:$40 sps:$4 sm:$0xff]  }
 0x102   :  { %4271 = vmatprep.subr.bf16.mxu1 %v20233_v43  ;;  %v20317_v43 = vld [vmem:[#allocation5 + $0x104c] ss:$40 sps:$4 sm:$0xff]  }
 0x104   :  { %4231 = vmatpush1.bf16.msra.mxu0 %v20228_v44  ;;  %v20312_v44 = vld [vmem:[#allocation5 + $0xb48] ss:$40 sps:$4 sm:$0xff]  }
 0x105   :  { %4272 = vmatpush1.bf16.msra.mxu1 %v20231_v45  ;;  %4232 = vmatprep.subr.bf16.mxu0 %v20236_v46  ;;  %v20315_v45 = vld [vmem:[#allocation5 + $0x1048] ss:$40 sps:$4 sm:$0xff]   ;;  %v20320_v46 = vld [vmem:[#allocation5 + $0xafc] ss:$40 sps:$4 sm:$0xff]  }
 0x106   :  { %4273 = vmatprep.subr.bf16.mxu1 %v20239_v47  ;;  %v20323_v47 = vld [vmem:[#allocation5 + $0xffc] ss:$40 sps:$4 sm:$0xff]  }
 0x108   :  { %4233 = vmatpush1.bf16.msra.mxu0 %v20234_v48  ;;  %v20318_v48 = vld [vmem:[#allocation5 + $0xaf8] ss:$40 sps:$4 sm:$0xff]  }
 0x109   :  { %4274 = vmatpush1.bf16.msra.mxu1 %v20237_v50  ;;  %4234 = vmatprep.subr.bf16.mxu0 %v20242_v51  ;;  %v20321_v50 = vld [vmem:[#allocation5 + $0xff8] ss:$40 sps:$4 sm:$0xff]   ;;  %v20326_v51 = vld [vmem:[#allocation5 + $0xaac] ss:$40 sps:$4 sm:$0xff]  }
 0x10a   :  { %4275 = vmatprep.subr.bf16.mxu1 %v20245_v53  ;;  %v20329_v53 = vld [vmem:[#allocation5 + $0xfac] ss:$40 sps:$4 sm:$0xff]  }
 0x10c   :  { %4235 = vmatpush1.bf16.msra.mxu0 %v20240_v54  ;;  %v20324_v54 = vld [vmem:[#allocation5 + $0xaa8] ss:$40 sps:$4 sm:$0xff]  }
 0x10d   :  { %4276 = vmatpush1.bf16.msra.mxu1 %v20243_v55  ;;  %4236 = vmatprep.subr.bf16.mxu0 %v20248_v56  ;;  %v20327_v55 = vld [vmem:[#allocation5 + $0xfa8] ss:$40 sps:$4 sm:$0xff]   ;;  %v20332_v56 = vld [vmem:[#allocation5 + $0xa5c] ss:$40 sps:$4 sm:$0xff]  }
 0x10e   :  { %4277 = vmatprep.subr.bf16.mxu1 %v20251_v57  ;;  %v20335_v57 = vld [vmem:[#allocation5 + $0xf5c] ss:$40 sps:$4 sm:$0xff]  }
 0x110   :  { %4237 = vmatpush2.bf16.msra.mxu0 %v20246_v58  ;;  %v20330_v58 = vld [vmem:[#allocation5 + $0xa58] ss:$40 sps:$4 sm:$0xff]  }
 0x111   :  { %4278 = vmatpush2.bf16.msra.mxu1 %v20249_v59  ;;  %4238 = vmatprep.subr.bf16.mxu0 %v20254_v60  ;;  %v20333_v59 = vld [vmem:[#allocation5 + $0xf58] ss:$40 sps:$4 sm:$0xff]   ;;  %v20338_v60 = vld [vmem:[#allocation5 + $0xa0c] ss:$40 sps:$4 sm:$0xff]  }
 0x112   :  { %4279 = vmatprep.subr.bf16.mxu1 %v20257_v61  ;;  %v20341_v61 = vld [vmem:[#allocation5 + $0xf0c] ss:$40 sps:$4 sm:$0xff]  }
 0x114   :  { %4239 = vmatpush2.bf16.msra.mxu0 %v20252_v62  ;;  %v20336_v62 = vld [vmem:[#allocation5 + $0xa08] ss:$40 sps:$4 sm:$0xff]  }
 0x115   :  { %4280 = vmatpush2.bf16.msra.mxu1 %v20255_v63  ;;  %4240 = vmatprep.subr.bf16.mxu0 %v20260_v0  ;;  %v20339_v63 = vld [vmem:[#allocation5 + $0xf08] ss:$40 sps:$4 sm:$0xff]   ;;  %v20344_v0 = vld [vmem:[#allocation5 + $0xebc] ss:$40 sps:$4 sm:$0xff]  }
 0x116   :  { %4281 = vmatprep.subr.bf16.mxu1 %v20263_v1  ;;  %v20347_v1 = vld [vmem:[#allocation5 + $0x13bc] ss:$40 sps:$4 sm:$0xff]  }
 0x118   :  { %4241 = vmatpush2.bf16.msra.mxu0 %v20258_v2  ;;  %v20342_v2 = vld [vmem:[#allocation5 + $0xeb8] ss:$40 sps:$4 sm:$0xff]  }
 0x119   :  { %4282 = vmatpush2.bf16.msra.mxu1 %v20261_v3  ;;  %4242 = vmatprep.subr.bf16.mxu0 %v20266_v4  ;;  %v20345_v3 = vld [vmem:[#allocation5 + $0x13b8] ss:$40 sps:$4 sm:$0xff]   ;;  %v20350_v4 = vld [vmem:[#allocation5 + $0xe6c] ss:$40 sps:$4 sm:$0xff]  }
 0x11a   :  { %4283 = vmatprep.subr.bf16.mxu1 %v20269_v5  ;;  %v20353_v5 = vld [vmem:[#allocation5 + $0x136c] ss:$40 sps:$4 sm:$0xff]  }
 0x11c   :  { %4243 = vmatpush2.bf16.msra.mxu0 %v20264_v6  ;;  %v20348_v6 = vld [vmem:[#allocation5 + $0xe68] ss:$40 sps:$4 sm:$0xff]  }
 0x11d   :  { %4284 = vmatpush2.bf16.msra.mxu1 %v20267_v7  ;;  %4244 = vmatprep.subr.bf16.mxu0 %v20272_v10  ;;  %v20351_v7 = vld [vmem:[#allocation5 + $0x1368] ss:$40 sps:$4 sm:$0xff]   ;;  %v20356_v10 = vld [vmem:[#allocation5 + $0xe1c] ss:$40 sps:$4 sm:$0xff]  }
 0x11e   :  { %4285 = vmatprep.subr.bf16.mxu1 %v20275_v11  ;;  %v20359_v11 = vld [vmem:[#allocation5 + $0x131c] ss:$40 sps:$4 sm:$0xff]  }
 0x120   :  { %4245 = vmatpush2.bf16.msra.mxu0 %v20270_v12  ;;  %v20354_v12 = vld [vmem:[#allocation5 + $0xe18] ss:$40 sps:$4 sm:$0xff]  }
 0x121   :  { %4286 = vmatpush2.bf16.msra.mxu1 %v20273_v13  ;;  %4246 = vmatprep.subr.bf16.mxu0 %v20278_v14  ;;  %v20357_v13 = vld [vmem:[#allocation5 + $0x1318] ss:$40 sps:$4 sm:$0xff]   ;;  %v20362_v14 = vld [vmem:[#allocation5 + $0xdcc] ss:$40 sps:$4 sm:$0xff]  }
 0x122   :  { %4287 = vmatprep.subr.bf16.mxu1 %v20281_v15  ;;  %v20365_v15 = vld [vmem:[#allocation5 + $0x12cc] ss:$40 sps:$4 sm:$0xff]  }
 0x124   :  { %4247 = vmatpush2.bf16.msra.mxu0 %v20276_v16  ;;  %v20360_v16 = vld [vmem:[#allocation5 + $0xdc8] ss:$40 sps:$4 sm:$0xff]  }
 0x125   :  { %4288 = vmatpush2.bf16.msra.mxu1 %v20279_v17  ;;  %4248 = vmatprep.subr.bf16.mxu0 %v20284_v18  ;;  %v20363_v17 = vld [vmem:[#allocation5 + $0x12c8] ss:$40 sps:$4 sm:$0xff]   ;;  %v20368_v18 = vld [vmem:[#allocation5 + $0xd7c] ss:$40 sps:$4 sm:$0xff]  }
 0x126   :  { %4289 = vmatprep.subr.bf16.mxu1 %v20287_v19  ;;  %v20371_v19 = vld [vmem:[#allocation5 + $0x127c] ss:$40 sps:$4 sm:$0xff]  }
 0x128   :  { %4249 = vmatpush2.bf16.msra.mxu0 %v20282_v22  ;;  %v20366_v22 = vld [vmem:[#allocation5 + $0xd78] ss:$40 sps:$4 sm:$0xff]  }
 0x129   :  { %4290 = vmatpush2.bf16.msra.mxu1 %v20285_v23  ;;  %4250 = vmatprep.subr.bf16.mxu0 %v20290_v24  ;;  %v20369_v23 = vld [vmem:[#allocation5 + $0x1278] ss:$40 sps:$4 sm:$0xff]   ;;  %v20374_v24 = vld [vmem:[#allocation5 + $0xd2c] ss:$40 sps:$4 sm:$0xff]  }
 0x12a   :  { %4291 = vmatprep.subr.bf16.mxu1 %v20293_v25  ;;  %v20377_v25 = vld [vmem:[#allocation5 + $0x122c] ss:$40 sps:$4 sm:$0xff]  }
 0x12c   :  { %4251 = vmatpush2.bf16.msra.mxu0 %v20288_v26  ;;  %v20372_v26 = vld [vmem:[#allocation5 + $0xd28] ss:$40 sps:$4 sm:$0xff]  }
 0x12d   :  { %4292 = vmatpush2.bf16.msra.mxu1 %v20291_v27  ;;  %4302 = vmatprep.subr.bf16.mxu0 %v20296_v28  ;;  %v20375_v27 = vld [vmem:[#allocation5 + $0x1228] ss:$40 sps:$4 sm:$0xff]   ;;  %v806_v28 = vlaneseq }
 0x12e   :  { %4343 = vmatprep.subr.bf16.mxu1 %v20299_v29  ;;  %v20380_v29 = vld [vmem:[#allocation5 + $0xcdc] ss:$40 sps:$4 sm:$0xff]  }
 0x12f   :  { %4253 = vmatmul.mubr.bf16.vlgmr.msra.gmra.mxu0 %v23761_v8 }
 0x130   :  { %4294 = vmatmul.mubr.bf16.vlgmr.msra.gmra.mxu1 %v23763_v9  ;;  %4303 = vmatpush1.bf16.msra.mxu0 %v20294_v30  ;;  %v20383_v30 = vld [vmem:[#allocation5 + $0x11dc] ss:$40 sps:$4 sm:$0xff]  }
 0x131   :  { %4344 = vmatpush1.bf16.msra.mxu1 %v20297_v31  ;;  %4304 = vmatprep.subr.bf16.mxu0 %v20302_v32  ;;  %v20378_v31 = vld [vmem:[#allocation5 + $0xcd8] ss:$40 sps:$4 sm:$0xff]  }
 0x132   :  { %4345 = vmatprep.subr.bf16.mxu1 %v20305_v33  ;;  %4334 = vmatprep.mubr.bf16.mxu0 %v23767_v37  ;;  %v20381_v32 = vld [vmem:[#allocation5 + $0x11d8] ss:$40 sps:$4 sm:$0xff]   ;;  %v23785_v33 = vshrl.u32 %v806_v28, 7  ;;  %v20437_v28 = vld [vmem:[#allocation5 + $0x514] ss:$40 sps:$4 sm:$0xff]  }
 0x133   :  { %4375 = vmatprep.mubr.bf16.mxu1 %v23769_v40 }
 0x134   :  { %4305 = vmatpush1.bf16.msra.mxu0 %v20300_v34  ;;  %v20386_v34 = vld [vmem:[#allocation5 + $0xc8c] ss:$40 sps:$4 sm:$0xff]  }
 0x135   :  { %4346 = vmatpush1.bf16.msra.mxu1 %v20303_v35  ;;  %4306 = vmatprep.subr.bf16.mxu0 %v20308_v36  ;;  %v20389_v35 = vld [vmem:[#allocation5 + $0x118c] ss:$40 sps:$4 sm:$0xff]   ;;  %v20384_v36 = vld [vmem:[#allocation5 + $0xc88] ss:$40 sps:$4 sm:$0xff]  }
 0x136   :  { %4347 = vmatprep.subr.bf16.mxu1 %v20311_v38  ;;  %v20387_v38 = vld [vmem:[#allocation5 + $0x1188] ss:$40 sps:$4 sm:$0xff]  }
 0x138   :  { %4307 = vmatpush1.bf16.msra.mxu0 %v20306_v39  ;;  %v802_v39 = vld [vmem:[#allocation7] sm:$0xff] }
 0x139   :  { %4348 = vmatpush1.bf16.msra.mxu1 %v20309_v41  ;;  %4308 = vmatprep.subr.bf16.mxu0 %v20314_v42  ;;  %v23788_v41 = vsub.s32 0, %v23785_v33  ;;  %v20392_v42 = vld [vmem:[#allocation5 + $0x244] ss:$40 sps:$4 sm:$0xff]  }
 0x13a   :  { %4349 = vmatprep.subr.bf16.mxu1 %v20317_v43  ;;  %v20395_v43 = vld [vmem:[#allocation5 + $0x744] ss:$40 sps:$4 sm:$0xff]  }
 0x13c   :  { %4309 = vmatpush1.bf16.msra.mxu0 %v20312_v44  ;;  %v23791_v44 = vsub.s32 1, %v23785_v33 }
 0x13d   :  { %4350 = vmatpush1.bf16.msra.mxu1 %v20315_v45  ;;  %4310 = vmatprep.subr.bf16.mxu0 %v20320_v46  ;;  %v20390_v45 = vld [vmem:[#allocation5 + $0x240] ss:$40 sps:$4 sm:$0xff]   ;;  %v809_v46 = vrot.slane %v802_v39, %v23788_v41 }
 0x13e   :  { %4351 = vmatprep.subr.bf16.mxu1 %v20323_v47  ;;  %v20393_v47 = vld [vmem:[#allocation5 + $0x740] ss:$40 sps:$4 sm:$0xff]  }
 0x140   :  { %4311 = vmatpush1.bf16.msra.mxu0 %v20318_v48  ;;  %v20398_v48 = vld [vmem:[#allocation5 + $0x1f4] ss:$40 sps:$4 sm:$0xff]  }
 0x141   :  { %4352 = vmatpush1.bf16.msra.mxu1 %v20321_v50  ;;  %4312 = vmatprep.subr.bf16.mxu0 %v20326_v51  ;;  %v20401_v50 = vld [vmem:[#allocation5 + $0x6f4] ss:$40 sps:$4 sm:$0xff]   ;;  %v813_v51 = vrot.slane %v802_v39, %v23791_v44  ;;  %v20444_v39 = vld [vmem:[#allocation5 + $0x470] ss:$40 sps:$4 sm:$0xff]  }
 0x142   :  { %4353 = vmatprep.subr.bf16.mxu1 %v20329_v53 }
 0x144   :  { %4313 = vmatpush1.bf16.msra.mxu0 %v20324_v54 }
 0x145   :  { %4354 = vmatpush1.bf16.msra.mxu1 %v20327_v55  ;;  %4314 = vmatprep.subr.bf16.mxu0 %v20332_v56  ;;  %v20396_v55 = vld [vmem:[#allocation5 + $0x1f0] ss:$40 sps:$4 sm:$0xff]  }
 0x146   :  { %4355 = vmatprep.subr.bf16.mxu1 %v20335_v57  ;;  %v20399_v57 = vld [vmem:[#allocation5 + $0x6f0] ss:$40 sps:$4 sm:$0xff]  }
 0x148   :  { %4315 = vmatpush1.bf16.msra.mxu0 %v20330_v58 }
 0x149   :  { %4356 = vmatpush1.bf16.msra.mxu1 %v20333_v59  ;;  %4316 = vmatprep.subr.bf16.mxu0 %v20338_v60  ;;  %v20404_v60 = vld [vmem:[#allocation5 + $0x1a4] ss:$40 sps:$4 sm:$0xff]  }
 0x14a   :  { %4357 = vmatprep.subr.bf16.mxu1 %v20341_v61  ;;  %v20407_v61 = vld [vmem:[#allocation5 + $0x6a4] ss:$40 sps:$4 sm:$0xff]  }
 0x14c   :  { %4317 = vmatpush1.bf16.msra.mxu0 %v20336_v62 }
 0x14d   :  { %4358 = vmatpush1.bf16.msra.mxu1 %v20339_v63  ;;  %4318 = vmatprep.subr.bf16.mxu0 %v20344_v0 }
 0x14e   :  { %4359 = vmatprep.subr.bf16.mxu1 %v20347_v1 }
 0x150   :  { %4319 = vmatpush2.bf16.msra.mxu0 %v20342_v2  ;;  %v20402_v2 = vld [vmem:[#allocation5 + $0x1a0] ss:$40 sps:$4 sm:$0xff]  }
 0x151   :  { %4360 = vmatpush2.bf16.msra.mxu1 %v20345_v3  ;;  %4320 = vmatprep.subr.bf16.mxu0 %v20350_v4  ;;  %v20405_v4 = vld [vmem:[#allocation5 + $0x6a0] ss:$40 sps:$4 sm:$0xff]  }
 0x152   :  { %4361 = vmatprep.subr.bf16.mxu1 %v20353_v5 }
 0x154   :  { %4321 = vmatpush2.bf16.msra.mxu0 %v20348_v6 }
 0x155   :  { %4362 = vmatpush2.bf16.msra.mxu1 %v20351_v7  ;;  %4322 = vmatprep.subr.bf16.mxu0 %v20356_v10  ;;  %v20410_v7 = vld [vmem:[#allocation5 + $0x154] ss:$40 sps:$4 sm:$0xff]  }
 0x156   :  { %4363 = vmatprep.subr.bf16.mxu1 %v20359_v11  ;;  %v20413_v10 = vld [vmem:[#allocation5 + $0x654] ss:$40 sps:$4 sm:$0xff]   ;;  %v20408_v11 = vld [vmem:[#allocation5 + $0x150] ss:$40 sps:$4 sm:$0xff]  }
 0x158   :  { %4323 = vmatpush2.bf16.msra.mxu0 %v20354_v12  ;;  %v20411_v12 = vld [vmem:[#allocation5 + $0x650] ss:$40 sps:$4 sm:$0xff]  }
 0x159   :  { %4364 = vmatpush2.bf16.msra.mxu1 %v20357_v13  ;;  %4324 = vmatprep.subr.bf16.mxu0 %v20362_v14  ;;  %v20416_v13 = vld [vmem:[#allocation5 + $0x104] ss:$40 sps:$4 sm:$0xff]  }
 0x15a   :  { %4365 = vmatprep.subr.bf16.mxu1 %v20365_v15  ;;  %v20419_v14 = vld [vmem:[#allocation5 + $0x604] ss:$40 sps:$4 sm:$0xff]   ;;  %v20414_v15 = vld [vmem:[#allocation5 + $0x100] ss:$40 sps:$4 sm:$0xff]  }
 0x15c   :  { %4325 = vmatpush2.bf16.msra.mxu0 %v20360_v16  ;;  %v20417_v16 = vld [vmem:[#allocation5 + $0x600] ss:$40 sps:$4 sm:$0xff]  }
 0x15d   :  { %4366 = vmatpush2.bf16.msra.mxu1 %v20363_v17  ;;  %4326 = vmatprep.subr.bf16.mxu0 %v20368_v18  ;;  %v20422_v17 = vld [vmem:[#allocation5 + $0xb4] ss:$40 sps:$4 sm:$0xff]  }
 0x15e   :  { %4367 = vmatprep.subr.bf16.mxu1 %v20371_v19  ;;  %v20425_v18 = vld [vmem:[#allocation5 + $0x5b4] ss:$40 sps:$4 sm:$0xff]   ;;  %v20420_v19 = vld [vmem:[#allocation5 + $0xb0] ss:$40 sps:$4 sm:$0xff]  }
 0x160   :  { %4327 = vmatpush2.bf16.msra.mxu0 %v20366_v22  ;;  %v20423_v22 = vld [vmem:[#allocation5 + $0x5b0] ss:$40 sps:$4 sm:$0xff]  }
 0x161   :  { %4368 = vmatpush2.bf16.msra.mxu1 %v20369_v23  ;;  %4328 = vmatprep.subr.bf16.mxu0 %v20374_v24  ;;  %v20428_v23 = vld [vmem:[#allocation5 + $0x64] ss:$40 sps:$4 sm:$0xff]  }
 0x162   :  { %4369 = vmatprep.subr.bf16.mxu1 %v20377_v25  ;;  %v20431_v24 = vld [vmem:[#allocation5 + $0x564] ss:$40 sps:$4 sm:$0xff]   ;;  %v20426_v25 = vld [vmem:[#allocation5 + $0x60] ss:$40 sps:$4 sm:$0xff]  }
 0x164   :  { %4329 = vmatpush2.bf16.msra.mxu0 %v20372_v26  ;;  %v20429_v26 = vld [vmem:[#allocation5 + $0x560] ss:$40 sps:$4 sm:$0xff]  }
 0x165   :  { %4370 = vmatpush2.bf16.msra.mxu1 %v20375_v27  ;;  %4330 = vmatprep.subr.bf16.mxu0 %v20380_v29  ;;  %v20434_v27 = vld [vmem:[#allocation5 + $0x14] ss:$40 sps:$4 sm:$0xff]   ;;  %v20432_v29 = vld [vmem:[#allocation5 + $0x10] ss:$40 sps:$4 sm:$0xff]  }
 0x166   :  { %4371 = vmatprep.subr.bf16.mxu1 %v20383_v30  ;;  %v20435_v30 = vld [vmem:[#allocation5 + $0x510] ss:$40 sps:$4 sm:$0xff]  }
 0x168   :  { %4331 = vmatpush2.bf16.msra.mxu0 %v20378_v31  ;;  %v20440_v31 = vld [vmem:[#allocation5 + $0x4c4] ss:$40 sps:$4 sm:$0xff]  }
 0x169   :  { %4372 = vmatpush2.bf16.msra.mxu1 %v20381_v32  ;;  %4332 = vmatprep.subr.bf16.mxu0 %v20386_v34  ;;  %v20443_v32 = vld [vmem:[#allocation5 + $0x9c4] ss:$40 sps:$4 sm:$0xff]   ;;  %v20438_v34 = vld [vmem:[#allocation5 + $0x4c0] ss:$40 sps:$4 sm:$0xff]  }
 0x16a   :  { %4373 = vmatprep.subr.bf16.mxu1 %v20389_v35  ;;  %v20441_v35 = vld [vmem:[#allocation5 + $0x9c0] ss:$40 sps:$4 sm:$0xff]  }
 0x16c   :  { %4333 = vmatpush2.bf16.msra.mxu0 %v20384_v36  ;;  %v20446_v36 = vld [vmem:[#allocation5 + $0x474] ss:$40 sps:$4 sm:$0xff]  }
 0x16d   :  { %4374 = vmatpush2.bf16.msra.mxu1 %v20387_v38  ;;  %4384 = vmatprep.subr.bf16.mxu0 %v20392_v42  ;;  %v20449_v38 = vld [vmem:[#allocation5 + $0x974] ss:$40 sps:$4 sm:$0xff]   ;;  %v20447_v42 = vld [vmem:[#allocation5 + $0x970] ss:$40 sps:$4 sm:$0xff]  }
 0x16e   :  { %4425 = vmatprep.subr.bf16.mxu1 %v20395_v43  ;;  %v20452_v43 = vld [vmem:[#allocation5 + $0x424] ss:$40 sps:$4 sm:$0xff]  }
 0x16f   :  { %v4090_v53 = vpop.f32.mrf.mxu0  ;;  %4335 = vmatmul.mubr.bf16.vlgmr.msra.gmra.mxu0 %v23773_v20 }
 0x170   :  { %v4131_v54 = vpop.f32.mrf.mxu1  ;;  %4376 = vmatmul.mubr.bf16.vlgmr.msra.gmra.mxu1 %v23775_v21  ;;  %v4091_v56 = vadd.f32 %v4090_v53, %v809_v46  ;;  %4385 = vmatpush1.bf16.msra.mxu0 %v20390_v45  ;;  %v20455_v45 = vld [vmem:[#allocation5 + $0x924] ss:$40 sps:$4 sm:$0xff]   ;;  %v20450_v46 = vld [vmem:[#allocation5 + $0x420] ss:$40 sps:$4 sm:$0xff]   ;;  %v20459_v53 = vld [vmem:[#allocation5 + $0x8d0] ss:$40 sps:$4 sm:$0xff]  }
 0x171   :  { %4426 = vmatpush1.bf16.msra.mxu1 %v20393_v47  ;;  %v4092_v58 = vpop.f32.mrf.mxu0  ;;  %4386 = vmatprep.subr.bf16.mxu0 %v20398_v48  ;;  %v20453_v47 = vld [vmem:[#allocation5 + $0x920] ss:$40 sps:$4 sm:$0xff]   ;;  %v20458_v48 = vld [vmem:[#allocation5 + $0x3d4] ss:$40 sps:$4 sm:$0xff]  }
 0x172   :  { %v4133_v59 = vpop.f32.mrf.mxu1  ;;  %4427 = vmatprep.subr.bf16.mxu1 %v20401_v50  ;;  %v23797_v62 = vadd.f32 %v4131_v54, %v4091_v56  ;;  %v4093_v63 = vadd.f32 %v4092_v58, %v813_v51  ;;  %4416 = vmatprep.mubr.bf16.mxu0 %v23755_v49  ;;  %v20461_v50 = vld [vmem:[#allocation5 + $0x8d4] ss:$40 sps:$4 sm:$0xff]   ;;  %v20456_v51 = vld [vmem:[#allocation5 + $0x3d0] ss:$40 sps:$4 sm:$0xff]   ;;  %v20464_v54 = vld [vmem:[#allocation5 + $0x384] ss:$40 sps:$4 sm:$0xff]  }
 0x173   :  { %4457 = vmatprep.mubr.bf16.mxu1 %v23757_v52  ;;  %v4094_v0 = vpop.f32.mrf.mxu0  ;;  %v20462_v56 = vld [vmem:[#allocation5 + $0x380] ss:$40 sps:$4 sm:$0xff]   ;;  %v20470_v58 = vld [vmem:[#allocation5 + $0x334] ss:$40 sps:$4 sm:$0xff]  }
 0x174   :  { %v4135_v1 = vpop.f32.mrf.mxu1  ;;  %v23801_v3 = vadd.f32 %v4133_v59, %v4093_v63  ;;  %4387 = vmatpush1.bf16.msra.mxu0 %v20396_v55  ;;  %v20467_v55 = vld [vmem:[#allocation5 + $0x884] ss:$40 sps:$4 sm:$0xff]   ;;  %v20473_v59 = vld [vmem:[#allocation5 + $0x834] ss:$40 sps:$4 sm:$0xff]  }
 0x175   :  { %4428 = vmatpush1.bf16.msra.mxu1 %v20399_v57  ;;  %v4095_v5 = vpop.f32.mrf.mxu0  ;;  %4388 = vmatprep.subr.bf16.mxu0 %v20404_v60  ;;  %v20465_v57 = vld [vmem:[#allocation5 + $0x880] ss:$40 sps:$4 sm:$0xff]   ;;  %v20468_v60 = vld [vmem:[#allocation5 + $0x330] ss:$40 sps:$4 sm:$0xff]   ;;  %v20476_v63 = vld [vmem:[#allocation5 + $0x2e4] ss:$40 sps:$4 sm:$0xff]  }
 0x176   :  { %v4136_v6 = vpop.f32.mrf.mxu1  ;;  %4429 = vmatprep.subr.bf16.mxu1 %v20407_v61  ;;  %v20471_v61 = vld [vmem:[#allocation5 + $0x830] ss:$40 sps:$4 sm:$0xff]   ;;  %v20479_v0 = vld [vmem:[#allocation5 + $0x7e4] ss:$40 sps:$4 sm:$0xff]   ;;  %v20474_v1 = vld [vmem:[#allocation5 + $0x2e0] ss:$40 sps:$4 sm:$0xff]  }
 0x177   :  { %v20485_v5 = vld [vmem:[#allocation5 + $0x794] ss:$40 sps:$4 sm:$0xff]   ;;  %v20480_v6 = vld [vmem:[#allocation5 + $0x290] ss:$40 sps:$4 sm:$0xff]  }
 0x178   :  { %4389 = vmatpush1.bf16.msra.mxu0 %v20402_v2  ;;  %v20477_v2 = vld [vmem:[#allocation5 + $0x7e0] ss:$40 sps:$4 sm:$0xff]  }
 0x179   :  { %4430 = vmatpush1.bf16.msra.mxu1 %v20405_v4  ;;  %4390 = vmatprep.subr.bf16.mxu0 %v20410_v7  ;;  %v20482_v4 = vld [vmem:[#allocation5 + $0x294] ss:$40 sps:$4 sm:$0xff]   ;;  %v20483_v7 = vld [vmem:[#allocation5 + $0x790] ss:$40 sps:$4 sm:$0xff]  }
 0x17a   :  { %4431 = vmatprep.subr.bf16.mxu1 %v20413_v10  ;;  %v20488_v10 = vld [vmem:[#allocation5 + $0xc44] ss:$40 sps:$4 sm:$0xff]  }
 0x17c   :  { %4391 = vmatpush1.bf16.msra.mxu0 %v20408_v11  ;;  %v20491_v11 = vld [vmem:[#allocation5 + $0x1144] ss:$40 sps:$4 sm:$0xff]  }
 0x17d   :  { %4432 = vmatpush1.bf16.msra.mxu1 %v20411_v12  ;;  %4392 = vmatprep.subr.bf16.mxu0 %v20416_v13  ;;  %v20486_v12 = vld [vmem:[#allocation5 + $0xc40] ss:$40 sps:$4 sm:$0xff]  }
 0x17e   :  { %4433 = vmatprep.subr.bf16.mxu1 %v20419_v14  ;;  %v20489_v13 = vld [vmem:[#allocation5 + $0x1140] ss:$40 sps:$4 sm:$0xff]   ;;  %v20494_v14 = vld [vmem:[#allocation5 + $0xbf4] ss:$40 sps:$4 sm:$0xff]  }
 0x180   :  { %4393 = vmatpush1.bf16.msra.mxu0 %v20414_v15  ;;  %v20497_v15 = vld [vmem:[#allocation5 + $0x10f4] ss:$40 sps:$4 sm:$0xff]  }
 0x181   :  { %4434 = vmatpush1.bf16.msra.mxu1 %v20417_v16  ;;  %4394 = vmatprep.subr.bf16.mxu0 %v20422_v17  ;;  %v20492_v16 = vld [vmem:[#allocation5 + $0xbf0] ss:$40 sps:$4 sm:$0xff]  }
 0x182   :  { %4435 = vmatprep.subr.bf16.mxu1 %v20425_v18  ;;  %v20495_v17 = vld [vmem:[#allocation5 + $0x10f0] ss:$40 sps:$4 sm:$0xff]  }
 0x184   :  { %4395 = vmatpush1.bf16.msra.mxu0 %v20420_v19 }
 0x185   :  { %4436 = vmatpush1.bf16.msra.mxu1 %v20423_v22  ;;  %4396 = vmatprep.subr.bf16.mxu0 %v20428_v23 }
 0x186   :  { %4437 = vmatprep.subr.bf16.mxu1 %v20431_v24 }
 0x188   :  { %4397 = vmatpush1.bf16.msra.mxu0 %v20426_v25  ;;  %v20500_v25 = vld [vmem:[#allocation5 + $0xba4] ss:$40 sps:$4 sm:$0xff]  }
 0x189   :  { %4438 = vmatpush1.bf16.msra.mxu1 %v20429_v26  ;;  %4398 = vmatprep.subr.bf16.mxu0 %v20434_v27  ;;  %v20503_v26 = vld [vmem:[#allocation5 + $0x10a4] ss:$40 sps:$4 sm:$0xff]  }
 0x18a   :  { %4439 = vmatprep.subr.bf16.mxu1 %v20437_v28 }
 0x18c   :  { %4399 = vmatpush1.bf16.msra.mxu0 %v20432_v29  ;;  %v20498_v29 = vld [vmem:[#allocation5 + $0xba0] ss:$40 sps:$4 sm:$0xff]  }
 0x18d   :  { %4440 = vmatpush1.bf16.msra.mxu1 %v20435_v30  ;;  %4400 = vmatprep.subr.bf16.mxu0 %v20440_v31  ;;  %v20501_v30 = vld [vmem:[#allocation5 + $0x10a0] ss:$40 sps:$4 sm:$0xff]  }
 0x18e   :  { %4441 = vmatprep.subr.bf16.mxu1 %v20443_v32 }
 0x190   :  { %4401 = vmatpush2.bf16.msra.mxu0 %v20438_v34 }
 0x191   :  { %4442 = vmatpush2.bf16.msra.mxu1 %v20441_v35  ;;  %4402 = vmatprep.subr.bf16.mxu0 %v20446_v36  ;;  %v20506_v36 = vld [vmem:[#allocation5 + $0xb54] ss:$40 sps:$4 sm:$0xff]  }
 0x192   :  { %4443 = vmatprep.subr.bf16.mxu1 %v20449_v38  ;;  %v20509_v38 = vld [vmem:[#allocation5 + $0x1054] ss:$40 sps:$4 sm:$0xff]  }
 0x194   :  { %4403 = vmatpush2.bf16.msra.mxu0 %v20444_v39  ;;  %v20507_v39 = vld [vmem:[#allocation5 + $0x1050] ss:$40 sps:$4 sm:$0xff]  }
 0x195   :  { %4444 = vmatpush2.bf16.msra.mxu1 %v20447_v42  ;;  %4404 = vmatprep.subr.bf16.mxu0 %v20452_v43  ;;  %v20512_v42 = vld [vmem:[#allocation5 + $0xb04] ss:$40 sps:$4 sm:$0xff]  }
 0x196   :  { %4445 = vmatprep.subr.bf16.mxu1 %v20455_v45  ;;  %v20515_v43 = vld [vmem:[#allocation5 + $0x1004] ss:$40 sps:$4 sm:$0xff]   ;;  %v20510_v45 = vld [vmem:[#allocation5 + $0xb00] ss:$40 sps:$4 sm:$0xff]  }
 0x198   :  { %4405 = vmatpush2.bf16.msra.mxu0 %v20450_v46  ;;  %v20513_v46 = vld [vmem:[#allocation5 + $0x1000] ss:$40 sps:$4 sm:$0xff]  }
 0x199   :  { %4446 = vmatpush2.bf16.msra.mxu1 %v20453_v47  ;;  %4406 = vmatprep.subr.bf16.mxu0 %v20458_v48  ;;  %v20518_v47 = vld [vmem:[#allocation5 + $0xab4] ss:$40 sps:$4 sm:$0xff]  }
 0x19a   :  { %4447 = vmatprep.subr.bf16.mxu1 %v20461_v50  ;;  %v20521_v48 = vld [vmem:[#allocation5 + $0xfb4] ss:$40 sps:$4 sm:$0xff]   ;;  %v20516_v50 = vld [vmem:[#allocation5 + $0xab0] ss:$40 sps:$4 sm:$0xff]  }
 0x19c   :  { %4407 = vmatpush2.bf16.msra.mxu0 %v20456_v51  ;;  %v20519_v51 = vld [vmem:[#allocation5 + $0xfb0] ss:$40 sps:$4 sm:$0xff]  }
 0x19d   :  { %4448 = vmatpush2.bf16.msra.mxu1 %v20459_v53  ;;  %4408 = vmatprep.subr.bf16.mxu0 %v20464_v54  ;;  %v20524_v53 = vld [vmem:[#allocation5 + $0xa64] ss:$40 sps:$4 sm:$0xff]  }
 0x19e   :  { %4449 = vmatprep.subr.bf16.mxu1 %v20467_v55  ;;  %v20527_v54 = vld [vmem:[#allocation5 + $0xf64] ss:$40 sps:$4 sm:$0xff]   ;;  %v20522_v55 = vld [vmem:[#allocation5 + $0xa60] ss:$40 sps:$4 sm:$0xff]  }
 0x1a0   :  { %4409 = vmatpush2.bf16.msra.mxu0 %v20462_v56  ;;  %v20525_v56 = vld [vmem:[#allocation5 + $0xf60] ss:$40 sps:$4 sm:$0xff]  }
 0x1a1   :  { %4450 = vmatpush2.bf16.msra.mxu1 %v20465_v57  ;;  %4410 = vmatprep.subr.bf16.mxu0 %v20470_v58  ;;  %v20530_v57 = vld [vmem:[#allocation5 + $0xa14] ss:$40 sps:$4 sm:$0xff]  }
 0x1a2   :  { %4451 = vmatprep.subr.bf16.mxu1 %v20473_v59  ;;  %v20533_v58 = vld [vmem:[#allocation5 + $0xf14] ss:$40 sps:$4 sm:$0xff]   ;;  %v20528_v59 = vld [vmem:[#allocation5 + $0xa10] ss:$40 sps:$4 sm:$0xff]  }
 0x1a4   :  { %4411 = vmatpush2.bf16.msra.mxu0 %v20468_v60  ;;  %v20531_v60 = vld [vmem:[#allocation5 + $0xf10] ss:$40 sps:$4 sm:$0xff]  }
 0x1a5   :  { %4452 = vmatpush2.bf16.msra.mxu1 %v20471_v61  ;;  %4412 = vmatprep.subr.bf16.mxu0 %v20476_v63  ;;  %v20536_v61 = vld [vmem:[#allocation5 + $0xec4] ss:$40 sps:$4 sm:$0xff]  }
 0x1a6   :  { %4453 = vmatprep.subr.bf16.mxu1 %v20479_v0  ;;  %v20539_v63 = vld [vmem:[#allocation5 + $0x13c4] ss:$40 sps:$4 sm:$0xff]   ;;  %v20534_v0 = vld [vmem:[#allocation5 + $0xec0] ss:$40 sps:$4 sm:$0xff]  }
 0x1a8   :  { %4413 = vmatpush2.bf16.msra.mxu0 %v20474_v1  ;;  %v20537_v1 = vld [vmem:[#allocation5 + $0x13c0] ss:$40 sps:$4 sm:$0xff]  }
 0x1a9   :  { %4454 = vmatpush2.bf16.msra.mxu1 %v20477_v2  ;;  %4414 = vmatprep.subr.bf16.mxu0 %v20482_v4  ;;  %v20542_v2 = vld [vmem:[#allocation5 + $0xe74] ss:$40 sps:$4 sm:$0xff]  }
 0x1aa   :  { %4455 = vmatprep.subr.bf16.mxu1 %v20485_v5  ;;  %v20545_v4 = vld [vmem:[#allocation5 + $0x1374] ss:$40 sps:$4 sm:$0xff]   ;;  %v20540_v5 = vld [vmem:[#allocation5 + $0xe70] ss:$40 sps:$4 sm:$0xff]  }
 0x1ac   :  { %4415 = vmatpush2.bf16.msra.mxu0 %v20480_v6  ;;  %v20543_v6 = vld [vmem:[#allocation5 + $0x1370] ss:$40 sps:$4 sm:$0xff]  }
 0x1ad   :  { %4456 = vmatpush2.bf16.msra.mxu1 %v20483_v7  ;;  %4466 = vmatprep.subr.bf16.mxu0 %v20488_v10  ;;  %v20548_v7 = vld [vmem:[#allocation5 + $0xe24] ss:$40 sps:$4 sm:$0xff]  }
 0x1ae   :  { %4507 = vmatprep.subr.bf16.mxu1 %v20491_v11  ;;  %v20551_v10 = vld [vmem:[#allocation5 + $0x1324] ss:$40 sps:$4 sm:$0xff]   ;;  %v20546_v11 = vld [vmem:[#allocation5 + $0xe20] ss:$40 sps:$4 sm:$0xff]  }
 0x1af   :  { %v4172_v18 = vpop.f32.mrf.mxu0  ;;  %4417 = vmatmul.mubr.bf16.vlgmr.msra.gmra.mxu0 %v23761_v8 }
 0x1b0   :  { %v4213_v19 = vpop.f32.mrf.mxu1  ;;  %4458 = vmatmul.mubr.bf16.vlgmr.msra.gmra.mxu1 %v23763_v9  ;;  %v4173_v22 = vadd.f32 %v4172_v18, %v23797_v62  ;;  %4467 = vmatpush1.bf16.msra.mxu0 %v20486_v12  ;;  %v20549_v12 = vld [vmem:[#allocation5 + $0x1320] ss:$40 sps:$4 sm:$0xff]   ;;  %v20563_v18 = vld [vmem:[#allocation5 + $0x1284] ss:$40 sps:$4 sm:$0xff]  }
 0x1b1   :  { %4508 = vmatpush1.bf16.msra.mxu1 %v20489_v13  ;;  %v4174_v23 = vpop.f32.mrf.mxu0  ;;  %4468 = vmatprep.subr.bf16.mxu0 %v20494_v14  ;;  %v20554_v13 = vld [vmem:[#allocation5 + $0xdd4] ss:$40 sps:$4 sm:$0xff]  }
 0x1b2   :  { %v4215_v24 = vpop.f32.mrf.mxu1  ;;  %4509 = vmatprep.subr.bf16.mxu1 %v20497_v15  ;;  %v23806_v27 = vadd.f32 %v4213_v19, %v4173_v22  ;;  %v4175_v28 = vadd.f32 %v4174_v23, %v23801_v3  ;;  %4498 = vmatprep.mubr.bf16.mxu0 %v23767_v37  ;;  %v20504_v3 = vld [vmem:[#allocation5 + $0xb50] ss:$40 sps:$4 sm:$0xff]   ;;  %v20557_v14 = vld [vmem:[#allocation5 + $0x12d4] ss:$40 sps:$4 sm:$0xff]   ;;  %v20558_v19 = vld [vmem:[#allocation5 + $0xd80] ss:$40 sps:$4 sm:$0xff]  }
 0x1b3   :  { %4539 = vmatprep.mubr.bf16.mxu1 %v23769_v40  ;;  %v4176_v31 = vpop.f32.mrf.mxu0  ;;  %v20552_v15 = vld [vmem:[#allocation5 + $0xdd0] ss:$40 sps:$4 sm:$0xff]   ;;  %v20561_v22 = vld [vmem:[#allocation5 + $0x1280] ss:$40 sps:$4 sm:$0xff]   ;;  %v20566_v23 = vld [vmem:[#allocation5 + $0xd34] ss:$40 sps:$4 sm:$0xff]  }
 0x1b4   :  { %v4217_v62 = vpop.f32.mrf.mxu1  ;;  %v23811_v32 = vadd.f32 %v4215_v24, %v4175_v28  ;;  %4469 = vmatpush1.bf16.msra.mxu0 %v20492_v16  ;;  %v20555_v16 = vld [vmem:[#allocation5 + $0x12d0] ss:$40 sps:$4 sm:$0xff]   ;;  %v20569_v24 = vld [vmem:[#allocation5 + $0x1234] ss:$40 sps:$4 sm:$0xff]   ;;  %v20572_v28 = vld [vmem:[#allocation5 + $0xce4] ss:$40 sps:$4 sm:$0xff]  }
 0x1b5   :  { %4510 = vmatpush1.bf16.msra.mxu1 %v20495_v17  ;;  %v4177_v34 = vpop.f32.mrf.mxu0  ;;  %4470 = vmatprep.subr.bf16.mxu0 %v20500_v25  ;;  %v20560_v17 = vld [vmem:[#allocation5 + $0xd84] ss:$40 sps:$4 sm:$0xff]   ;;  %v20564_v25 = vld [vmem:[#allocation5 + $0xd30] ss:$40 sps:$4 sm:$0xff]   ;;  %v20573_v31 = vld [vmem:[#allocation5 + $0x11e0] ss:$40 sps:$4 sm:$0xff]  }
 0x1b6   :  { %v4218_v35 = vpop.f32.mrf.mxu1  ;;  %4511 = vmatprep.subr.bf16.mxu1 %v20503_v26  ;;  %v20567_v26 = vld [vmem:[#allocation5 + $0x1230] ss:$40 sps:$4 sm:$0xff]   ;;  %v20578_v62 = vld [vmem:[#allocation5 + $0xc94] ss:$40 sps:$4 sm:$0xff]  }
 0x1b7   :  { %v20581_v34 = vld [vmem:[#allocation5 + $0x1194] ss:$40 sps:$4 sm:$0xff]   ;;  %v20576_v35 = vld [vmem:[#allocation5 + $0xc90] ss:$40 sps:$4 sm:$0xff]  }
 0x1b8   :  { %4471 = vmatpush1.bf16.msra.mxu0 %v20498_v29  ;;  %v20575_v29 = vld [vmem:[#allocation5 + $0x11e4] ss:$40 sps:$4 sm:$0xff]  }
 0x1b9   :  { %4512 = vmatpush1.bf16.msra.mxu1 %v20501_v30  ;;  %4472 = vmatprep.subr.bf16.mxu0 %v20506_v36  ;;  %v20570_v30 = vld [vmem:[#allocation5 + $0xce0] ss:$40 sps:$4 sm:$0xff]   ;;  %v20579_v36 = vld [vmem:[#allocation5 + $0x1190] ss:$40 sps:$4 sm:$0xff]  }
 0x1ba   :  { %4513 = vmatprep.subr.bf16.mxu1 %v20509_v38  ;;  %v23814_v38 = vsub.s32 2, %v23785_v33 }
 0x1bc   :  { %4473 = vmatpush1.bf16.msra.mxu0 %v20504_v3  ;;  %v20584_v3 = vld [vmem:[#allocation5 + $0x24c] ss:$40 sps:$4 sm:$0xff]  }
 0x1bd   :  { %4514 = vmatpush1.bf16.msra.mxu1 %v20507_v39  ;;  %4474 = vmatprep.subr.bf16.mxu0 %v20512_v42  ;;  %v20587_v39 = vld [vmem:[#allocation5 + $0x74c] ss:$40 sps:$4 sm:$0xff]   ;;  %v20582_v42 = vld [vmem:[#allocation5 + $0x248] ss:$40 sps:$4 sm:$0xff]  }
 0x1be   :  { %4515 = vmatprep.subr.bf16.mxu1 %v20515_v43  ;;  %v20585_v43 = vld [vmem:[#allocation5 + $0x748] ss:$40 sps:$4 sm:$0xff]  }
 0x1c0   :  { %4475 = vmatpush1.bf16.msra.mxu0 %v20510_v45  ;;  %v23817_v45 = vsub.s32 3, %v23785_v33 }
 0x1c1   :  { %4516 = vmatpush1.bf16.msra.mxu1 %v20513_v46  ;;  %4476 = vmatprep.subr.bf16.mxu0 %v20518_v47  ;;  %v23446_v46 = vld [vmem:[#allocation7] sm:$0xff] }
 0x1c2   :  { %4517 = vmatprep.subr.bf16.mxu1 %v20521_v48  ;;  %v817_v47 = vrot.slane %v23446_v46, %v23814_v38  ;;  %v20590_v48 = vld [vmem:[#allocation5 + $0x1fc] ss:$40 sps:$4 sm:$0xff]  }
 0x1c4   :  { %4477 = vmatpush1.bf16.msra.mxu0 %v20516_v50  ;;  %v20593_v50 = vld [vmem:[#allocation5 + $0x6fc] ss:$40 sps:$4 sm:$0xff]  }
 0x1c5   :  { %4518 = vmatpush1.bf16.msra.mxu1 %v20519_v51  ;;  %4478 = vmatprep.subr.bf16.mxu0 %v20524_v53  ;;  %v821_v51 = vrot.slane %v23446_v46, %v23817_v45  ;;  %v20588_v53 = vld [vmem:[#allocation5 + $0x1f8] ss:$40 sps:$4 sm:$0xff]  }
 0x1c6   :  { %4519 = vmatprep.subr.bf16.mxu1 %v20527_v54  ;;  %v20591_v54 = vld [vmem:[#allocation5 + $0x6f8] ss:$40 sps:$4 sm:$0xff]  }
 0x1c7   :  { %v20636_v46 = vld [vmem:[#allocation5 + $0x478] ss:$40 sps:$4 sm:$0xff]  }
 0x1c8   :  { %4479 = vmatpush1.bf16.msra.mxu0 %v20522_v55 }
 0x1c9   :  { %4520 = vmatpush1.bf16.msra.mxu1 %v20525_v56  ;;  %4480 = vmatprep.subr.bf16.mxu0 %v20530_v57 }
 0x1ca   :  { %4521 = vmatprep.subr.bf16.mxu1 %v20533_v58 }
 0x1cc   :  { %4481 = vmatpush1.bf16.msra.mxu0 %v20528_v59 }
 0x1cd   :  { %4522 = vmatpush1.bf16.msra.mxu1 %v20531_v60  ;;  %4482 = vmatprep.subr.bf16.mxu0 %v20536_v61  ;;  %v20596_v60 = vld [vmem:[#allocation5 + $0x1ac] ss:$40 sps:$4 sm:$0xff]  }
 0x1ce   :  { %4523 = vmatprep.subr.bf16.mxu1 %v20539_v63  ;;  %v20599_v61 = vld [vmem:[#allocation5 + $0x6ac] ss:$40 sps:$4 sm:$0xff]  }
 0x1d0   :  { %4483 = vmatpush2.bf16.msra.mxu0 %v20534_v0 }
 0x1d1   :  { %4524 = vmatpush2.bf16.msra.mxu1 %v20537_v1  ;;  %4484 = vmatprep.subr.bf16.mxu0 %v20542_v2  ;;  %v20594_v1 = vld [vmem:[#allocation5 + $0x1a8] ss:$40 sps:$4 sm:$0xff]  }
 0x1d2   :  { %4525 = vmatprep.subr.bf16.mxu1 %v20545_v4  ;;  %v20597_v2 = vld [vmem:[#allocation5 + $0x6a8] ss:$40 sps:$4 sm:$0xff]  }
 0x1d4   :  { %4485 = vmatpush2.bf16.msra.mxu0 %v20540_v5 }
 0x1d5   :  { %4526 = vmatpush2.bf16.msra.mxu1 %v20543_v6  ;;  %4486 = vmatprep.subr.bf16.mxu0 %v20548_v7 }
 0x1d6   :  { %4527 = vmatprep.subr.bf16.mxu1 %v20551_v10 }
 0x1d8   :  { %4487 = vmatpush2.bf16.msra.mxu0 %v20546_v11  ;;  %v20602_v11 = vld [vmem:[#allocation5 + $0x15c] ss:$40 sps:$4 sm:$0xff]  }
 0x1d9   :  { %4528 = vmatpush2.bf16.msra.mxu1 %v20549_v12  ;;  %4488 = vmatprep.subr.bf16.mxu0 %v20554_v13  ;;  %v20605_v12 = vld [vmem:[#allocation5 + $0x65c] ss:$40 sps:$4 sm:$0xff]   ;;  %v20600_v13 = vld [vmem:[#allocation5 + $0x158] ss:$40 sps:$4 sm:$0xff]  }
 0x1da   :  { %4529 = vmatprep.subr.bf16.mxu1 %v20557_v14  ;;  %v20603_v14 = vld [vmem:[#allocation5 + $0x658] ss:$40 sps:$4 sm:$0xff]  }
 0x1dc   :  { %4489 = vmatpush2.bf16.msra.mxu0 %v20552_v15  ;;  %v20608_v15 = vld [vmem:[#allocation5 + $0x10c] ss:$40 sps:$4 sm:$0xff]  }
 0x1dd   :  { %4530 = vmatpush2.bf16.msra.mxu1 %v20555_v16  ;;  %4490 = vmatprep.subr.bf16.mxu0 %v20560_v17  ;;  %v20611_v16 = vld [vmem:[#allocation5 + $0x60c] ss:$40 sps:$4 sm:$0xff]   ;;  %v20606_v17 = vld [vmem:[#allocation5 + $0x108] ss:$40 sps:$4 sm:$0xff]  }
 0x1de   :  { %4531 = vmatprep.subr.bf16.mxu1 %v20563_v18  ;;  %v20609_v18 = vld [vmem:[#allocation5 + $0x608] ss:$40 sps:$4 sm:$0xff]  }
 0x1e0   :  { %4491 = vmatpush2.bf16.msra.mxu0 %v20558_v19  ;;  %v20614_v19 = vld [vmem:[#allocation5 + $0xbc] ss:$40 sps:$4 sm:$0xff]  }
 0x1e1   :  { %4532 = vmatpush2.bf16.msra.mxu1 %v20561_v22  ;;  %4492 = vmatprep.subr.bf16.mxu0 %v20566_v23  ;;  %v20617_v22 = vld [vmem:[#allocation5 + $0x5bc] ss:$40 sps:$4 sm:$0xff]   ;;  %v20612_v23 = vld [vmem:[#allocation5 + $0xb8] ss:$40 sps:$4 sm:$0xff]  }
 0x1e2   :  { %4533 = vmatprep.subr.bf16.mxu1 %v20569_v24  ;;  %v20615_v24 = vld [vmem:[#allocation5 + $0x5b8] ss:$40 sps:$4 sm:$0xff]  }
 0x1e4   :  { %4493 = vmatpush2.bf16.msra.mxu0 %v20564_v25  ;;  %v20620_v25 = vld [vmem:[#allocation5 + $0x6c] ss:$40 sps:$4 sm:$0xff]  }
 0x1e5   :  { %4534 = vmatpush2.bf16.msra.mxu1 %v20567_v26  ;;  %4494 = vmatprep.subr.bf16.mxu0 %v20572_v28  ;;  %v20623_v26 = vld [vmem:[#allocation5 + $0x56c] ss:$40 sps:$4 sm:$0xff]   ;;  %v20618_v28 = vld [vmem:[#allocation5 + $0x68] ss:$40 sps:$4 sm:$0xff]  }
 0x1e6   :  { %4535 = vmatprep.subr.bf16.mxu1 %v20575_v29  ;;  %v20621_v29 = vld [vmem:[#allocation5 + $0x568] ss:$40 sps:$4 sm:$0xff]  }
 0x1e8   :  { %4495 = vmatpush2.bf16.msra.mxu0 %v20570_v30  ;;  %v20626_v30 = vld [vmem:[#allocation5 + $0x1c] ss:$40 sps:$4 sm:$0xff]  }
 0x1e9   :  { %4536 = vmatpush2.bf16.msra.mxu1 %v20573_v31  ;;  %4496 = vmatprep.subr.bf16.mxu0 %v20578_v62  ;;  %v20629_v31 = vld [vmem:[#allocation5 + $0x51c] ss:$40 sps:$4 sm:$0xff]   ;;  %v20624_v62 = vld [vmem:[#allocation5 + $0x18] ss:$40 sps:$4 sm:$0xff]  }
 0x1ea   :  { %4537 = vmatprep.subr.bf16.mxu1 %v20581_v34  ;;  %v20627_v34 = vld [vmem:[#allocation5 + $0x518] ss:$40 sps:$4 sm:$0xff]  }
 0x1ec   :  { %4497 = vmatpush2.bf16.msra.mxu0 %v20576_v35  ;;  %v20632_v35 = vld [vmem:[#allocation5 + $0x4cc] ss:$40 sps:$4 sm:$0xff]  }
 0x1ed   :  { %4538 = vmatpush2.bf16.msra.mxu1 %v20579_v36  ;;  %4548 = vmatprep.subr.bf16.mxu0 %v20584_v3  ;;  %v20635_v36 = vld [vmem:[#allocation5 + $0x9cc] ss:$40 sps:$4 sm:$0xff]   ;;  %v20630_v3 = vld [vmem:[#allocation5 + $0x4c8] ss:$40 sps:$4 sm:$0xff]  }
 0x1ee   :  { %4589 = vmatprep.subr.bf16.mxu1 %v20587_v39  ;;  %v20633_v39 = vld [vmem:[#allocation5 + $0x9c8] ss:$40 sps:$4 sm:$0xff]  }
 0x1ef   :  { %v4254_v55 = vpop.f32.mrf.mxu0  ;;  %4499 = vmatmul.mubr.bf16.vlgmr.msra.gmra.mxu0 %v23773_v20 }
 0x1f0   :  { %v4295_v56 = vpop.f32.mrf.mxu1  ;;  %4540 = vmatmul.mubr.bf16.vlgmr.msra.gmra.mxu1 %v23775_v21  ;;  %v4255_v57 = vadd.f32 %v4254_v55, %v817_v47  ;;  %4549 = vmatpush1.bf16.msra.mxu0 %v20582_v42  ;;  %v20638_v42 = vld [vmem:[#allocation5 + $0x47c] ss:$40 sps:$4 sm:$0xff]   ;;  %v20639_v47 = vld [vmem:[#allocation5 + $0x978] ss:$40 sps:$4 sm:$0xff]  }
 0x1f1   :  { %4590 = vmatpush1.bf16.msra.mxu1 %v20585_v43  ;;  %v4256_v58 = vpop.f32.mrf.mxu0  ;;  %4550 = vmatprep.subr.bf16.mxu0 %v20590_v48  ;;  %v20641_v43 = vld [vmem:[#allocation5 + $0x97c] ss:$40 sps:$4 sm:$0xff]   ;;  %v20644_v48 = vld [vmem:[#allocation5 + $0x42c] ss:$40 sps:$4 sm:$0xff]  }
 0x1f2   :  { %v4297_v59 = vpop.f32.mrf.mxu1  ;;  %4591 = vmatprep.subr.bf16.mxu1 %v20593_v50  ;;  %v23823_v63 = vadd.f32 %v4295_v56, %v4255_v57  ;;  %v4257_v0 = vadd.f32 %v4256_v58, %v821_v51  ;;  %4580 = vmatprep.mubr.bf16.mxu0 %v23755_v49  ;;  %v20647_v50 = vld [vmem:[#allocation5 + $0x92c] ss:$40 sps:$4 sm:$0xff]   ;;  %v20642_v51 = vld [vmem:[#allocation5 + $0x428] ss:$40 sps:$4 sm:$0xff]   ;;  %v20653_v55 = vld [vmem:[#allocation5 + $0x8dc] ss:$40 sps:$4 sm:$0xff]  }
 0x1f3   :  { %4621 = vmatprep.mubr.bf16.mxu1 %v23757_v52  ;;  %v4258_v4 = vpop.f32.mrf.mxu0  ;;  %v20648_v56 = vld [vmem:[#allocation5 + $0x3d8] ss:$40 sps:$4 sm:$0xff]   ;;  %v20656_v58 = vld [vmem:[#allocation5 + $0x38c] ss:$40 sps:$4 sm:$0xff]  }
 0x1f4   :  { %v4299_v5 = vpop.f32.mrf.mxu1  ;;  %v23827_v6 = vadd.f32 %v4297_v59, %v4257_v0  ;;  %4551 = vmatpush1.bf16.msra.mxu0 %v20588_v53  ;;  %v20645_v53 = vld [vmem:[#allocation5 + $0x928] ss:$40 sps:$4 sm:$0xff]   ;;  %v20651_v57 = vld [vmem:[#allocation5 + $0x8d8] ss:$40 sps:$4 sm:$0xff]   ;;  %v20659_v59 = vld [vmem:[#allocation5 + $0x88c] ss:$40 sps:$4 sm:$0xff]  }
 0x1f5   :  { %4592 = vmatpush1.bf16.msra.mxu1 %v20591_v54  ;;  %v4259_v7 = vpop.f32.mrf.mxu0  ;;  %4552 = vmatprep.subr.bf16.mxu0 %v20596_v60  ;;  %v20650_v54 = vld [vmem:[#allocation5 + $0x3dc] ss:$40 sps:$4 sm:$0xff]   ;;  %v20654_v60 = vld [vmem:[#allocation5 + $0x388] ss:$40 sps:$4 sm:$0xff]   ;;  %v20663_v4 = vld [vmem:[#allocation5 + $0x838] ss:$40 sps:$4 sm:$0xff]  }
 0x1f6   :  { %v4300_v10 = vpop.f32.mrf.mxu1  ;;  %4593 = vmatprep.subr.bf16.mxu1 %v20599_v61  ;;  %v20657_v61 = vld [vmem:[#allocation5 + $0x888] ss:$40 sps:$4 sm:$0xff]   ;;  %v20662_v0 = vld [vmem:[#allocation5 + $0x33c] ss:$40 sps:$4 sm:$0xff]   ;;  %v20668_v5 = vld [vmem:[#allocation5 + $0x2ec] ss:$40 sps:$4 sm:$0xff]  }
 0x1f7   :  { %v20671_v7 = vld [vmem:[#allocation5 + $0x7ec] ss:$40 sps:$4 sm:$0xff]   ;;  %v20666_v10 = vld [vmem:[#allocation5 + $0x2e8] ss:$40 sps:$4 sm:$0xff]  }
 0x1f8   :  { %4553 = vmatpush1.bf16.msra.mxu0 %v20594_v1  ;;  %v20665_v1 = vld [vmem:[#allocation5 + $0x83c] ss:$40 sps:$4 sm:$0xff]  }
 0x1f9   :  { %4594 = vmatpush1.bf16.msra.mxu1 %v20597_v2  ;;  %4554 = vmatprep.subr.bf16.mxu0 %v20602_v11  ;;  %v20660_v2 = vld [vmem:[#allocation5 + $0x338] ss:$40 sps:$4 sm:$0xff]   ;;  %v20669_v11 = vld [vmem:[#allocation5 + $0x7e8] ss:$40 sps:$4 sm:$0xff]  }
 0x1fa   :  { %4595 = vmatprep.subr.bf16.mxu1 %v20605_v12  ;;  %v20674_v12 = vld [vmem:[#allocation5 + $0x29c] ss:$40 sps:$4 sm:$0xff]  }
 0x1fc   :  { %4555 = vmatpush1.bf16.msra.mxu0 %v20600_v13  ;;  %v20677_v13 = vld [vmem:[#allocation5 + $0x79c] ss:$40 sps:$4 sm:$0xff]  }
 0x1fd   :  { %4596 = vmatpush1.bf16.msra.mxu1 %v20603_v14  ;;  %4556 = vmatprep.subr.bf16.mxu0 %v20608_v15  ;;  %v20672_v14 = vld [vmem:[#allocation5 + $0x298] ss:$40 sps:$4 sm:$0xff]  }
 0x1fe   :  { %4597 = vmatprep.subr.bf16.mxu1 %v20611_v16  ;;  %v20675_v15 = vld [vmem:[#allocation5 + $0x798] ss:$40 sps:$4 sm:$0xff]   ;;  %v20680_v16 = vld [vmem:[#allocation5 + $0xc4c] ss:$40 sps:$4 sm:$0xff]  }
 0x200   :  { %4557 = vmatpush1.bf16.msra.mxu0 %v20606_v17  ;;  %v20683_v17 = vld [vmem:[#allocation5 + $0x114c] ss:$40 sps:$4 sm:$0xff]  }
 0x201   :  { %4598 = vmatpush1.bf16.msra.mxu1 %v20609_v18  ;;  %4558 = vmatprep.subr.bf16.mxu0 %v20614_v19  ;;  %v20678_v18 = vld [vmem:[#allocation5 + $0xc48] ss:$40 sps:$4 sm:$0xff]  }
 0x202   :  { %4599 = vmatprep.subr.bf16.mxu1 %v20617_v22  ;;  %v20681_v19 = vld [vmem:[#allocation5 + $0x1148] ss:$40 sps:$4 sm:$0xff]   ;;  %v20686_v22 = vld [vmem:[#allocation5 + $0xbfc] ss:$40 sps:$4 sm:$0xff]  }
 0x204   :  { %4559 = vmatpush1.bf16.msra.mxu0 %v20612_v23  ;;  %v20689_v23 = vld [vmem:[#allocation5 + $0x10fc] ss:$40 sps:$4 sm:$0xff]  }
 0x205   :  { %4600 = vmatpush1.bf16.msra.mxu1 %v20615_v24  ;;  %4560 = vmatprep.subr.bf16.mxu0 %v20620_v25  ;;  %v20684_v24 = vld [vmem:[#allocation5 + $0xbf8] ss:$40 sps:$4 sm:$0xff]  }
 0x206   :  { %4601 = vmatprep.subr.bf16.mxu1 %v20623_v26  ;;  %v20687_v25 = vld [vmem:[#allocation5 + $0x10f8] ss:$40 sps:$4 sm:$0xff]  }
 0x208   :  { %4561 = vmatpush1.bf16.msra.mxu0 %v20618_v28 }
 0x209   :  { %4602 = vmatpush1.bf16.msra.mxu1 %v20621_v29  ;;  %4562 = vmatprep.subr.bf16.mxu0 %v20626_v30 }
 0x20a   :  { %4603 = vmatprep.subr.bf16.mxu1 %v20629_v31 }
 0x20c   :  { %4563 = vmatpush1.bf16.msra.mxu0 %v20624_v62  ;;  %v20692_v62 = vld [vmem:[#allocation5 + $0xbac] ss:$40 sps:$4 sm:$0xff]  }
 0x20d   :  { %4604 = vmatpush1.bf16.msra.mxu1 %v20627_v34  ;;  %4564 = vmatprep.subr.bf16.mxu0 %v20632_v35  ;;  %v20695_v34 = vld [vmem:[#allocation5 + $0x10ac] ss:$40 sps:$4 sm:$0xff]  }
 0x20e   :  { %4605 = vmatprep.subr.bf16.mxu1 %v20635_v36 }
 0x210   :  { %4565 = vmatpush2.bf16.msra.mxu0 %v20630_v3  ;;  %v20690_v3 = vld [vmem:[#allocation5 + $0xba8] ss:$40 sps:$4 sm:$0xff]  }
 0x211   :  { %4606 = vmatpush2.bf16.msra.mxu1 %v20633_v39  ;;  %4566 = vmatprep.subr.bf16.mxu0 %v20638_v42  ;;  %v20693_v39 = vld [vmem:[#allocation5 + $0x10a8] ss:$40 sps:$4 sm:$0xff]  }
 0x212   :  { %4607 = vmatprep.subr.bf16.mxu1 %v20641_v43 }
 0x214   :  { %4567 = vmatpush2.bf16.msra.mxu0 %v20636_v46 }
 0x215   :  { %4608 = vmatpush2.bf16.msra.mxu1 %v20639_v47  ;;  %4568 = vmatprep.subr.bf16.mxu0 %v20644_v48  ;;  %v20698_v48 = vld [vmem:[#allocation5 + $0xb5c] ss:$40 sps:$4 sm:$0xff]  }
 0x216   :  { %4609 = vmatprep.subr.bf16.mxu1 %v20647_v50  ;;  %v20701_v50 = vld [vmem:[#allocation5 + $0x105c] ss:$40 sps:$4 sm:$0xff]  }
 0x218   :  { %4569 = vmatpush2.bf16.msra.mxu0 %v20642_v51  ;;  %v20699_v51 = vld [vmem:[#allocation5 + $0x1058] ss:$40 sps:$4 sm:$0xff]  }
 0x219   :  { %4610 = vmatpush2.bf16.msra.mxu1 %v20645_v53  ;;  %4570 = vmatprep.subr.bf16.mxu0 %v20650_v54  ;;  %v20704_v53 = vld [vmem:[#allocation5 + $0xb0c] ss:$40 sps:$4 sm:$0xff]  }
 0x21a   :  { %4611 = vmatprep.subr.bf16.mxu1 %v20653_v55  ;;  %v20707_v54 = vld [vmem:[#allocation5 + $0x100c] ss:$40 sps:$4 sm:$0xff]   ;;  %v20702_v55 = vld [vmem:[#allocation5 + $0xb08] ss:$40 sps:$4 sm:$0xff]  }
 0x21c   :  { %4571 = vmatpush2.bf16.msra.mxu0 %v20648_v56  ;;  %v20705_v56 = vld [vmem:[#allocation5 + $0x1008] ss:$40 sps:$4 sm:$0xff]  }
 0x21d   :  { %4612 = vmatpush2.bf16.msra.mxu1 %v20651_v57  ;;  %4572 = vmatprep.subr.bf16.mxu0 %v20656_v58  ;;  %v20710_v57 = vld [vmem:[#allocation5 + $0xabc] ss:$40 sps:$4 sm:$0xff]  }
 0x21e   :  { %4613 = vmatprep.subr.bf16.mxu1 %v20659_v59  ;;  %v20713_v58 = vld [vmem:[#allocation5 + $0xfbc] ss:$40 sps:$4 sm:$0xff]   ;;  %v20708_v59 = vld [vmem:[#allocation5 + $0xab8] ss:$40 sps:$4 sm:$0xff]  }
 0x220   :  { %4573 = vmatpush2.bf16.msra.mxu0 %v20654_v60  ;;  %v20711_v60 = vld [vmem:[#allocation5 + $0xfb8] ss:$40 sps:$4 sm:$0xff]  }
 0x221   :  { %4614 = vmatpush2.bf16.msra.mxu1 %v20657_v61  ;;  %4574 = vmatprep.subr.bf16.mxu0 %v20662_v0  ;;  %v20716_v61 = vld [vmem:[#allocation5 + $0xa6c] ss:$40 sps:$4 sm:$0xff]  }
 0x222   :  { %4615 = vmatprep.subr.bf16.mxu1 %v20665_v1  ;;  %v20719_v0 = vld [vmem:[#allocation5 + $0xf6c] ss:$40 sps:$4 sm:$0xff]   ;;  %v20714_v1 = vld [vmem:[#allocation5 + $0xa68] ss:$40 sps:$4 sm:$0xff]  }
 0x224   :  { %4575 = vmatpush2.bf16.msra.mxu0 %v20660_v2  ;;  %v20717_v2 = vld [vmem:[#allocation5 + $0xf68] ss:$40 sps:$4 sm:$0xff]  }
 0x225   :  { %4616 = vmatpush2.bf16.msra.mxu1 %v20663_v4  ;;  %4576 = vmatprep.subr.bf16.mxu0 %v20668_v5  ;;  %v20722_v4 = vld [vmem:[#allocation5 + $0xa1c] ss:$40 sps:$4 sm:$0xff]  }
 0x226   :  { %4617 = vmatprep.subr.bf16.mxu1 %v20671_v7  ;;  %v20725_v5 = vld [vmem:[#allocation5 + $0xf1c] ss:$40 sps:$4 sm:$0xff]   ;;  %v20720_v7 = vld [vmem:[#allocation5 + $0xa18] ss:$40 sps:$4 sm:$0xff]  }
 0x228   :  { %4577 = vmatpush2.bf16.msra.mxu0 %v20666_v10  ;;  %v20723_v10 = vld [vmem:[#allocation5 + $0xf18] ss:$40 sps:$4 sm:$0xff]  }
 0x229   :  { %4618 = vmatpush2.bf16.msra.mxu1 %v20669_v11  ;;  %4578 = vmatprep.subr.bf16.mxu0 %v20674_v12  ;;  %v20728_v11 = vld [vmem:[#allocation5 + $0xecc] ss:$40 sps:$4 sm:$0xff]  }
 0x22a   :  { %4619 = vmatprep.subr.bf16.mxu1 %v20677_v13  ;;  %v20731_v12 = vld [vmem:[#allocation5 + $0x13cc] ss:$40 sps:$4 sm:$0xff]   ;;  %v20726_v13 = vld [vmem:[#allocation5 + $0xec8] ss:$40 sps:$4 sm:$0xff]  }
 0x22c   :  { %4579 = vmatpush2.bf16.msra.mxu0 %v20672_v14  ;;  %v20729_v14 = vld [vmem:[#allocation5 + $0x13c8] ss:$40 sps:$4 sm:$0xff]  }
 0x22d   :  { %4620 = vmatpush2.bf16.msra.mxu1 %v20675_v15  ;;  %4630 = vmatprep.subr.bf16.mxu0 %v20680_v16  ;;  %v20734_v15 = vld [vmem:[#allocation5 + $0xe7c] ss:$40 sps:$4 sm:$0xff]  }
 0x22e   :  { %4671 = vmatprep.subr.bf16.mxu1 %v20683_v17  ;;  %v20737_v16 = vld [vmem:[#allocation5 + $0x137c] ss:$40 sps:$4 sm:$0xff]   ;;  %v20732_v17 = vld [vmem:[#allocation5 + $0xe78] ss:$40 sps:$4 sm:$0xff]  }
 0x22f   :  { %v4336_v26 = vpop.f32.mrf.mxu0  ;;  %4581 = vmatmul.mubr.bf16.vlgmr.msra.gmra.mxu0 %v23761_v8 }
 0x230   :  { %v4377_v28 = vpop.f32.mrf.mxu1  ;;  %4622 = vmatmul.mubr.bf16.vlgmr.msra.gmra.mxu1 %v23763_v9  ;;  %v4337_v29 = vadd.f32 %v4336_v26, %v23823_v63  ;;  %4631 = vmatpush1.bf16.msra.mxu0 %v20678_v18  ;;  %v20735_v18 = vld [vmem:[#allocation5 + $0x1378] ss:$40 sps:$4 sm:$0xff]   ;;  %v20749_v26 = vld [vmem:[#allocation5 + $0x12dc] ss:$40 sps:$4 sm:$0xff]  }
 0x231   :  { %4672 = vmatpush1.bf16.msra.mxu1 %v20681_v19  ;;  %v4338_v30 = vpop.f32.mrf.mxu0  ;;  %4632 = vmatprep.subr.bf16.mxu0 %v20686_v22  ;;  %v20740_v19 = vld [vmem:[#allocation5 + $0xe2c] ss:$40 sps:$4 sm:$0xff]  }
 0x232   :  { %v4379_v31 = vpop.f32.mrf.mxu1  ;;  %4673 = vmatprep.subr.bf16.mxu1 %v20689_v23  ;;  %v23832_v35 = vadd.f32 %v4377_v28, %v4337_v29  ;;  %v4339_v36 = vadd.f32 %v4338_v30, %v23827_v6  ;;  %4662 = vmatprep.mubr.bf16.mxu0 %v23767_v37  ;;  %v20696_v6 = vld [vmem:[#allocation5 + $0xb58] ss:$40 sps:$4 sm:$0xff]   ;;  %v20743_v22 = vld [vmem:[#allocation5 + $0x132c] ss:$40 sps:$4 sm:$0xff]   ;;  %v20738_v23 = vld [vmem:[#allocation5 + $0xe28] ss:$40 sps:$4 sm:$0xff]  }
 0x233   :  { %4703 = vmatprep.mubr.bf16.mxu1 %v23769_v40  ;;  %v4340_v42 = vpop.f32.mrf.mxu0  ;;  %v20744_v28 = vld [vmem:[#allocation5 + $0xdd8] ss:$40 sps:$4 sm:$0xff]   ;;  %v20752_v30 = vld [vmem:[#allocation5 + $0xd8c] ss:$40 sps:$4 sm:$0xff]  }
 0x234   :  { %v4381_v63 = vpop.f32.mrf.mxu1  ;;  %v23837_v43 = vadd.f32 %v4379_v31, %v4339_v36  ;;  %4633 = vmatpush1.bf16.msra.mxu0 %v20684_v24  ;;  %v20741_v24 = vld [vmem:[#allocation5 + $0x1328] ss:$40 sps:$4 sm:$0xff]   ;;  %v20747_v29 = vld [vmem:[#allocation5 + $0x12d8] ss:$40 sps:$4 sm:$0xff]   ;;  %v20755_v31 = vld [vmem:[#allocation5 + $0x128c] ss:$40 sps:$4 sm:$0xff]  }
 0x235   :  { %4674 = vmatpush1.bf16.msra.mxu1 %v20687_v25  ;;  %v4341_v46 = vpop.f32.mrf.mxu0  ;;  %4634 = vmatprep.subr.bf16.mxu0 %v20692_v62  ;;  %v20746_v25 = vld [vmem:[#allocation5 + $0xddc] ss:$40 sps:$4 sm:$0xff]   ;;  %v20750_v62 = vld [vmem:[#allocation5 + $0xd88] ss:$40 sps:$4 sm:$0xff]   ;;  %v20759_v42 = vld [vmem:[#allocation5 + $0x1238] ss:$40 sps:$4 sm:$0xff]  }
 0x236   :  { %v4382_v47 = vpop.f32.mrf.mxu1  ;;  %4675 = vmatprep.subr.bf16.mxu1 %v20695_v34  ;;  %v20753_v34 = vld [vmem:[#allocation5 + $0x1288] ss:$40 sps:$4 sm:$0xff]   ;;  %v20758_v36 = vld [vmem:[#allocation5 + $0xd3c] ss:$40 sps:$4 sm:$0xff]   ;;  %v20764_v63 = vld [vmem:[#allocation5 + $0xcec] ss:$40 sps:$4 sm:$0xff]  }
 0x237   :  { %v20767_v46 = vld [vmem:[#allocation5 + $0x11ec] ss:$40 sps:$4 sm:$0xff]   ;;  %v20762_v47 = vld [vmem:[#allocation5 + $0xce8] ss:$40 sps:$4 sm:$0xff]  }
 0x238   :  { %4635 = vmatpush1.bf16.msra.mxu0 %v20690_v3  ;;  %v20761_v3 = vld [vmem:[#allocation5 + $0x123c] ss:$40 sps:$4 sm:$0xff]  }
 0x239   :  { %4676 = vmatpush1.bf16.msra.mxu1 %v20693_v39  ;;  %4636 = vmatprep.subr.bf16.mxu0 %v20698_v48  ;;  %v20756_v39 = vld [vmem:[#allocation5 + $0xd38] ss:$40 sps:$4 sm:$0xff]   ;;  %v20765_v48 = vld [vmem:[#allocation5 + $0x11e8] ss:$40 sps:$4 sm:$0xff]  }
 0x23a   :  { %4677 = vmatprep.subr.bf16.mxu1 %v20701_v50  ;;  %v20770_v50 = vld [vmem:[#allocation5 + $0xc9c] ss:$40 sps:$4 sm:$0xff]  }
 0x23c   :  { %4637 = vmatpush1.bf16.msra.mxu0 %v20696_v6  ;;  %v20773_v6 = vld [vmem:[#allocation5 + $0x119c] ss:$40 sps:$4 sm:$0xff]  }
 0x23d   :  { %4678 = vmatpush1.bf16.msra.mxu1 %v20699_v51  ;;  %4638 = vmatprep.subr.bf16.mxu0 %v20704_v53  ;;  %v20768_v51 = vld [vmem:[#allocation5 + $0xc98] ss:$40 sps:$4 sm:$0xff]  }
 0x23e   :  { %4679 = vmatprep.subr.bf16.mxu1 %v20707_v54  ;;  %v20771_v53 = vld [vmem:[#allocation5 + $0x1198] ss:$40 sps:$4 sm:$0xff]   ;;  %v23840_v54 = vsub.s32 4, %v23785_v33 }
 0x240   :  { %4639 = vmatpush1.bf16.msra.mxu0 %v20702_v55  ;;  %v20776_v55 = vld [vmem:[#allocation5 + $0x254] ss:$40 sps:$4 sm:$0xff]  }
 0x241   :  { %4680 = vmatpush1.bf16.msra.mxu1 %v20705_v56  ;;  %4640 = vmatprep.subr.bf16.mxu0 %v20710_v57  ;;  %v20779_v56 = vld [vmem:[#allocation5 + $0x754] ss:$40 sps:$4 sm:$0xff]   ;;  %v20774_v57 = vld [vmem:[#allocation5 + $0x250] ss:$40 sps:$4 sm:$0xff]  }
 0x242   :  { %4681 = vmatprep.subr.bf16.mxu1 %v20713_v58  ;;  %v20777_v58 = vld [vmem:[#allocation5 + $0x750] ss:$40 sps:$4 sm:$0xff]  }
 0x244   :  { %4641 = vmatpush1.bf16.msra.mxu0 %v20708_v59  ;;  %v23843_v59 = vsub.s32 5, %v23785_v33 }
 0x245   :  { %4682 = vmatpush1.bf16.msra.mxu1 %v20711_v60  ;;  %4642 = vmatprep.subr.bf16.mxu0 %v20716_v61  ;;  %v23447_v60 = vld [vmem:[#allocation7] sm:$0xff] }
 0x246   :  { %4683 = vmatprep.subr.bf16.mxu1 %v20719_v0  ;;  %v825_v61 = vrot.slane %v23447_v60, %v23840_v54  ;;  %v20782_v0 = vld [vmem:[#allocation5 + $0x204] ss:$40 sps:$4 sm:$0xff]  }
 0x248   :  { %4643 = vmatpush1.bf16.msra.mxu0 %v20714_v1  ;;  %v20785_v1 = vld [vmem:[#allocation5 + $0x704] ss:$40 sps:$4 sm:$0xff]  }
 0x249   :  { %4684 = vmatpush1.bf16.msra.mxu1 %v20717_v2  ;;  %4644 = vmatprep.subr.bf16.mxu0 %v20722_v4  ;;  %v829_v2 = vrot.slane %v23447_v60, %v23843_v59  ;;  %v20780_v4 = vld [vmem:[#allocation5 + $0x200] ss:$40 sps:$4 sm:$0xff]   ;;  %v20830_v60 = vld [vmem:[#allocation5 + $0x484] ss:$40 sps:$4 sm:$0xff]  }
 0x24a   :  { %4685 = vmatprep.subr.bf16.mxu1 %v20725_v5  ;;  %v20783_v5 = vld [vmem:[#allocation5 + $0x700] ss:$40 sps:$4 sm:$0xff]  }
 0x24c   :  { %4645 = vmatpush1.bf16.msra.mxu0 %v20720_v7 }
 0x24d   :  { %4686 = vmatpush1.bf16.msra.mxu1 %v20723_v10  ;;  %4646 = vmatprep.subr.bf16.mxu0 %v20728_v11  ;;  %v20788_v11 = vld [vmem:[#allocation5 + $0x1b4] ss:$40 sps:$4 sm:$0xff]  }
 0x24e   :  { %4687 = vmatprep.subr.bf16.mxu1 %v20731_v12  ;;  %v20791_v12 = vld [vmem:[#allocation5 + $0x6b4] ss:$40 sps:$4 sm:$0xff]  }
 0x250   :  { %4647 = vmatpush2.bf16.msra.mxu0 %v20726_v13 }
 0x251   :  { %4688 = vmatpush2.bf16.msra.mxu1 %v20729_v14  ;;  %4648 = vmatprep.subr.bf16.mxu0 %v20734_v15 }
 0x252   :  { %4689 = vmatprep.subr.bf16.mxu1 %v20737_v16 }
 0x254   :  { %4649 = vmatpush2.bf16.msra.mxu0 %v20732_v17 }
 0x255   :  { %4690 = vmatpush2.bf16.msra.mxu1 %v20735_v18  ;;  %4650 = vmatprep.subr.bf16.mxu0 %v20740_v19 }
 0x256   :  { %4691 = vmatprep.subr.bf16.mxu1 %v20743_v22  ;;  %v20786_v22 = vld [vmem:[#allocation5 + $0x1b0] ss:$40 sps:$4 sm:$0xff]  }
 0x258   :  { %4651 = vmatpush2.bf16.msra.mxu0 %v20738_v23  ;;  %v20789_v23 = vld [vmem:[#allocation5 + $0x6b0] ss:$40 sps:$4 sm:$0xff]  }
 0x259   :  { %4692 = vmatpush2.bf16.msra.mxu1 %v20741_v24  ;;  %4652 = vmatprep.subr.bf16.mxu0 %v20746_v25 }
 0x25a   :  { %4693 = vmatprep.subr.bf16.mxu1 %v20749_v26 }
 0x25c   :  { %4653 = vmatpush2.bf16.msra.mxu0 %v20744_v28  ;;  %v20794_v28 = vld [vmem:[#allocation5 + $0x164] ss:$40 sps:$4 sm:$0xff]  }
 0x25d   :  { %4694 = vmatpush2.bf16.msra.mxu1 %v20747_v29  ;;  %4654 = vmatprep.subr.bf16.mxu0 %v20752_v30  ;;  %v20797_v29 = vld [vmem:[#allocation5 + $0x664] ss:$40 sps:$4 sm:$0xff]   ;;  %v20792_v30 = vld [vmem:[#allocation5 + $0x160] ss:$40 sps:$4 sm:$0xff]  }
 0x25e   :  { %4695 = vmatprep.subr.bf16.mxu1 %v20755_v31  ;;  %v20795_v31 = vld [vmem:[#allocation5 + $0x660] ss:$40 sps:$4 sm:$0xff]  }
 0x260   :  { %4655 = vmatpush2.bf16.msra.mxu0 %v20750_v62  ;;  %v20798_v62 = vld [vmem:[#allocation5 + $0x110] ss:$40 sps:$4 sm:$0xff]  }
 0x261   :  { %4696 = vmatpush2.bf16.msra.mxu1 %v20753_v34  ;;  %4656 = vmatprep.subr.bf16.mxu0 %v20758_v36  ;;  %v20801_v34 = vld [vmem:[#allocation5 + $0x610] ss:$40 sps:$4 sm:$0xff]   ;;  %v20806_v36 = vld [vmem:[#allocation5 + $0xc4] ss:$40 sps:$4 sm:$0xff]  }
 0x262   :  { %4697 = vmatprep.subr.bf16.mxu1 %v20761_v3  ;;  %v20809_v3 = vld [vmem:[#allocation5 + $0x5c4] ss:$40 sps:$4 sm:$0xff]  }
 0x264   :  { %4657 = vmatpush2.bf16.msra.mxu0 %v20756_v39  ;;  %v20804_v39 = vld [vmem:[#allocation5 + $0xc0] ss:$40 sps:$4 sm:$0xff]  }
 0x265   :  { %4698 = vmatpush2.bf16.msra.mxu1 %v20759_v42  ;;  %4658 = vmatprep.subr.bf16.mxu0 %v20764_v63  ;;  %v20807_v42 = vld [vmem:[#allocation5 + $0x5c0] ss:$40 sps:$4 sm:$0xff]   ;;  %v20812_v63 = vld [vmem:[#allocation5 + $0x74] ss:$40 sps:$4 sm:$0xff]  }
 0x266   :  { %4699 = vmatprep.subr.bf16.mxu1 %v20767_v46  ;;  %v20815_v46 = vld [vmem:[#allocation5 + $0x574] ss:$40 sps:$4 sm:$0xff]  }
 0x268   :  { %4659 = vmatpush2.bf16.msra.mxu0 %v20762_v47  ;;  %v20810_v47 = vld [vmem:[#allocation5 + $0x70] ss:$40 sps:$4 sm:$0xff]  }
 0x269   :  { %4700 = vmatpush2.bf16.msra.mxu1 %v20765_v48  ;;  %4660 = vmatprep.subr.bf16.mxu0 %v20770_v50  ;;  %v20813_v48 = vld [vmem:[#allocation5 + $0x570] ss:$40 sps:$4 sm:$0xff]   ;;  %v20818_v50 = vld [vmem:[#allocation5 + $0x24] ss:$40 sps:$4 sm:$0xff]  }
 0x26a   :  { %4701 = vmatprep.subr.bf16.mxu1 %v20773_v6  ;;  %v20821_v6 = vld [vmem:[#allocation5 + $0x524] ss:$40 sps:$4 sm:$0xff]  }
 0x26c   :  { %4661 = vmatpush2.bf16.msra.mxu0 %v20768_v51  ;;  %v20816_v51 = vld [vmem:[#allocation5 + $0x20] ss:$40 sps:$4 sm:$0xff]  }
 0x26d   :  { %4702 = vmatpush2.bf16.msra.mxu1 %v20771_v53  ;;  %4712 = vmatprep.subr.bf16.mxu0 %v20776_v55  ;;  %v20819_v53 = vld [vmem:[#allocation5 + $0x520] ss:$40 sps:$4 sm:$0xff]   ;;  %v20824_v55 = vld [vmem:[#allocation5 + $0x4d4] ss:$40 sps:$4 sm:$0xff]  }
 0x26e   :  { %4753 = vmatprep.subr.bf16.mxu1 %v20779_v56  ;;  %v20827_v56 = vld [vmem:[#allocation5 + $0x9d4] ss:$40 sps:$4 sm:$0xff]  }
 0x26f   :  { %v4418_v7 = vpop.f32.mrf.mxu0  ;;  %4663 = vmatmul.mubr.bf16.vlgmr.msra.gmra.mxu0 %v23773_v20 }
 0x270   :  { %v4459_v10 = vpop.f32.mrf.mxu1  ;;  %4704 = vmatmul.mubr.bf16.vlgmr.msra.gmra.mxu1 %v23775_v21  ;;  %v4419_v13 = vadd.f32 %v4418_v7, %v825_v61  ;;  %4713 = vmatpush1.bf16.msra.mxu0 %v20774_v57  ;;  %v20822_v57 = vld [vmem:[#allocation5 + $0x4d0] ss:$40 sps:$4 sm:$0xff]   ;;  %v20833_v61 = vld [vmem:[#allocation5 + $0x984] ss:$40 sps:$4 sm:$0xff]  }
 0x271   :  { %4754 = vmatpush1.bf16.msra.mxu1 %v20777_v58  ;;  %v4420_v14 = vpop.f32.mrf.mxu0  ;;  %4714 = vmatprep.subr.bf16.mxu0 %v20782_v0  ;;  %v20825_v58 = vld [vmem:[#allocation5 + $0x9d0] ss:$40 sps:$4 sm:$0xff]   ;;  %v20828_v0 = vld [vmem:[#allocation5 + $0x480] ss:$40 sps:$4 sm:$0xff]  }
 0x272   :  { %v4461_v15 = vpop.f32.mrf.mxu1  ;;  %4755 = vmatprep.subr.bf16.mxu1 %v20785_v1  ;;  %v23849_v16 = vadd.f32 %v4459_v10, %v4419_v13  ;;  %v4421_v17 = vadd.f32 %v4420_v14, %v829_v2  ;;  %4744 = vmatprep.mubr.bf16.mxu0 %v23755_v49  ;;  %v20800_v49 = vld [vmem:[#allocation5 + $0x114] ss:$40 sps:$4 sm:$0xff]   ;;  %v20831_v1 = vld [vmem:[#allocation5 + $0x980] ss:$40 sps:$4 sm:$0xff]   ;;  %v20837_v7 = vld [vmem:[#allocation5 + $0x930] ss:$40 sps:$4 sm:$0xff]  }
 0x273   :  { %4785 = vmatprep.mubr.bf16.mxu1 %v23757_v52  ;;  %v4422_v18 = vpop.f32.mrf.mxu0  ;;  %v20803_v52 = vld [vmem:[#allocation5 + $0x614] ss:$40 sps:$4 sm:$0xff]   ;;  %v20842_v10 = vld [vmem:[#allocation5 + $0x3e4] ss:$40 sps:$4 sm:$0xff]   ;;  %v20843_v13 = vld [vmem:[#allocation5 + $0x8e0] ss:$40 sps:$4 sm:$0xff]  }
 0x274   :  { %v4463_v19 = vpop.f32.mrf.mxu1  ;;  %v23853_v24 = vadd.f32 %v4461_v15, %v4421_v17  ;;  %4715 = vmatpush1.bf16.msra.mxu0 %v20780_v4  ;;  %v20836_v2 = vld [vmem:[#allocation5 + $0x434] ss:$40 sps:$4 sm:$0xff]   ;;  %v20846_v17 = vld [vmem:[#allocation5 + $0x390] ss:$40 sps:$4 sm:$0xff]  }
 0x275   :  { %4756 = vmatpush1.bf16.msra.mxu1 %v20783_v5  ;;  %v4423_v25 = vpop.f32.mrf.mxu0  ;;  %4716 = vmatprep.subr.bf16.mxu0 %v20788_v11  ;;  %v20839_v4 = vld [vmem:[#allocation5 + $0x934] ss:$40 sps:$4 sm:$0xff]   ;;  %v20834_v5 = vld [vmem:[#allocation5 + $0x430] ss:$40 sps:$4 sm:$0xff]   ;;  %v20845_v11 = vld [vmem:[#allocation5 + $0x8e4] ss:$40 sps:$4 sm:$0xff]  }
 0x276   :  { %v4464_v26 = vpop.f32.mrf.mxu1  ;;  %4757 = vmatprep.subr.bf16.mxu1 %v20791_v12  ;;  %v20840_v12 = vld [vmem:[#allocation5 + $0x3e0] ss:$40 sps:$4 sm:$0xff]   ;;  %v20848_v14 = vld [vmem:[#allocation5 + $0x394] ss:$40 sps:$4 sm:$0xff]   ;;  %v20849_v18 = vld [vmem:[#allocation5 + $0x890] ss:$40 sps:$4 sm:$0xff]  }
 0x277   :  { %v20851_v15 = vld [vmem:[#allocation5 + $0x894] ss:$40 sps:$4 sm:$0xff]   ;;  %v20854_v19 = vld [vmem:[#allocation5 + $0x344] ss:$40 sps:$4 sm:$0xff]   ;;  %v20855_v25 = vld [vmem:[#allocation5 + $0x840] ss:$40 sps:$4 sm:$0xff]  }
 0x278   :  { %4717 = vmatpush1.bf16.msra.mxu0 %v20786_v22  ;;  %v20857_v22 = vld [vmem:[#allocation5 + $0x844] ss:$40 sps:$4 sm:$0xff]   ;;  %v20860_v26 = vld [vmem:[#allocation5 + $0x2f4] ss:$40 sps:$4 sm:$0xff]  }
 0x279   :  { %4758 = vmatpush1.bf16.msra.mxu1 %v20789_v23  ;;  %4718 = vmatprep.subr.bf16.mxu0 %v20794_v28  ;;  %v20852_v23 = vld [vmem:[#allocation5 + $0x340] ss:$40 sps:$4 sm:$0xff]   ;;  %v20863_v28 = vld [vmem:[#allocation5 + $0x7f4] ss:$40 sps:$4 sm:$0xff]  }
 0x27a   :  { %4759 = vmatprep.subr.bf16.mxu1 %v20797_v29  ;;  %v20858_v29 = vld [vmem:[#allocation5 + $0x2f0] ss:$40 sps:$4 sm:$0xff]  }
 0x27c   :  { %4719 = vmatpush1.bf16.msra.mxu0 %v20792_v30  ;;  %v20861_v30 = vld [vmem:[#allocation5 + $0x7f0] ss:$40 sps:$4 sm:$0xff]  }
 0x27d   :  { %4760 = vmatpush1.bf16.msra.mxu1 %v20795_v31  ;;  %4720 = vmatprep.subr.bf16.mxu0 %v20800_v49  ;;  %v20866_v31 = vld [vmem:[#allocation5 + $0x2a4] ss:$40 sps:$4 sm:$0xff]  }
 0x27e   :  { %4761 = vmatprep.subr.bf16.mxu1 %v20803_v52  ;;  %v20869_v49 = vld [vmem:[#allocation5 + $0x7a4] ss:$40 sps:$4 sm:$0xff]   ;;  %v20864_v52 = vld [vmem:[#allocation5 + $0x2a0] ss:$40 sps:$4 sm:$0xff]  }
 0x280   :  { %4721 = vmatpush1.bf16.msra.mxu0 %v20798_v62  ;;  %v20867_v62 = vld [vmem:[#allocation5 + $0x7a0] ss:$40 sps:$4 sm:$0xff]  }
 0x281   :  { %4762 = vmatpush1.bf16.msra.mxu1 %v20801_v34  ;;  %4722 = vmatprep.subr.bf16.mxu0 %v20806_v36  ;;  %v20872_v34 = vld [vmem:[#allocation5 + $0xc54] ss:$40 sps:$4 sm:$0xff]  }
 0x282   :  { %4763 = vmatprep.subr.bf16.mxu1 %v20809_v3  ;;  %v20875_v36 = vld [vmem:[#allocation5 + $0x1154] ss:$40 sps:$4 sm:$0xff]   ;;  %v20870_v3 = vld [vmem:[#allocation5 + $0xc50] ss:$40 sps:$4 sm:$0xff]  }
 0x284   :  { %4723 = vmatpush1.bf16.msra.mxu0 %v20804_v39  ;;  %v20873_v39 = vld [vmem:[#allocation5 + $0x1150] ss:$40 sps:$4 sm:$0xff]  }
 0x285   :  { %4764 = vmatpush1.bf16.msra.mxu1 %v20807_v42  ;;  %4724 = vmatprep.subr.bf16.mxu0 %v20812_v63  ;;  %v20878_v42 = vld [vmem:[#allocation5 + $0xc04] ss:$40 sps:$4 sm:$0xff]  }
 0x286   :  { %4765 = vmatprep.subr.bf16.mxu1 %v20815_v46  ;;  %v20881_v63 = vld [vmem:[#allocation5 + $0x1104] ss:$40 sps:$4 sm:$0xff]   ;;  %v20876_v46 = vld [vmem:[#allocation5 + $0xc00] ss:$40 sps:$4 sm:$0xff]  }
 0x288   :  { %4725 = vmatpush1.bf16.msra.mxu0 %v20810_v47  ;;  %v20879_v47 = vld [vmem:[#allocation5 + $0x1100] ss:$40 sps:$4 sm:$0xff]  }
 0x289   :  { %4766 = vmatpush1.bf16.msra.mxu1 %v20813_v48  ;;  %4726 = vmatprep.subr.bf16.mxu0 %v20818_v50 }
 0x28a   :  { %4767 = vmatprep.subr.bf16.mxu1 %v20821_v6  ;;  %v20884_v6 = vld [vmem:[#allocation5 + $0xbb4] ss:$40 sps:$4 sm:$0xff]  }
 0x28c   :  { %4727 = vmatpush1.bf16.msra.mxu0 %v20816_v51  ;;  %v20887_v51 = vld [vmem:[#allocation5 + $0x10b4] ss:$40 sps:$4 sm:$0xff]  }
 0x28d   :  { %4768 = vmatpush1.bf16.msra.mxu1 %v20819_v53  ;;  %4728 = vmatprep.subr.bf16.mxu0 %v20824_v55 }
 0x28e   :  { %4769 = vmatprep.subr.bf16.mxu1 %v20827_v56 }
 0x290   :  { %4729 = vmatpush2.bf16.msra.mxu0 %v20822_v57 }
 0x291   :  { %4770 = vmatpush2.bf16.msra.mxu1 %v20825_v58  ;;  %4730 = vmatprep.subr.bf16.mxu0 %v20830_v60  ;;  %v20882_v60 = vld [vmem:[#allocation5 + $0xbb0] ss:$40 sps:$4 sm:$0xff]  }
 0x292   :  { %4771 = vmatprep.subr.bf16.mxu1 %v20833_v61  ;;  %v20885_v61 = vld [vmem:[#allocation5 + $0x10b0] ss:$40 sps:$4 sm:$0xff]  }
 0x294   :  { %4731 = vmatpush2.bf16.msra.mxu0 %v20828_v0  ;;  %v20890_v0 = vld [vmem:[#allocation5 + $0xb64] ss:$40 sps:$4 sm:$0xff]  }
 0x295   :  { %4772 = vmatpush2.bf16.msra.mxu1 %v20831_v1  ;;  %4732 = vmatprep.subr.bf16.mxu0 %v20836_v2 }
 0x296   :  { %4773 = vmatprep.subr.bf16.mxu1 %v20839_v4 }
 0x298   :  { %4733 = vmatpush2.bf16.msra.mxu0 %v20834_v5  ;;  %v20888_v5 = vld [vmem:[#allocation5 + $0xb60] ss:$40 sps:$4 sm:$0xff]  }
 0x299   :  { %4774 = vmatpush2.bf16.msra.mxu1 %v20837_v7  ;;  %4734 = vmatprep.subr.bf16.mxu0 %v20842_v10  ;;  %v20896_v7 = vld [vmem:[#allocation5 + $0xb14] ss:$40 sps:$4 sm:$0xff]  }
 0x29a   :  { %4775 = vmatprep.subr.bf16.mxu1 %v20845_v11  ;;  %v20899_v10 = vld [vmem:[#allocation5 + $0x1014] ss:$40 sps:$4 sm:$0xff]   ;;  %v20902_v11 = vld [vmem:[#allocation5 + $0xac4] ss:$40 sps:$4 sm:$0xff]  }
 0x29c   :  { %4735 = vmatpush2.bf16.msra.mxu0 %v20840_v12  ;;  %v20905_v12 = vld [vmem:[#allocation5 + $0xfc4] ss:$40 sps:$4 sm:$0xff]  }
 0x29d   :  { %4776 = vmatpush2.bf16.msra.mxu1 %v20843_v13  ;;  %4736 = vmatprep.subr.bf16.mxu0 %v20848_v14  ;;  %v20900_v13 = vld [vmem:[#allocation5 + $0xac0] ss:$40 sps:$4 sm:$0xff]  }
 0x29e   :  { %4777 = vmatprep.subr.bf16.mxu1 %v20851_v15  ;;  %v20903_v14 = vld [vmem:[#allocation5 + $0xfc0] ss:$40 sps:$4 sm:$0xff]   ;;  %v20908_v15 = vld [vmem:[#allocation5 + $0xa74] ss:$40 sps:$4 sm:$0xff]  }
 0x2a0   :  { %4737 = vmatpush2.bf16.msra.mxu0 %v20846_v17  ;;  %v20911_v17 = vld [vmem:[#allocation5 + $0xf74] ss:$40 sps:$4 sm:$0xff]  }
 0x2a1   :  { %4778 = vmatpush2.bf16.msra.mxu1 %v20849_v18  ;;  %4738 = vmatprep.subr.bf16.mxu0 %v20854_v19  ;;  %v20906_v18 = vld [vmem:[#allocation5 + $0xa70] ss:$40 sps:$4 sm:$0xff]  }
 0x2a2   :  { %4779 = vmatprep.subr.bf16.mxu1 %v20857_v22  ;;  %v20909_v19 = vld [vmem:[#allocation5 + $0xf70] ss:$40 sps:$4 sm:$0xff]   ;;  %v20914_v22 = vld [vmem:[#allocation5 + $0xa24] ss:$40 sps:$4 sm:$0xff]  }
 0x2a4   :  { %4739 = vmatpush2.bf16.msra.mxu0 %v20852_v23  ;;  %v20917_v23 = vld [vmem:[#allocation5 + $0xf24] ss:$40 sps:$4 sm:$0xff]  }
 0x2a5   :  { %4780 = vmatpush2.bf16.msra.mxu1 %v20855_v25  ;;  %4740 = vmatprep.subr.bf16.mxu0 %v20860_v26  ;;  %v20912_v25 = vld [vmem:[#allocation5 + $0xa20] ss:$40 sps:$4 sm:$0xff]  }
 0x2a6   :  { %4781 = vmatprep.subr.bf16.mxu1 %v20863_v28  ;;  %v20915_v26 = vld [vmem:[#allocation5 + $0xf20] ss:$40 sps:$4 sm:$0xff]   ;;  %v20920_v28 = vld [vmem:[#allocation5 + $0xed4] ss:$40 sps:$4 sm:$0xff]  }
 0x2a8   :  { %4741 = vmatpush2.bf16.msra.mxu0 %v20858_v29  ;;  %v20923_v29 = vld [vmem:[#allocation5 + $0x13d4] ss:$40 sps:$4 sm:$0xff]  }
 0x2a9   :  { %4782 = vmatpush2.bf16.msra.mxu1 %v20861_v30  ;;  %4742 = vmatprep.subr.bf16.mxu0 %v20866_v31  ;;  %v20918_v30 = vld [vmem:[#allocation5 + $0xed0] ss:$40 sps:$4 sm:$0xff]  }
 0x2aa   :  { %4783 = vmatprep.subr.bf16.mxu1 %v20869_v49  ;;  %v20921_v31 = vld [vmem:[#allocation5 + $0x13d0] ss:$40 sps:$4 sm:$0xff]   ;;  %v20926_v49 = vld [vmem:[#allocation5 + $0xe84] ss:$40 sps:$4 sm:$0xff]  }
 0x2ac   :  { %4743 = vmatpush2.bf16.msra.mxu0 %v20864_v52  ;;  %v20929_v52 = vld [vmem:[#allocation5 + $0x1384] ss:$40 sps:$4 sm:$0xff]  }
 0x2ad   :  { %4784 = vmatpush2.bf16.msra.mxu1 %v20867_v62  ;;  %4794 = vmatprep.subr.bf16.mxu0 %v20872_v34  ;;  %v20924_v62 = vld [vmem:[#allocation5 + $0xe80] ss:$40 sps:$4 sm:$0xff]  }
 0x2ae   :  { %4835 = vmatprep.subr.bf16.mxu1 %v20875_v36  ;;  %v20927_v34 = vld [vmem:[#allocation5 + $0x1380] ss:$40 sps:$4 sm:$0xff]   ;;  %v20932_v36 = vld [vmem:[#allocation5 + $0xe34] ss:$40 sps:$4 sm:$0xff]  }
 0x2af   :  { %v4500_v48 = vpop.f32.mrf.mxu0  ;;  %4745 = vmatmul.mubr.bf16.vlgmr.msra.gmra.mxu0 %v23761_v8 }
 0x2b0   :  { %v4541_v50 = vpop.f32.mrf.mxu1  ;;  %4786 = vmatmul.mubr.bf16.vlgmr.msra.gmra.mxu1 %v23763_v9  ;;  %v4501_v53 = vadd.f32 %v4500_v48, %v23849_v16  ;;  %4795 = vmatpush1.bf16.msra.mxu0 %v20870_v3  ;;  %v20893_v16 = vld [vmem:[#allocation5 + $0x1064] ss:$40 sps:$4 sm:$0xff]   ;;  %v20935_v3 = vld [vmem:[#allocation5 + $0x1334] ss:$40 sps:$4 sm:$0xff]   ;;  %v20939_v48 = vld [vmem:[#allocation5 + $0x12e0] ss:$40 sps:$4 sm:$0xff]  }
 0x2b1   :  { %4836 = vmatpush1.bf16.msra.mxu1 %v20873_v39  ;;  %v4502_v55 = vpop.f32.mrf.mxu0  ;;  %4796 = vmatprep.subr.bf16.mxu0 %v20878_v42  ;;  %v20930_v39 = vld [vmem:[#allocation5 + $0xe30] ss:$40 sps:$4 sm:$0xff]  }
 0x2b2   :  { %v4543_v56 = vpop.f32.mrf.mxu1  ;;  %4837 = vmatprep.subr.bf16.mxu1 %v20881_v63  ;;  %v23858_v57 = vadd.f32 %v4541_v50, %v4501_v53  ;;  %v4503_v58 = vadd.f32 %v4502_v55, %v23853_v24  ;;  %4826 = vmatprep.mubr.bf16.mxu0 %v23767_v37  ;;  %v20891_v24 = vld [vmem:[#allocation5 + $0x1060] ss:$40 sps:$4 sm:$0xff]   ;;  %v20894_v37 = vld [vmem:[#allocation5 + $0xb10] ss:$40 sps:$4 sm:$0xff]   ;;  %v20938_v63 = vld [vmem:[#allocation5 + $0xde4] ss:$40 sps:$4 sm:$0xff]  }
 0x2b3   :  { %4867 = vmatprep.mubr.bf16.mxu1 %v23769_v40  ;;  %v4504_v8 = vpop.f32.mrf.mxu0  ;;  %v20897_v40 = vld [vmem:[#allocation5 + $0x1010] ss:$40 sps:$4 sm:$0xff]   ;;  %v20944_v50 = vld [vmem:[#allocation5 + $0xd94] ss:$40 sps:$4 sm:$0xff]   ;;  %v20950_v55 = vld [vmem:[#allocation5 + $0xd44] ss:$40 sps:$4 sm:$0xff]  }
 0x2b4   :  { %v4545_v9 = vpop.f32.mrf.mxu1  ;;  %v23863_v1 = vadd.f32 %v4543_v56, %v4503_v58  ;;  %4797 = vmatpush1.bf16.msra.mxu0 %v20876_v46  ;;  %v20933_v42 = vld [vmem:[#allocation5 + $0x1330] ss:$40 sps:$4 sm:$0xff]   ;;  %v20941_v46 = vld [vmem:[#allocation5 + $0x12e4] ss:$40 sps:$4 sm:$0xff]   ;;  %v20948_v58 = vld [vmem:[#allocation5 + $0xd40] ss:$40 sps:$4 sm:$0xff]  }
 0x2b5   :  { %4838 = vmatpush1.bf16.msra.mxu1 %v20879_v47  ;;  %v4505_v2 = vpop.f32.mrf.mxu0  ;;  %4798 = vmatprep.subr.bf16.mxu0 %v20884_v6  ;;  %v20936_v47 = vld [vmem:[#allocation5 + $0xde0] ss:$40 sps:$4 sm:$0xff]   ;;  %v20947_v6 = vld [vmem:[#allocation5 + $0x1294] ss:$40 sps:$4 sm:$0xff]   ;;  %v20945_v53 = vld [vmem:[#allocation5 + $0x1290] ss:$40 sps:$4 sm:$0xff]  }
 0x2b6   :  { %v4546_v4 = vpop.f32.mrf.mxu1  ;;  %4839 = vmatprep.subr.bf16.mxu1 %v20887_v51  ;;  %v20942_v51 = vld [vmem:[#allocation5 + $0xd90] ss:$40 sps:$4 sm:$0xff]   ;;  %v20953_v56 = vld [vmem:[#allocation5 + $0x1244] ss:$40 sps:$4 sm:$0xff]   ;;  %v20959_v8 = vld [vmem:[#allocation5 + $0x11f4] ss:$40 sps:$4 sm:$0xff]  }
 0x2b7   :  { %v20954_v9 = vld [vmem:[#allocation5 + $0xcf0] ss:$40 sps:$4 sm:$0xff]   ;;  %v20965_v2 = vld [vmem:[#allocation5 + $0x11a4] ss:$40 sps:$4 sm:$0xff]   ;;  %v20960_v4 = vld [vmem:[#allocation5 + $0xca0] ss:$40 sps:$4 sm:$0xff]  }
 0x2b8   :  { %4799 = vmatpush1.bf16.msra.mxu0 %v20882_v60  ;;  %v20951_v60 = vld [vmem:[#allocation5 + $0x1240] ss:$40 sps:$4 sm:$0xff]  }
 0x2b9   :  { %4840 = vmatpush1.bf16.msra.mxu1 %v20885_v61  ;;  %4800 = vmatprep.subr.bf16.mxu0 %v20890_v0  ;;  %v20956_v61 = vld [vmem:[#allocation5 + $0xcf4] ss:$40 sps:$4 sm:$0xff]   ;;  %v20957_v0 = vld [vmem:[#allocation5 + $0x11f0] ss:$40 sps:$4 sm:$0xff]  }
 0x2ba   :  { %4841 = vmatprep.subr.bf16.mxu1 %v20893_v16  ;;  %v20962_v16 = vld [vmem:[#allocation5 + $0xca4] ss:$40 sps:$4 sm:$0xff]  }
 0x2bc   :  { %4801 = vmatpush1.bf16.msra.mxu0 %v20888_v5  ;;  %v20963_v5 = vld [vmem:[#allocation5 + $0x11a0] ss:$40 sps:$4 sm:$0xff]  }
 0x2bd   :  { %4842 = vmatpush1.bf16.msra.mxu1 %v20891_v24  ;;  %4802 = vmatprep.subr.bf16.mxu0 %v20896_v7  ;;  %v23866_v24 = vsub.s32 6, %v23785_v33  ;;  %v20968_v7 = vld [vmem:[#allocation8 + $0x234] ss:$40 sps:$4 sm:$0xff]  }
 0x2be   :  { %4843 = vmatprep.subr.bf16.mxu1 %v20899_v10  ;;  %v20971_v10 = vld [vmem:[#allocation8 + $0x734] ss:$40 sps:$4 sm:$0xff]  }
 0x2c0   :  { %4803 = vmatpush1.bf16.msra.mxu0 %v20894_v37  ;;  %v4877_v37 = vmax.f32 %v23811_v32, 0.0 }
 0x2c1   :  { %4844 = vmatpush1.bf16.msra.mxu1 %v20897_v40  ;;  %4804 = vmatprep.subr.bf16.mxu0 %v20902_v11  ;;  %v20966_v40 = vld [vmem:[#allocation8 + $0x230] ss:$40 sps:$4 sm:$0xff]   ;;  %v4879_v11 = vmax.f32 %v23837_v43, 0.0  ;;  %v20975_v43 = vld [vmem:[#allocation8 + $0x6e0] ss:$40 sps:$4 sm:$0xff]  }
 0x2c2   :  { %4845 = vmatprep.subr.bf16.mxu1 %v20905_v12  ;;  %v20969_v12 = vld [vmem:[#allocation8 + $0x730] ss:$40 sps:$4 sm:$0xff]  }
 0x2c4   :  { %4805 = vmatpush1.bf16.msra.mxu0 %v20900_v13  ;;  %v23870_v13 = vld [vmem:[#allocation7] sm:$0xff] }
 0x2c5   :  { %4846 = vmatpush1.bf16.msra.mxu1 %v20903_v14  ;;  %4806 = vmatprep.subr.bf16.mxu0 %v20908_v15  ;;  %v833_v14 = vrot.slane %v23870_v13, %v23866_v24  ;;  %v20974_v15 = vld [vmem:[#allocation8 + $0x1e4] ss:$40 sps:$4 sm:$0xff]  }
 0x2c6   :  { %4847 = vmatprep.subr.bf16.mxu1 %v20911_v17  ;;  %v20977_v17 = vld [vmem:[#allocation8 + $0x6e4] ss:$40 sps:$4 sm:$0xff]  }
 0x2c8   :  { %4807 = vmatpush1.bf16.msra.mxu0 %v20906_v18  ;;  %v23874_v18 = vpack.c.bf16 %v4877_v37, %v4877_v37  ;;  %v21025_v37 = vld [vmem:[#allocation8 + $0x964] ss:$40 sps:$4 sm:$0xff]  }
 0x2c9   :  { %4848 = vmatpush1.bf16.msra.mxu1 %v20909_v19  ;;  %4808 = vmatprep.subr.bf16.mxu0 %v20914_v22  ;;  %v20972_v19 = vld [vmem:[#allocation8 + $0x1e0] ss:$40 sps:$4 sm:$0xff]   ;;  %v23876_v22 = vpack.c.bf16 %v4879_v11, %v4879_v11  ;;  %v21028_v11 = vld [vmem:[#allocation8 + $0x414] ss:$40 sps:$4 sm:$0xff]  }
 0x2ca   :  { %4849 = vmatprep.subr.bf16.mxu1 %v20917_v23 }
 0x2cc   :  { %4809 = vmatpush1.bf16.msra.mxu0 %v20912_v25  ;;  %v20980_v25 = vld [vmem:[#allocation8 + $0x194] ss:$40 sps:$4 sm:$0xff]  }
 0x2cd   :  { %4850 = vmatpush1.bf16.msra.mxu1 %v20915_v26  ;;  %4810 = vmatprep.subr.bf16.mxu0 %v20920_v28 }
 0x2ce   :  { %4851 = vmatprep.subr.bf16.mxu1 %v20923_v29 }
 0x2d0   :  { %4811 = vmatpush2.bf16.msra.mxu0 %v20918_v30 }
 0x2d1   :  { %4852 = vmatpush2.bf16.msra.mxu1 %v20921_v31  ;;  %4812 = vmatprep.subr.bf16.mxu0 %v20926_v49  ;;  %v20983_v31 = vld [vmem:[#allocation8 + $0x694] ss:$40 sps:$4 sm:$0xff]  }
 0x2d2   :  { %4853 = vmatprep.subr.bf16.mxu1 %v20929_v52  ;;  %v20981_v52 = vld [vmem:[#allocation8 + $0x690] ss:$40 sps:$4 sm:$0xff]  }
 0x2d4   :  { %4813 = vmatpush2.bf16.msra.mxu0 %v20924_v62 }
 0x2d5   :  { %4854 = vmatpush2.bf16.msra.mxu1 %v20927_v34  ;;  %4814 = vmatprep.subr.bf16.mxu0 %v20932_v36  ;;  %v20986_v36 = vld [vmem:[#allocation8 + $0x144] ss:$40 sps:$4 sm:$0xff]  }
 0x2d6   :  { %4855 = vmatprep.subr.bf16.mxu1 %v20935_v3  ;;  %v20989_v3 = vld [vmem:[#allocation8 + $0x644] ss:$40 sps:$4 sm:$0xff]  }
 0x2d8   :  { %4815 = vmatpush2.bf16.msra.mxu0 %v20930_v39  ;;  %v20984_v39 = vld [vmem:[#allocation8 + $0x140] ss:$40 sps:$4 sm:$0xff]  }
 0x2d9   :  { %4856 = vmatpush2.bf16.msra.mxu1 %v20933_v42  ;;  %4816 = vmatprep.subr.bf16.mxu0 %v20938_v63  ;;  %v20987_v42 = vld [vmem:[#allocation8 + $0x640] ss:$40 sps:$4 sm:$0xff]   ;;  %v20992_v63 = vld [vmem:[#allocation8 + $0xf4] ss:$40 sps:$4 sm:$0xff]  }
 0x2da   :  { %4857 = vmatprep.subr.bf16.mxu1 %v20941_v46  ;;  %v20990_v46 = vld [vmem:[#allocation8 + $0xf0] ss:$40 sps:$4 sm:$0xff]  }
 0x2dc   :  { %4817 = vmatpush2.bf16.msra.mxu0 %v20936_v47  ;;  %v20995_v47 = vld [vmem:[#allocation8 + $0x5f4] ss:$40 sps:$4 sm:$0xff]  }
 0x2dd   :  { %4858 = vmatpush2.bf16.msra.mxu1 %v20939_v48  ;;  %4818 = vmatprep.subr.bf16.mxu0 %v20944_v50  ;;  %v20993_v48 = vld [vmem:[#allocation8 + $0x5f0] ss:$40 sps:$4 sm:$0xff]   ;;  %v20998_v50 = vld [vmem:[#allocation8 + $0xa4] ss:$40 sps:$4 sm:$0xff]  }
 0x2de   :  { %4859 = vmatprep.subr.bf16.mxu1 %v20947_v6  ;;  %v20996_v6 = vld [vmem:[#allocation8 + $0xa0] ss:$40 sps:$4 sm:$0xff]  }
 0x2e0   :  { %4819 = vmatpush2.bf16.msra.mxu0 %v20942_v51  ;;  %v21001_v51 = vld [vmem:[#allocation8 + $0x5a4] ss:$40 sps:$4 sm:$0xff]  }
 0x2e1   :  { %4860 = vmatpush2.bf16.msra.mxu1 %v20945_v53  ;;  %4820 = vmatprep.subr.bf16.mxu0 %v20950_v55  ;;  %v20999_v53 = vld [vmem:[#allocation8 + $0x5a0] ss:$40 sps:$4 sm:$0xff]   ;;  %v21004_v55 = vld [vmem:[#allocation8 + $0x54] ss:$40 sps:$4 sm:$0xff]  }
 0x2e2   :  { %4861 = vmatprep.subr.bf16.mxu1 %v20953_v56  ;;  %v21002_v56 = vld [vmem:[#allocation8 + $0x50] ss:$40 sps:$4 sm:$0xff]  }
 0x2e4   :  { %4821 = vmatpush2.bf16.msra.mxu0 %v20948_v58  ;;  %v21007_v58 = vld [vmem:[#allocation8 + $0x554] ss:$40 sps:$4 sm:$0xff]  }
 0x2e5   :  { %4862 = vmatpush2.bf16.msra.mxu1 %v20951_v60  ;;  %4822 = vmatprep.subr.bf16.mxu0 %v20956_v61  ;;  %v21005_v60 = vld [vmem:[#allocation8 + $0x550] ss:$40 sps:$4 sm:$0xff]   ;;  %v21010_v61 = vld [vmem:[#allocation8 + $0x4] ss:$40 sps:$4 sm:$0xff]  }
 0x2e6   :  { %4863 = vmatprep.subr.bf16.mxu1 %v20959_v8  ;;  %v21008_v8 = vld [vmem:[#allocation8] ss:$40 sps:$4 sm:$0xff]  }
 0x2e8   :  { %4823 = vmatpush2.bf16.msra.mxu0 %v20954_v9  ;;  %v21013_v9 = vld [vmem:[#allocation8 + $0x504] ss:$40 sps:$4 sm:$0xff]  }
 0x2e9   :  { %4864 = vmatpush2.bf16.msra.mxu1 %v20957_v0  ;;  %4824 = vmatprep.subr.bf16.mxu0 %v20962_v16  ;;  %v21011_v0 = vld [vmem:[#allocation8 + $0x500] ss:$40 sps:$4 sm:$0xff]   ;;  %v21016_v16 = vld [vmem:[#allocation8 + $0x4b4] ss:$40 sps:$4 sm:$0xff]  }
 0x2ea   :  { %4865 = vmatprep.subr.bf16.mxu1 %v20965_v2  ;;  %v21014_v2 = vld [vmem:[#allocation8 + $0x4b0] ss:$40 sps:$4 sm:$0xff]  }
 0x2ec   :  { %4825 = vmatpush2.bf16.msra.mxu0 %v20960_v4  ;;  %v21019_v4 = vld [vmem:[#allocation8 + $0x9b4] ss:$40 sps:$4 sm:$0xff]  }
 0x2ed   :  { %4866 = vmatpush2.bf16.msra.mxu1 %v20963_v5  ;;  %9750 = vmatprep.subr.bf16.mxu0 %v20968_v7  ;;  %v21017_v5 = vld [vmem:[#allocation8 + $0x9b0] ss:$40 sps:$4 sm:$0xff]   ;;  %v21022_v7 = vld [vmem:[#allocation8 + $0x464] ss:$40 sps:$4 sm:$0xff]  }
 0x2ee   :  { %9791 = vmatprep.subr.bf16.mxu1 %v20971_v10  ;;  %v21020_v10 = vld [vmem:[#allocation8 + $0x460] ss:$40 sps:$4 sm:$0xff]  }
 0x2ef   :  { %v4582_v32 = vpop.f32.mrf.mxu0  ;;  %4827 = vmatmul.mubr.bf16.vlgmr.msra.gmra.mxu0 %v23773_v20  ;;  %v20978_v20 = vld [vmem:[#allocation8 + $0x190] ss:$40 sps:$4 sm:$0xff]  }
 0x2f0   :  { %v4623_v23 = vpop.f32.mrf.mxu1  ;;  %4868 = vmatmul.mubr.bf16.vlgmr.msra.gmra.mxu1 %v23775_v21  ;;  %v4583_v26 = vadd.f32 %v4582_v32, %v833_v14  ;;  %9751 = vmatpush1.bf16.msra.mxu0 %v20966_v40  ;;  %v21023_v40 = vld [vmem:[#allocation8 + $0x960] ss:$40 sps:$4 sm:$0xff]   ;;  %v21031_v14 = vld [vmem:[#allocation8 + $0x914] ss:$40 sps:$4 sm:$0xff]   ;;  %v21037_v32 = vld [vmem:[#allocation8 + $0x8c4] ss:$40 sps:$4 sm:$0xff]  }
 0x2f1   :  { %9782 = vmatprep.mubr.bf16.mxu0 %v23874_v18  ;;  %9792 = vmatpush1.bf16.msra.mxu1 %v20969_v12  ;;  %v23882_v28 = vpop.f32.mrf.mxu0  ;;  %v21026_v12 = vld [vmem:[#allocation8 + $0x410] ss:$40 sps:$4 sm:$0xff]  }
 0x2f2   :  { %9823 = vmatprep.mubr.bf16.mxu1 %v23876_v22  ;;  %v23884_v29 = vpop.f32.mrf.mxu1  ;;  %v23886_v30 = vadd.f32 %v4623_v23, %v4583_v26  ;;  %9752 = vmatprep.subr.bf16.mxu0 %v20974_v15  ;;  %v21029_v15 = vld [vmem:[#allocation8 + $0x910] ss:$40 sps:$4 sm:$0xff]   ;;  %v21035_v23 = vld [vmem:[#allocation8 + $0x8c0] ss:$40 sps:$4 sm:$0xff]   ;;  %v21043_v26 = vld [vmem:[#allocation8 + $0x874] ss:$40 sps:$4 sm:$0xff]  }
 0x2f3   :  { %9793 = vmatprep.subr.bf16.mxu1 %v20977_v17  ;;  %v4586_v21 = vpop.f32.mrf.mxu0  ;;  %v21034_v17 = vld [vmem:[#allocation8 + $0x3c4] ss:$40 sps:$4 sm:$0xff]  }
 0x2f4   :  { %v4627_v49 = vpop.f32.mrf.mxu1  ;;  %9753 = vmatpush1.bf16.msra.mxu0 %v20972_v19  ;;  %v21032_v19 = vld [vmem:[#allocation8 + $0x3c0] ss:$40 sps:$4 sm:$0xff]  }
 0x2f5   :  { %9794 = vmatpush1.bf16.msra.mxu1 %v20975_v43  ;;  %v4587_v62 = vpop.f32.mrf.mxu0  ;;  %9754 = vmatprep.subr.bf16.mxu0 %v20980_v25  ;;  %v21040_v43 = vld [vmem:[#allocation8 + $0x374] ss:$40 sps:$4 sm:$0xff]   ;;  %v21038_v25 = vld [vmem:[#allocation8 + $0x370] ss:$40 sps:$4 sm:$0xff]   ;;  %v21044_v21 = vld [vmem:[#allocation8 + $0x320] ss:$40 sps:$4 sm:$0xff]  }
 0x2f6   :  { %v4628_v34 = vpop.f32.mrf.mxu1  ;;  %9795 = vmatprep.subr.bf16.mxu1 %v20983_v31  ;;  %v21046_v31 = vld [vmem:[#allocation8 + $0x324] ss:$40 sps:$4 sm:$0xff]   ;;  %v21052_v62 = vld [vmem:[#allocation8 + $0x2d4] ss:$40 sps:$4 sm:$0xff]  }
 0x2f7   :  { %v21049_v49 = vld [vmem:[#allocation8 + $0x824] ss:$40 sps:$4 sm:$0xff]   ;;  %v21050_v34 = vld [vmem:[#allocation8 + $0x2d0] ss:$40 sps:$4 sm:$0xff]  }
 0x2f8   :  { %9755 = vmatpush1.bf16.msra.mxu0 %v20978_v20  ;;  %v21041_v20 = vld [vmem:[#allocation8 + $0x870] ss:$40 sps:$4 sm:$0xff]  }
 0x2f9   :  { %9796 = vmatpush1.bf16.msra.mxu1 %v20981_v52  ;;  %9756 = vmatprep.subr.bf16.mxu0 %v20986_v36  ;;  %v21047_v52 = vld [vmem:[#allocation8 + $0x820] ss:$40 sps:$4 sm:$0xff]   ;;  %v21055_v36 = vld [vmem:[#allocation8 + $0x7d4] ss:$40 sps:$4 sm:$0xff]  }
 0x2fa   :  { %9797 = vmatprep.subr.bf16.mxu1 %v20989_v3  ;;  %v23889_v3 = vsub.s32 7, %v23785_v33  ;;  %v21067_v33 = vld [vmem:[#allocation8 + $0x1134] ss:$40 sps:$4 sm:$0xff]  }
 0x2fc   :  { %9757 = vmatpush1.bf16.msra.mxu0 %v20984_v39  ;;  %v21053_v39 = vld [vmem:[#allocation8 + $0x7d0] ss:$40 sps:$4 sm:$0xff]  }
 0x2fd   :  { %9798 = vmatpush1.bf16.msra.mxu1 %v20987_v42  ;;  %9758 = vmatprep.subr.bf16.mxu0 %v20992_v63  ;;  %v21058_v42 = vld [vmem:[#allocation8 + $0x284] ss:$40 sps:$4 sm:$0xff]   ;;  %v21056_v63 = vld [vmem:[#allocation8 + $0x280] ss:$40 sps:$4 sm:$0xff]  }
 0x2fe   :  { %9799 = vmatprep.subr.bf16.mxu1 %v20995_v47  ;;  %v4876_v47 = vmax.f32 %v23806_v27, 0.0 }
 0x300   :  { %9759 = vmatpush1.bf16.msra.mxu0 %v20990_v46  ;;  %v21061_v46 = vld [vmem:[#allocation8 + $0x784] ss:$40 sps:$4 sm:$0xff]   ;;  %v23897_v27 = vpack.c.bf16 %v4876_v47, %v4876_v47  ;;  %v21104_v47 = vld [vmem:[#allocation8 + $0xa00] ss:$40 sps:$4 sm:$0xff]  }
 0x301   :  { %9800 = vmatpush1.bf16.msra.mxu1 %v20993_v48  ;;  %9760 = vmatprep.subr.bf16.mxu0 %v20998_v50  ;;  %v837_v48 = vrot.slane %v23870_v13, %v23889_v3  ;;  %v21059_v50 = vld [vmem:[#allocation8 + $0x780] ss:$40 sps:$4 sm:$0xff]   ;;  %v21070_v13 = vld [vmem:[#allocation8 + $0xbe4] ss:$40 sps:$4 sm:$0xff]  }
 0x302   :  { %9801 = vmatprep.subr.bf16.mxu1 %v21001_v51  ;;  %v4878_v51 = vmax.f32 %v23832_v35, 0.0 }
 0x304   :  { %9761 = vmatpush1.bf16.msra.mxu0 %v20996_v6  ;;  %v21064_v6 = vld [vmem:[#allocation8 + $0xc34] ss:$40 sps:$4 sm:$0xff]  }
 0x305   :  { %9802 = vmatpush1.bf16.msra.mxu1 %v20999_v53  ;;  %9762 = vmatprep.subr.bf16.mxu0 %v21004_v55  ;;  %v21062_v53 = vld [vmem:[#allocation8 + $0xc30] ss:$40 sps:$4 sm:$0xff]   ;;  %v4881_v55 = vmax.f32 %v23863_v1, 0.0  ;;  %v21071_v1 = vld [vmem:[#allocation8 + $0x10e0] ss:$40 sps:$4 sm:$0xff]  }
 0x306   :  { %9803 = vmatprep.subr.bf16.mxu1 %v21007_v58  ;;  %v4585_v58 = vadd.f32 %v23882_v28, %v837_v48  ;;  %v21107_v48 = vld [vmem:[#allocation8 + $0xf00] ss:$40 sps:$4 sm:$0xff]  }
 0x308   :  { %9763 = vmatpush1.bf16.msra.mxu0 %v21002_v56  ;;  %v21065_v56 = vld [vmem:[#allocation8 + $0x1130] ss:$40 sps:$4 sm:$0xff]   ;;  %v4626_v28 = vadd.f32 %v23884_v29, %v4585_v58  ;;  %v21119_v58 = vld [vmem:[#allocation8 + $0x1360] ss:$40 sps:$4 sm:$0xff]  }
 0x309   :  { %9804 = vmatpush1.bf16.msra.mxu1 %v21005_v60  ;;  %9764 = vmatprep.subr.bf16.mxu0 %v21010_v61  ;;  %v21073_v60 = vld [vmem:[#allocation8 + $0x10e4] ss:$40 sps:$4 sm:$0xff]   ;;  %v23899_v61 = vpack.c.bf16 %v4878_v51, %v4878_v51  ;;  %v21113_v51 = vld [vmem:[#allocation8 + $0x13b0] ss:$40 sps:$4 sm:$0xff]  }
 0x30a   :  { %9805 = vmatprep.subr.bf16.mxu1 %v21013_v9  ;;  %v23901_v9 = vpack.c.bf16 %v4881_v55, %v4881_v55  ;;  %v21121_v55 = vld [vmem:[#allocation8 + $0x1364] ss:$40 sps:$4 sm:$0xff]  }
 0x30c   :  { %9765 = vmatpush1.bf16.msra.mxu0 %v21008_v8  ;;  %v21068_v8 = vld [vmem:[#allocation8 + $0xbe0] ss:$40 sps:$4 sm:$0xff]  }
 0x30d   :  { %9806 = vmatpush1.bf16.msra.mxu1 %v21011_v0  ;;  %9766 = vmatprep.subr.bf16.mxu0 %v21016_v16 }
 0x30e   :  { %9807 = vmatprep.subr.bf16.mxu1 %v21019_v4  ;;  %v21076_v4 = vld [vmem:[#allocation8 + $0xb94] ss:$40 sps:$4 sm:$0xff]  }
 0x310   :  { %9767 = vmatpush2.bf16.msra.mxu0 %v21014_v2 }
 0x311   :  { %9808 = vmatpush2.bf16.msra.mxu1 %v21017_v5  ;;  %9768 = vmatprep.subr.bf16.mxu0 %v21022_v7  ;;  %v21074_v7 = vld [vmem:[#allocation8 + $0xb90] ss:$40 sps:$4 sm:$0xff]  }
 0x312   :  { %9809 = vmatprep.subr.bf16.mxu1 %v21025_v37 }
 0x314   :  { %9769 = vmatpush2.bf16.msra.mxu0 %v21020_v10  ;;  %v21079_v10 = vld [vmem:[#allocation8 + $0x1094] ss:$40 sps:$4 sm:$0xff]  }
 0x315   :  { %9810 = vmatpush2.bf16.msra.mxu1 %v21023_v40  ;;  %9770 = vmatprep.subr.bf16.mxu0 %v21028_v11  ;;  %v21077_v11 = vld [vmem:[#allocation8 + $0x1090] ss:$40 sps:$4 sm:$0xff]  }
 0x316   :  { %9811 = vmatprep.subr.bf16.mxu1 %v21031_v14 }
 0x318   :  { %9771 = vmatpush2.bf16.msra.mxu0 %v21026_v12 }
 0x319   :  { %9812 = vmatpush2.bf16.msra.mxu1 %v21029_v15  ;;  %9772 = vmatprep.subr.bf16.mxu0 %v21034_v17  ;;  %v21082_v15 = vld [vmem:[#allocation8 + $0xb44] ss:$40 sps:$4 sm:$0xff]  }
 0x31a   :  { %9813 = vmatprep.subr.bf16.mxu1 %v21037_v32  ;;  %v21085_v32 = vld [vmem:[#allocation8 + $0x1044] ss:$40 sps:$4 sm:$0xff]  }
 0x31c   :  { %9773 = vmatpush2.bf16.msra.mxu0 %v21032_v19  ;;  %v21080_v19 = vld [vmem:[#allocation8 + $0xb40] ss:$40 sps:$4 sm:$0xff]  }
 0x31d   :  { %9814 = vmatpush2.bf16.msra.mxu1 %v21035_v23  ;;  %9774 = vmatprep.subr.bf16.mxu0 %v21040_v43  ;;  %v21083_v23 = vld [vmem:[#allocation8 + $0x1040] ss:$40 sps:$4 sm:$0xff]  }
 0x31e   :  { %9815 = vmatprep.subr.bf16.mxu1 %v21043_v26  ;;  %v21091_v26 = vld [vmem:[#allocation8 + $0xff4] ss:$40 sps:$4 sm:$0xff]  }
 0x320   :  { %9775 = vmatpush2.bf16.msra.mxu0 %v21038_v25  ;;  %v21088_v25 = vld [vmem:[#allocation8 + $0xaf4] ss:$40 sps:$4 sm:$0xff]  }
 0x321   :  { %9816 = vmatpush2.bf16.msra.mxu1 %v21041_v20  ;;  %9776 = vmatprep.subr.bf16.mxu0 %v21046_v31  ;;  %v21086_v20 = vld [vmem:[#allocation8 + $0xaf0] ss:$40 sps:$4 sm:$0xff]  }
 0x322   :  { %9817 = vmatprep.subr.bf16.mxu1 %v21049_v49  ;;  %v21089_v31 = vld [vmem:[#allocation8 + $0xff0] ss:$40 sps:$4 sm:$0xff]   ;;  %v21097_v49 = vld [vmem:[#allocation8 + $0xfa4] ss:$40 sps:$4 sm:$0xff]  }
 0x324   :  { %9777 = vmatpush2.bf16.msra.mxu0 %v21044_v21  ;;  %v21094_v21 = vld [vmem:[#allocation8 + $0xaa4] ss:$40 sps:$4 sm:$0xff]  }
 0x325   :  { %9818 = vmatpush2.bf16.msra.mxu1 %v21047_v52  ;;  %9778 = vmatprep.subr.bf16.mxu0 %v21052_v62  ;;  %v21092_v52 = vld [vmem:[#allocation8 + $0xaa0] ss:$40 sps:$4 sm:$0xff]  }
 0x326   :  { %9819 = vmatprep.subr.bf16.mxu1 %v21055_v36  ;;  %v21095_v62 = vld [vmem:[#allocation8 + $0xfa0] ss:$40 sps:$4 sm:$0xff]   ;;  %v21103_v36 = vld [vmem:[#allocation8 + $0xf54] ss:$40 sps:$4 sm:$0xff]  }
 0x328   :  { %9779 = vmatpush2.bf16.msra.mxu0 %v21050_v34  ;;  %v21100_v34 = vld [vmem:[#allocation8 + $0xa54] ss:$40 sps:$4 sm:$0xff]  }
 0x329   :  { %9820 = vmatpush2.bf16.msra.mxu1 %v21053_v39  ;;  %9780 = vmatprep.subr.bf16.mxu0 %v21058_v42  ;;  %v21098_v39 = vld [vmem:[#allocation8 + $0xa50] ss:$40 sps:$4 sm:$0xff]  }
 0x32a   :  { %9821 = vmatprep.subr.bf16.mxu1 %v21061_v46  ;;  %v21101_v42 = vld [vmem:[#allocation8 + $0xf50] ss:$40 sps:$4 sm:$0xff]   ;;  %v21109_v46 = vld [vmem:[#allocation8 + $0xf04] ss:$40 sps:$4 sm:$0xff]  }
 0x32c   :  { %9781 = vmatpush2.bf16.msra.mxu0 %v21056_v63  ;;  %v21106_v63 = vld [vmem:[#allocation8 + $0xa04] ss:$40 sps:$4 sm:$0xff]  }
 0x32d   :  { %9822 = vmatpush2.bf16.msra.mxu1 %v21059_v50  ;;  %9832 = vmatprep.subr.bf16.mxu0 %v21064_v6  ;;  %v21112_v50 = vld [vmem:[#allocation8 + $0xeb4] ss:$40 sps:$4 sm:$0xff]  }
 0x32e   :  { %9873 = vmatprep.subr.bf16.mxu1 %v21067_v33  ;;  %v21115_v6 = vld [vmem:[#allocation8 + $0x13b4] ss:$40 sps:$4 sm:$0xff]   ;;  %v21110_v33 = vld [vmem:[#allocation8 + $0xeb0] ss:$40 sps:$4 sm:$0xff]  }
 0x32f   :  { %v23903_v35 = vpop.f32.mrf.mxu0  ;;  %9783 = vmatmul.mubr.bf16.vlgmr.msra.gmra.mxu0 %v23897_v27 }
 0x330   :  { %v23905_v0 = vpop.f32.mrf.mxu1  ;;  %9824 = vmatmul.mubr.bf16.vlgmr.msra.gmra.mxu1 %v23899_v61  ;;  %9833 = vmatpush1.bf16.msra.mxu0 %v21062_v53  ;;  %v21118_v53 = vld [vmem:[#allocation8 + $0xe64] ss:$40 sps:$4 sm:$0xff]  }
 0x331   :  { %9864 = vmatprep.mubr.bf16.mxu0 %v23901_v9  ;;  %9874 = vmatpush1.bf16.msra.mxu1 %v21065_v56  ;;  %v4666_v16 = vpop.f32.mrf.mxu0  ;;  %v21116_v56 = vld [vmem:[#allocation8 + $0xe60] ss:$40 sps:$4 sm:$0xff]  }
 0x332   :  { %v4707_v2 = vpop.f32.mrf.mxu1  ;;  %v4667_v5 = vadd.f32 %v4666_v16, %v4626_v28  ;;  %9834 = vmatprep.subr.bf16.mxu0 %v21070_v13  ;;  %9875 = vmatprep.subr.bf16.mxu1 %v21073_v60  ;;  %v21124_v13 = vld [vmem:[#allocation8 + $0xe14] ss:$40 sps:$4 sm:$0xff]   ;;  %v21130_v28 = vld [vmem:[#allocation8 + $0xdc4] ss:$40 sps:$4 sm:$0xff]  }
 0x333   :  { %v4668_v37 = vpop.f32.mrf.mxu0  ;;  %v21127_v60 = vld [vmem:[#allocation8 + $0x1314] ss:$40 sps:$4 sm:$0xff]   ;;  %v21133_v16 = vld [vmem:[#allocation8 + $0x12c4] ss:$40 sps:$4 sm:$0xff]  }
 0x334   :  { %v4709_v40 = vpop.f32.mrf.mxu1  ;;  %v4708_v12 = vadd.f32 %v4707_v2, %v4667_v5  ;;  %9835 = vmatpush1.bf16.msra.mxu0 %v21068_v8  ;;  %v21122_v8 = vld [vmem:[#allocation8 + $0xe10] ss:$40 sps:$4 sm:$0xff]   ;;  %v21128_v2 = vld [vmem:[#allocation8 + $0xdc0] ss:$40 sps:$4 sm:$0xff]   ;;  %v21136_v5 = vld [vmem:[#allocation8 + $0xd74] ss:$40 sps:$4 sm:$0xff]  }
 0x335   :  { %9876 = vmatpush1.bf16.msra.mxu1 %v21071_v1  ;;  %v4669_v29 = vpop.f32.mrf.mxu0  ;;  %9836 = vmatprep.subr.bf16.mxu0 %v21076_v4  ;;  %v21125_v1 = vld [vmem:[#allocation8 + $0x1310] ss:$40 sps:$4 sm:$0xff]   ;;  %v21131_v4 = vld [vmem:[#allocation8 + $0x12c0] ss:$40 sps:$4 sm:$0xff]   ;;  %v21142_v40 = vld [vmem:[#allocation8 + $0xd24] ss:$40 sps:$4 sm:$0xff]  }
 0x336   :  { %v4710_v14 = vpop.f32.mrf.mxu1  ;;  %v4883_v17 = vmax.f32 %v4708_v12, 0.0  ;;  %9877 = vmatprep.subr.bf16.mxu1 %v21079_v10  ;;  %v21134_v10 = vld [vmem:[#allocation8 + $0xd70] ss:$40 sps:$4 sm:$0xff]   ;;  %v21140_v12 = vld [vmem:[#allocation8 + $0xd20] ss:$40 sps:$4 sm:$0xff]  }
 0x337   :  { %v21137_v37 = vld [vmem:[#allocation8 + $0x1270] ss:$40 sps:$4 sm:$0xff]   ;;  %v21143_v29 = vld [vmem:[#allocation8 + $0x1220] ss:$40 sps:$4 sm:$0xff]   ;;  %v21148_v14 = vld [vmem:[#allocation8 + $0xcd4] ss:$40 sps:$4 sm:$0xff]  }
 0x338   :  { %v23911_v43 = vpack.c.bf16 %v4883_v17, %v4883_v17  ;;  %9837 = vmatpush1.bf16.msra.mxu0 %v21074_v7  ;;  %v21139_v7 = vld [vmem:[#allocation8 + $0x1274] ss:$40 sps:$4 sm:$0xff]  }
 0x339   :  { %9878 = vmatpush1.bf16.msra.mxu1 %v21077_v11  ;;  %9838 = vmatprep.subr.bf16.mxu0 %v21082_v15  ;;  %v21145_v11 = vld [vmem:[#allocation8 + $0x1224] ss:$40 sps:$4 sm:$0xff]   ;;  %v4665_v15 = vadd.f32 %v23903_v35, %v23886_v30  ;;  %v21151_v17 = vld [vmem:[#allocation8 + $0x11d4] ss:$40 sps:$4 sm:$0xff]  }
 0x33a   :  { %9905 = vmatprep.mubr.bf16.mxu1 %v23911_v43  ;;  %9879 = vmatprep.subr.bf16.mxu1 %v21085_v32  ;;  %v21149_v32 = vld [vmem:[#allocation8 + $0x11d0] ss:$40 sps:$4 sm:$0xff]   ;;  %v21169_v30 = vld [vmem:[#allocation8 + $0x1634] ss:$40 sps:$4 sm:$0xff]  }
 0x33c   :  { %9839 = vmatpush1.bf16.msra.mxu0 %v21080_v19  ;;  %v21146_v19 = vld [vmem:[#allocation8 + $0xcd0] ss:$40 sps:$4 sm:$0xff]  }
 0x33d   :  { %9880 = vmatpush1.bf16.msra.mxu1 %v21083_v23  ;;  %9840 = vmatprep.subr.bf16.mxu0 %v21088_v25  ;;  %v21154_v23 = vld [vmem:[#allocation8 + $0xc84] ss:$40 sps:$4 sm:$0xff]   ;;  %v4706_v25 = vadd.f32 %v23905_v0, %v4665_v15 }
 0x33e   :  { %9881 = vmatprep.subr.bf16.mxu1 %v21091_v26  ;;  %v21157_v26 = vld [vmem:[#allocation8 + $0x1184] ss:$40 sps:$4 sm:$0xff]  }
 0x33f   :  { %v4882_v35 = vmax.f32 %v4706_v25, 0.0  ;;  %v21163_v0 = vld [vmem:[#allocation8 + $0x1ec] ss:$40 sps:$4 sm:$0xff]   ;;  %v21215_v25 = vld [vmem:[#allocation8 + $0x18b0] ss:$40 sps:$4 sm:$0xff]  }
 0x340   :  { %9841 = vmatpush1.bf16.msra.mxu0 %v21086_v20  ;;  %v21152_v20 = vld [vmem:[#allocation8 + $0xc80] ss:$40 sps:$4 sm:$0xff]   ;;  %v21196_v15 = vld [vmem:[#allocation8 + $0xc] ss:$40 sps:$4 sm:$0xff]  }
 0x341   :  { %9882 = vmatpush1.bf16.msra.mxu1 %v21089_v31  ;;  %9842 = vmatprep.subr.bf16.mxu0 %v21094_v21  ;;  %v4880_v31 = vmax.f32 %v23858_v57, 0.0  ;;  %v21155_v21 = vld [vmem:[#allocation8 + $0x1180] ss:$40 sps:$4 sm:$0xff]  }
 0x342   :  { %9883 = vmatprep.subr.bf16.mxu1 %v21097_v49  ;;  %v21160_v49 = vld [vmem:[#allocation8 + $0x23c] ss:$40 sps:$4 sm:$0xff]  }
 0x344   :  { %9843 = vmatpush1.bf16.msra.mxu0 %v21092_v52  ;;  %v21167_v52 = vld [vmem:[#allocation8 + $0x1630] ss:$40 sps:$4 sm:$0xff]  }
 0x345   :  { %9884 = vmatpush1.bf16.msra.mxu1 %v21095_v62  ;;  %9844 = vmatprep.subr.bf16.mxu0 %v21100_v34  ;;  %v23918_v62 = vpack.c.bf16 %v4880_v31, %v4880_v31  ;;  %v21158_v34 = vld [vmem:[#allocation8 + $0x238] ss:$40 sps:$4 sm:$0xff]   ;;  %v21208_v31 = vld [vmem:[#allocation8 + $0x46c] ss:$40 sps:$4 sm:$0xff]  }
 0x346   :  { %9885 = vmatprep.subr.bf16.mxu1 %v21103_v36  ;;  %v23920_v36 = vpack.c.bf16 %v4882_v35, %v4882_v35  ;;  %v21229_v35 = vld [vmem:[#allocation8 + $0x1814] ss:$40 sps:$4 sm:$0xff]  }
 0x348   :  { %9845 = vmatpush1.bf16.msra.mxu0 %v21098_v39  ;;  %v21175_v39 = vld [vmem:[#allocation8 + $0x15e4] ss:$40 sps:$4 sm:$0xff]  }
 0x349   :  { %9886 = vmatpush1.bf16.msra.mxu1 %v21101_v42  ;;  %9846 = vmatprep.subr.bf16.mxu0 %v21106_v63  ;;  %v21161_v63 = vld [vmem:[#allocation8 + $0x1e8] ss:$40 sps:$4 sm:$0xff]  }
 0x34a   :  { %9887 = vmatprep.subr.bf16.mxu1 %v21109_v46  ;;  %v21173_v46 = vld [vmem:[#allocation8 + $0x15e0] ss:$40 sps:$4 sm:$0xff]  }
 0x34c   :  { %9847 = vmatpush1.bf16.msra.mxu0 %v21104_v47 }
 0x34d   :  { %9888 = vmatpush1.bf16.msra.mxu1 %v21107_v48  ;;  %9848 = vmatprep.subr.bf16.mxu0 %v21112_v50  ;;  %v21181_v50 = vld [vmem:[#allocation8 + $0x1594] ss:$40 sps:$4 sm:$0xff]  }
 0x34e   :  { %9889 = vmatprep.subr.bf16.mxu1 %v21115_v6  ;;  %v21166_v6 = vld [vmem:[#allocation8 + $0x19c] ss:$40 sps:$4 sm:$0xff]  }
 0x350   :  { %9849 = vmatpush2.bf16.msra.mxu0 %v21110_v33 }
 0x351   :  { %9890 = vmatpush2.bf16.msra.mxu1 %v21113_v51  ;;  %9850 = vmatprep.subr.bf16.mxu0 %v21118_v53  ;;  %v21164_v53 = vld [vmem:[#allocation8 + $0x198] ss:$40 sps:$4 sm:$0xff]  }
 0x352   :  { %9891 = vmatprep.subr.bf16.mxu1 %v21121_v55  ;;  %v21179_v55 = vld [vmem:[#allocation8 + $0x1590] ss:$40 sps:$4 sm:$0xff]  }
 0x354   :  { %9851 = vmatpush2.bf16.msra.mxu0 %v21116_v56 }
 0x355   :  { %9892 = vmatpush2.bf16.msra.mxu1 %v21119_v58  ;;  %9852 = vmatprep.subr.bf16.mxu0 %v21124_v13  ;;  %v21187_v13 = vld [vmem:[#allocation8 + $0x1544] ss:$40 sps:$4 sm:$0xff]  }
 0x356   :  { %9893 = vmatprep.subr.bf16.mxu1 %v21127_v60  ;;  %v21172_v60 = vld [vmem:[#allocation8 + $0x14c] ss:$40 sps:$4 sm:$0xff]  }
 0x358   :  { %9853 = vmatpush2.bf16.msra.mxu0 %v21122_v8  ;;  %v21170_v8 = vld [vmem:[#allocation8 + $0x148] ss:$40 sps:$4 sm:$0xff]  }
 0x359   :  { %9894 = vmatpush2.bf16.msra.mxu1 %v21125_v1  ;;  %9854 = vmatprep.subr.bf16.mxu0 %v21130_v28  ;;  %v21185_v1 = vld [vmem:[#allocation8 + $0x1540] ss:$40 sps:$4 sm:$0xff]   ;;  %v21193_v28 = vld [vmem:[#allocation8 + $0x14f4] ss:$40 sps:$4 sm:$0xff]  }
 0x35a   :  { %9895 = vmatprep.subr.bf16.mxu1 %v21133_v16  ;;  %v21178_v16 = vld [vmem:[#allocation8 + $0xfc] ss:$40 sps:$4 sm:$0xff]  }
 0x35c   :  { %9855 = vmatpush2.bf16.msra.mxu0 %v21128_v2  ;;  %v21191_v2 = vld [vmem:[#allocation8 + $0x14f0] ss:$40 sps:$4 sm:$0xff]  }
 0x35d   :  { %9896 = vmatpush2.bf16.msra.mxu1 %v21131_v4  ;;  %9856 = vmatprep.subr.bf16.mxu0 %v21136_v5  ;;  %v21176_v4 = vld [vmem:[#allocation8 + $0xf8] ss:$40 sps:$4 sm:$0xff]   ;;  %v21199_v5 = vld [vmem:[#allocation8 + $0x14a4] ss:$40 sps:$4 sm:$0xff]  }
 0x35e   :  { %9897 = vmatprep.subr.bf16.mxu1 %v21139_v7  ;;  %v21184_v7 = vld [vmem:[#allocation8 + $0xac] ss:$40 sps:$4 sm:$0xff]  }
 0x360   :  { %9857 = vmatpush2.bf16.msra.mxu0 %v21134_v10  ;;  %v21197_v10 = vld [vmem:[#allocation8 + $0x14a0] ss:$40 sps:$4 sm:$0xff]  }
 0x361   :  { %9898 = vmatpush2.bf16.msra.mxu1 %v21137_v37  ;;  %9858 = vmatprep.subr.bf16.mxu0 %v21142_v40  ;;  %v21182_v37 = vld [vmem:[#allocation8 + $0xa8] ss:$40 sps:$4 sm:$0xff]   ;;  %v21205_v40 = vld [vmem:[#allocation8 + $0x1454] ss:$40 sps:$4 sm:$0xff]  }
 0x362   :  { %9899 = vmatprep.subr.bf16.mxu1 %v21145_v11  ;;  %v21190_v11 = vld [vmem:[#allocation8 + $0x5c] ss:$40 sps:$4 sm:$0xff]  }
 0x364   :  { %9859 = vmatpush2.bf16.msra.mxu0 %v21140_v12  ;;  %v21203_v12 = vld [vmem:[#allocation8 + $0x1450] ss:$40 sps:$4 sm:$0xff]  }
 0x365   :  { %9900 = vmatpush2.bf16.msra.mxu1 %v21143_v29  ;;  %9860 = vmatprep.subr.bf16.mxu0 %v21148_v14  ;;  %v21188_v29 = vld [vmem:[#allocation8 + $0x58] ss:$40 sps:$4 sm:$0xff]   ;;  %v21211_v14 = vld [vmem:[#allocation8 + $0x1404] ss:$40 sps:$4 sm:$0xff]  }
 0x366   :  { %9901 = vmatprep.subr.bf16.mxu1 %v21151_v17  ;;  %v21209_v17 = vld [vmem:[#allocation8 + $0x1400] ss:$40 sps:$4 sm:$0xff]  }
 0x368   :  { %9861 = vmatpush2.bf16.msra.mxu0 %v21146_v19  ;;  %v21194_v19 = vld [vmem:[#allocation8 + $0x8] ss:$40 sps:$4 sm:$0xff]  }
 0x369   :  { %9902 = vmatpush2.bf16.msra.mxu1 %v21149_v32  ;;  %9862 = vmatprep.subr.bf16.mxu0 %v21154_v23  ;;  %v21217_v32 = vld [vmem:[#allocation8 + $0x18b4] ss:$40 sps:$4 sm:$0xff]  }
 0x36a   :  { %9903 = vmatprep.subr.bf16.mxu1 %v21157_v26  ;;  %v21202_v23 = vld [vmem:[#allocation8 + $0x4bc] ss:$40 sps:$4 sm:$0xff]   ;;  %v21200_v26 = vld [vmem:[#allocation8 + $0x4b8] ss:$40 sps:$4 sm:$0xff]  }
 0x36c   :  { %9863 = vmatpush2.bf16.msra.mxu0 %v21152_v20  ;;  %v21223_v20 = vld [vmem:[#allocation8 + $0x1864] ss:$40 sps:$4 sm:$0xff]  }
 0x36d   :  { %9904 = vmatpush2.bf16.msra.mxu1 %v21155_v21  ;;  %9914 = vmatprep.subr.bf16.mxu0 %v21169_v30  ;;  %v21221_v21 = vld [vmem:[#allocation8 + $0x1860] ss:$40 sps:$4 sm:$0xff]  }
 0x36e   :  { %9955 = vmatprep.subr.bf16.mxu1 %v21160_v49  ;;  %v21206_v30 = vld [vmem:[#allocation8 + $0x468] ss:$40 sps:$4 sm:$0xff]   ;;  %v21214_v49 = vld [vmem:[#allocation8 + $0x41c] ss:$40 sps:$4 sm:$0xff]  }
 0x36f   :  { %v23922_v57 = vpop.f32.mrf.mxu0  ;;  %9865 = vmatmul.mubr.bf16.vlgmr.msra.gmra.mxu0 %v23918_v62 }
 0x370   :  { %v23924_v42 = vpop.f32.mrf.mxu1  ;;  %9906 = vmatmul.mubr.bf16.vlgmr.msra.gmra.mxu1 %v23920_v36  ;;  %9915 = vmatpush1.bf16.msra.mxu0 %v21167_v52  ;;  %v21227_v52 = vld [vmem:[#allocation8 + $0x1810] ss:$40 sps:$4 sm:$0xff]  }
 0x371   :  { %9956 = vmatpush1.bf16.msra.mxu1 %v21158_v34  ;;  %9987 = vmatprep.mubr.bf16.mxu1 %v23874_v18  ;;  %v23929_v47 = vpop.f32.mrf.mxu0  ;;  %v21212_v34 = vld [vmem:[#allocation8 + $0x418] ss:$40 sps:$4 sm:$0xff]  }
 0x372   :  { %v23931_v48 = vpop.f32.mrf.mxu1  ;;  %9957 = vmatprep.subr.bf16.mxu1 %v21163_v0  ;;  %9916 = vmatprep.subr.bf16.mxu0 %v21175_v39  ;;  %v21235_v0 = vld [vmem:[#allocation8 + $0x17c4] ss:$40 sps:$4 sm:$0xff]  }
 0x373   :  { %v4750_v33 = vpop.f32.mrf.mxu0  ;;  %v21220_v39 = vld [vmem:[#allocation8 + $0x3cc] ss:$40 sps:$4 sm:$0xff]  }
 0x374   :  { %v4791_v51 = vpop.f32.mrf.mxu1  ;;  %9917 = vmatpush1.bf16.msra.mxu0 %v21173_v46  ;;  %v21218_v46 = vld [vmem:[#allocation8 + $0x3c8] ss:$40 sps:$4 sm:$0xff]  }
 0x375   :  { %9958 = vmatpush1.bf16.msra.mxu1 %v21161_v63  ;;  %v4751_v56 = vpop.f32.mrf.mxu0  ;;  %9918 = vmatprep.subr.bf16.mxu0 %v21181_v50  ;;  %v21233_v63 = vld [vmem:[#allocation8 + $0x17c0] ss:$40 sps:$4 sm:$0xff]   ;;  %v21241_v50 = vld [vmem:[#allocation8 + $0x1774] ss:$40 sps:$4 sm:$0xff]   ;;  %v21239_v33 = vld [vmem:[#allocation8 + $0x1770] ss:$40 sps:$4 sm:$0xff]  }
 0x376   :  { %v4792_v58 = vpop.f32.mrf.mxu1  ;;  %9959 = vmatprep.subr.bf16.mxu1 %v21166_v6  ;;  %v21226_v6 = vld [vmem:[#allocation8 + $0x37c] ss:$40 sps:$4 sm:$0xff]   ;;  %v21224_v51 = vld [vmem:[#allocation8 + $0x378] ss:$40 sps:$4 sm:$0xff]  }
 0x377   :  { %v21245_v56 = vld [vmem:[#allocation8 + $0x1720] ss:$40 sps:$4 sm:$0xff]   ;;  %v803_v58 = vld [vmem:[#allocation7 + $0x8] sm:$0x3] }
 0x378   :  { %9919 = vmatpush1.bf16.msra.mxu0 %v21179_v55  ;;  %v21232_v55 = vld [vmem:[#allocation8 + $0x32c] ss:$40 sps:$4 sm:$0xff]  }
 0x379   :  { %9960 = vmatpush1.bf16.msra.mxu1 %v21164_v53  ;;  %9920 = vmatprep.subr.bf16.mxu0 %v21187_v13  ;;  %v21247_v53 = vld [vmem:[#allocation8 + $0x1724] ss:$40 sps:$4 sm:$0xff]   ;;  %v21230_v13 = vld [vmem:[#allocation8 + $0x328] ss:$40 sps:$4 sm:$0xff]  }
 0x37a   :  { %9961 = vmatprep.subr.bf16.mxu1 %v21172_v60  ;;  %v21253_v60 = vld [vmem:[#allocation8 + $0x16d4] ss:$40 sps:$4 sm:$0xff]  }
 0x37c   :  { %9921 = vmatpush1.bf16.msra.mxu0 %v21185_v1  ;;  %v21251_v1 = vld [vmem:[#allocation8 + $0x16d0] ss:$40 sps:$4 sm:$0xff]  }
 0x37d   :  { %9962 = vmatpush1.bf16.msra.mxu1 %v21170_v8  ;;  %9922 = vmatprep.subr.bf16.mxu0 %v21193_v28  ;;  %v21238_v8 = vld [vmem:[#allocation8 + $0x2dc] ss:$40 sps:$4 sm:$0xff]   ;;  %v21236_v28 = vld [vmem:[#allocation8 + $0x2d8] ss:$40 sps:$4 sm:$0xff]  }
 0x37e   :  { %9963 = vmatprep.subr.bf16.mxu1 %v21178_v16  ;;  %v21259_v16 = vld [vmem:[#allocation8 + $0x1684] ss:$40 sps:$4 sm:$0xff]  }
 0x380   :  { %9923 = vmatpush1.bf16.msra.mxu0 %v21191_v2  ;;  %v841_v2 = vrot.slane %v803_v58, %v23788_v41 }
 0x381   :  { %9964 = vmatpush1.bf16.msra.mxu1 %v21176_v4  ;;  %9924 = vmatprep.subr.bf16.mxu0 %v21199_v5  ;;  %v21244_v4 = vld [vmem:[#allocation8 + $0x28c] ss:$40 sps:$4 sm:$0xff]   ;;  %v21257_v5 = vld [vmem:[#allocation8 + $0x1680] ss:$40 sps:$4 sm:$0xff]  }
 0x382   :  { %9965 = vmatprep.subr.bf16.mxu1 %v21184_v7  ;;  %v845_v7 = vrot.slane %v803_v58, %v23791_v44  ;;  %v21275_v58 = vld [vmem:[#allocation8 + $0x698] ss:$40 sps:$4 sm:$0xff]  }
 0x384   :  { %9925 = vmatpush1.bf16.msra.mxu0 %v21197_v10  ;;  %v21242_v10 = vld [vmem:[#allocation8 + $0x288] ss:$40 sps:$4 sm:$0xff]  }
 0x385   :  { %9966 = vmatpush1.bf16.msra.mxu1 %v21182_v37  ;;  %9926 = vmatprep.subr.bf16.mxu0 %v21205_v40  ;;  %v21265_v37 = vld [vmem:[#allocation8 + $0x73c] ss:$40 sps:$4 sm:$0xff]   ;;  %v4747_v40 = vadd.f32 %v23922_v57, %v841_v2  ;;  %v21292_v2 = vld [vmem:[#allocation8 + $0xa0c] ss:$40 sps:$4 sm:$0xff]  }
 0x386   :  { %9967 = vmatprep.subr.bf16.mxu1 %v21190_v11  ;;  %v21250_v11 = vld [vmem:[#allocation8 + $0xc3c] ss:$40 sps:$4 sm:$0xff]  }
 0x388   :  { %9927 = vmatpush1.bf16.msra.mxu0 %v21203_v12  ;;  %v4749_v12 = vadd.f32 %v23929_v47, %v845_v7  ;;  %v21295_v7 = vld [vmem:[#allocation8 + $0x5ac] ss:$40 sps:$4 sm:$0xff]  }
 0x389   :  { %9968 = vmatpush1.bf16.msra.mxu1 %v21188_v29  ;;  %9928 = vmatprep.subr.bf16.mxu0 %v21211_v14  ;;  %v21248_v29 = vld [vmem:[#allocation8 + $0xc38] ss:$40 sps:$4 sm:$0xff]   ;;  %v4788_v14 = vadd.f32 %v23924_v42, %v4747_v40 }
 0x38a   :  { %9969 = vmatprep.subr.bf16.mxu1 %v21196_v15  ;;  %v21256_v15 = vld [vmem:[#allocation8 + $0xbec] ss:$40 sps:$4 sm:$0xff]   ;;  %v21296_v40 = vld [vmem:[#allocation8 + $0xeb8] ss:$40 sps:$4 sm:$0xff]  }
 0x38c   :  { %9929 = vmatpush1.bf16.msra.mxu0 %v21209_v17 }
 0x38d   :  { %9970 = vmatpush1.bf16.msra.mxu1 %v21194_v19  ;;  %9930 = vmatprep.subr.bf16.mxu0 %v21217_v32  ;;  %v4790_v32 = vadd.f32 %v23931_v48, %v4749_v12  ;;  %v21304_v12 = vld [vmem:[#allocation8 + $0xe6c] ss:$40 sps:$4 sm:$0xff]  }
 0x38e   :  { %9971 = vmatprep.subr.bf16.mxu1 %v21202_v23 }
 0x390   :  { %9931 = vmatpush2.bf16.msra.mxu0 %v21215_v25  ;;  %v21254_v25 = vld [vmem:[#allocation8 + $0xbe8] ss:$40 sps:$4 sm:$0xff]  }
 0x391   :  { %9972 = vmatpush2.bf16.msra.mxu1 %v21200_v26  ;;  %9932 = vmatprep.subr.bf16.mxu0 %v21223_v20 }
 0x392   :  { %9973 = vmatprep.subr.bf16.mxu1 %v21208_v31  ;;  %v21262_v31 = vld [vmem:[#allocation8 + $0xb9c] ss:$40 sps:$4 sm:$0xff]  }
 0x394   :  { %9933 = vmatpush2.bf16.msra.mxu0 %v21221_v21 }
 0x395   :  { %9974 = vmatpush2.bf16.msra.mxu1 %v21206_v30  ;;  %9934 = vmatprep.subr.bf16.mxu0 %v21229_v35 }
 0x396   :  { %9975 = vmatprep.subr.bf16.mxu1 %v21214_v49 }
 0x398   :  { %9935 = vmatpush2.bf16.msra.mxu0 %v21227_v52  ;;  %v21260_v52 = vld [vmem:[#allocation8 + $0xb98] ss:$40 sps:$4 sm:$0xff]  }
 0x399   :  { %9976 = vmatpush2.bf16.msra.mxu1 %v21212_v34  ;;  %9936 = vmatprep.subr.bf16.mxu0 %v21235_v0  ;;  %v21263_v0 = vld [vmem:[#allocation8 + $0x738] ss:$40 sps:$4 sm:$0xff]  }
 0x39a   :  { %9977 = vmatprep.subr.bf16.mxu1 %v21220_v39  ;;  %v21268_v39 = vld [vmem:[#allocation8 + $0xb4c] ss:$40 sps:$4 sm:$0xff]  }
 0x39c   :  { %9937 = vmatpush2.bf16.msra.mxu0 %v21233_v63  ;;  %v21266_v63 = vld [vmem:[#allocation8 + $0xb48] ss:$40 sps:$4 sm:$0xff]  }
 0x39d   :  { %9978 = vmatpush2.bf16.msra.mxu1 %v21218_v46  ;;  %9938 = vmatprep.subr.bf16.mxu0 %v21241_v50 }
 0x39e   :  { %9979 = vmatprep.subr.bf16.mxu1 %v21226_v6  ;;  %v21271_v6 = vld [vmem:[#allocation8 + $0x6ec] ss:$40 sps:$4 sm:$0xff]  }
 0x3a0   :  { %9939 = vmatpush2.bf16.msra.mxu0 %v21239_v33  ;;  %v21274_v33 = vld [vmem:[#allocation8 + $0xafc] ss:$40 sps:$4 sm:$0xff]  }
 0x3a1   :  { %9980 = vmatpush2.bf16.msra.mxu1 %v21224_v51  ;;  %9940 = vmatprep.subr.bf16.mxu0 %v21247_v53  ;;  %v21269_v51 = vld [vmem:[#allocation8 + $0x6e8] ss:$40 sps:$4 sm:$0xff]   ;;  %v21272_v53 = vld [vmem:[#allocation8 + $0xaf8] ss:$40 sps:$4 sm:$0xff]  }
 0x3a2   :  { %9981 = vmatprep.subr.bf16.mxu1 %v21232_v55  ;;  %v21277_v55 = vld [vmem:[#allocation8 + $0x69c] ss:$40 sps:$4 sm:$0xff]  }
 0x3a4   :  { %9941 = vmatpush2.bf16.msra.mxu0 %v21245_v56  ;;  %v21280_v56 = vld [vmem:[#allocation8 + $0xaac] ss:$40 sps:$4 sm:$0xff]  }
 0x3a5   :  { %9982 = vmatpush2.bf16.msra.mxu1 %v21230_v13  ;;  %9942 = vmatprep.subr.bf16.mxu0 %v21253_v60  ;;  %v21278_v13 = vld [vmem:[#allocation8 + $0xaa8] ss:$40 sps:$4 sm:$0xff]   ;;  %v21283_v60 = vld [vmem:[#allocation8 + $0x64c] ss:$40 sps:$4 sm:$0xff]  }
 0x3a6   :  { %9983 = vmatprep.subr.bf16.mxu1 %v21238_v8  ;;  %v21286_v8 = vld [vmem:[#allocation8 + $0xa5c] ss:$40 sps:$4 sm:$0xff]  }
 0x3a8   :  { %9943 = vmatpush2.bf16.msra.mxu0 %v21251_v1  ;;  %v21281_v1 = vld [vmem:[#allocation8 + $0x648] ss:$40 sps:$4 sm:$0xff]  }
 0x3a9   :  { %9984 = vmatpush2.bf16.msra.mxu1 %v21236_v28  ;;  %9944 = vmatprep.subr.bf16.mxu0 %v21259_v16  ;;  %v21284_v28 = vld [vmem:[#allocation8 + $0xa58] ss:$40 sps:$4 sm:$0xff]   ;;  %v21289_v16 = vld [vmem:[#allocation8 + $0x5fc] ss:$40 sps:$4 sm:$0xff]  }
 0x3aa   :  { %9985 = vmatprep.subr.bf16.mxu1 %v21244_v4  ;;  %v21287_v4 = vld [vmem:[#allocation8 + $0x5f8] ss:$40 sps:$4 sm:$0xff]  }
 0x3ac   :  { %9945 = vmatpush2.bf16.msra.mxu0 %v21257_v5  ;;  %v21290_v5 = vld [vmem:[#allocation8 + $0xa08] ss:$40 sps:$4 sm:$0xff]  }
 0x3ad   :  { %9986 = vmatpush2.bf16.msra.mxu1 %v21242_v10  ;;  %9996 = vmatprep.subr.bf16.mxu0 %v21265_v37  ;;  %v21298_v10 = vld [vmem:[#allocation8 + $0xebc] ss:$40 sps:$4 sm:$0xff]   ;;  %v21293_v37 = vld [vmem:[#allocation8 + $0x5a8] ss:$40 sps:$4 sm:$0xff]  }
 0x3ae   :  { %10037 = vmatprep.subr.bf16.mxu1 %v21250_v11  ;;  %v21301_v11 = vld [vmem:[#allocation8 + $0x55c] ss:$40 sps:$4 sm:$0xff]  }
 0x3af   :  { %v4828_v17 = vpop.f32.mrf.mxu0 }
 0x3b0   :  { %v4869_v19 = vpop.f32.mrf.mxu1  ;;  %v4829_v23 = vadd.f32 %v4828_v17, %v4788_v14  ;;  %9988 = vmatmul.mubr.bf16.vlgmr.msra.gmra.mxu1 %v23897_v27  ;;  %v21302_v14 = vld [vmem:[#allocation8 + $0xe68] ss:$40 sps:$4 sm:$0xff]   ;;  %v21310_v17 = vld [vmem:[#allocation8 + $0xe1c] ss:$40 sps:$4 sm:$0xff]  }
 0x3b1   :  { %10038 = vmatpush1.bf16.msra.mxu1 %v21248_v29  ;;  %10069 = vmatprep.mubr.bf16.mxu1 %v23901_v9  ;;  %v4830_v57 = vpop.f32.mrf.mxu0  ;;  %v21299_v29 = vld [vmem:[#allocation8 + $0x558] ss:$40 sps:$4 sm:$0xff]  }
 0x3b2   :  { %v4871_v47 = vpop.f32.mrf.mxu1  ;;  %v4870_v26 = vadd.f32 %v4869_v19, %v4829_v23  ;;  %v4831_v20 = vadd.f32 %v4830_v57, %v4790_v32  ;;  %10039 = vmatprep.subr.bf16.mxu1 %v21256_v15  ;;  %v21307_v15 = vld [vmem:[#allocation8 + $0x50c] ss:$40 sps:$4 sm:$0xff]   ;;  %v21305_v19 = vld [vmem:[#allocation8 + $0x508] ss:$40 sps:$4 sm:$0xff]   ;;  %v21308_v32 = vld [vmem:[#allocation8 + $0xe18] ss:$40 sps:$4 sm:$0xff]  }
 0x3b3   :  { %v4832_v42 = vpop.f32.mrf.mxu0  ;;  %v21313_v23 = vld [vmem:[#allocation8 + $0x9bc] ss:$40 sps:$4 sm:$0xff]   ;;  %v21316_v57 = vld [vmem:[#allocation8 + $0xdcc] ss:$40 sps:$4 sm:$0xff]  }
 0x3b4   :  { %v4873_v21 = vpop.f32.mrf.mxu1  ;;  %v4872_v30 = vadd.f32 %v4871_v47, %v4831_v20  ;;  %v4884_v35 = vmax.f32 %v4870_v26, 0.0  ;;  %v21311_v47 = vld [vmem:[#allocation8 + $0x9b8] ss:$40 sps:$4 sm:$0xff]   ;;  %v21319_v26 = vld [vmem:[#allocation8 + $0x96c] ss:$40 sps:$4 sm:$0xff]  }
 0x3b5   :  { %10040 = vmatpush1.bf16.msra.mxu1 %v21254_v25  ;;  %v4833_v49 = vpop.f32.mrf.mxu0  ;;  %v21314_v25 = vld [vmem:[#allocation8 + $0xdc8] ss:$40 sps:$4 sm:$0xff]   ;;  %v21322_v20 = vld [vmem:[#allocation8 + $0xd7c] ss:$40 sps:$4 sm:$0xff]   ;;  %v21320_v42 = vld [vmem:[#allocation8 + $0xd78] ss:$40 sps:$4 sm:$0xff]  }
 0x3b6   :  { %v4874_v48 = vpop.f32.mrf.mxu1  ;;  %v4885_v34 = vmax.f32 %v4872_v30, 0.0  ;;  %10041 = vmatprep.subr.bf16.mxu1 %v21262_v31  ;;  %v23943_v50 = vpack.c.bf16 %v4884_v35, %v4884_v35  ;;  %v21317_v31 = vld [vmem:[#allocation8 + $0x968] ss:$40 sps:$4 sm:$0xff]   ;;  %v21325_v21 = vld [vmem:[#allocation8 + $0x91c] ss:$40 sps:$4 sm:$0xff]  }
 0x3b7   :  { %v21328_v30 = vld [vmem:[#allocation8 + $0xd2c] ss:$40 sps:$4 sm:$0xff]   ;;  %v21323_v35 = vld [vmem:[#allocation8 + $0x918] ss:$40 sps:$4 sm:$0xff]   ;;  %v21326_v49 = vld [vmem:[#allocation8 + $0xd28] ss:$40 sps:$4 sm:$0xff]  }
 0x3b8   :  { %v23941_v46 = vpack.c.bf16 %v4885_v34, %v4885_v34  ;;  %v21331_v48 = vld [vmem:[#allocation8 + $0x8cc] ss:$40 sps:$4 sm:$0xff]   ;;  %v21329_v34 = vld [vmem:[#allocation8 + $0x8c8] ss:$40 sps:$4 sm:$0xff]  }
 0x3b9   :  { %10042 = vmatpush1.bf16.msra.mxu1 %v21260_v52  ;;  %v21334_v52 = vld [vmem:[#allocation8 + $0xcdc] ss:$40 sps:$4 sm:$0xff]  }
 0x3ba   :  { %9946 = vmatprep.mubr.bf16.mxu0 %v23941_v46  ;;  %10043 = vmatprep.subr.bf16.mxu1 %v21268_v39  ;;  %v21337_v39 = vld [vmem:[#allocation8 + $0x87c] ss:$40 sps:$4 sm:$0xff]  }
 0x3bb   :  { %9947 = vmatmul.mubr.bf16.vlgmr.msra.gmra.mxu0 %v23943_v50 }
 0x3bc   :  { %9997 = vmatpush1.bf16.msra.mxu0 %v21263_v0  ;;  %10028 = vmatprep.mubr.bf16.mxu0 %v23876_v22  ;;  %v21332_v0 = vld [vmem:[#allocation8 + $0xcd8] ss:$40 sps:$4 sm:$0xff]  }
 0x3bd   :  { %10044 = vmatpush1.bf16.msra.mxu1 %v21266_v63  ;;  %9998 = vmatprep.subr.bf16.mxu0 %v21271_v6  ;;  %v21335_v63 = vld [vmem:[#allocation8 + $0x878] ss:$40 sps:$4 sm:$0xff]   ;;  %v21340_v6 = vld [vmem:[#allocation8 + $0xc8c] ss:$40 sps:$4 sm:$0xff]  }
 0x3be   :  { %10045 = vmatprep.subr.bf16.mxu1 %v21274_v33  ;;  %v21338_v33 = vld [vmem:[#allocation8 + $0xc88] ss:$40 sps:$4 sm:$0xff]  }
 0x3c0   :  { %9999 = vmatpush1.bf16.msra.mxu0 %v21269_v51  ;;  %v21343_v51 = vld [vmem:[#allocation8 + $0x82c] ss:$40 sps:$4 sm:$0xff]  }
 0x3c1   :  { %10046 = vmatpush1.bf16.msra.mxu1 %v21272_v53  ;;  %10000 = vmatprep.subr.bf16.mxu0 %v21277_v55  ;;  %v5696_v53 = vld [vmem:[#allocation10] sm:$0xff] }
 0x3c2   :  { %10047 = vmatprep.subr.bf16.mxu1 %v21280_v56  ;;  %v21346_v55 = vld [vmem:[#allocation8 + $0x163c] ss:$40 sps:$4 sm:$0xff]   ;;  %v21341_v56 = vld [vmem:[#allocation8 + $0x828] ss:$40 sps:$4 sm:$0xff]  }
 0x3c4   :  { %10001 = vmatpush1.bf16.msra.mxu0 %v21275_v58  ;;  %v5703_v58 = vrot.slane %v5696_v53, %v23788_v41 }
 0x3c5   :  { %10048 = vmatpush1.bf16.msra.mxu1 %v21278_v13  ;;  %10002 = vmatprep.subr.bf16.mxu0 %v21283_v60  ;;  %v21344_v13 = vld [vmem:[#allocation8 + $0x1638] ss:$40 sps:$4 sm:$0xff]   ;;  %v21349_v60 = vld [vmem:[#allocation8 + $0x7dc] ss:$40 sps:$4 sm:$0xff]  }
 0x3c6   :  { %10049 = vmatprep.subr.bf16.mxu1 %v21286_v8  ;;  %v5707_v8 = vrot.slane %v5696_v53, %v23791_v44  ;;  %v21391_v53 = vld [vmem:[#allocation8 + $0xfac] ss:$40 sps:$4 sm:$0xff]  }
 0x3c8   :  { %10003 = vmatpush1.bf16.msra.mxu0 %v21281_v1  ;;  %v21347_v1 = vld [vmem:[#allocation8 + $0x7d8] ss:$40 sps:$4 sm:$0xff]  }
 0x3c9   :  { %10050 = vmatpush1.bf16.msra.mxu1 %v21284_v28  ;;  %10004 = vmatprep.subr.bf16.mxu0 %v21289_v16  ;;  %v21352_v28 = vld [vmem:[#allocation8 + $0x15ec] ss:$40 sps:$4 sm:$0xff]  }
 0x3ca   :  { %10051 = vmatprep.subr.bf16.mxu1 %v21292_v2  ;;  %v21350_v2 = vld [vmem:[#allocation8 + $0x15e8] ss:$40 sps:$4 sm:$0xff]  }
 0x3cc   :  { %10005 = vmatpush1.bf16.msra.mxu0 %v21287_v4 }
 0x3cd   :  { %10052 = vmatpush1.bf16.msra.mxu1 %v21290_v5  ;;  %10006 = vmatprep.subr.bf16.mxu0 %v21295_v7 }
 0x3ce   :  { %10053 = vmatprep.subr.bf16.mxu1 %v21298_v10  ;;  %v21355_v10 = vld [vmem:[#allocation8 + $0x78c] ss:$40 sps:$4 sm:$0xff]  }
 0x3d0   :  { %10007 = vmatpush1.bf16.msra.mxu0 %v21293_v37 }
 0x3d1   :  { %10054 = vmatpush2.bf16.msra.mxu1 %v21296_v40  ;;  %10008 = vmatprep.subr.bf16.mxu0 %v21301_v11 }
 0x3d2   :  { %10055 = vmatprep.subr.bf16.mxu1 %v21304_v12  ;;  %v21353_v12 = vld [vmem:[#allocation8 + $0x788] ss:$40 sps:$4 sm:$0xff]  }
 0x3d4   :  { %10009 = vmatpush1.bf16.msra.mxu0 %v21299_v29  ;;  %v21358_v29 = vld [vmem:[#allocation8 + $0x159c] ss:$40 sps:$4 sm:$0xff]  }
 0x3d5   :  { %10056 = vmatpush2.bf16.msra.mxu1 %v21302_v14  ;;  %10010 = vmatprep.subr.bf16.mxu0 %v21307_v15  ;;  %v21356_v15 = vld [vmem:[#allocation8 + $0x1598] ss:$40 sps:$4 sm:$0xff]  }
 0x3d6   :  { %10057 = vmatprep.subr.bf16.mxu1 %v21310_v17 }
 0x3d8   :  { %10011 = vmatpush1.bf16.msra.mxu0 %v21305_v19 }
 0x3d9   :  { %10058 = vmatpush2.bf16.msra.mxu1 %v21308_v32  ;;  %10012 = vmatprep.subr.bf16.mxu0 %v21313_v23  ;;  %v21361_v23 = vld [vmem:[#allocation8 + $0x113c] ss:$40 sps:$4 sm:$0xff]  }
 0x3da   :  { %10059 = vmatprep.subr.bf16.mxu1 %v21316_v57 }
 0x3dc   :  { %10013 = vmatpush2.bf16.msra.mxu0 %v21311_v47  ;;  %v21359_v47 = vld [vmem:[#allocation8 + $0x1138] ss:$40 sps:$4 sm:$0xff]  }
 0x3dd   :  { %10060 = vmatpush2.bf16.msra.mxu1 %v21314_v25  ;;  %10014 = vmatprep.subr.bf16.mxu0 %v21319_v26  ;;  %v21364_v25 = vld [vmem:[#allocation8 + $0x154c] ss:$40 sps:$4 sm:$0xff]   ;;  %v21362_v26 = vld [vmem:[#allocation8 + $0x1548] ss:$40 sps:$4 sm:$0xff]  }
 0x3de   :  { %10061 = vmatprep.subr.bf16.mxu1 %v21322_v20  ;;  %v21367_v20 = vld [vmem:[#allocation8 + $0x10ec] ss:$40 sps:$4 sm:$0xff]  }
 0x3e0   :  { %10015 = vmatpush2.bf16.msra.mxu0 %v21317_v31  ;;  %v21365_v31 = vld [vmem:[#allocation8 + $0x10e8] ss:$40 sps:$4 sm:$0xff]  }
 0x3e1   :  { %10062 = vmatpush2.bf16.msra.mxu1 %v21320_v42  ;;  %10016 = vmatprep.subr.bf16.mxu0 %v21325_v21  ;;  %v21370_v42 = vld [vmem:[#allocation8 + $0x14fc] ss:$40 sps:$4 sm:$0xff]   ;;  %v21368_v21 = vld [vmem:[#allocation8 + $0x14f8] ss:$40 sps:$4 sm:$0xff]  }
 0x3e2   :  { %10063 = vmatprep.subr.bf16.mxu1 %v21328_v30  ;;  %v21373_v30 = vld [vmem:[#allocation8 + $0x109c] ss:$40 sps:$4 sm:$0xff]  }
 0x3e4   :  { %10017 = vmatpush2.bf16.msra.mxu0 %v21323_v35  ;;  %v21371_v35 = vld [vmem:[#allocation8 + $0x1098] ss:$40 sps:$4 sm:$0xff]  }
 0x3e5   :  { %10064 = vmatpush2.bf16.msra.mxu1 %v21326_v49  ;;  %10018 = vmatprep.subr.bf16.mxu0 %v21331_v48  ;;  %v21376_v49 = vld [vmem:[#allocation8 + $0x14ac] ss:$40 sps:$4 sm:$0xff]   ;;  %v21374_v48 = vld [vmem:[#allocation8 + $0x14a8] ss:$40 sps:$4 sm:$0xff]  }
 0x3e6   :  { %10065 = vmatprep.subr.bf16.mxu1 %v21334_v52  ;;  %v21379_v52 = vld [vmem:[#allocation8 + $0x104c] ss:$40 sps:$4 sm:$0xff]  }
 0x3e8   :  { %10019 = vmatpush2.bf16.msra.mxu0 %v21329_v34  ;;  %v21382_v34 = vld [vmem:[#allocation8 + $0x145c] ss:$40 sps:$4 sm:$0xff]  }
 0x3e9   :  { %10066 = vmatpush2.bf16.msra.mxu1 %v21332_v0  ;;  %10020 = vmatprep.subr.bf16.mxu0 %v21337_v39  ;;  %v21377_v0 = vld [vmem:[#allocation8 + $0x1048] ss:$40 sps:$4 sm:$0xff]   ;;  %v21380_v39 = vld [vmem:[#allocation8 + $0x1458] ss:$40 sps:$4 sm:$0xff]  }
 0x3ea   :  { %10067 = vmatprep.subr.bf16.mxu1 %v21340_v6  ;;  %v21388_v6 = vld [vmem:[#allocation8 + $0x140c] ss:$40 sps:$4 sm:$0xff]  }
 0x3ec   :  { %10021 = vmatpush2.bf16.msra.mxu0 %v21335_v63  ;;  %v21385_v63 = vld [vmem:[#allocation8 + $0xffc] ss:$40 sps:$4 sm:$0xff]  }
 0x3ed   :  { %10068 = vmatpush2.bf16.msra.mxu1 %v21338_v33  ;;  %10022 = vmatprep.subr.bf16.mxu0 %v21343_v51  ;;  %v21383_v33 = vld [vmem:[#allocation8 + $0xff8] ss:$40 sps:$4 sm:$0xff]   ;;  %v21386_v51 = vld [vmem:[#allocation8 + $0x1408] ss:$40 sps:$4 sm:$0xff]  }
 0x3ee   :  { %10119 = vmatprep.subr.bf16.mxu1 %v21346_v55  ;;  %v21394_v55 = vld [vmem:[#allocation8 + $0x18bc] ss:$40 sps:$4 sm:$0xff]  }
 0x3ef   :  { %v9784_v16 = vpop.f32.mrf.mxu0 }
 0x3f0   :  { %v9785_v4 = vadd.f32 %v9784_v16, %v5703_v58  ;;  %v9825_v5 = vpop.f32.mrf.mxu1  ;;  %10023 = vmatpush2.bf16.msra.mxu0 %v21341_v56  ;;  %10070 = vmatmul.mubr.bf16.vlgmr.msra.gmra.mxu1 %v23918_v62  ;;  %v21389_v56 = vld [vmem:[#allocation8 + $0xfa8] ss:$40 sps:$4 sm:$0xff]   ;;  %v21392_v58 = vld [vmem:[#allocation8 + $0x18b8] ss:$40 sps:$4 sm:$0xff]   ;;  %v21406_v16 = vld [vmem:[#allocation8 + $0x181c] ss:$40 sps:$4 sm:$0xff]  }
 0x3f1   :  { %10120 = vmatpush1.bf16.msra.mxu1 %v21344_v13  ;;  %10151 = vmatprep.mubr.bf16.mxu1 %v23941_v46  ;;  %v9786_v7 = vpop.f32.mrf.mxu0  ;;  %v21397_v13 = vld [vmem:[#allocation8 + $0xf5c] ss:$40 sps:$4 sm:$0xff]  }
 0x3f2   :  { %v23952_v37 = vadd.f32 %v9825_v5, %v9785_v4  ;;  %v9787_v40 = vadd.f32 %v9786_v7, %v5707_v8  ;;  %v9827_v11 = vpop.f32.mrf.mxu1  ;;  %10024 = vmatprep.subr.bf16.mxu0 %v21349_v60  ;;  %10121 = vmatprep.subr.bf16.mxu1 %v21352_v28  ;;  %v21400_v60 = vld [vmem:[#allocation8 + $0x186c] ss:$40 sps:$4 sm:$0xff]   ;;  %v21395_v8 = vld [vmem:[#allocation8 + $0xf58] ss:$40 sps:$4 sm:$0xff]   ;;  %v21409_v5 = vld [vmem:[#allocation8 + $0x13bc] ss:$40 sps:$4 sm:$0xff]  }
 0x3f3   :  { %v9788_v14 = vpop.f32.mrf.mxu0  ;;  %v21403_v28 = vld [vmem:[#allocation8 + $0xf0c] ss:$40 sps:$4 sm:$0xff]   ;;  %v21404_v4 = vld [vmem:[#allocation8 + $0x1818] ss:$40 sps:$4 sm:$0xff]  }
 0x3f4   :  { %v23954_v17 = vadd.f32 %v9827_v11, %v9787_v40  ;;  %v9829_v19 = vpop.f32.mrf.mxu1  ;;  %10025 = vmatpush2.bf16.msra.mxu0 %v21347_v1  ;;  %v21398_v1 = vld [vmem:[#allocation8 + $0x1868] ss:$40 sps:$4 sm:$0xff]   ;;  %v21412_v7 = vld [vmem:[#allocation8 + $0x17cc] ss:$40 sps:$4 sm:$0xff]   ;;  %v21416_v14 = vld [vmem:[#allocation8 + $0x1778] ss:$40 sps:$4 sm:$0xff]  }
 0x3f5   :  { %10122 = vmatpush1.bf16.msra.mxu1 %v21350_v2  ;;  %v9789_v32 = vpop.f32.mrf.mxu0  ;;  %10026 = vmatprep.subr.bf16.mxu0 %v21355_v10  ;;  %v21401_v2 = vld [vmem:[#allocation8 + $0xf08] ss:$40 sps:$4 sm:$0xff]   ;;  %v21407_v10 = vld [vmem:[#allocation8 + $0x13b8] ss:$40 sps:$4 sm:$0xff]   ;;  %v21415_v11 = vld [vmem:[#allocation8 + $0x136c] ss:$40 sps:$4 sm:$0xff]  }
 0x3f6   :  { %v9830_v57 = vpop.f32.mrf.mxu1  ;;  %10123 = vmatprep.subr.bf16.mxu1 %v21358_v29  ;;  %v21410_v40 = vld [vmem:[#allocation8 + $0x17c8] ss:$40 sps:$4 sm:$0xff]   ;;  %v21424_v19 = vld [vmem:[#allocation8 + $0x172c] ss:$40 sps:$4 sm:$0xff]   ;;  %v21419_v32 = vld [vmem:[#allocation8 + $0x1318] ss:$40 sps:$4 sm:$0xff]  }
 0x3f7   :  { %v21413_v29 = vld [vmem:[#allocation8 + $0x1368] ss:$40 sps:$4 sm:$0xff]   ;;  %v21427_v57 = vld [vmem:[#allocation8 + $0x12cc] ss:$40 sps:$4 sm:$0xff]  }
 0x3f8   :  { %10027 = vmatpush2.bf16.msra.mxu0 %v21353_v12  ;;  %v21418_v12 = vld [vmem:[#allocation8 + $0x177c] ss:$40 sps:$4 sm:$0xff]  }
 0x3f9   :  { %10124 = vmatpush1.bf16.msra.mxu1 %v21356_v15  ;;  %10078 = vmatprep.subr.bf16.mxu0 %v21361_v23  ;;  %v21421_v15 = vld [vmem:[#allocation8 + $0x131c] ss:$40 sps:$4 sm:$0xff]   ;;  %v21422_v23 = vld [vmem:[#allocation8 + $0x1728] ss:$40 sps:$4 sm:$0xff]  }
 0x3fa   :  { %10125 = vmatprep.subr.bf16.mxu1 %v21364_v25  ;;  %v21425_v25 = vld [vmem:[#allocation8 + $0x12c8] ss:$40 sps:$4 sm:$0xff]  }
 0x3fb   :  { %10029 = vmatmul.mubr.bf16.vlgmr.msra.gmra.mxu0 %v23899_v61 }
 0x3fc   :  { %10079 = vmatpush1.bf16.msra.mxu0 %v21359_v47  ;;  %10110 = vmatprep.mubr.bf16.mxu0 %v23911_v43  ;;  %v21430_v47 = vld [vmem:[#allocation8 + $0x16dc] ss:$40 sps:$4 sm:$0xff]  }
 0x3fd   :  { %10126 = vmatpush1.bf16.msra.mxu1 %v21362_v26  ;;  %10080 = vmatprep.subr.bf16.mxu0 %v21367_v20  ;;  %v21428_v26 = vld [vmem:[#allocation8 + $0x16d8] ss:$40 sps:$4 sm:$0xff]   ;;  %v21433_v20 = vld [vmem:[#allocation8 + $0x127c] ss:$40 sps:$4 sm:$0xff]  }
 0x3fe   :  { %10127 = vmatprep.subr.bf16.mxu1 %v21370_v42  ;;  %v21431_v42 = vld [vmem:[#allocation8 + $0x1278] ss:$40 sps:$4 sm:$0xff]  }
 0x400   :  { %10081 = vmatpush1.bf16.msra.mxu0 %v21365_v31  ;;  %v21436_v31 = vld [vmem:[#allocation8 + $0x168c] ss:$40 sps:$4 sm:$0xff]  }
 0x401   :  { %10128 = vmatpush1.bf16.msra.mxu1 %v21368_v21  ;;  %10082 = vmatprep.subr.bf16.mxu0 %v21373_v30  ;;  %v21434_v21 = vld [vmem:[#allocation8 + $0x1688] ss:$40 sps:$4 sm:$0xff]   ;;  %v21439_v30 = vld [vmem:[#allocation8 + $0x122c] ss:$40 sps:$4 sm:$0xff]  }
 0x402   :  { %10129 = vmatprep.subr.bf16.mxu1 %v21376_v49  ;;  %v21437_v49 = vld [vmem:[#allocation8 + $0x1228] ss:$40 sps:$4 sm:$0xff]  }
 0x404   :  { %10083 = vmatpush1.bf16.msra.mxu0 %v21371_v35  ;;  %v21442_v35 = vld [vmem:[#allocation8 + $0x744] ss:$40 sps:$4 sm:$0xff]  }
 0x405   :  { %10130 = vmatpush1.bf16.msra.mxu1 %v21374_v48  ;;  %10084 = vmatprep.subr.bf16.mxu0 %v21379_v52  ;;  %v21440_v48 = vld [vmem:[#allocation8 + $0x740] ss:$40 sps:$4 sm:$0xff]   ;;  %v21445_v52 = vld [vmem:[#allocation8 + $0x11dc] ss:$40 sps:$4 sm:$0xff]  }
 0x406   :  { %10131 = vmatprep.subr.bf16.mxu1 %v21382_v34  ;;  %v21443_v34 = vld [vmem:[#allocation8 + $0x11d8] ss:$40 sps:$4 sm:$0xff]  }
 0x408   :  { %10085 = vmatpush1.bf16.msra.mxu0 %v21377_v0  ;;  %v21448_v0 = vld [vmem:[#allocation8 + $0x6f4] ss:$40 sps:$4 sm:$0xff]  }
 0x409   :  { %10132 = vmatpush1.bf16.msra.mxu1 %v21380_v39  ;;  %10086 = vmatprep.subr.bf16.mxu0 %v21385_v63  ;;  %v21446_v63 = vld [vmem:[#allocation8 + $0x6f0] ss:$40 sps:$4 sm:$0xff]  }
 0x40a   :  { %10133 = vmatprep.subr.bf16.mxu1 %v21388_v6 }
 0x40c   :  { %10087 = vmatpush1.bf16.msra.mxu0 %v21383_v33 }
 0x40d   :  { %10134 = vmatpush1.bf16.msra.mxu1 %v21386_v51  ;;  %10088 = vmatprep.subr.bf16.mxu0 %v21391_v53  ;;  %v21451_v53 = vld [vmem:[#allocation8 + $0x118c] ss:$40 sps:$4 sm:$0xff]  }
 0x40e   :  { %10135 = vmatprep.subr.bf16.mxu1 %v21394_v55 }
 0x410   :  { %10089 = vmatpush1.bf16.msra.mxu0 %v21389_v56 }
 0x411   :  { %10136 = vmatpush2.bf16.msra.mxu1 %v21392_v58  ;;  %10090 = vmatprep.subr.bf16.mxu0 %v21397_v13  ;;  %v21449_v13 = vld [vmem:[#allocation8 + $0x1188] ss:$40 sps:$4 sm:$0xff]  }
 0x412   :  { %10137 = vmatprep.subr.bf16.mxu1 %v21400_v60  ;;  %v21454_v60 = vld [vmem:[#allocation8 + $0x6a4] ss:$40 sps:$4 sm:$0xff]  }
 0x414   :  { %10091 = vmatpush1.bf16.msra.mxu0 %v21395_v8 }
 0x415   :  { %10138 = vmatpush2.bf16.msra.mxu1 %v21398_v1  ;;  %10092 = vmatprep.subr.bf16.mxu0 %v21403_v28 }
 0x416   :  { %10139 = vmatprep.subr.bf16.mxu1 %v21406_v16 }
 0x418   :  { %10093 = vmatpush1.bf16.msra.mxu0 %v21401_v2  ;;  %v21457_v2 = vld [vmem:[#allocation8 + $0x244] ss:$40 sps:$4 sm:$0xff]  }
 0x419   :  { %10140 = vmatpush2.bf16.msra.mxu1 %v21404_v4  ;;  %10094 = vmatprep.subr.bf16.mxu0 %v21409_v5  ;;  %v21455_v5 = vld [vmem:[#allocation8 + $0x240] ss:$40 sps:$4 sm:$0xff]  }
 0x41a   :  { %10141 = vmatprep.subr.bf16.mxu1 %v21412_v7  ;;  %v21460_v7 = vld [vmem:[#allocation8 + $0x654] ss:$40 sps:$4 sm:$0xff]  }
 0x41c   :  { %10095 = vmatpush2.bf16.msra.mxu0 %v21407_v10  ;;  %v21463_v10 = vld [vmem:[#allocation8 + $0x1f4] ss:$40 sps:$4 sm:$0xff]  }
 0x41d   :  { %10142 = vmatpush2.bf16.msra.mxu1 %v21410_v40  ;;  %10096 = vmatprep.subr.bf16.mxu0 %v21415_v11  ;;  %v21461_v40 = vld [vmem:[#allocation8 + $0x1f0] ss:$40 sps:$4 sm:$0xff]   ;;  %v21466_v11 = vld [vmem:[#allocation8 + $0x604] ss:$40 sps:$4 sm:$0xff]  }
 0x41e   :  { %10143 = vmatprep.subr.bf16.mxu1 %v21418_v12  ;;  %v21464_v12 = vld [vmem:[#allocation8 + $0x600] ss:$40 sps:$4 sm:$0xff]  }
 0x420   :  { %10097 = vmatpush2.bf16.msra.mxu0 %v21413_v29  ;;  %v21469_v29 = vld [vmem:[#allocation8 + $0x1a4] ss:$40 sps:$4 sm:$0xff]  }
 0x421   :  { %10144 = vmatpush2.bf16.msra.mxu1 %v21416_v14  ;;  %10098 = vmatprep.subr.bf16.mxu0 %v21421_v15  ;;  %v21472_v14 = vld [vmem:[#allocation8 + $0x5b4] ss:$40 sps:$4 sm:$0xff]   ;;  %v21467_v15 = vld [vmem:[#allocation8 + $0x1a0] ss:$40 sps:$4 sm:$0xff]  }
 0x422   :  { %10145 = vmatprep.subr.bf16.mxu1 %v21424_v19  ;;  %v21470_v19 = vld [vmem:[#allocation8 + $0x5b0] ss:$40 sps:$4 sm:$0xff]  }
 0x424   :  { %10099 = vmatpush2.bf16.msra.mxu0 %v21419_v32  ;;  %v21475_v32 = vld [vmem:[#allocation8 + $0x154] ss:$40 sps:$4 sm:$0xff]  }
 0x425   :  { %10146 = vmatpush2.bf16.msra.mxu1 %v21422_v23  ;;  %10100 = vmatprep.subr.bf16.mxu0 %v21427_v57  ;;  %v21478_v23 = vld [vmem:[#allocation8 + $0x564] ss:$40 sps:$4 sm:$0xff]   ;;  %v21473_v57 = vld [vmem:[#allocation8 + $0x150] ss:$40 sps:$4 sm:$0xff]  }
 0x426   :  { %10147 = vmatprep.subr.bf16.mxu1 %v21430_v47  ;;  %v21476_v47 = vld [vmem:[#allocation8 + $0x560] ss:$40 sps:$4 sm:$0xff]  }
 0x428   :  { %10101 = vmatpush2.bf16.msra.mxu0 %v21425_v25  ;;  %v21481_v25 = vld [vmem:[#allocation8 + $0x104] ss:$40 sps:$4 sm:$0xff]  }
 0x429   :  { %10148 = vmatpush2.bf16.msra.mxu1 %v21428_v26  ;;  %10102 = vmatprep.subr.bf16.mxu0 %v21433_v20  ;;  %v21484_v26 = vld [vmem:[#allocation8 + $0x514] ss:$40 sps:$4 sm:$0xff]   ;;  %v21479_v20 = vld [vmem:[#allocation8 + $0x100] ss:$40 sps:$4 sm:$0xff]  }
 0x42a   :  { %10149 = vmatprep.subr.bf16.mxu1 %v21436_v31  ;;  %v21482_v31 = vld [vmem:[#allocation8 + $0x510] ss:$40 sps:$4 sm:$0xff]  }
 0x42c   :  { %10103 = vmatpush2.bf16.msra.mxu0 %v21431_v42  ;;  %v21487_v42 = vld [vmem:[#allocation8 + $0xb4] ss:$40 sps:$4 sm:$0xff]  }
 0x42d   :  { %10150 = vmatpush2.bf16.msra.mxu1 %v21434_v21  ;;  %10104 = vmatprep.subr.bf16.mxu0 %v21439_v30  ;;  %v21490_v21 = vld [vmem:[#allocation8 + $0x9c4] ss:$40 sps:$4 sm:$0xff]   ;;  %v21485_v30 = vld [vmem:[#allocation8 + $0xb0] ss:$40 sps:$4 sm:$0xff]  }
 0x42e   :  { %10201 = vmatprep.subr.bf16.mxu1 %v21442_v35  ;;  %v21488_v35 = vld [vmem:[#allocation8 + $0x9c0] ss:$40 sps:$4 sm:$0xff]  }
 0x42f   :  { %v9866_v39 = vpop.f32.mrf.mxu0 }
 0x430   :  { %v9867_v6 = vadd.f32 %v9866_v39, %v23952_v37  ;;  %v9907_v33 = vpop.f32.mrf.mxu1  ;;  %10105 = vmatpush2.bf16.msra.mxu0 %v21437_v49  ;;  %10152 = vmatmul.mubr.bf16.vlgmr.msra.gmra.mxu1 %v23943_v50  ;;  %v21452_v37 = vld [vmem:[#allocation8 + $0x6a0] ss:$40 sps:$4 sm:$0xff]   ;;  %v21493_v49 = vld [vmem:[#allocation8 + $0x64] ss:$40 sps:$4 sm:$0xff]  }
 0x431   :  { %10202 = vmatpush1.bf16.msra.mxu1 %v21440_v48  ;;  %10233 = vmatprep.mubr.bf16.mxu1 %v23876_v22  ;;  %v9868_v51 = vpop.f32.mrf.mxu0  ;;  %v21496_v48 = vld [vmem:[#allocation8 + $0x974] ss:$40 sps:$4 sm:$0xff]   ;;  %v21502_v39 = vld [vmem:[#allocation8 + $0x924] ss:$40 sps:$4 sm:$0xff]  }
 0x432   :  { %v23961_v55 = vadd.f32 %v9907_v33, %v9867_v6  ;;  %v9869_v56 = vadd.f32 %v9868_v51, %v23954_v17  ;;  %v9909_v58 = vpop.f32.mrf.mxu1  ;;  %10106 = vmatprep.subr.bf16.mxu0 %v21445_v52  ;;  %10203 = vmatprep.subr.bf16.mxu1 %v21448_v0  ;;  %v21458_v17 = vld [vmem:[#allocation8 + $0x650] ss:$40 sps:$4 sm:$0xff]   ;;  %v21491_v52 = vld [vmem:[#allocation8 + $0x60] ss:$40 sps:$4 sm:$0xff]   ;;  %v21499_v0 = vld [vmem:[#allocation8 + $0x14] ss:$40 sps:$4 sm:$0xff]  }
 0x433   :  { %v9870_v8 = vpop.f32.mrf.mxu0  ;;  %v21500_v6 = vld [vmem:[#allocation8 + $0x920] ss:$40 sps:$4 sm:$0xff]   ;;  %v21505_v33 = vld [vmem:[#allocation8 + $0x4c4] ss:$40 sps:$4 sm:$0xff]   ;;  %v21508_v51 = vld [vmem:[#allocation8 + $0x8d4] ss:$40 sps:$4 sm:$0xff]  }
 0x434   :  { %v23964_v1 = vadd.f32 %v9909_v58, %v9869_v56  ;;  %v9911_v28 = vpop.f32.mrf.mxu1  ;;  %10107 = vmatpush2.bf16.msra.mxu0 %v21443_v34  ;;  %v21494_v34 = vld [vmem:[#allocation8 + $0x970] ss:$40 sps:$4 sm:$0xff]   ;;  %v21511_v58 = vld [vmem:[#allocation8 + $0x474] ss:$40 sps:$4 sm:$0xff]   ;;  %v21512_v8 = vld [vmem:[#allocation8 + $0x880] ss:$40 sps:$4 sm:$0xff]  }
 0x435   :  { %10204 = vmatpush1.bf16.msra.mxu1 %v21446_v63  ;;  %v9871_v16 = vpop.f32.mrf.mxu0  ;;  %10108 = vmatprep.subr.bf16.mxu0 %v21451_v53  ;;  %v21497_v63 = vld [vmem:[#allocation8 + $0x10] ss:$40 sps:$4 sm:$0xff]   ;;  %v21503_v53 = vld [vmem:[#allocation8 + $0x4c0] ss:$40 sps:$4 sm:$0xff]   ;;  %v21520_v28 = vld [vmem:[#allocation8 + $0x834] ss:$40 sps:$4 sm:$0xff]  }
 0x436   :  { %v9912_v4 = vpop.f32.mrf.mxu1  ;;  %10205 = vmatprep.subr.bf16.mxu1 %v21454_v60  ;;  %v21506_v56 = vld [vmem:[#allocation8 + $0x8d0] ss:$40 sps:$4 sm:$0xff]   ;;  %v21515_v16 = vld [vmem:[#allocation8 + $0x420] ss:$40 sps:$4 sm:$0xff]  }
 0x437   :  { %v21509_v60 = vld [vmem:[#allocation8 + $0x470] ss:$40 sps:$4 sm:$0xff]   ;;  %v21523_v4 = vld [vmem:[#allocation8 + $0x3d4] ss:$40 sps:$4 sm:$0xff]  }
 0x438   :  { %10109 = vmatpush2.bf16.msra.mxu0 %v21449_v13  ;;  %v21514_v13 = vld [vmem:[#allocation8 + $0x884] ss:$40 sps:$4 sm:$0xff]  }
 0x439   :  { %10206 = vmatpush1.bf16.msra.mxu1 %v21452_v37  ;;  %10160 = vmatprep.subr.bf16.mxu0 %v21457_v2  ;;  %v21517_v37 = vld [vmem:[#allocation8 + $0x424] ss:$40 sps:$4 sm:$0xff]   ;;  %v21518_v2 = vld [vmem:[#allocation8 + $0x830] ss:$40 sps:$4 sm:$0xff]  }
 0x43a   :  { %10207 = vmatprep.subr.bf16.mxu1 %v21460_v7  ;;  %v21521_v7 = vld [vmem:[#allocation8 + $0x3d0] ss:$40 sps:$4 sm:$0xff]  }
 0x43b   :  { %10111 = vmatmul.mubr.bf16.vlgmr.msra.gmra.mxu0 %v23920_v36 }
 0x43c   :  { %10161 = vmatpush1.bf16.msra.mxu0 %v21455_v5  ;;  %10192 = vmatprep.mubr.bf16.mxu0 %v23874_v18  ;;  %v21526_v5 = vld [vmem:[#allocation8 + $0x7e4] ss:$40 sps:$4 sm:$0xff]  }
 0x43d   :  { %10208 = vmatpush1.bf16.msra.mxu1 %v21458_v17  ;;  %10162 = vmatprep.subr.bf16.mxu0 %v21463_v10  ;;  %v21524_v17 = vld [vmem:[#allocation8 + $0x7e0] ss:$40 sps:$4 sm:$0xff]   ;;  %v21529_v10 = vld [vmem:[#allocation8 + $0x384] ss:$40 sps:$4 sm:$0xff]  }
 0x43e   :  { %10209 = vmatprep.subr.bf16.mxu1 %v21466_v11  ;;  %v21527_v11 = vld [vmem:[#allocation8 + $0x380] ss:$40 sps:$4 sm:$0xff]  }
 0x440   :  { %10163 = vmatpush1.bf16.msra.mxu0 %v21461_v40  ;;  %v21532_v40 = vld [vmem:[#allocation8 + $0x794] ss:$40 sps:$4 sm:$0xff]  }
 0x441   :  { %10210 = vmatpush1.bf16.msra.mxu1 %v21464_v12  ;;  %10164 = vmatprep.subr.bf16.mxu0 %v21469_v29  ;;  %v21530_v12 = vld [vmem:[#allocation8 + $0x790] ss:$40 sps:$4 sm:$0xff]   ;;  %v21535_v29 = vld [vmem:[#allocation8 + $0x334] ss:$40 sps:$4 sm:$0xff]  }
 0x442   :  { %10211 = vmatprep.subr.bf16.mxu1 %v21472_v14  ;;  %v21538_v14 = vld [vmem:[#allocation8 + $0x1144] ss:$40 sps:$4 sm:$0xff]  }
 0x444   :  { %10165 = vmatpush1.bf16.msra.mxu0 %v21467_v15  ;;  %v21533_v15 = vld [vmem:[#allocation8 + $0x330] ss:$40 sps:$4 sm:$0xff]  }
 0x445   :  { %10212 = vmatpush1.bf16.msra.mxu1 %v21470_v19  ;;  %10166 = vmatprep.subr.bf16.mxu0 %v21475_v32  ;;  %v21536_v19 = vld [vmem:[#allocation8 + $0x1140] ss:$40 sps:$4 sm:$0xff]   ;;  %v21541_v32 = vld [vmem:[#allocation8 + $0x2e4] ss:$40 sps:$4 sm:$0xff]  }
 0x446   :  { %10213 = vmatprep.subr.bf16.mxu1 %v21478_v23  ;;  %v21539_v23 = vld [vmem:[#allocation8 + $0x2e0] ss:$40 sps:$4 sm:$0xff]  }
 0x448   :  { %10167 = vmatpush1.bf16.msra.mxu0 %v21473_v57  ;;  %v21544_v57 = vld [vmem:[#allocation8 + $0x10f4] ss:$40 sps:$4 sm:$0xff]  }
 0x449   :  { %10214 = vmatpush1.bf16.msra.mxu1 %v21476_v47  ;;  %10168 = vmatprep.subr.bf16.mxu0 %v21481_v25  ;;  %v21542_v47 = vld [vmem:[#allocation8 + $0x10f0] ss:$40 sps:$4 sm:$0xff]  }
 0x44a   :  { %10215 = vmatprep.subr.bf16.mxu1 %v21484_v26  ;;  %v21547_v26 = vld [vmem:[#allocation8 + $0x294] ss:$40 sps:$4 sm:$0xff]  }
 0x44c   :  { %10169 = vmatpush1.bf16.msra.mxu0 %v21479_v20 }
 0x44d   :  { %10216 = vmatpush1.bf16.msra.mxu1 %v21482_v31  ;;  %10170 = vmatprep.subr.bf16.mxu0 %v21487_v42  ;;  %v21545_v31 = vld [vmem:[#allocation8 + $0x290] ss:$40 sps:$4 sm:$0xff]   ;;  %v21550_v42 = vld [vmem:[#allocation8 + $0x10a4] ss:$40 sps:$4 sm:$0xff]  }
 0x44e   :  { %10217 = vmatprep.subr.bf16.mxu1 %v21490_v21  ;;  %v21548_v21 = vld [vmem:[#allocation8 + $0x10a0] ss:$40 sps:$4 sm:$0xff]  }
 0x450   :  { %10171 = vmatpush1.bf16.msra.mxu0 %v21485_v30 }
 0x451   :  { %10218 = vmatpush2.bf16.msra.mxu1 %v21488_v35  ;;  %10172 = vmatprep.subr.bf16.mxu0 %v21493_v49  ;;  %v21553_v35 = vld [vmem:[#allocation8 + $0xc44] ss:$40 sps:$4 sm:$0xff]  }
 0x452   :  { %10219 = vmatprep.subr.bf16.mxu1 %v21496_v48  ;;  %v21551_v48 = vld [vmem:[#allocation8 + $0xc40] ss:$40 sps:$4 sm:$0xff]  }
 0x454   :  { %10173 = vmatpush1.bf16.msra.mxu0 %v21491_v52  ;;  %v21556_v52 = vld [vmem:[#allocation8 + $0x1054] ss:$40 sps:$4 sm:$0xff]  }
 0x455   :  { %10220 = vmatpush2.bf16.msra.mxu1 %v21494_v34  ;;  %10174 = vmatprep.subr.bf16.mxu0 %v21499_v0  ;;  %v21554_v34 = vld [vmem:[#allocation8 + $0x1050] ss:$40 sps:$4 sm:$0xff]   ;;  %v21559_v0 = vld [vmem:[#allocation8 + $0xbf4] ss:$40 sps:$4 sm:$0xff]  }
 0x456   :  { %10221 = vmatprep.subr.bf16.mxu1 %v21502_v39  ;;  %v21557_v39 = vld [vmem:[#allocation8 + $0xbf0] ss:$40 sps:$4 sm:$0xff]  }
 0x458   :  { %10175 = vmatpush1.bf16.msra.mxu0 %v21497_v63  ;;  %v21562_v63 = vld [vmem:[#allocation8 + $0x1004] ss:$40 sps:$4 sm:$0xff]  }
 0x459   :  { %10222 = vmatpush2.bf16.msra.mxu1 %v21500_v6  ;;  %10176 = vmatprep.subr.bf16.mxu0 %v21505_v33  ;;  %v21560_v33 = vld [vmem:[#allocation8 + $0x1000] ss:$40 sps:$4 sm:$0xff]  }
 0x45a   :  { %10223 = vmatprep.subr.bf16.mxu1 %v21508_v51 }
 0x45c   :  { %10177 = vmatpush2.bf16.msra.mxu0 %v21503_v53 }
 0x45d   :  { %10224 = vmatpush2.bf16.msra.mxu1 %v21506_v56  ;;  %10178 = vmatprep.subr.bf16.mxu0 %v21511_v58  ;;  %v21565_v56 = vld [vmem:[#allocation8 + $0xba4] ss:$40 sps:$4 sm:$0xff]  }
 0x45e   :  { %10225 = vmatprep.subr.bf16.mxu1 %v21514_v13  ;;  %v21563_v13 = vld [vmem:[#allocation8 + $0xba0] ss:$40 sps:$4 sm:$0xff]  }
 0x460   :  { %10179 = vmatpush2.bf16.msra.mxu0 %v21509_v60  ;;  %v21568_v60 = vld [vmem:[#allocation8 + $0xfb4] ss:$40 sps:$4 sm:$0xff]  }
 0x461   :  { %10226 = vmatpush2.bf16.msra.mxu1 %v21512_v8  ;;  %10180 = vmatprep.subr.bf16.mxu0 %v21517_v37  ;;  %v21566_v37 = vld [vmem:[#allocation8 + $0xfb0] ss:$40 sps:$4 sm:$0xff]  }
 0x462   :  { %10227 = vmatprep.subr.bf16.mxu1 %v21520_v28 }
 0x464   :  { %10181 = vmatpush2.bf16.msra.mxu0 %v21515_v16  ;;  %v21574_v16 = vld [vmem:[#allocation8 + $0xf64] ss:$40 sps:$4 sm:$0xff]  }
 0x465   :  { %10228 = vmatpush2.bf16.msra.mxu1 %v21518_v2  ;;  %10182 = vmatprep.subr.bf16.mxu0 %v21523_v4  ;;  %v21569_v2 = vld [vmem:[#allocation8 + $0xb50] ss:$40 sps:$4 sm:$0xff]   ;;  %v21572_v4 = vld [vmem:[#allocation8 + $0xf60] ss:$40 sps:$4 sm:$0xff]  }
 0x466   :  { %10229 = vmatprep.subr.bf16.mxu1 %v21526_v5  ;;  %v21577_v5 = vld [vmem:[#allocation8 + $0xb04] ss:$40 sps:$4 sm:$0xff]  }
 0x468   :  { %10183 = vmatpush2.bf16.msra.mxu0 %v21521_v7  ;;  %v21575_v7 = vld [vmem:[#allocation8 + $0xb00] ss:$40 sps:$4 sm:$0xff]  }
 0x469   :  { %10230 = vmatpush2.bf16.msra.mxu1 %v21524_v17  ;;  %10184 = vmatprep.subr.bf16.mxu0 %v21529_v10  ;;  %v21578_v17 = vld [vmem:[#allocation8 + $0xf10] ss:$40 sps:$4 sm:$0xff]   ;;  %v21583_v10 = vld [vmem:[#allocation8 + $0xab4] ss:$40 sps:$4 sm:$0xff]  }
 0x46a   :  { %10231 = vmatprep.subr.bf16.mxu1 %v21532_v40  ;;  %v21586_v40 = vld [vmem:[#allocation8 + $0x13c4] ss:$40 sps:$4 sm:$0xff]  }
 0x46c   :  { %10185 = vmatpush2.bf16.msra.mxu0 %v21527_v11  ;;  %v21581_v11 = vld [vmem:[#allocation8 + $0xab0] ss:$40 sps:$4 sm:$0xff]  }
 0x46d   :  { %10232 = vmatpush2.bf16.msra.mxu1 %v21530_v12  ;;  %10186 = vmatprep.subr.bf16.mxu0 %v21535_v29  ;;  %v21584_v12 = vld [vmem:[#allocation8 + $0x13c0] ss:$40 sps:$4 sm:$0xff]   ;;  %v21589_v29 = vld [vmem:[#allocation8 + $0xa64] ss:$40 sps:$4 sm:$0xff]  }
 0x46e   :  { %10283 = vmatprep.subr.bf16.mxu1 %v21538_v14  ;;  %v21592_v14 = vld [vmem:[#allocation8 + $0x1374] ss:$40 sps:$4 sm:$0xff]  }
 0x470   :  { %v23968_v25 = vpop.f32.mrf.mxu1  ;;  %10187 = vmatpush2.bf16.msra.mxu0 %v21533_v15  ;;  %10234 = vmatmul.mubr.bf16.vlgmr.msra.gmra.mxu1 %v23899_v61  ;;  %v21587_v15 = vld [vmem:[#allocation8 + $0xa60] ss:$40 sps:$4 sm:$0xff]  }
 0x471   :  { %10284 = vmatpush1.bf16.msra.mxu1 %v21536_v19  ;;  %10315 = vmatprep.mubr.bf16.mxu1 %v23911_v43  ;;  %v21590_v19 = vld [vmem:[#allocation8 + $0x1370] ss:$40 sps:$4 sm:$0xff]  }
 0x472   :  { %v23972_v20 = vpop.f32.mrf.mxu1  ;;  %10188 = vmatprep.subr.bf16.mxu0 %v21541_v32  ;;  %10285 = vmatprep.subr.bf16.mxu1 %v21544_v57  ;;  %v21595_v32 = vld [vmem:[#allocation8 + $0xa14] ss:$40 sps:$4 sm:$0xff]   ;;  %v21593_v57 = vld [vmem:[#allocation8 + $0xa10] ss:$40 sps:$4 sm:$0xff]  }
 0x474   :  { %v9993_v30 = vpop.f32.mrf.mxu1  ;;  %10189 = vmatpush2.bf16.msra.mxu0 %v21539_v23  ;;  %v21598_v23 = vld [vmem:[#allocation8 + $0x1324] ss:$40 sps:$4 sm:$0xff]  }
 0x475   :  { %10286 = vmatpush1.bf16.msra.mxu1 %v21542_v47  ;;  %10190 = vmatprep.subr.bf16.mxu0 %v21547_v26  ;;  %v21596_v47 = vld [vmem:[#allocation8 + $0x1320] ss:$40 sps:$4 sm:$0xff]   ;;  %v21601_v26 = vld [vmem:[#allocation8 + $0xec4] ss:$40 sps:$4 sm:$0xff]   ;;  %v21607_v30 = vld [vmem:[#allocation8 + $0xe74] ss:$40 sps:$4 sm:$0xff]  }
 0x476   :  { %v9994_v49 = vpop.f32.mrf.mxu1  ;;  %10287 = vmatprep.subr.bf16.mxu1 %v21550_v42  ;;  %v21599_v42 = vld [vmem:[#allocation8 + $0xec0] ss:$40 sps:$4 sm:$0xff]  }
 0x477   :  { %v21605_v49 = vld [vmem:[#allocation8 + $0xe70] ss:$40 sps:$4 sm:$0xff]  }
 0x478   :  { %10191 = vmatpush2.bf16.msra.mxu0 %v21545_v31  ;;  %v21604_v31 = vld [vmem:[#allocation8 + $0x12d4] ss:$40 sps:$4 sm:$0xff]  }
 0x479   :  { %10288 = vmatpush1.bf16.msra.mxu1 %v21548_v21  ;;  %10242 = vmatprep.subr.bf16.mxu0 %v21553_v35  ;;  %v21602_v21 = vld [vmem:[#allocation8 + $0x12d0] ss:$40 sps:$4 sm:$0xff]   ;;  %v21610_v35 = vld [vmem:[#allocation8 + $0x1284] ss:$40 sps:$4 sm:$0xff]  }
 0x47a   :  { %10289 = vmatprep.subr.bf16.mxu1 %v21556_v52  ;;  %v21613_v52 = vld [vmem:[#allocation8 + $0xe24] ss:$40 sps:$4 sm:$0xff]  }
 0x47b   :  { %10193 = vmatmul.mubr.bf16.vlgmr.msra.gmra.mxu0 %v23897_v27  ;;  %v9948_v6 = vpop.f32.mrf.mxu0 }
 0x47c   :  { %v23976_v51 = vadd.f32 %v9948_v6, %v23961_v55  ;;  %10243 = vmatpush1.bf16.msra.mxu0 %v21551_v48  ;;  %10274 = vmatprep.mubr.bf16.mxu0 %v23901_v9  ;;  %v21571_v55 = vld [vmem:[#allocation8 + $0xb54] ss:$40 sps:$4 sm:$0xff]   ;;  %v21608_v48 = vld [vmem:[#allocation8 + $0x1280] ss:$40 sps:$4 sm:$0xff]   ;;  %v21622_v6 = vld [vmem:[#allocation8 + $0x11e4] ss:$40 sps:$4 sm:$0xff]  }
 0x47d   :  { %10290 = vmatpush1.bf16.msra.mxu1 %v21554_v34  ;;  %v9950_v53 = vpop.f32.mrf.mxu0  ;;  %10244 = vmatprep.subr.bf16.mxu0 %v21559_v0  ;;  %v21616_v34 = vld [vmem:[#allocation8 + $0x1234] ss:$40 sps:$4 sm:$0xff]   ;;  %v21611_v0 = vld [vmem:[#allocation8 + $0xe20] ss:$40 sps:$4 sm:$0xff]  }
 0x47e   :  { %v23980_v58 = vadd.f32 %v9950_v53, %v23964_v1  ;;  %10291 = vmatprep.subr.bf16.mxu1 %v21562_v63  ;;  %v21580_v1 = vld [vmem:[#allocation8 + $0xf14] ss:$40 sps:$4 sm:$0xff]   ;;  %v21620_v53 = vld [vmem:[#allocation8 + $0x11e0] ss:$40 sps:$4 sm:$0xff]  }
 0x47f   :  { %v9952_v8 = vpop.f32.mrf.mxu0  ;;  %v21619_v63 = vld [vmem:[#allocation8 + $0xdd4] ss:$40 sps:$4 sm:$0xff]  }
 0x480   :  { %10245 = vmatpush1.bf16.msra.mxu0 %v21557_v39  ;;  %v21614_v39 = vld [vmem:[#allocation8 + $0x1230] ss:$40 sps:$4 sm:$0xff]  }
 0x481   :  { %10292 = vmatpush1.bf16.msra.mxu1 %v21560_v33  ;;  %v9953_v28 = vpop.f32.mrf.mxu0  ;;  %10246 = vmatprep.subr.bf16.mxu0 %v21565_v56  ;;  %v21617_v33 = vld [vmem:[#allocation8 + $0xdd0] ss:$40 sps:$4 sm:$0xff]   ;;  %v21625_v56 = vld [vmem:[#allocation8 + $0xd84] ss:$40 sps:$4 sm:$0xff]  }
 0x482   :  { %10293 = vmatprep.subr.bf16.mxu1 %v21568_v60  ;;  %v21623_v60 = vld [vmem:[#allocation8 + $0xd80] ss:$40 sps:$4 sm:$0xff]   ;;  %v21626_v8 = vld [vmem:[#allocation8 + $0x1190] ss:$40 sps:$4 sm:$0xff]   ;;  %v21634_v28 = vld [vmem:[#allocation8 + $0x24c] ss:$40 sps:$4 sm:$0xff]  }
 0x484   :  { %10247 = vmatpush1.bf16.msra.mxu0 %v21563_v13  ;;  %v21628_v13 = vld [vmem:[#allocation8 + $0x1194] ss:$40 sps:$4 sm:$0xff]  }
 0x485   :  { %10294 = vmatpush1.bf16.msra.mxu1 %v21566_v37  ;;  %10248 = vmatprep.subr.bf16.mxu0 %v21571_v55  ;;  %v21631_v37 = vld [vmem:[#allocation8 + $0xd34] ss:$40 sps:$4 sm:$0xff]   ;;  %v21629_v55 = vld [vmem:[#allocation8 + $0xd30] ss:$40 sps:$4 sm:$0xff]  }
 0x486   :  { %10295 = vmatprep.subr.bf16.mxu1 %v21574_v16  ;;  %v21632_v16 = vld [vmem:[#allocation8 + $0x248] ss:$40 sps:$4 sm:$0xff]  }
 0x488   :  { %10249 = vmatpush1.bf16.msra.mxu0 %v21569_v2  ;;  %v21637_v2 = vld [vmem:[#allocation8 + $0xce4] ss:$40 sps:$4 sm:$0xff]  }
 0x489   :  { %10296 = vmatpush1.bf16.msra.mxu1 %v21572_v4  ;;  %10250 = vmatprep.subr.bf16.mxu0 %v21577_v5  ;;  %v21635_v4 = vld [vmem:[#allocation8 + $0xce0] ss:$40 sps:$4 sm:$0xff]   ;;  %v21640_v5 = vld [vmem:[#allocation8 + $0x1fc] ss:$40 sps:$4 sm:$0xff]  }
 0x48a   :  { %10297 = vmatprep.subr.bf16.mxu1 %v21580_v1  ;;  %v21638_v1 = vld [vmem:[#allocation8 + $0x1f8] ss:$40 sps:$4 sm:$0xff]  }
 0x48c   :  { %10251 = vmatpush1.bf16.msra.mxu0 %v21575_v7 }
 0x48d   :  { %10298 = vmatpush1.bf16.msra.mxu1 %v21578_v17  ;;  %10252 = vmatprep.subr.bf16.mxu0 %v21583_v10  ;;  %v21643_v17 = vld [vmem:[#allocation8 + $0xc94] ss:$40 sps:$4 sm:$0xff]  }
 0x48e   :  { %10299 = vmatprep.subr.bf16.mxu1 %v21586_v40  ;;  %v21641_v40 = vld [vmem:[#allocation8 + $0xc90] ss:$40 sps:$4 sm:$0xff]  }
 0x490   :  { %10253 = vmatpush1.bf16.msra.mxu0 %v21581_v11  ;;  %v21646_v11 = vld [vmem:[#allocation8 + $0x1ac] ss:$40 sps:$4 sm:$0xff]  }
 0x491   :  { %10300 = vmatpush2.bf16.msra.mxu1 %v21584_v12  ;;  %10254 = vmatprep.subr.bf16.mxu0 %v21589_v29  ;;  %v21644_v12 = vld [vmem:[#allocation8 + $0x1a8] ss:$40 sps:$4 sm:$0xff]  }
 0x492   :  { %10301 = vmatprep.subr.bf16.mxu1 %v21592_v14  ;;  %v21649_v14 = vld [vmem:[#allocation8 + $0x1644] ss:$40 sps:$4 sm:$0xff]  }
 0x494   :  { %10255 = vmatpush1.bf16.msra.mxu0 %v21587_v15  ;;  %v23449_v15 = vld [vmem:[#allocation10] sm:$0xff] }
 0x495   :  { %10302 = vmatpush2.bf16.msra.mxu1 %v21590_v19  ;;  %10256 = vmatprep.subr.bf16.mxu0 %v21595_v32  ;;  %v5711_v19 = vrot.slane %v23449_v15, %v23814_v38 }
 0x496   :  { %10303 = vmatprep.subr.bf16.mxu1 %v21598_v23  ;;  %v21647_v23 = vld [vmem:[#allocation8 + $0x1640] ss:$40 sps:$4 sm:$0xff]  }
 0x498   :  { %10257 = vmatpush1.bf16.msra.mxu0 %v21593_v57  ;;  %v21652_v57 = vld [vmem:[#allocation8 + $0x15c] ss:$40 sps:$4 sm:$0xff]  }
 0x499   :  { %10304 = vmatpush2.bf16.msra.mxu1 %v21596_v47  ;;  %10258 = vmatprep.subr.bf16.mxu0 %v21601_v26  ;;  %v21650_v47 = vld [vmem:[#allocation8 + $0x158] ss:$40 sps:$4 sm:$0xff]   ;;  %v5715_v26 = vrot.slane %v23449_v15, %v23817_v45  ;;  %v21692_v15 = vld [vmem:[#allocation8 + $0x428] ss:$40 sps:$4 sm:$0xff]  }
 0x49a   :  { %10305 = vmatprep.subr.bf16.mxu1 %v21604_v31  ;;  %v21655_v31 = vld [vmem:[#allocation8 + $0x15f4] ss:$40 sps:$4 sm:$0xff]  }
 0x49c   :  { %10259 = vmatpush2.bf16.msra.mxu0 %v21599_v42  ;;  %v9990_v42 = vadd.f32 %v23968_v25, %v5711_v19  ;;  %v21664_v25 = vld [vmem:[#allocation8 + $0xbc] ss:$40 sps:$4 sm:$0xff]  }
 0x49d   :  { %10306 = vmatpush2.bf16.msra.mxu1 %v21602_v21  ;;  %10260 = vmatprep.subr.bf16.mxu0 %v21607_v30  ;;  %v21653_v21 = vld [vmem:[#allocation8 + $0x15f0] ss:$40 sps:$4 sm:$0xff]   ;;  %v21658_v30 = vld [vmem:[#allocation8 + $0x10c] ss:$40 sps:$4 sm:$0xff]  }
 0x49e   :  { %10307 = vmatprep.subr.bf16.mxu1 %v21610_v35  ;;  %v21697_v19 = vld [vmem:[#allocation8 + $0x18c4] ss:$40 sps:$4 sm:$0xff]  }
 0x4a0   :  { %10261 = vmatpush2.bf16.msra.mxu0 %v21605_v49  ;;  %v21656_v49 = vld [vmem:[#allocation8 + $0x108] ss:$40 sps:$4 sm:$0xff]  }
 0x4a1   :  { %10308 = vmatpush2.bf16.msra.mxu1 %v21608_v48  ;;  %10262 = vmatprep.subr.bf16.mxu0 %v21613_v52  ;;  %v9992_v48 = vadd.f32 %v23972_v20, %v5715_v26  ;;  %v21662_v20 = vld [vmem:[#allocation8 + $0xb8] ss:$40 sps:$4 sm:$0xff]   ;;  %v21706_v26 = vld [vmem:[#allocation8 + $0x38c] ss:$40 sps:$4 sm:$0xff]  }
 0x4a2   :  { %10309 = vmatprep.subr.bf16.mxu1 %v21616_v34 }
 0x4a4   :  { %10263 = vmatpush2.bf16.msra.mxu0 %v21611_v0  ;;  %v21661_v0 = vld [vmem:[#allocation8 + $0x15a4] ss:$40 sps:$4 sm:$0xff]  }
 0x4a5   :  { %10310 = vmatpush2.bf16.msra.mxu1 %v21614_v39  ;;  %10264 = vmatprep.subr.bf16.mxu0 %v21619_v63 }
 0x4a6   :  { %10311 = vmatprep.subr.bf16.mxu1 %v21622_v6 }
 0x4a8   :  { %10265 = vmatpush2.bf16.msra.mxu0 %v21617_v33  ;;  %v21659_v33 = vld [vmem:[#allocation8 + $0x15a0] ss:$40 sps:$4 sm:$0xff]  }
 0x4a9   :  { %10312 = vmatpush2.bf16.msra.mxu1 %v21620_v53  ;;  %10266 = vmatprep.subr.bf16.mxu0 %v21625_v56 }
 0x4aa   :  { %10313 = vmatprep.subr.bf16.mxu1 %v21628_v13  ;;  %v21667_v13 = vld [vmem:[#allocation8 + $0x1554] ss:$40 sps:$4 sm:$0xff]  }
 0x4ac   :  { %10267 = vmatpush2.bf16.msra.mxu0 %v21623_v60  ;;  %v21670_v60 = vld [vmem:[#allocation8 + $0x6c] ss:$40 sps:$4 sm:$0xff]  }
 0x4ad   :  { %10314 = vmatpush2.bf16.msra.mxu1 %v21626_v8  ;;  %10268 = vmatprep.subr.bf16.mxu0 %v21631_v37  ;;  %v21665_v8 = vld [vmem:[#allocation8 + $0x1550] ss:$40 sps:$4 sm:$0xff]  }
 0x4ae   :  { %10365 = vmatprep.subr.bf16.mxu1 %v21634_v28  ;;  %v21668_v37 = vld [vmem:[#allocation8 + $0x68] ss:$40 sps:$4 sm:$0xff]   ;;  %v21673_v28 = vld [vmem:[#allocation8 + $0x1504] ss:$40 sps:$4 sm:$0xff]  }
 0x4b0   :  { %v10071_v7 = vpop.f32.mrf.mxu1  ;;  %10269 = vmatpush2.bf16.msra.mxu0 %v21629_v55  ;;  %10316 = vmatmul.mubr.bf16.vlgmr.msra.gmra.mxu1 %v23920_v36  ;;  %v21676_v55 = vld [vmem:[#allocation8 + $0x1c] ss:$40 sps:$4 sm:$0xff]  }
 0x4b1   :  { %10366 = vmatpush1.bf16.msra.mxu1 %v21632_v16  ;;  %10397 = vmatprep.mubr.bf16.mxu1 %v23874_v18  ;;  %v21671_v16 = vld [vmem:[#allocation8 + $0x1500] ss:$40 sps:$4 sm:$0xff]  }
 0x4b2   :  { %v10073_v10 = vpop.f32.mrf.mxu1  ;;  %10270 = vmatprep.subr.bf16.mxu0 %v21637_v2  ;;  %10367 = vmatprep.subr.bf16.mxu1 %v21640_v5  ;;  %v21674_v2 = vld [vmem:[#allocation8 + $0x18] ss:$40 sps:$4 sm:$0xff]   ;;  %v21682_v5 = vld [vmem:[#allocation8 + $0x4cc] ss:$40 sps:$4 sm:$0xff]  }
 0x4b4   :  { %v10075_v29 = vpop.f32.mrf.mxu1  ;;  %10271 = vmatpush2.bf16.msra.mxu0 %v21635_v4  ;;  %v21679_v4 = vld [vmem:[#allocation8 + $0x14b4] ss:$40 sps:$4 sm:$0xff]  }
 0x4b5   :  { %10368 = vmatpush1.bf16.msra.mxu1 %v21638_v1  ;;  %10272 = vmatprep.subr.bf16.mxu0 %v21643_v17  ;;  %v21677_v1 = vld [vmem:[#allocation8 + $0x14b0] ss:$40 sps:$4 sm:$0xff]   ;;  %v21685_v17 = vld [vmem:[#allocation8 + $0x1464] ss:$40 sps:$4 sm:$0xff]  }
 0x4b6   :  { %v10076_v32 = vpop.f32.mrf.mxu1  ;;  %10369 = vmatprep.subr.bf16.mxu1 %v21646_v11  ;;  %v21686_v11 = vld [vmem:[#allocation8 + $0x478] ss:$40 sps:$4 sm:$0xff]   ;;  %v21694_v29 = vld [vmem:[#allocation8 + $0x42c] ss:$40 sps:$4 sm:$0xff]  }
 0x4b7   :  { %v21700_v32 = vld [vmem:[#allocation8 + $0x3dc] ss:$40 sps:$4 sm:$0xff]  }
 0x4b8   :  { %10273 = vmatpush2.bf16.msra.mxu0 %v21641_v40  ;;  %v21683_v40 = vld [vmem:[#allocation8 + $0x1460] ss:$40 sps:$4 sm:$0xff]  }
 0x4b9   :  { %10370 = vmatpush1.bf16.msra.mxu1 %v21644_v12  ;;  %10324 = vmatprep.subr.bf16.mxu0 %v21649_v14  ;;  %v21691_v12 = vld [vmem:[#allocation8 + $0x1414] ss:$40 sps:$4 sm:$0xff]   ;;  %v21689_v14 = vld [vmem:[#allocation8 + $0x1410] ss:$40 sps:$4 sm:$0xff]  }
 0x4ba   :  { %10371 = vmatprep.subr.bf16.mxu1 %v21652_v57  ;;  %v21698_v57 = vld [vmem:[#allocation8 + $0x3d8] ss:$40 sps:$4 sm:$0xff]  }
 0x4bb   :  { %v10030_v35 = vpop.f32.mrf.mxu0  ;;  %10275 = vmatmul.mubr.bf16.vlgmr.msra.gmra.mxu0 %v23918_v62 }
 0x4bc   :  { %v10031_v52 = vadd.f32 %v10030_v35, %v9990_v42  ;;  %10325 = vmatpush1.bf16.msra.mxu0 %v21647_v23  ;;  %10356 = vmatprep.mubr.bf16.mxu0 %v23941_v46  ;;  %v21695_v23 = vld [vmem:[#allocation8 + $0x18c0] ss:$40 sps:$4 sm:$0xff]  }
 0x4bd   :  { %v10032_v34 = vpop.f32.mrf.mxu0  ;;  %10372 = vmatpush1.bf16.msra.mxu1 %v21650_v47  ;;  %10326 = vmatprep.subr.bf16.mxu0 %v21655_v31  ;;  %v21703_v47 = vld [vmem:[#allocation8 + $0x1874] ss:$40 sps:$4 sm:$0xff]   ;;  %v21701_v31 = vld [vmem:[#allocation8 + $0x1870] ss:$40 sps:$4 sm:$0xff]   ;;  %v21707_v35 = vld [vmem:[#allocation8 + $0x1820] ss:$40 sps:$4 sm:$0xff]  }
 0x4be   :  { %v10033_v39 = vadd.f32 %v10032_v34, %v9992_v48  ;;  %10373 = vmatprep.subr.bf16.mxu1 %v21658_v30  ;;  %v23990_v63 = vadd.f32 %v10071_v7, %v10031_v52  ;;  %v21680_v7 = vld [vmem:[#allocation8 + $0x4c8] ss:$40 sps:$4 sm:$0xff]   ;;  %v21712_v30 = vld [vmem:[#allocation8 + $0x33c] ss:$40 sps:$4 sm:$0xff]   ;;  %v21718_v52 = vld [vmem:[#allocation8 + $0x2ec] ss:$40 sps:$4 sm:$0xff]  }
 0x4bf   :  { %v10034_v6 = vpop.f32.mrf.mxu0  ;;  %v21704_v42 = vld [vmem:[#allocation8 + $0x388] ss:$40 sps:$4 sm:$0xff]   ;;  %v21715_v48 = vld [vmem:[#allocation8 + $0x17d4] ss:$40 sps:$4 sm:$0xff]  }
 0x4c0   :  { %10327 = vmatpush1.bf16.msra.mxu0 %v21653_v21  ;;  %v23992_v53 = vadd.f32 %v10073_v10, %v10033_v39  ;;  %v21688_v10 = vld [vmem:[#allocation8 + $0x47c] ss:$40 sps:$4 sm:$0xff]   ;;  %v21713_v34 = vld [vmem:[#allocation8 + $0x17d0] ss:$40 sps:$4 sm:$0xff]   ;;  %v21719_v6 = vld [vmem:[#allocation8 + $0x1780] ss:$40 sps:$4 sm:$0xff]  }
 0x4c1   :  { %v10035_v56 = vpop.f32.mrf.mxu0  ;;  %10374 = vmatpush1.bf16.msra.mxu1 %v21656_v49  ;;  %10328 = vmatprep.subr.bf16.mxu0 %v21661_v0  ;;  %v21709_v21 = vld [vmem:[#allocation8 + $0x1824] ss:$40 sps:$4 sm:$0xff]   ;;  %v21710_v49 = vld [vmem:[#allocation8 + $0x338] ss:$40 sps:$4 sm:$0xff]   ;;  %v21716_v0 = vld [vmem:[#allocation8 + $0x2e8] ss:$40 sps:$4 sm:$0xff]  }
 0x4c2   :  { %10375 = vmatprep.subr.bf16.mxu1 %v21664_v25  ;;  %v21721_v39 = vld [vmem:[#allocation8 + $0x1784] ss:$40 sps:$4 sm:$0xff]   ;;  %v21727_v56 = vld [vmem:[#allocation8 + $0x1734] ss:$40 sps:$4 sm:$0xff]  }
 0x4c3   :  { %v21724_v25 = vld [vmem:[#allocation8 + $0x29c] ss:$40 sps:$4 sm:$0xff]  }
 0x4c4   :  { %10329 = vmatpush1.bf16.msra.mxu0 %v21659_v33  ;;  %v21722_v33 = vld [vmem:[#allocation8 + $0x298] ss:$40 sps:$4 sm:$0xff]  }
 0x4c5   :  { %10376 = vmatpush1.bf16.msra.mxu1 %v21662_v20  ;;  %10330 = vmatprep.subr.bf16.mxu0 %v21667_v13  ;;  %v21730_v20 = vld [vmem:[#allocation8 + $0xc4c] ss:$40 sps:$4 sm:$0xff]   ;;  %v21725_v13 = vld [vmem:[#allocation8 + $0x1730] ss:$40 sps:$4 sm:$0xff]  }
 0x4c6   :  { %10377 = vmatprep.subr.bf16.mxu1 %v21670_v60  ;;  %v21728_v60 = vld [vmem:[#allocation8 + $0xc48] ss:$40 sps:$4 sm:$0xff]  }
 0x4c8   :  { %10331 = vmatpush1.bf16.msra.mxu0 %v21665_v8  ;;  %v21733_v8 = vld [vmem:[#allocation8 + $0x16e4] ss:$40 sps:$4 sm:$0xff]  }
 0x4c9   :  { %10378 = vmatpush1.bf16.msra.mxu1 %v21668_v37  ;;  %10332 = vmatprep.subr.bf16.mxu0 %v21673_v28  ;;  %v21731_v37 = vld [vmem:[#allocation8 + $0x16e0] ss:$40 sps:$4 sm:$0xff]   ;;  %v21736_v28 = vld [vmem:[#allocation8 + $0xbfc] ss:$40 sps:$4 sm:$0xff]  }
 0x4ca   :  { %10379 = vmatprep.subr.bf16.mxu1 %v21676_v55  ;;  %v21734_v55 = vld [vmem:[#allocation8 + $0xbf8] ss:$40 sps:$4 sm:$0xff]  }
 0x4cc   :  { %10333 = vmatpush1.bf16.msra.mxu0 %v21671_v16 }
 0x4cd   :  { %10380 = vmatpush1.bf16.msra.mxu1 %v21674_v2  ;;  %10334 = vmatprep.subr.bf16.mxu0 %v21679_v4  ;;  %v21739_v2 = vld [vmem:[#allocation8 + $0x1694] ss:$40 sps:$4 sm:$0xff]  }
 0x4ce   :  { %10381 = vmatprep.subr.bf16.mxu1 %v21682_v5  ;;  %v21737_v5 = vld [vmem:[#allocation8 + $0x1690] ss:$40 sps:$4 sm:$0xff]  }
 0x4d0   :  { %10335 = vmatpush1.bf16.msra.mxu0 %v21677_v1  ;;  %v21742_v1 = vld [vmem:[#allocation8 + $0xbac] ss:$40 sps:$4 sm:$0xff]  }
 0x4d1   :  { %10382 = vmatpush2.bf16.msra.mxu1 %v21680_v7  ;;  %10336 = vmatprep.subr.bf16.mxu0 %v21685_v17  ;;  %v21740_v7 = vld [vmem:[#allocation8 + $0xba8] ss:$40 sps:$4 sm:$0xff]  }
 0x4d2   :  { %10383 = vmatprep.subr.bf16.mxu1 %v21688_v10  ;;  %v21745_v10 = vld [vmem:[#allocation8 + $0x74c] ss:$40 sps:$4 sm:$0xff]  }
 0x4d4   :  { %10337 = vmatpush1.bf16.msra.mxu0 %v21683_v40 }
 0x4d5   :  { %10384 = vmatpush2.bf16.msra.mxu1 %v21686_v11  ;;  %10338 = vmatprep.subr.bf16.mxu0 %v21691_v12  ;;  %v21743_v11 = vld [vmem:[#allocation8 + $0x748] ss:$40 sps:$4 sm:$0xff]   ;;  %v21748_v12 = vld [vmem:[#allocation8 + $0xb5c] ss:$40 sps:$4 sm:$0xff]  }
 0x4d6   :  { %10385 = vmatprep.subr.bf16.mxu1 %v21694_v29  ;;  %v21746_v29 = vld [vmem:[#allocation8 + $0xb58] ss:$40 sps:$4 sm:$0xff]  }
 0x4d8   :  { %10339 = vmatpush1.bf16.msra.mxu0 %v21689_v14  ;;  %v21751_v14 = vld [vmem:[#allocation8 + $0x6fc] ss:$40 sps:$4 sm:$0xff]  }
 0x4d9   :  { %10386 = vmatpush2.bf16.msra.mxu1 %v21692_v15  ;;  %10340 = vmatprep.subr.bf16.mxu0 %v21697_v19  ;;  %v21749_v15 = vld [vmem:[#allocation8 + $0x6f8] ss:$40 sps:$4 sm:$0xff]   ;;  %v21754_v19 = vld [vmem:[#allocation8 + $0xb0c] ss:$40 sps:$4 sm:$0xff]  }
 0x4da   :  { %10387 = vmatprep.subr.bf16.mxu1 %v21700_v32 }
 0x4dc   :  { %10341 = vmatpush2.bf16.msra.mxu0 %v21695_v23  ;;  %v21752_v23 = vld [vmem:[#allocation8 + $0xb08] ss:$40 sps:$4 sm:$0xff]  }
 0x4dd   :  { %10388 = vmatpush2.bf16.msra.mxu1 %v21698_v57  ;;  %10342 = vmatprep.subr.bf16.mxu0 %v21703_v47 }
 0x4de   :  { %10389 = vmatprep.subr.bf16.mxu1 %v21706_v26  ;;  %v21757_v26 = vld [vmem:[#allocation8 + $0x6ac] ss:$40 sps:$4 sm:$0xff]  }
 0x4e0   :  { %10343 = vmatpush2.bf16.msra.mxu0 %v21701_v31 }
 0x4e1   :  { %10390 = vmatpush2.bf16.msra.mxu1 %v21704_v42  ;;  %10344 = vmatprep.subr.bf16.mxu0 %v21709_v21  ;;  %v21760_v21 = vld [vmem:[#allocation8 + $0xabc] ss:$40 sps:$4 sm:$0xff]  }
 0x4e2   :  { %10391 = vmatprep.subr.bf16.mxu1 %v21712_v30 }
 0x4e4   :  { %10345 = vmatpush2.bf16.msra.mxu0 %v21707_v35  ;;  %v21755_v35 = vld [vmem:[#allocation8 + $0x6a8] ss:$40 sps:$4 sm:$0xff]  }
 0x4e5   :  { %10392 = vmatpush2.bf16.msra.mxu1 %v21710_v49  ;;  %10346 = vmatprep.subr.bf16.mxu0 %v21715_v48 }
 0x4e6   :  { %10393 = vmatprep.subr.bf16.mxu1 %v21718_v52  ;;  %v21763_v52 = vld [vmem:[#allocation8 + $0x65c] ss:$40 sps:$4 sm:$0xff]  }
 0x4e8   :  { %10347 = vmatpush2.bf16.msra.mxu0 %v21713_v34  ;;  %v21766_v34 = vld [vmem:[#allocation8 + $0xa6c] ss:$40 sps:$4 sm:$0xff]  }
 0x4e9   :  { %10394 = vmatpush2.bf16.msra.mxu1 %v21716_v0  ;;  %10348 = vmatprep.subr.bf16.mxu0 %v21721_v39  ;;  %v21761_v0 = vld [vmem:[#allocation8 + $0x658] ss:$40 sps:$4 sm:$0xff]   ;;  %v21764_v39 = vld [vmem:[#allocation8 + $0xa68] ss:$40 sps:$4 sm:$0xff]  }
 0x4ea   :  { %10395 = vmatprep.subr.bf16.mxu1 %v21724_v25  ;;  %v21772_v25 = vld [vmem:[#allocation8 + $0xa1c] ss:$40 sps:$4 sm:$0xff]  }
 0x4ec   :  { %10349 = vmatpush2.bf16.msra.mxu0 %v21719_v6  ;;  %v21767_v6 = vld [vmem:[#allocation8 + $0x608] ss:$40 sps:$4 sm:$0xff]  }
 0x4ed   :  { %10396 = vmatpush2.bf16.msra.mxu1 %v21722_v33  ;;  %10350 = vmatprep.subr.bf16.mxu0 %v21727_v56  ;;  %v21770_v33 = vld [vmem:[#allocation8 + $0xa18] ss:$40 sps:$4 sm:$0xff]   ;;  %v21775_v56 = vld [vmem:[#allocation8 + $0x5bc] ss:$40 sps:$4 sm:$0xff]  }
 0x4ee   :  { %10447 = vmatprep.subr.bf16.mxu1 %v21730_v20  ;;  %v21778_v20 = vld [vmem:[#allocation8 + $0xecc] ss:$40 sps:$4 sm:$0xff]  }
 0x4f0   :  { %v10153_v16 = vpop.f32.mrf.mxu1  ;;  %10351 = vmatpush2.bf16.msra.mxu0 %v21725_v13  ;;  %10398 = vmatmul.mubr.bf16.vlgmr.msra.gmra.mxu1 %v23897_v27  ;;  %v21773_v13 = vld [vmem:[#allocation8 + $0x5b8] ss:$40 sps:$4 sm:$0xff]  }
 0x4f1   :  { %10448 = vmatpush1.bf16.msra.mxu1 %v21728_v60  ;;  %10479 = vmatprep.mubr.bf16.mxu1 %v23901_v9  ;;  %v21776_v60 = vld [vmem:[#allocation8 + $0xec8] ss:$40 sps:$4 sm:$0xff]  }
 0x4f2   :  { %v10155_v4 = vpop.f32.mrf.mxu1  ;;  %10352 = vmatprep.subr.bf16.mxu0 %v21733_v8  ;;  %10449 = vmatprep.subr.bf16.mxu1 %v21736_v28  ;;  %v21781_v8 = vld [vmem:[#allocation8 + $0x56c] ss:$40 sps:$4 sm:$0xff]   ;;  %v21779_v28 = vld [vmem:[#allocation8 + $0x568] ss:$40 sps:$4 sm:$0xff]  }
 0x4f4   :  { %v10157_v17 = vpop.f32.mrf.mxu1  ;;  %10353 = vmatpush2.bf16.msra.mxu0 %v21731_v37  ;;  %v21784_v37 = vld [vmem:[#allocation8 + $0xe7c] ss:$40 sps:$4 sm:$0xff]  }
 0x4f5   :  { %10450 = vmatpush1.bf16.msra.mxu1 %v21734_v55  ;;  %10354 = vmatprep.subr.bf16.mxu0 %v21739_v2  ;;  %v21782_v55 = vld [vmem:[#allocation8 + $0xe78] ss:$40 sps:$4 sm:$0xff]   ;;  %v21790_v2 = vld [vmem:[#allocation8 + $0xe2c] ss:$40 sps:$4 sm:$0xff]   ;;  %v21791_v17 = vld [vmem:[#allocation8 + $0x9c8] ss:$40 sps:$4 sm:$0xff]  }
 0x4f6   :  { %v10158_v40 = vpop.f32.mrf.mxu1  ;;  %10451 = vmatprep.subr.bf16.mxu1 %v21742_v1  ;;  %v21793_v1 = vld [vmem:[#allocation8 + $0x9cc] ss:$40 sps:$4 sm:$0xff]  }
 0x4f7   :  { %v21799_v40 = vld [vmem:[#allocation8 + $0x97c] ss:$40 sps:$4 sm:$0xff]  }
 0x4f8   :  { %10355 = vmatpush2.bf16.msra.mxu0 %v21737_v5  ;;  %v21788_v5 = vld [vmem:[#allocation8 + $0xe28] ss:$40 sps:$4 sm:$0xff]  }
 0x4f9   :  { %10452 = vmatpush1.bf16.msra.mxu1 %v21740_v7  ;;  %10406 = vmatprep.subr.bf16.mxu0 %v21745_v10  ;;  %v21796_v7 = vld [vmem:[#allocation8 + $0xddc] ss:$40 sps:$4 sm:$0xff]   ;;  %v21794_v10 = vld [vmem:[#allocation8 + $0xdd8] ss:$40 sps:$4 sm:$0xff]  }
 0x4fa   :  { %10453 = vmatprep.subr.bf16.mxu1 %v21748_v12  ;;  %v21797_v12 = vld [vmem:[#allocation8 + $0x978] ss:$40 sps:$4 sm:$0xff]  }
 0x4fb   :  { %v10112_v32 = vpop.f32.mrf.mxu0  ;;  %10357 = vmatmul.mubr.bf16.vlgmr.msra.gmra.mxu0 %v23943_v50 }
 0x4fc   :  { %v10113_v57 = vadd.f32 %v10112_v32, %v23990_v63  ;;  %10407 = vmatpush1.bf16.msra.mxu0 %v21743_v11  ;;  %10438 = vmatprep.mubr.bf16.mxu0 %v23876_v22  ;;  %v21758_v63 = vld [vmem:[#allocation8 + $0xab8] ss:$40 sps:$4 sm:$0xff]   ;;  %v21802_v11 = vld [vmem:[#allocation8 + $0xd8c] ss:$40 sps:$4 sm:$0xff]  }
 0x4fd   :  { %v10114_v47 = vpop.f32.mrf.mxu0  ;;  %10454 = vmatpush1.bf16.msra.mxu1 %v21746_v29  ;;  %10408 = vmatprep.subr.bf16.mxu0 %v21751_v14  ;;  %v21800_v29 = vld [vmem:[#allocation8 + $0xd88] ss:$40 sps:$4 sm:$0xff]   ;;  %v21805_v14 = vld [vmem:[#allocation8 + $0x92c] ss:$40 sps:$4 sm:$0xff]   ;;  %v21806_v32 = vld [vmem:[#allocation8 + $0xd38] ss:$40 sps:$4 sm:$0xff]  }
 0x4fe   :  { %v23999_v31 = vadd.f32 %v10153_v16, %v10113_v57  ;;  %v10115_v42 = vadd.f32 %v10114_v47, %v23992_v53  ;;  %10455 = vmatprep.subr.bf16.mxu1 %v21754_v19  ;;  %v21769_v53 = vld [vmem:[#allocation8 + $0x60c] ss:$40 sps:$4 sm:$0xff]   ;;  %v21787_v16 = vld [vmem:[#allocation8 + $0x51c] ss:$40 sps:$4 sm:$0xff]   ;;  %v21803_v19 = vld [vmem:[#allocation8 + $0x928] ss:$40 sps:$4 sm:$0xff]  }
 0x4ff   :  { %v10116_v30 = vpop.f32.mrf.mxu0  ;;  %v21814_v57 = vld [vmem:[#allocation8 + $0xcec] ss:$40 sps:$4 sm:$0xff]   ;;  %v21809_v47 = vld [vmem:[#allocation8 + $0x8d8] ss:$40 sps:$4 sm:$0xff]  }
 0x500   :  { %v24002_v49 = vadd.f32 %v10155_v4, %v10115_v42  ;;  %10409 = vmatpush1.bf16.msra.mxu0 %v21749_v15  ;;  %v21785_v4 = vld [vmem:[#allocation8 + $0x518] ss:$40 sps:$4 sm:$0xff]   ;;  %v21808_v15 = vld [vmem:[#allocation8 + $0xd3c] ss:$40 sps:$4 sm:$0xff]   ;;  %v21817_v42 = vld [vmem:[#allocation8 + $0x88c] ss:$40 sps:$4 sm:$0xff]  }
 0x501   :  { %v10117_v48 = vpop.f32.mrf.mxu0  ;;  %10456 = vmatpush1.bf16.msra.mxu1 %v21752_v23  ;;  %10410 = vmatprep.subr.bf16.mxu0 %v21757_v26  ;;  %v21811_v23 = vld [vmem:[#allocation8 + $0x8dc] ss:$40 sps:$4 sm:$0xff]   ;;  %v21812_v26 = vld [vmem:[#allocation8 + $0xce8] ss:$40 sps:$4 sm:$0xff]  }
 0x502   :  { %10457 = vmatprep.subr.bf16.mxu1 %v21760_v21  ;;  %v21820_v21 = vld [vmem:[#allocation8 + $0xc9c] ss:$40 sps:$4 sm:$0xff]   ;;  %v21815_v30 = vld [vmem:[#allocation8 + $0x888] ss:$40 sps:$4 sm:$0xff]  }
 0x503   :  { %v21823_v48 = vld [vmem:[#allocation8 + $0x83c] ss:$40 sps:$4 sm:$0xff]  }
 0x504   :  { %10411 = vmatpush1.bf16.msra.mxu0 %v21755_v35  ;;  %v21818_v35 = vld [vmem:[#allocation8 + $0xc98] ss:$40 sps:$4 sm:$0xff]  }
 0x505   :  { %10458 = vmatpush1.bf16.msra.mxu1 %v21758_v63  ;;  %10412 = vmatprep.subr.bf16.mxu0 %v21763_v52  ;;  %v21826_v63 = vld [vmem:[#allocation8 + $0x164c] ss:$40 sps:$4 sm:$0xff]   ;;  %v21821_v52 = vld [vmem:[#allocation8 + $0x838] ss:$40 sps:$4 sm:$0xff]  }
 0x506   :  { %10459 = vmatprep.subr.bf16.mxu1 %v21766_v34  ;;  %v21824_v34 = vld [vmem:[#allocation8 + $0x1648] ss:$40 sps:$4 sm:$0xff]  }
 0x508   :  { %10413 = vmatpush1.bf16.msra.mxu0 %v21761_v0  ;;  %v21829_v0 = vld [vmem:[#allocation8 + $0x7ec] ss:$40 sps:$4 sm:$0xff]  }
 0x509   :  { %10460 = vmatpush1.bf16.msra.mxu1 %v21764_v39  ;;  %10414 = vmatprep.subr.bf16.mxu0 %v21769_v53  ;;  %v21827_v39 = vld [vmem:[#allocation8 + $0x7e8] ss:$40 sps:$4 sm:$0xff]   ;;  %v21832_v53 = vld [vmem:[#allocation8 + $0x15fc] ss:$40 sps:$4 sm:$0xff]  }
 0x50a   :  { %10461 = vmatprep.subr.bf16.mxu1 %v21772_v25  ;;  %v21830_v25 = vld [vmem:[#allocation8 + $0x15f8] ss:$40 sps:$4 sm:$0xff]  }
 0x50c   :  { %10415 = vmatpush1.bf16.msra.mxu0 %v21767_v6 }
 0x50d   :  { %10462 = vmatpush1.bf16.msra.mxu1 %v21770_v33  ;;  %10416 = vmatprep.subr.bf16.mxu0 %v21775_v56  ;;  %v21835_v33 = vld [vmem:[#allocation8 + $0x79c] ss:$40 sps:$4 sm:$0xff]  }
 0x50e   :  { %10463 = vmatprep.subr.bf16.mxu1 %v21778_v20  ;;  %v21833_v20 = vld [vmem:[#allocation8 + $0x798] ss:$40 sps:$4 sm:$0xff]  }
 0x510   :  { %10417 = vmatpush1.bf16.msra.mxu0 %v21773_v13  ;;  %v21838_v13 = vld [vmem:[#allocation8 + $0x15ac] ss:$40 sps:$4 sm:$0xff]  }
 0x511   :  { %10464 = vmatpush2.bf16.msra.mxu1 %v21776_v60  ;;  %10418 = vmatprep.subr.bf16.mxu0 %v21781_v8  ;;  %v21836_v60 = vld [vmem:[#allocation8 + $0x15a8] ss:$40 sps:$4 sm:$0xff]  }
 0x512   :  { %10465 = vmatprep.subr.bf16.mxu1 %v21784_v37  ;;  %v21841_v37 = vld [vmem:[#allocation8 + $0x114c] ss:$40 sps:$4 sm:$0xff]  }
 0x514   :  { %10419 = vmatpush1.bf16.msra.mxu0 %v21779_v28 }
 0x515   :  { %10466 = vmatpush2.bf16.msra.mxu1 %v21782_v55  ;;  %10420 = vmatprep.subr.bf16.mxu0 %v21787_v16  ;;  %v21839_v55 = vld [vmem:[#allocation8 + $0x1148] ss:$40 sps:$4 sm:$0xff]   ;;  %v21844_v16 = vld [vmem:[#allocation8 + $0x155c] ss:$40 sps:$4 sm:$0xff]  }
 0x516   :  { %10467 = vmatprep.subr.bf16.mxu1 %v21790_v2  ;;  %v21842_v2 = vld [vmem:[#allocation8 + $0x1558] ss:$40 sps:$4 sm:$0xff]  }
 0x518   :  { %10421 = vmatpush1.bf16.msra.mxu0 %v21785_v4  ;;  %v24006_v4 = vld [vmem:[#allocation10] sm:$0xff] }
 0x519   :  { %10468 = vmatpush2.bf16.msra.mxu1 %v21788_v5  ;;  %10422 = vmatprep.subr.bf16.mxu0 %v21793_v1  ;;  %v5719_v5 = vrot.slane %v24006_v4, %v23840_v54  ;;  %v21847_v1 = vld [vmem:[#allocation8 + $0x10fc] ss:$40 sps:$4 sm:$0xff]  }
 0x51a   :  { %10469 = vmatprep.subr.bf16.mxu1 %v21796_v7  ;;  %v5723_v7 = vrot.slane %v24006_v4, %v23843_v59 }
 0x51c   :  { %10423 = vmatpush2.bf16.msra.mxu0 %v21791_v17  ;;  %v21845_v17 = vld [vmem:[#allocation8 + $0x10f8] ss:$40 sps:$4 sm:$0xff]  }
 0x51d   :  { %10470 = vmatpush2.bf16.msra.mxu1 %v21794_v10  ;;  %10424 = vmatprep.subr.bf16.mxu0 %v21799_v40  ;;  %v21850_v10 = vld [vmem:[#allocation8 + $0x150c] ss:$40 sps:$4 sm:$0xff]  }
 0x51e   :  { %10471 = vmatprep.subr.bf16.mxu1 %v21802_v11  ;;  %v21848_v11 = vld [vmem:[#allocation8 + $0x1508] ss:$40 sps:$4 sm:$0xff]  }
 0x520   :  { %10425 = vmatpush2.bf16.msra.mxu0 %v21797_v12 }
 0x521   :  { %10472 = vmatpush2.bf16.msra.mxu1 %v21800_v29  ;;  %10426 = vmatprep.subr.bf16.mxu0 %v21805_v14  ;;  %v21853_v14 = vld [vmem:[#allocation8 + $0x10ac] ss:$40 sps:$4 sm:$0xff]  }
 0x522   :  { %10473 = vmatprep.subr.bf16.mxu1 %v21808_v15 }
 0x524   :  { %10427 = vmatpush2.bf16.msra.mxu0 %v21803_v19  ;;  %v21851_v19 = vld [vmem:[#allocation8 + $0x10a8] ss:$40 sps:$4 sm:$0xff]  }
 0x525   :  { %10474 = vmatpush2.bf16.msra.mxu1 %v21806_v32  ;;  %10428 = vmatprep.subr.bf16.mxu0 %v21811_v23  ;;  %v21856_v32 = vld [vmem:[#allocation8 + $0x14bc] ss:$40 sps:$4 sm:$0xff]  }
 0x526   :  { %10475 = vmatprep.subr.bf16.mxu1 %v21814_v57 }
 0x528   :  { %10429 = vmatpush2.bf16.msra.mxu0 %v21809_v47  ;;  %v21854_v47 = vld [vmem:[#allocation8 + $0x14b8] ss:$40 sps:$4 sm:$0xff]  }
 0x529   :  { %10476 = vmatpush2.bf16.msra.mxu1 %v21812_v26  ;;  %10430 = vmatprep.subr.bf16.mxu0 %v21817_v42 }
 0x52a   :  { %10477 = vmatprep.subr.bf16.mxu1 %v21820_v21  ;;  %v21859_v21 = vld [vmem:[#allocation8 + $0x105c] ss:$40 sps:$4 sm:$0xff]  }
 0x52c   :  { %10431 = vmatpush2.bf16.msra.mxu0 %v21815_v30  ;;  %v21862_v30 = vld [vmem:[#allocation8 + $0x146c] ss:$40 sps:$4 sm:$0xff]  }
 0x52d   :  { %10478 = vmatpush2.bf16.msra.mxu1 %v21818_v35  ;;  %10432 = vmatprep.subr.bf16.mxu0 %v21823_v48  ;;  %v21857_v35 = vld [vmem:[#allocation8 + $0x1058] ss:$40 sps:$4 sm:$0xff]   ;;  %v21860_v48 = vld [vmem:[#allocation8 + $0x1468] ss:$40 sps:$4 sm:$0xff]  }
 0x52e   :  { %10529 = vmatprep.subr.bf16.mxu1 %v21826_v63  ;;  %v21865_v63 = vld [vmem:[#allocation8 + $0x100c] ss:$40 sps:$4 sm:$0xff]  }
 0x530   :  { %v10235_v6 = vpop.f32.mrf.mxu1  ;;  %10433 = vmatpush2.bf16.msra.mxu0 %v21821_v52  ;;  %10480 = vmatmul.mubr.bf16.vlgmr.msra.gmra.mxu1 %v23918_v62  ;;  %v21868_v52 = vld [vmem:[#allocation8 + $0x141c] ss:$40 sps:$4 sm:$0xff]  }
 0x531   :  { %10530 = vmatpush1.bf16.msra.mxu1 %v21824_v34  ;;  %10561 = vmatprep.mubr.bf16.mxu1 %v23941_v46  ;;  %v21863_v34 = vld [vmem:[#allocation8 + $0x1008] ss:$40 sps:$4 sm:$0xff]  }
 0x532   :  { %v10237_v56 = vpop.f32.mrf.mxu1  ;;  %10434 = vmatprep.subr.bf16.mxu0 %v21829_v0  ;;  %10531 = vmatprep.subr.bf16.mxu1 %v21832_v53  ;;  %v21866_v0 = vld [vmem:[#allocation8 + $0x1418] ss:$40 sps:$4 sm:$0xff]   ;;  %v21874_v53 = vld [vmem:[#allocation8 + $0x18cc] ss:$40 sps:$4 sm:$0xff]  }
 0x534   :  { %v10239_v8 = vpop.f32.mrf.mxu1  ;;  %10435 = vmatpush2.bf16.msra.mxu0 %v21827_v39  ;;  %v21871_v39 = vld [vmem:[#allocation8 + $0xfbc] ss:$40 sps:$4 sm:$0xff]  }
 0x535   :  { %10532 = vmatpush1.bf16.msra.mxu1 %v21830_v25  ;;  %10436 = vmatprep.subr.bf16.mxu0 %v21835_v33  ;;  %v21869_v25 = vld [vmem:[#allocation8 + $0xfb8] ss:$40 sps:$4 sm:$0xff]   ;;  %v21877_v33 = vld [vmem:[#allocation8 + $0xf6c] ss:$40 sps:$4 sm:$0xff]  }
 0x536   :  { %v10240_v28 = vpop.f32.mrf.mxu1  ;;  %10533 = vmatprep.subr.bf16.mxu1 %v21838_v13  ;;  %v21878_v13 = vld [vmem:[#allocation8 + $0x1878] ss:$40 sps:$4 sm:$0xff]   ;;  %v21886_v8 = vld [vmem:[#allocation8 + $0x182c] ss:$40 sps:$4 sm:$0xff]  }
 0x537   :  { %v21884_v28 = vld [vmem:[#allocation8 + $0x1828] ss:$40 sps:$4 sm:$0xff]  }
 0x538   :  { %10437 = vmatpush2.bf16.msra.mxu0 %v21833_v20  ;;  %v21875_v20 = vld [vmem:[#allocation8 + $0xf68] ss:$40 sps:$4 sm:$0xff]  }
 0x539   :  { %10534 = vmatpush1.bf16.msra.mxu1 %v21836_v60  ;;  %10488 = vmatprep.subr.bf16.mxu0 %v21841_v37  ;;  %v21883_v60 = vld [vmem:[#allocation8 + $0xf1c] ss:$40 sps:$4 sm:$0xff]   ;;  %v21881_v37 = vld [vmem:[#allocation8 + $0xf18] ss:$40 sps:$4 sm:$0xff]  }
 0x53a   :  { %10535 = vmatprep.subr.bf16.mxu1 %v21844_v16  ;;  %v21892_v16 = vld [vmem:[#allocation8 + $0x17dc] ss:$40 sps:$4 sm:$0xff]  }
 0x53b   :  { %v10194_v40 = vpop.f32.mrf.mxu0  ;;  %10439 = vmatmul.mubr.bf16.vlgmr.msra.gmra.mxu0 %v23899_v61 }
 0x53c   :  { %v10195_v12 = vadd.f32 %v10194_v40, %v5719_v5  ;;  %10489 = vmatpush1.bf16.msra.mxu0 %v21839_v55  ;;  %10520 = vmatprep.mubr.bf16.mxu0 %v23911_v43  ;;  %v21889_v55 = vld [vmem:[#allocation8 + $0x13cc] ss:$40 sps:$4 sm:$0xff]   ;;  %v21890_v5 = vld [vmem:[#allocation8 + $0x17d8] ss:$40 sps:$4 sm:$0xff]  }
 0x53d   :  { %v10196_v29 = vpop.f32.mrf.mxu0  ;;  %10536 = vmatpush1.bf16.msra.mxu1 %v21842_v2  ;;  %10490 = vmatprep.subr.bf16.mxu0 %v21847_v1  ;;  %v21887_v2 = vld [vmem:[#allocation8 + $0x13c8] ss:$40 sps:$4 sm:$0xff]   ;;  %v21895_v1 = vld [vmem:[#allocation8 + $0x137c] ss:$40 sps:$4 sm:$0xff]   ;;  %v21901_v40 = vld [vmem:[#allocation8 + $0x132c] ss:$40 sps:$4 sm:$0xff]  }
 0x53e   :  { %v10197_v15 = vadd.f32 %v10196_v29, %v5723_v7  ;;  %10537 = vmatprep.subr.bf16.mxu1 %v21850_v10  ;;  %v24014_v23 = vadd.f32 %v10235_v6, %v10195_v12  ;;  %v21872_v6 = vld [vmem:[#allocation8 + $0x18c8] ss:$40 sps:$4 sm:$0xff]   ;;  %v21898_v7 = vld [vmem:[#allocation8 + $0x178c] ss:$40 sps:$4 sm:$0xff]   ;;  %v21902_v29 = vld [vmem:[#allocation8 + $0x1738] ss:$40 sps:$4 sm:$0xff]  }
 0x53f   :  { %v10198_v57 = vpop.f32.mrf.mxu0  ;;  %v21896_v10 = vld [vmem:[#allocation8 + $0x1788] ss:$40 sps:$4 sm:$0xff]  }
 0x540   :  { %10491 = vmatpush1.bf16.msra.mxu0 %v21845_v17  ;;  %v24016_v26 = vadd.f32 %v10237_v56, %v10197_v15  ;;  %v21880_v56 = vld [vmem:[#allocation8 + $0x187c] ss:$40 sps:$4 sm:$0xff]   ;;  %v21893_v17 = vld [vmem:[#allocation8 + $0x1378] ss:$40 sps:$4 sm:$0xff]   ;;  %v21899_v12 = vld [vmem:[#allocation8 + $0x1328] ss:$40 sps:$4 sm:$0xff]  }
 0x541   :  { %v10199_v42 = vpop.f32.mrf.mxu0  ;;  %10538 = vmatpush1.bf16.msra.mxu1 %v21848_v11  ;;  %10492 = vmatprep.subr.bf16.mxu0 %v21853_v14  ;;  %v21904_v11 = vld [vmem:[#allocation8 + $0x173c] ss:$40 sps:$4 sm:$0xff]   ;;  %v21910_v15 = vld [vmem:[#allocation8 + $0x16ec] ss:$40 sps:$4 sm:$0xff]  }
 0x542   :  { %10539 = vmatprep.subr.bf16.mxu1 %v21856_v32  ;;  %v21907_v14 = vld [vmem:[#allocation8 + $0x12dc] ss:$40 sps:$4 sm:$0xff]   ;;  %v21908_v32 = vld [vmem:[#allocation8 + $0x16e8] ss:$40 sps:$4 sm:$0xff]   ;;  %v21913_v57 = vld [vmem:[#allocation8 + $0x128c] ss:$40 sps:$4 sm:$0xff]  }
 0x543   :  { %v21911_v42 = vld [vmem:[#allocation8 + $0x1288] ss:$40 sps:$4 sm:$0xff]  }
 0x544   :  { %10493 = vmatpush1.bf16.msra.mxu0 %v21851_v19  ;;  %v21905_v19 = vld [vmem:[#allocation8 + $0x12d8] ss:$40 sps:$4 sm:$0xff]  }
 0x545   :  { %10540 = vmatpush1.bf16.msra.mxu1 %v21854_v47  ;;  %10494 = vmatprep.subr.bf16.mxu0 %v21859_v21  ;;  %v21916_v47 = vld [vmem:[#allocation8 + $0x169c] ss:$40 sps:$4 sm:$0xff]   ;;  %v21914_v21 = vld [vmem:[#allocation8 + $0x1698] ss:$40 sps:$4 sm:$0xff]  }
 0x546   :  { %10541 = vmatprep.subr.bf16.mxu1 %v21862_v30  ;;  %v21919_v30 = vld [vmem:[#allocation8 + $0x123c] ss:$40 sps:$4 sm:$0xff]  }
 0x548   :  { %10495 = vmatpush1.bf16.msra.mxu0 %v21857_v35  ;;  %v21922_v35 = vld [vmem:[#allocation8 + $0x754] ss:$40 sps:$4 sm:$0xff]  }
 0x549   :  { %10542 = vmatpush1.bf16.msra.mxu1 %v21860_v48  ;;  %10496 = vmatprep.subr.bf16.mxu0 %v21865_v63  ;;  %v21917_v48 = vld [vmem:[#allocation8 + $0x1238] ss:$40 sps:$4 sm:$0xff]  }
 0x54a   :  { %10543 = vmatprep.subr.bf16.mxu1 %v21868_v52  ;;  %v21920_v63 = vld [vmem:[#allocation8 + $0x750] ss:$40 sps:$4 sm:$0xff]   ;;  %v21925_v52 = vld [vmem:[#allocation8 + $0x11ec] ss:$40 sps:$4 sm:$0xff]  }
 0x54c   :  { %10497 = vmatpush1.bf16.msra.mxu0 %v21863_v34  ;;  %v21928_v34 = vld [vmem:[#allocation8 + $0x704] ss:$40 sps:$4 sm:$0xff]  }
 0x54d   :  { %10544 = vmatpush1.bf16.msra.mxu1 %v21866_v0  ;;  %10498 = vmatprep.subr.bf16.mxu0 %v21871_v39  ;;  %v21923_v39 = vld [vmem:[#allocation8 + $0x11e8] ss:$40 sps:$4 sm:$0xff]  }
 0x54e   :  { %10545 = vmatprep.subr.bf16.mxu1 %v21874_v53  ;;  %v21926_v53 = vld [vmem:[#allocation8 + $0x700] ss:$40 sps:$4 sm:$0xff]  }
 0x550   :  { %10499 = vmatpush1.bf16.msra.mxu0 %v21869_v25  ;;  %v21931_v25 = vld [vmem:[#allocation8 + $0x119c] ss:$40 sps:$4 sm:$0xff]  }
 0x551   :  { %10546 = vmatpush2.bf16.msra.mxu1 %v21872_v6  ;;  %10500 = vmatprep.subr.bf16.mxu0 %v21877_v33  ;;  %v21934_v33 = vld [vmem:[#allocation8 + $0x6b4] ss:$40 sps:$4 sm:$0xff]  }
 0x552   :  { %10547 = vmatprep.subr.bf16.mxu1 %v21880_v56 }
 0x554   :  { %10501 = vmatpush1.bf16.msra.mxu0 %v21875_v20  ;;  %v21929_v20 = vld [vmem:[#allocation8 + $0x1198] ss:$40 sps:$4 sm:$0xff]  }
 0x555   :  { %10548 = vmatpush2.bf16.msra.mxu1 %v21878_v13  ;;  %10502 = vmatprep.subr.bf16.mxu0 %v21883_v60  ;;  %v21932_v13 = vld [vmem:[#allocation8 + $0x6b0] ss:$40 sps:$4 sm:$0xff]   ;;  %v21937_v60 = vld [vmem:[#allocation8 + $0x254] ss:$40 sps:$4 sm:$0xff]  }
 0x556   :  { %10549 = vmatprep.subr.bf16.mxu1 %v21886_v8 }
 0x558   :  { %10503 = vmatpush1.bf16.msra.mxu0 %v21881_v37  ;;  %v21940_v37 = vld [vmem:[#allocation8 + $0x664] ss:$40 sps:$4 sm:$0xff]  }
 0x559   :  { %10550 = vmatpush2.bf16.msra.mxu1 %v21884_v28  ;;  %10504 = vmatprep.subr.bf16.mxu0 %v21889_v55  ;;  %v21935_v28 = vld [vmem:[#allocation8 + $0x250] ss:$40 sps:$4 sm:$0xff]   ;;  %v21943_v55 = vld [vmem:[#allocation8 + $0x204] ss:$40 sps:$4 sm:$0xff]  }
 0x55a   :  { %10551 = vmatprep.subr.bf16.mxu1 %v21892_v16  ;;  %v21946_v16 = vld [vmem:[#allocation8 + $0x614] ss:$40 sps:$4 sm:$0xff]  }
 0x55c   :  { %10505 = vmatpush2.bf16.msra.mxu0 %v21887_v2 }
 0x55d   :  { %10552 = vmatpush2.bf16.msra.mxu1 %v21890_v5  ;;  %10506 = vmatprep.subr.bf16.mxu0 %v21895_v1  ;;  %v21941_v1 = vld [vmem:[#allocation8 + $0x200] ss:$40 sps:$4 sm:$0xff]  }
 0x55e   :  { %10553 = vmatprep.subr.bf16.mxu1 %v21898_v7 }
 0x560   :  { %10507 = vmatpush2.bf16.msra.mxu0 %v21893_v17  ;;  %v21944_v17 = vld [vmem:[#allocation8 + $0x610] ss:$40 sps:$4 sm:$0xff]  }
 0x561   :  { %10554 = vmatpush2.bf16.msra.mxu1 %v21896_v10  ;;  %10508 = vmatprep.subr.bf16.mxu0 %v21901_v40  ;;  %v21949_v10 = vld [vmem:[#allocation8 + $0x1b4] ss:$40 sps:$4 sm:$0xff]  }
 0x562   :  { %10555 = vmatprep.subr.bf16.mxu1 %v21904_v11  ;;  %v21952_v11 = vld [vmem:[#allocation8 + $0x5c4] ss:$40 sps:$4 sm:$0xff]  }
 0x564   :  { %10509 = vmatpush2.bf16.msra.mxu0 %v21899_v12 }
 0x565   :  { %10556 = vmatpush2.bf16.msra.mxu1 %v21902_v29  ;;  %10510 = vmatprep.subr.bf16.mxu0 %v21907_v14  ;;  %v21947_v14 = vld [vmem:[#allocation8 + $0x1b0] ss:$40 sps:$4 sm:$0xff]  }
 0x566   :  { %10557 = vmatprep.subr.bf16.mxu1 %v21910_v15 }
 0x568   :  { %10511 = vmatpush2.bf16.msra.mxu0 %v21905_v19  ;;  %v21955_v19 = vld [vmem:[#allocation8 + $0x164] ss:$40 sps:$4 sm:$0xff]  }
 0x569   :  { %10558 = vmatpush2.bf16.msra.mxu1 %v21908_v32  ;;  %10512 = vmatprep.subr.bf16.mxu0 %v21913_v57  ;;  %v21958_v32 = vld [vmem:[#allocation8 + $0x574] ss:$40 sps:$4 sm:$0xff]   ;;  %v21953_v57 = vld [vmem:[#allocation8 + $0x160] ss:$40 sps:$4 sm:$0xff]  }
 0x56a   :  { %10559 = vmatprep.subr.bf16.mxu1 %v21916_v47  ;;  %v21961_v47 = vld [vmem:[#allocation8 + $0x114] ss:$40 sps:$4 sm:$0xff]  }
 0x56c   :  { %10513 = vmatpush2.bf16.msra.mxu0 %v21911_v42  ;;  %v21964_v42 = vld [vmem:[#allocation8 + $0x524] ss:$40 sps:$4 sm:$0xff]  }
 0x56d   :  { %10560 = vmatpush2.bf16.msra.mxu1 %v21914_v21  ;;  %10514 = vmatprep.subr.bf16.mxu0 %v21919_v30  ;;  %v21959_v21 = vld [vmem:[#allocation8 + $0x110] ss:$40 sps:$4 sm:$0xff]   ;;  %v21962_v30 = vld [vmem:[#allocation8 + $0x520] ss:$40 sps:$4 sm:$0xff]  }
 0x56e   :  { %10611 = vmatprep.subr.bf16.mxu1 %v21922_v35  ;;  %v21967_v35 = vld [vmem:[#allocation8 + $0xc4] ss:$40 sps:$4 sm:$0xff]  }
 0x570   :  { %v10317_v0 = vpop.f32.mrf.mxu1  ;;  %10515 = vmatpush2.bf16.msra.mxu0 %v21917_v48  ;;  %10562 = vmatmul.mubr.bf16.vlgmr.msra.gmra.mxu1 %v23943_v50  ;;  %v21970_v48 = vld [vmem:[#allocation8 + $0x9d4] ss:$40 sps:$4 sm:$0xff]  }
 0x571   :  { %10612 = vmatpush1.bf16.msra.mxu1 %v21920_v63  ;;  %10643 = vmatprep.mubr.bf16.mxu1 %v23876_v22  ;;  %v21938_v22 = vld [vmem:[#allocation8 + $0x660] ss:$40 sps:$4 sm:$0xff]  }
 0x572   :  { %v10319_v6 = vpop.f32.mrf.mxu1  ;;  %10516 = vmatprep.subr.bf16.mxu0 %v21925_v52  ;;  %10613 = vmatprep.subr.bf16.mxu1 %v21928_v34  ;;  %v21965_v63 = vld [vmem:[#allocation8 + $0xc0] ss:$40 sps:$4 sm:$0xff]   ;;  %v21968_v52 = vld [vmem:[#allocation8 + $0x9d0] ss:$40 sps:$4 sm:$0xff]   ;;  %v21973_v34 = vld [vmem:[#allocation8 + $0x74] ss:$40 sps:$4 sm:$0xff]  }
 0x574   :  { %v10321_v56 = vpop.f32.mrf.mxu1  ;;  %10517 = vmatpush2.bf16.msra.mxu0 %v21923_v39  ;;  %v21971_v39 = vld [vmem:[#allocation8 + $0x70] ss:$40 sps:$4 sm:$0xff]  }
 0x575   :  { %10614 = vmatpush1.bf16.msra.mxu1 %v21926_v53  ;;  %10518 = vmatprep.subr.bf16.mxu0 %v21931_v25  ;;  %v21974_v53 = vld [vmem:[#allocation8 + $0x980] ss:$40 sps:$4 sm:$0xff]   ;;  %v21979_v25 = vld [vmem:[#allocation8 + $0x24] ss:$40 sps:$4 sm:$0xff]   ;;  %v21980_v56 = vld [vmem:[#allocation8 + $0x930] ss:$40 sps:$4 sm:$0xff]  }
 0x576   :  { %v10322_v8 = vpop.f32.mrf.mxu1  ;;  %10615 = vmatprep.subr.bf16.mxu1 %v21934_v33  ;;  %v21977_v33 = vld [vmem:[#allocation8 + $0x20] ss:$40 sps:$4 sm:$0xff]  }
 0x577   :  { %v21986_v8 = vld [vmem:[#allocation8 + $0x8e0] ss:$40 sps:$4 sm:$0xff]  }
 0x578   :  { %10519 = vmatpush2.bf16.msra.mxu0 %v21929_v20  ;;  %v21985_v20 = vld [vmem:[#allocation8 + $0x4d4] ss:$40 sps:$4 sm:$0xff]  }
 0x579   :  { %10616 = vmatpush1.bf16.msra.mxu1 %v21932_v13  ;;  %10570 = vmatprep.subr.bf16.mxu0 %v21937_v60  ;;  %v21988_v13 = vld [vmem:[#allocation8 + $0x8e4] ss:$40 sps:$4 sm:$0xff]   ;;  %v21983_v60 = vld [vmem:[#allocation8 + $0x4d0] ss:$40 sps:$4 sm:$0xff]  }
 0x57a   :  { %10617 = vmatprep.subr.bf16.mxu1 %v21940_v37  ;;  %v21991_v37 = vld [vmem:[#allocation8 + $0x484] ss:$40 sps:$4 sm:$0xff]  }
 0x57b   :  { %v10276_v2 = vpop.f32.mrf.mxu0  ;;  %10521 = vmatmul.mubr.bf16.vlgmr.msra.gmra.mxu0 %v23920_v36 }
 0x57c   :  { %v10277_v5 = vadd.f32 %v10276_v2, %v24014_v23  ;;  %10571 = vmatpush1.bf16.msra.mxu0 %v21935_v28  ;;  %10602 = vmatprep.mubr.bf16.mxu0 %v23874_v18  ;;  %v21950_v18 = vld [vmem:[#allocation8 + $0x5c0] ss:$40 sps:$4 sm:$0xff]   ;;  %v21994_v28 = vld [vmem:[#allocation8 + $0x894] ss:$40 sps:$4 sm:$0xff]   ;;  %v22000_v2 = vld [vmem:[#allocation8 + $0x844] ss:$40 sps:$4 sm:$0xff]  }
 0x57d   :  { %v10278_v7 = vpop.f32.mrf.mxu0  ;;  %10618 = vmatpush1.bf16.msra.mxu1 %v21938_v22  ;;  %10572 = vmatprep.subr.bf16.mxu0 %v21943_v55  ;;  %v21989_v22 = vld [vmem:[#allocation8 + $0x480] ss:$40 sps:$4 sm:$0xff]   ;;  %v21992_v55 = vld [vmem:[#allocation8 + $0x890] ss:$40 sps:$4 sm:$0xff]  }
 0x57e   :  { %v10279_v40 = vadd.f32 %v10278_v7, %v24016_v26  ;;  %10619 = vmatprep.subr.bf16.mxu1 %v21946_v16  ;;  %v24024_v12 = vadd.f32 %v10317_v0, %v10277_v5  ;;  %v21956_v26 = vld [vmem:[#allocation8 + $0x570] ss:$40 sps:$4 sm:$0xff]   ;;  %v21976_v0 = vld [vmem:[#allocation8 + $0x984] ss:$40 sps:$4 sm:$0xff]   ;;  %v21997_v16 = vld [vmem:[#allocation8 + $0x434] ss:$40 sps:$4 sm:$0xff]  }
 0x57f   :  { %v10280_v29 = vpop.f32.mrf.mxu0  ;;  %v21995_v5 = vld [vmem:[#allocation8 + $0x430] ss:$40 sps:$4 sm:$0xff]   ;;  %v22003_v7 = vld [vmem:[#allocation8 + $0x3e4] ss:$40 sps:$4 sm:$0xff]  }
 0x580   :  { %10573 = vmatpush1.bf16.msra.mxu0 %v21941_v1  ;;  %v24026_v15 = vadd.f32 %v10319_v6, %v10279_v40  ;;  %v21982_v6 = vld [vmem:[#allocation8 + $0x934] ss:$40 sps:$4 sm:$0xff]   ;;  %v21998_v1 = vld [vmem:[#allocation8 + $0x840] ss:$40 sps:$4 sm:$0xff]   ;;  %v22004_v40 = vld [vmem:[#allocation8 + $0x7f0] ss:$40 sps:$4 sm:$0xff]  }
 0x581   :  { %v10281_v23 = vpop.f32.mrf.mxu0  ;;  %10620 = vmatpush1.bf16.msra.mxu1 %v21944_v17  ;;  %10574 = vmatprep.subr.bf16.mxu0 %v21949_v10  ;;  %v22006_v17 = vld [vmem:[#allocation8 + $0x7f4] ss:$40 sps:$4 sm:$0xff]   ;;  %v22001_v10 = vld [vmem:[#allocation8 + $0x3e0] ss:$40 sps:$4 sm:$0xff]   ;;  %v22012_v29 = vld [vmem:[#allocation8 + $0x7a4] ss:$40 sps:$4 sm:$0xff]  }
 0x582   :  { %10621 = vmatprep.subr.bf16.mxu1 %v21952_v11  ;;  %v22009_v11 = vld [vmem:[#allocation8 + $0x394] ss:$40 sps:$4 sm:$0xff]   ;;  %v22010_v23 = vld [vmem:[#allocation8 + $0x7a0] ss:$40 sps:$4 sm:$0xff]  }
 0x584   :  { %10575 = vmatpush1.bf16.msra.mxu0 %v21947_v14  ;;  %v22007_v14 = vld [vmem:[#allocation8 + $0x390] ss:$40 sps:$4 sm:$0xff]  }
 0x585   :  { %10622 = vmatpush1.bf16.msra.mxu1 %v21950_v18  ;;  %10576 = vmatprep.subr.bf16.mxu0 %v21955_v19  ;;  %v22015_v18 = vld [vmem:[#allocation8 + $0x344] ss:$40 sps:$4 sm:$0xff]   ;;  %v22018_v19 = vld [vmem:[#allocation8 + $0x1154] ss:$40 sps:$4 sm:$0xff]  }
 0x586   :  { %10623 = vmatprep.subr.bf16.mxu1 %v21958_v32  ;;  %v22013_v32 = vld [vmem:[#allocation8 + $0x340] ss:$40 sps:$4 sm:$0xff]  }
 0x588   :  { %10577 = vmatpush1.bf16.msra.mxu0 %v21953_v57  ;;  %v22016_v57 = vld [vmem:[#allocation8 + $0x1150] ss:$40 sps:$4 sm:$0xff]  }
 0x589   :  { %10624 = vmatpush1.bf16.msra.mxu1 %v21956_v26  ;;  %10578 = vmatprep.subr.bf16.mxu0 %v21961_v47  ;;  %v22021_v26 = vld [vmem:[#allocation8 + $0x2f4] ss:$40 sps:$4 sm:$0xff]   ;;  %v22024_v47 = vld [vmem:[#allocation8 + $0x1104] ss:$40 sps:$4 sm:$0xff]  }
 0x58a   :  { %10625 = vmatprep.subr.bf16.mxu1 %v21964_v42 }
 0x58c   :  { %10579 = vmatpush1.bf16.msra.mxu0 %v21959_v21  ;;  %v22019_v21 = vld [vmem:[#allocation8 + $0x2f0] ss:$40 sps:$4 sm:$0xff]  }
 0x58d   :  { %10626 = vmatpush1.bf16.msra.mxu1 %v21962_v30  ;;  %10580 = vmatprep.subr.bf16.mxu0 %v21967_v35  ;;  %v22022_v30 = vld [vmem:[#allocation8 + $0x1100] ss:$40 sps:$4 sm:$0xff]   ;;  %v22027_v35 = vld [vmem:[#allocation8 + $0x2a4] ss:$40 sps:$4 sm:$0xff]  }
 0x58e   :  { %10627 = vmatprep.subr.bf16.mxu1 %v21970_v48 }
 0x590   :  { %10581 = vmatpush1.bf16.msra.mxu0 %v21965_v63  ;;  %v22030_v63 = vld [vmem:[#allocation8 + $0x10b4] ss:$40 sps:$4 sm:$0xff]  }
 0x591   :  { %10628 = vmatpush2.bf16.msra.mxu1 %v21968_v52  ;;  %10582 = vmatprep.subr.bf16.mxu0 %v21973_v34  ;;  %v22025_v34 = vld [vmem:[#allocation8 + $0x2a0] ss:$40 sps:$4 sm:$0xff]  }
 0x592   :  { %10629 = vmatprep.subr.bf16.mxu1 %v21976_v0  ;;  %v22028_v0 = vld [vmem:[#allocation8 + $0x10b0] ss:$40 sps:$4 sm:$0xff]  }
 0x594   :  { %10583 = vmatpush1.bf16.msra.mxu0 %v21971_v39  ;;  %v22033_v39 = vld [vmem:[#allocation8 + $0xc54] ss:$40 sps:$4 sm:$0xff]  }
 0x595   :  { %10630 = vmatpush2.bf16.msra.mxu1 %v21974_v53  ;;  %10584 = vmatprep.subr.bf16.mxu0 %v21979_v25  ;;  %v22031_v25 = vld [vmem:[#allocation8 + $0xc50] ss:$40 sps:$4 sm:$0xff]  }
 0x596   :  { %10631 = vmatprep.subr.bf16.mxu1 %v21982_v6  ;;  %v22039_v6 = vld [vmem:[#allocation8 + $0xc04] ss:$40 sps:$4 sm:$0xff]  }
 0x598   :  { %10585 = vmatpush1.bf16.msra.mxu0 %v21977_v33  ;;  %v22042_v33 = vld [vmem:[#allocation8 + $0x1014] ss:$40 sps:$4 sm:$0xff]  }
 0x599   :  { %10632 = vmatpush2.bf16.msra.mxu1 %v21980_v56  ;;  %10586 = vmatprep.subr.bf16.mxu0 %v21985_v20 }
 0x59a   :  { %10633 = vmatprep.subr.bf16.mxu1 %v21988_v13  ;;  %v22037_v13 = vld [vmem:[#allocation8 + $0xc00] ss:$40 sps:$4 sm:$0xff]  }
 0x59c   :  { %10587 = vmatpush2.bf16.msra.mxu0 %v21983_v60 }
 0x59d   :  { %10634 = vmatpush2.bf16.msra.mxu1 %v21986_v8  ;;  %10588 = vmatprep.subr.bf16.mxu0 %v21991_v37  ;;  %v22040_v8 = vld [vmem:[#allocation8 + $0x1010] ss:$40 sps:$4 sm:$0xff]   ;;  %v22045_v37 = vld [vmem:[#allocation8 + $0xbb4] ss:$40 sps:$4 sm:$0xff]  }
 0x59e   :  { %10635 = vmatprep.subr.bf16.mxu1 %v21994_v28 }
 0x5a0   :  { %10589 = vmatpush2.bf16.msra.mxu0 %v21989_v22  ;;  %v22048_v22 = vld [vmem:[#allocation8 + $0xfc4] ss:$40 sps:$4 sm:$0xff]  }
 0x5a1   :  { %10636 = vmatpush2.bf16.msra.mxu1 %v21992_v55  ;;  %10590 = vmatprep.subr.bf16.mxu0 %v21997_v16 }
 0x5a2   :  { %10637 = vmatprep.subr.bf16.mxu1 %v22000_v2  ;;  %v22051_v2 = vld [vmem:[#allocation8 + $0xb64] ss:$40 sps:$4 sm:$0xff]  }
 0x5a4   :  { %10591 = vmatpush2.bf16.msra.mxu0 %v21995_v5  ;;  %v22049_v5 = vld [vmem:[#allocation8 + $0xb60] ss:$40 sps:$4 sm:$0xff]  }
 0x5a5   :  { %10638 = vmatpush2.bf16.msra.mxu1 %v21998_v1  ;;  %10592 = vmatprep.subr.bf16.mxu0 %v22003_v7  ;;  %v22052_v1 = vld [vmem:[#allocation8 + $0xf70] ss:$40 sps:$4 sm:$0xff]   ;;  %v22057_v7 = vld [vmem:[#allocation8 + $0xb14] ss:$40 sps:$4 sm:$0xff]  }
 0x5a6   :  { %10639 = vmatprep.subr.bf16.mxu1 %v22006_v17  ;;  %v22055_v17 = vld [vmem:[#allocation8 + $0xb10] ss:$40 sps:$4 sm:$0xff]  }
 0x5a8   :  { %10593 = vmatpush2.bf16.msra.mxu0 %v22001_v10  ;;  %v22058_v10 = vld [vmem:[#allocation8 + $0xf20] ss:$40 sps:$4 sm:$0xff]  }
 0x5a9   :  { %10640 = vmatpush2.bf16.msra.mxu1 %v22004_v40  ;;  %10594 = vmatprep.subr.bf16.mxu0 %v22009_v11  ;;  %v22063_v40 = vld [vmem:[#allocation8 + $0xac4] ss:$40 sps:$4 sm:$0xff]   ;;  %v22066_v11 = vld [vmem:[#allocation8 + $0x13d4] ss:$40 sps:$4 sm:$0xff]  }
 0x5aa   :  { %10641 = vmatprep.subr.bf16.mxu1 %v22012_v29  ;;  %v22061_v29 = vld [vmem:[#allocation8 + $0xac0] ss:$40 sps:$4 sm:$0xff]  }
 0x5ac   :  { %10595 = vmatpush2.bf16.msra.mxu0 %v22007_v14  ;;  %v22064_v14 = vld [vmem:[#allocation8 + $0x13d0] ss:$40 sps:$4 sm:$0xff]  }
 0x5ad   :  { %10642 = vmatpush2.bf16.msra.mxu1 %v22010_v23  ;;  %10596 = vmatprep.subr.bf16.mxu0 %v22015_v18  ;;  %v22069_v23 = vld [vmem:[#allocation8 + $0xa74] ss:$40 sps:$4 sm:$0xff]   ;;  %v22072_v18 = vld [vmem:[#allocation8 + $0x1384] ss:$40 sps:$4 sm:$0xff]  }
 0x5ae   :  { %10693 = vmatprep.subr.bf16.mxu1 %v22018_v19  ;;  %v22067_v19 = vld [vmem:[#allocation8 + $0xa70] ss:$40 sps:$4 sm:$0xff]  }
 0x5b0   :  { %v24028_v42 = vpop.f32.mrf.mxu1  ;;  %10597 = vmatpush2.bf16.msra.mxu0 %v22013_v32  ;;  %10644 = vmatmul.mubr.bf16.vlgmr.msra.gmra.mxu1 %v23899_v61  ;;  %v22036_v61 = vld [vmem:[#allocation8 + $0x1064] ss:$40 sps:$4 sm:$0xff]   ;;  %v22070_v32 = vld [vmem:[#allocation8 + $0x1380] ss:$40 sps:$4 sm:$0xff]  }
 0x5b1   :  { %10694 = vmatpush1.bf16.msra.mxu1 %v22016_v57  ;;  %10725 = vmatprep.mubr.bf16.mxu1 %v23911_v43  ;;  %v22034_v43 = vld [vmem:[#allocation8 + $0x1060] ss:$40 sps:$4 sm:$0xff]   ;;  %v22075_v57 = vld [vmem:[#allocation8 + $0xa24] ss:$40 sps:$4 sm:$0xff]  }
 0x5b2   :  { %v24032_v48 = vpop.f32.mrf.mxu1  ;;  %10598 = vmatprep.subr.bf16.mxu0 %v22021_v26  ;;  %10695 = vmatprep.subr.bf16.mxu1 %v22024_v47  ;;  %v22078_v26 = vld [vmem:[#allocation8 + $0x1334] ss:$40 sps:$4 sm:$0xff]   ;;  %v22073_v47 = vld [vmem:[#allocation8 + $0xa20] ss:$40 sps:$4 sm:$0xff]  }
 0x5b4   :  { %v10403_v52 = vpop.f32.mrf.mxu1  ;;  %10599 = vmatpush2.bf16.msra.mxu0 %v22019_v21  ;;  %v22076_v21 = vld [vmem:[#allocation8 + $0x1330] ss:$40 sps:$4 sm:$0xff]  }
 0x5b5   :  { %10696 = vmatpush1.bf16.msra.mxu1 %v22022_v30  ;;  %10600 = vmatprep.subr.bf16.mxu0 %v22027_v35  ;;  %v22081_v30 = vld [vmem:[#allocation8 + $0xed4] ss:$40 sps:$4 sm:$0xff]   ;;  %v22084_v35 = vld [vmem:[#allocation8 + $0x12e4] ss:$40 sps:$4 sm:$0xff]   ;;  %v22082_v52 = vld [vmem:[#allocation8 + $0x12e0] ss:$40 sps:$4 sm:$0xff]  }
 0x5b6   :  { %v10404_v53 = vpop.f32.mrf.mxu1  ;;  %10697 = vmatprep.subr.bf16.mxu1 %v22030_v63  ;;  %v22079_v63 = vld [vmem:[#allocation8 + $0xed0] ss:$40 sps:$4 sm:$0xff]  }
 0x5b7   :  { %v22088_v53 = vld [vmem:[#allocation8 + $0x1290] ss:$40 sps:$4 sm:$0xff]  }
 0x5b8   :  { %10601 = vmatpush2.bf16.msra.mxu0 %v22025_v34  ;;  %v22087_v34 = vld [vmem:[#allocation8 + $0xe84] ss:$40 sps:$4 sm:$0xff]  }
 0x5b9   :  { %10698 = vmatpush1.bf16.msra.mxu1 %v22028_v0  ;;  %10652 = vmatprep.subr.bf16.mxu0 %v22033_v39  ;;  %v22090_v0 = vld [vmem:[#allocation8 + $0x1294] ss:$40 sps:$4 sm:$0xff]   ;;  %v22085_v39 = vld [vmem:[#allocation8 + $0xe80] ss:$40 sps:$4 sm:$0xff]  }
 0x5ba   :  { %10699 = vmatprep.subr.bf16.mxu1 %v22036_v61  ;;  %v22093_v61 = vld [vmem:[#allocation8 + $0xe34] ss:$40 sps:$4 sm:$0xff]  }
 0x5bb   :  { %v10358_v56 = vpop.f32.mrf.mxu0  ;;  %10603 = vmatmul.mubr.bf16.vlgmr.msra.gmra.mxu0 %v23897_v27  ;;  %v22043_v27 = vld [vmem:[#allocation8 + $0xbb0] ss:$40 sps:$4 sm:$0xff]  }
 0x5bc   :  { %v24036_v20 = vadd.f32 %v10358_v56, %v24024_v12  ;;  %10653 = vmatpush1.bf16.msra.mxu0 %v22031_v25  ;;  %10684 = vmatprep.mubr.bf16.mxu0 %v23901_v9  ;;  %v22046_v12 = vld [vmem:[#allocation8 + $0xfc0] ss:$40 sps:$4 sm:$0xff]   ;;  %v22054_v9 = vld [vmem:[#allocation8 + $0xf74] ss:$40 sps:$4 sm:$0xff]   ;;  %v22096_v25 = vld [vmem:[#allocation8 + $0x1244] ss:$40 sps:$4 sm:$0xff]  }
 0x5bd   :  { %v10360_v60 = vpop.f32.mrf.mxu0  ;;  %10700 = vmatpush1.bf16.msra.mxu1 %v22034_v43  ;;  %10654 = vmatprep.subr.bf16.mxu0 %v22039_v6  ;;  %v22091_v43 = vld [vmem:[#allocation8 + $0xe30] ss:$40 sps:$4 sm:$0xff]   ;;  %v22094_v6 = vld [vmem:[#allocation8 + $0x1240] ss:$40 sps:$4 sm:$0xff]   ;;  %v22102_v56 = vld [vmem:[#allocation8 + $0x11f4] ss:$40 sps:$4 sm:$0xff]  }
 0x5be   :  { %v24040_v28 = vadd.f32 %v10360_v60, %v24026_v15  ;;  %10701 = vmatprep.subr.bf16.mxu1 %v22042_v33  ;;  %v22060_v15 = vld [vmem:[#allocation8 + $0xf24] ss:$40 sps:$4 sm:$0xff]   ;;  %v22100_v60 = vld [vmem:[#allocation8 + $0x11f0] ss:$40 sps:$4 sm:$0xff]  }
 0x5bf   :  { %v10362_v55 = vpop.f32.mrf.mxu0  ;;  %v22099_v33 = vld [vmem:[#allocation8 + $0xde4] ss:$40 sps:$4 sm:$0xff]  }
 0x5c0   :  { %10655 = vmatpush1.bf16.msra.mxu0 %v22037_v13  ;;  %v22097_v13 = vld [vmem:[#allocation8 + $0xde0] ss:$40 sps:$4 sm:$0xff]  }
 0x5c1   :  { %v10363_v16 = vpop.f32.mrf.mxu0  ;;  %10702 = vmatpush1.bf16.msra.mxu1 %v22040_v8  ;;  %10656 = vmatprep.subr.bf16.mxu0 %v22045_v37  ;;  %v22105_v8 = vld [vmem:[#allocation8 + $0xd94] ss:$40 sps:$4 sm:$0xff]   ;;  %v22108_v37 = vld [vmem:[#allocation8 + $0x11a4] ss:$40 sps:$4 sm:$0xff]   ;;  %v22106_v55 = vld [vmem:[#allocation8 + $0x11a0] ss:$40 sps:$4 sm:$0xff]  }
 0x5c2   :  { %10703 = vmatprep.subr.bf16.mxu1 %v22048_v22  ;;  %v22103_v22 = vld [vmem:[#allocation8 + $0xd90] ss:$40 sps:$4 sm:$0xff]   ;;  %v22114_v16 = vld [vmem:[#allocation11 + $0x234] ss:$40 sps:$4 sm:$0xff]  }
 0x5c4   :  { %10657 = vmatpush1.bf16.msra.mxu0 %v22043_v27  ;;  %v22111_v27 = vld [vmem:[#allocation8 + $0xd44] ss:$40 sps:$4 sm:$0xff]  }
 0x5c5   :  { %10704 = vmatpush1.bf16.msra.mxu1 %v22046_v12  ;;  %10658 = vmatprep.subr.bf16.mxu0 %v22051_v2  ;;  %v10776_v12 = vmax.f32 %v23980_v58, 0.0  ;;  %v22109_v2 = vld [vmem:[#allocation8 + $0xd40] ss:$40 sps:$4 sm:$0xff]   ;;  %v22123_v58 = vld [vmem:[#allocation8 + $0xca4] ss:$40 sps:$4 sm:$0xff]  }
 0x5c6   :  { %10705 = vmatprep.subr.bf16.mxu1 %v22054_v9  ;;  %v22112_v9 = vld [vmem:[#allocation11 + $0x230] ss:$40 sps:$4 sm:$0xff]  }
 0x5c8   :  { %10659 = vmatpush1.bf16.msra.mxu0 %v22049_v5  ;;  %v22117_v5 = vld [vmem:[#allocation8 + $0xcf4] ss:$40 sps:$4 sm:$0xff]  }
 0x5c9   :  { %10706 = vmatpush1.bf16.msra.mxu1 %v22052_v1  ;;  %10660 = vmatprep.subr.bf16.mxu0 %v22057_v7  ;;  %v22120_v1 = vld [vmem:[#allocation11 + $0x1e4] ss:$40 sps:$4 sm:$0xff]   ;;  %v24043_v7 = vpack.c.bf16 %v10776_v12, %v10776_v12  ;;  %v22157_v12 = vld [vmem:[#allocation8 + $0x14c0] ss:$40 sps:$4 sm:$0xff]  }
 0x5ca   :  { %10707 = vmatprep.subr.bf16.mxu1 %v22060_v15 }
 0x5cc   :  { %10661 = vmatpush1.bf16.msra.mxu0 %v22055_v17  ;;  %v22115_v17 = vld [vmem:[#allocation8 + $0xcf0] ss:$40 sps:$4 sm:$0xff]  }
 0x5cd   :  { %10708 = vmatpush1.bf16.msra.mxu1 %v22058_v10  ;;  %10662 = vmatprep.subr.bf16.mxu0 %v22063_v40  ;;  %v22118_v10 = vld [vmem:[#allocation11 + $0x1e0] ss:$40 sps:$4 sm:$0xff]  }
 0x5ce   :  { %10709 = vmatprep.subr.bf16.mxu1 %v22066_v11  ;;  %v22126_v11 = vld [vmem:[#allocation11 + $0x194] ss:$40 sps:$4 sm:$0xff]  }
 0x5d0   :  { %10663 = vmatpush1.bf16.msra.mxu0 %v22061_v29 }
 0x5d1   :  { %10710 = vmatpush2.bf16.msra.mxu1 %v22064_v14  ;;  %10664 = vmatprep.subr.bf16.mxu0 %v22069_v23  ;;  %v22121_v14 = vld [vmem:[#allocation8 + $0xca0] ss:$40 sps:$4 sm:$0xff]  }
 0x5d2   :  { %10711 = vmatprep.subr.bf16.mxu1 %v22072_v18  ;;  %v22124_v23 = vld [vmem:[#allocation11 + $0x190] ss:$40 sps:$4 sm:$0xff]  }
 0x5d3   :  { %v22129_v18 = vld [vmem:[#allocation8 + $0x1654] ss:$40 sps:$4 sm:$0xff]  }
 0x5d4   :  { %10665 = vmatpush1.bf16.msra.mxu0 %v22067_v19 }
 0x5d5   :  { %10712 = vmatpush2.bf16.msra.mxu1 %v22070_v32  ;;  %10666 = vmatprep.subr.bf16.mxu0 %v22075_v57  ;;  %v22132_v32 = vld [vmem:[#allocation11 + $0x144] ss:$40 sps:$4 sm:$0xff]   ;;  %v5731_v57 = vrot.slane %v24006_v4, %v23889_v3 }
 0x5d6   :  { %10713 = vmatprep.subr.bf16.mxu1 %v22078_v26  ;;  %v22127_v26 = vld [vmem:[#allocation8 + $0x1650] ss:$40 sps:$4 sm:$0xff]  }
 0x5d8   :  { %10667 = vmatpush1.bf16.msra.mxu0 %v22073_v47  ;;  %v22130_v47 = vld [vmem:[#allocation11 + $0x140] ss:$40 sps:$4 sm:$0xff]  }
 0x5d9   :  { %10714 = vmatpush2.bf16.msra.mxu1 %v22076_v21  ;;  %10668 = vmatprep.subr.bf16.mxu0 %v22081_v30  ;;  %v22135_v21 = vld [vmem:[#allocation8 + $0x1604] ss:$40 sps:$4 sm:$0xff]  }
 0x5da   :  { %10715 = vmatprep.subr.bf16.mxu1 %v22084_v35  ;;  %v22138_v35 = vld [vmem:[#allocation11 + $0xf4] ss:$40 sps:$4 sm:$0xff]  }
 0x5dc   :  { %10669 = vmatpush2.bf16.msra.mxu0 %v22079_v63 }
 0x5dd   :  { %10716 = vmatpush2.bf16.msra.mxu1 %v22082_v52  ;;  %10670 = vmatprep.subr.bf16.mxu0 %v22087_v34  ;;  %v10402_v52 = vadd.f32 %v24032_v48, %v5731_v57  ;;  %v22189_v57 = vld [vmem:[#allocation8 + $0x1834] ss:$40 sps:$4 sm:$0xff]  }
 0x5de   :  { %10717 = vmatprep.subr.bf16.mxu1 %v22090_v0 }
 0x5e0   :  { %10671 = vmatpush2.bf16.msra.mxu0 %v22085_v39  ;;  %v22136_v39 = vld [vmem:[#allocation11 + $0xf0] ss:$40 sps:$4 sm:$0xff]  }
 0x5e1   :  { %10718 = vmatpush2.bf16.msra.mxu1 %v22088_v53  ;;  %10672 = vmatprep.subr.bf16.mxu0 %v22093_v61  ;;  %v22141_v53 = vld [vmem:[#allocation8 + $0x15b4] ss:$40 sps:$4 sm:$0xff]  }
 0x5e2   :  { %10719 = vmatprep.subr.bf16.mxu1 %v22096_v25 }
 0x5e4   :  { %10673 = vmatpush2.bf16.msra.mxu0 %v22091_v43 }
 0x5e5   :  { %10720 = vmatpush2.bf16.msra.mxu1 %v22094_v6  ;;  %10674 = vmatprep.subr.bf16.mxu0 %v22099_v33  ;;  %v22147_v33 = vld [vmem:[#allocation8 + $0x1564] ss:$40 sps:$4 sm:$0xff]  }
 0x5e6   :  { %10721 = vmatprep.subr.bf16.mxu1 %v22102_v56  ;;  %v22150_v56 = vld [vmem:[#allocation11 + $0x54] ss:$40 sps:$4 sm:$0xff]  }
 0x5e8   :  { %10675 = vmatpush2.bf16.msra.mxu0 %v22097_v13  ;;  %v22145_v13 = vld [vmem:[#allocation8 + $0x1560] ss:$40 sps:$4 sm:$0xff]  }
 0x5e9   :  { %10722 = vmatpush2.bf16.msra.mxu1 %v22100_v60  ;;  %10676 = vmatprep.subr.bf16.mxu0 %v22105_v8  ;;  %v22148_v60 = vld [vmem:[#allocation11 + $0x50] ss:$40 sps:$4 sm:$0xff]  }
 0x5ea   :  { %10723 = vmatprep.subr.bf16.mxu1 %v22108_v37  ;;  %v22153_v8 = vld [vmem:[#allocation8 + $0x1514] ss:$40 sps:$4 sm:$0xff]  }
 0x5eb   :  { %v22156_v37 = vld [vmem:[#allocation11 + $0x4] ss:$40 sps:$4 sm:$0xff]  }
 0x5ec   :  { %10677 = vmatpush2.bf16.msra.mxu0 %v22103_v22  ;;  %v22151_v22 = vld [vmem:[#allocation8 + $0x1510] ss:$40 sps:$4 sm:$0xff]  }
 0x5ed   :  { %10724 = vmatpush2.bf16.msra.mxu1 %v22106_v55  ;;  %10678 = vmatprep.subr.bf16.mxu0 %v22111_v27  ;;  %v22154_v55 = vld [vmem:[#allocation11] ss:$40 sps:$4 sm:$0xff]  }
 0x5ee   :  { %15649 = vmatprep.subr.bf16.mxu1 %v22114_v16  ;;  %v22159_v27 = vld [vmem:[#allocation8 + $0x14c4] ss:$40 sps:$4 sm:$0xff]  }
 0x5ef   :  { %v22162_v16 = vld [vmem:[#allocation11 + $0x4b4] ss:$40 sps:$4 sm:$0xff]  }
 0x5f0   :  { %v10481_v15 = vpop.f32.mrf.mxu1  ;;  %10679 = vmatpush2.bf16.msra.mxu0 %v22109_v2  ;;  %10726 = vmatmul.mubr.bf16.vlgmr.msra.gmra.mxu1 %v23920_v36  ;;  %v5727_v36 = vrot.slane %v24006_v4, %v23866_v24  ;;  %v22133_v4 = vld [vmem:[#allocation8 + $0x1600] ss:$40 sps:$4 sm:$0xff]  }
 0x5f1   :  { %15650 = vmatpush1.bf16.msra.mxu1 %v22112_v9  ;;  %15681 = vmatprep.mubr.bf16.mxu1 %v24043_v7  ;;  %v22160_v2 = vld [vmem:[#allocation11 + $0x4b0] ss:$40 sps:$4 sm:$0xff]  }
 0x5f2   :  { %v10483_v40 = vpop.f32.mrf.mxu1  ;;  %10680 = vmatprep.subr.bf16.mxu0 %v22117_v5  ;;  %15651 = vmatprep.subr.bf16.mxu1 %v22120_v1  ;;  %v10400_v30 = vadd.f32 %v24028_v42, %v5727_v36  ;;  %v22144_v42 = vld [vmem:[#allocation11 + $0xa4] ss:$40 sps:$4 sm:$0xff]   ;;  %v22186_v36 = vld [vmem:[#allocation11 + $0x374] ss:$40 sps:$4 sm:$0xff]  }
 0x5f3   :  { %v22165_v9 = vld [vmem:[#allocation8 + $0x1474] ss:$40 sps:$4 sm:$0xff]   ;;  %v22163_v1 = vld [vmem:[#allocation8 + $0x1470] ss:$40 sps:$4 sm:$0xff]  }
 0x5f4   :  { %v10485_v29 = vpop.f32.mrf.mxu1  ;;  %10681 = vmatpush2.bf16.msra.mxu0 %v22115_v17  ;;  %v22168_v5 = vld [vmem:[#allocation11 + $0x464] ss:$40 sps:$4 sm:$0xff]  }
 0x5f5   :  { %15652 = vmatpush1.bf16.msra.mxu1 %v22118_v10  ;;  %10682 = vmatprep.subr.bf16.mxu0 %v22123_v58  ;;  %v22171_v17 = vld [vmem:[#allocation8 + $0x1424] ss:$40 sps:$4 sm:$0xff]   ;;  %v22169_v58 = vld [vmem:[#allocation8 + $0x1420] ss:$40 sps:$4 sm:$0xff]  }
 0x5f6   :  { %v10486_v19 = vpop.f32.mrf.mxu1  ;;  %15653 = vmatprep.subr.bf16.mxu1 %v22126_v11  ;;  %v22174_v10 = vld [vmem:[#allocation11 + $0x414] ss:$40 sps:$4 sm:$0xff]   ;;  %v22180_v29 = vld [vmem:[#allocation11 + $0x3c4] ss:$40 sps:$4 sm:$0xff]  }
 0x5f7   :  { %v22177_v11 = vld [vmem:[#allocation8 + $0x18d4] ss:$40 sps:$4 sm:$0xff]   ;;  %v22181_v19 = vld [vmem:[#allocation8 + $0x1880] ss:$40 sps:$4 sm:$0xff]  }
 0x5f8   :  { %10683 = vmatpush2.bf16.msra.mxu0 %v22121_v14  ;;  %v22175_v14 = vld [vmem:[#allocation8 + $0x18d0] ss:$40 sps:$4 sm:$0xff]  }
 0x5f9   :  { %15654 = vmatpush1.bf16.msra.mxu1 %v22124_v23  ;;  %10734 = vmatprep.subr.bf16.mxu0 %v22129_v18  ;;  %v22178_v23 = vld [vmem:[#allocation11 + $0x3c0] ss:$40 sps:$4 sm:$0xff]  }
 0x5fa   :  { %15655 = vmatprep.subr.bf16.mxu1 %v22132_v32  ;;  %v22183_v18 = vld [vmem:[#allocation8 + $0x1884] ss:$40 sps:$4 sm:$0xff]  }
 0x5fb   :  { %v10440_v63 = vpop.f32.mrf.mxu0  ;;  %10685 = vmatmul.mubr.bf16.vlgmr.msra.gmra.mxu0 %v23918_v62  ;;  %v22139_v62 = vld [vmem:[#allocation8 + $0x15b0] ss:$40 sps:$4 sm:$0xff]  }
 0x5fc   :  { %v10441_v34 = vadd.f32 %v10440_v63, %v10400_v30  ;;  %10735 = vmatpush1.bf16.msra.mxu0 %v22127_v26  ;;  %10766 = vmatprep.mubr.bf16.mxu0 %v23941_v46  ;;  %v22142_v46 = vld [vmem:[#allocation11 + $0xa0] ss:$40 sps:$4 sm:$0xff]   ;;  %v22184_v32 = vld [vmem:[#allocation11 + $0x370] ss:$40 sps:$4 sm:$0xff]   ;;  %v22192_v26 = vld [vmem:[#allocation11 + $0x324] ss:$40 sps:$4 sm:$0xff]  }
 0x5fd   :  { %v10442_v0 = vpop.f32.mrf.mxu0  ;;  %15656 = vmatpush1.bf16.msra.mxu1 %v22130_v47  ;;  %10736 = vmatprep.subr.bf16.mxu0 %v22135_v21  ;;  %v22187_v47 = vld [vmem:[#allocation8 + $0x1830] ss:$40 sps:$4 sm:$0xff]   ;;  %v22195_v30 = vld [vmem:[#allocation8 + $0x17e4] ss:$40 sps:$4 sm:$0xff]   ;;  %v22193_v63 = vld [vmem:[#allocation8 + $0x17e0] ss:$40 sps:$4 sm:$0xff]  }
 0x5fe   :  { %v10443_v61 = vadd.f32 %v10442_v0, %v10402_v52  ;;  %15657 = vmatprep.subr.bf16.mxu1 %v22138_v35  ;;  %v24055_v25 = vadd.f32 %v10481_v15, %v10441_v34  ;;  %v22166_v15 = vld [vmem:[#allocation11 + $0x460] ss:$40 sps:$4 sm:$0xff]   ;;  %v22198_v35 = vld [vmem:[#allocation11 + $0x2d4] ss:$40 sps:$4 sm:$0xff]   ;;  %v22196_v52 = vld [vmem:[#allocation11 + $0x2d0] ss:$40 sps:$4 sm:$0xff]  }
 0x5ff   :  { %v10444_v43 = vpop.f32.mrf.mxu0  ;;  %v22190_v21 = vld [vmem:[#allocation11 + $0x320] ss:$40 sps:$4 sm:$0xff]  }
 0x600   :  { %10737 = vmatpush1.bf16.msra.mxu0 %v22133_v4  ;;  %v24057_v6 = vadd.f32 %v10483_v40, %v10443_v61  ;;  %v22172_v40 = vld [vmem:[#allocation11 + $0x410] ss:$40 sps:$4 sm:$0xff]   ;;  %v22204_v4 = vld [vmem:[#allocation11 + $0x284] ss:$40 sps:$4 sm:$0xff]   ;;  %v10775_v61 = vmax.f32 %v23976_v51, 0.0  ;;  %v10780_v43 = vmax.f32 %v24040_v28, 0.0 }
 0x601   :  { %v10445_v48 = vpop.f32.mrf.mxu0  ;;  %15658 = vmatpush1.bf16.msra.mxu1 %v22136_v39  ;;  %10738 = vmatprep.subr.bf16.mxu0 %v22141_v53  ;;  %v22201_v34 = vld [vmem:[#allocation8 + $0x1794] ss:$40 sps:$4 sm:$0xff]   ;;  %v22199_v0 = vld [vmem:[#allocation8 + $0x1790] ss:$40 sps:$4 sm:$0xff]   ;;  %v22207_v53 = vld [vmem:[#allocation8 + $0x1744] ss:$40 sps:$4 sm:$0xff]  }
 0x602   :  { %15659 = vmatprep.subr.bf16.mxu1 %v22144_v42  ;;  %v22202_v39 = vld [vmem:[#allocation11 + $0x280] ss:$40 sps:$4 sm:$0xff]   ;;  %v22210_v42 = vld [vmem:[#allocation11 + $0xc34] ss:$40 sps:$4 sm:$0xff]   ;;  %v22208_v48 = vld [vmem:[#allocation11 + $0xc30] ss:$40 sps:$4 sm:$0xff]  }
 0x603   :  { %v22211_v51 = vld [vmem:[#allocation8 + $0x16f0] ss:$40 sps:$4 sm:$0xff]  }
 0x604   :  { %10739 = vmatpush1.bf16.msra.mxu0 %v22139_v62  ;;  %v22205_v62 = vld [vmem:[#allocation8 + $0x1740] ss:$40 sps:$4 sm:$0xff]  }
 0x605   :  { %15660 = vmatpush1.bf16.msra.mxu1 %v22142_v46  ;;  %10740 = vmatprep.subr.bf16.mxu0 %v22147_v33  ;;  %v24061_v46 = vpack.c.bf16 %v10775_v61, %v10775_v61  ;;  %v22213_v33 = vld [vmem:[#allocation8 + $0x16f4] ss:$40 sps:$4 sm:$0xff]  }
 0x606   :  { %15661 = vmatprep.subr.bf16.mxu1 %v22150_v56  ;;  %v22216_v56 = vld [vmem:[#allocation11 + $0xbe4] ss:$40 sps:$4 sm:$0xff]   ;;  %v22214_v28 = vld [vmem:[#allocation11 + $0xbe0] ss:$40 sps:$4 sm:$0xff]   ;;  %v22261_v61 = vld [vmem:[#allocation11 + $0x554] ss:$40 sps:$4 sm:$0xff]  }
 0x608   :  { %10741 = vmatpush1.bf16.msra.mxu0 %v22145_v13  ;;  %v24063_v13 = vpack.c.bf16 %v10780_v43, %v10780_v43  ;;  %v22259_v43 = vld [vmem:[#allocation11 + $0x550] ss:$40 sps:$4 sm:$0xff]  }
 0x609   :  { %15662 = vmatpush1.bf16.msra.mxu1 %v22148_v60  ;;  %10742 = vmatprep.subr.bf16.mxu0 %v22153_v8  ;;  %v22219_v8 = vld [vmem:[#allocation8 + $0x16a4] ss:$40 sps:$4 sm:$0xff]  }
 0x60a   :  { %15663 = vmatprep.subr.bf16.mxu1 %v22156_v37 }
 0x60c   :  { %10743 = vmatpush1.bf16.msra.mxu0 %v22151_v22  ;;  %v22222_v22 = vld [vmem:[#allocation11 + $0xb94] ss:$40 sps:$4 sm:$0xff]  }
 0x60d   :  { %15664 = vmatpush1.bf16.msra.mxu1 %v22154_v55  ;;  %10744 = vmatprep.subr.bf16.mxu0 %v22159_v27  ;;  %v22217_v27 = vld [vmem:[#allocation8 + $0x16a0] ss:$40 sps:$4 sm:$0xff]  }
 0x60e   :  { %15665 = vmatprep.subr.bf16.mxu1 %v22162_v16  ;;  %v22220_v16 = vld [vmem:[#allocation11 + $0xb90] ss:$40 sps:$4 sm:$0xff]  }
 0x610   :  { %10745 = vmatpush1.bf16.msra.mxu0 %v22157_v12  ;;  %v22225_v12 = vld [vmem:[#allocation11 + $0x734] ss:$40 sps:$4 sm:$0xff]  }
 0x611   :  { %15666 = vmatpush2.bf16.msra.mxu1 %v22160_v2  ;;  %10746 = vmatprep.subr.bf16.mxu0 %v22165_v9  ;;  %v10778_v2 = vmax.f32 %v24002_v49, 0.0  ;;  %v22229_v49 = vld [vmem:[#allocation11 + $0x6e0] ss:$40 sps:$4 sm:$0xff]  }
 0x612   :  { %15667 = vmatprep.subr.bf16.mxu1 %v22168_v5  ;;  %v22228_v5 = vld [vmem:[#allocation11 + $0xb44] ss:$40 sps:$4 sm:$0xff]  }
 0x614   :  { %10747 = vmatpush1.bf16.msra.mxu0 %v22163_v1  ;;  %v22223_v1 = vld [vmem:[#allocation11 + $0x730] ss:$40 sps:$4 sm:$0xff]  }
 0x615   :  { %15668 = vmatpush2.bf16.msra.mxu1 %v22166_v15  ;;  %10748 = vmatprep.subr.bf16.mxu0 %v22171_v17  ;;  %v22226_v15 = vld [vmem:[#allocation11 + $0xb40] ss:$40 sps:$4 sm:$0xff]   ;;  %v22231_v17 = vld [vmem:[#allocation11 + $0x6e4] ss:$40 sps:$4 sm:$0xff]  }
 0x616   :  { %15669 = vmatprep.subr.bf16.mxu1 %v22174_v10  ;;  %v24068_v10 = vpack.c.bf16 %v10778_v2, %v10778_v2  ;;  %v22288_v2 = vld [vmem:[#allocation11 + $0xd24] ss:$40 sps:$4 sm:$0xff]  }
 0x618   :  { %10749 = vmatpush1.bf16.msra.mxu0 %v22169_v58  ;;  %v22234_v58 = vld [vmem:[#allocation11 + $0xaf4] ss:$40 sps:$4 sm:$0xff]  }
 0x619   :  { %15670 = vmatpush2.bf16.msra.mxu1 %v22172_v40  ;;  %10750 = vmatprep.subr.bf16.mxu0 %v22177_v11 }
 0x61a   :  { %15671 = vmatprep.subr.bf16.mxu1 %v22180_v29 }
 0x61c   :  { %10751 = vmatpush2.bf16.msra.mxu0 %v22175_v14  ;;  %v22232_v14 = vld [vmem:[#allocation11 + $0xaf0] ss:$40 sps:$4 sm:$0xff]  }
 0x61d   :  { %15672 = vmatpush2.bf16.msra.mxu1 %v22178_v23  ;;  %10752 = vmatprep.subr.bf16.mxu0 %v22183_v18  ;;  %v22237_v23 = vld [vmem:[#allocation11 + $0x694] ss:$40 sps:$4 sm:$0xff]  }
 0x61e   :  { %15673 = vmatprep.subr.bf16.mxu1 %v22186_v36 }
 0x620   :  { %10753 = vmatpush2.bf16.msra.mxu0 %v22181_v19  ;;  %v22240_v19 = vld [vmem:[#allocation11 + $0xaa4] ss:$40 sps:$4 sm:$0xff]  }
 0x621   :  { %15674 = vmatpush2.bf16.msra.mxu1 %v22184_v32  ;;  %10754 = vmatprep.subr.bf16.mxu0 %v22189_v57 }
 0x622   :  { %15675 = vmatprep.subr.bf16.mxu1 %v22192_v26  ;;  %v22238_v26 = vld [vmem:[#allocation11 + $0xaa0] ss:$40 sps:$4 sm:$0xff]  }
 0x624   :  { %10755 = vmatpush2.bf16.msra.mxu0 %v22187_v47  ;;  %v22243_v47 = vld [vmem:[#allocation11 + $0x644] ss:$40 sps:$4 sm:$0xff]  }
 0x625   :  { %15676 = vmatpush2.bf16.msra.mxu1 %v22190_v21  ;;  %10756 = vmatprep.subr.bf16.mxu0 %v22195_v30  ;;  %v22246_v21 = vld [vmem:[#allocation11 + $0xa54] ss:$40 sps:$4 sm:$0xff]   ;;  %v22241_v30 = vld [vmem:[#allocation11 + $0x640] ss:$40 sps:$4 sm:$0xff]  }
 0x626   :  { %15677 = vmatprep.subr.bf16.mxu1 %v22198_v35  ;;  %v22244_v35 = vld [vmem:[#allocation11 + $0xa50] ss:$40 sps:$4 sm:$0xff]  }
 0x628   :  { %10757 = vmatpush2.bf16.msra.mxu0 %v22193_v63  ;;  %v22252_v63 = vld [vmem:[#allocation11 + $0xa04] ss:$40 sps:$4 sm:$0xff]  }
 0x629   :  { %15678 = vmatpush2.bf16.msra.mxu1 %v22196_v52  ;;  %10758 = vmatprep.subr.bf16.mxu0 %v22201_v34  ;;  %v22247_v52 = vld [vmem:[#allocation11 + $0x5f0] ss:$40 sps:$4 sm:$0xff]   ;;  %v22250_v34 = vld [vmem:[#allocation11 + $0xa00] ss:$40 sps:$4 sm:$0xff]  }
 0x62a   :  { %15679 = vmatprep.subr.bf16.mxu1 %v22204_v4  ;;  %v22255_v4 = vld [vmem:[#allocation11 + $0x5a4] ss:$40 sps:$4 sm:$0xff]  }
 0x62c   :  { %10759 = vmatpush2.bf16.msra.mxu0 %v22199_v0  ;;  %v22258_v0 = vld [vmem:[#allocation11 + $0xeb4] ss:$40 sps:$4 sm:$0xff]  }
 0x62d   :  { %15680 = vmatpush2.bf16.msra.mxu1 %v22202_v39  ;;  %10760 = vmatprep.subr.bf16.mxu0 %v22207_v53  ;;  %v22253_v39 = vld [vmem:[#allocation11 + $0x5a0] ss:$40 sps:$4 sm:$0xff]   ;;  %v22256_v53 = vld [vmem:[#allocation11 + $0xeb0] ss:$40 sps:$4 sm:$0xff]  }
 0x62e   :  { %15731 = vmatprep.subr.bf16.mxu1 %v22210_v42  ;;  %v22264_v42 = vld [vmem:[#allocation11 + $0xe64] ss:$40 sps:$4 sm:$0xff]  }
 0x630   :  { %v10563_v60 = vpop.f32.mrf.mxu1  ;;  %10761 = vmatpush2.bf16.msra.mxu0 %v22205_v62  ;;  %15682 = vmatmul.mubr.bf16.vlgmr.msra.gmra.mxu1 %v24061_v46  ;;  %v22262_v62 = vld [vmem:[#allocation11 + $0xe60] ss:$40 sps:$4 sm:$0xff]  }
 0x631   :  { %15732 = vmatpush1.bf16.msra.mxu1 %v22208_v48  ;;  %15763 = vmatprep.mubr.bf16.mxu1 %v24063_v13  ;;  %v22267_v48 = vld [vmem:[#allocation11 + $0x504] ss:$40 sps:$4 sm:$0xff]  }
 0x632   :  { %v10565_v37 = vpop.f32.mrf.mxu1  ;;  %10762 = vmatprep.subr.bf16.mxu0 %v22213_v33  ;;  %15733 = vmatprep.subr.bf16.mxu1 %v22216_v56  ;;  %v22270_v33 = vld [vmem:[#allocation11 + $0xe14] ss:$40 sps:$4 sm:$0xff]   ;;  %v22265_v56 = vld [vmem:[#allocation11 + $0x500] ss:$40 sps:$4 sm:$0xff]  }
 0x634   :  { %v10567_v55 = vpop.f32.mrf.mxu1  ;;  %10763 = vmatpush2.bf16.msra.mxu0 %v22211_v51  ;;  %v22273_v51 = vld [vmem:[#allocation11 + $0x9b4] ss:$40 sps:$4 sm:$0xff]  }
 0x635   :  { %15734 = vmatpush1.bf16.msra.mxu1 %v22214_v28  ;;  %10764 = vmatprep.subr.bf16.mxu0 %v22219_v8  ;;  %v22276_v28 = vld [vmem:[#allocation11 + $0xdc4] ss:$40 sps:$4 sm:$0xff]   ;;  %v22271_v8 = vld [vmem:[#allocation11 + $0x9b0] ss:$40 sps:$4 sm:$0xff]   ;;  %v22282_v55 = vld [vmem:[#allocation11 + $0xd74] ss:$40 sps:$4 sm:$0xff]  }
 0x636   :  { %v10568_v9 = vpop.f32.mrf.mxu1  ;;  %15735 = vmatprep.subr.bf16.mxu1 %v22222_v22  ;;  %v22279_v22 = vld [vmem:[#allocation11 + $0x964] ss:$40 sps:$4 sm:$0xff]  }
 0x637   :  { %v22283_v9 = vld [vmem:[#allocation11 + $0x910] ss:$40 sps:$4 sm:$0xff]  }
 0x638   :  { %10765 = vmatpush2.bf16.msra.mxu0 %v22217_v27  ;;  %v22277_v27 = vld [vmem:[#allocation11 + $0x960] ss:$40 sps:$4 sm:$0xff]  }
 0x639   :  { %15736 = vmatpush1.bf16.msra.mxu1 %v22220_v16  ;;  %15690 = vmatprep.subr.bf16.mxu0 %v22225_v12  ;;  %v22280_v16 = vld [vmem:[#allocation11 + $0xd70] ss:$40 sps:$4 sm:$0xff]   ;;  %v22285_v12 = vld [vmem:[#allocation11 + $0x914] ss:$40 sps:$4 sm:$0xff]  }
 0x63a   :  { %15737 = vmatprep.subr.bf16.mxu1 %v22228_v5  ;;  %v22286_v5 = vld [vmem:[#allocation11 + $0xd20] ss:$40 sps:$4 sm:$0xff]  }
 0x63b   :  { %v10522_v40 = vpop.f32.mrf.mxu0  ;;  %10767 = vmatmul.mubr.bf16.vlgmr.msra.gmra.mxu0 %v23943_v50  ;;  %v22235_v50 = vld [vmem:[#allocation11 + $0x690] ss:$40 sps:$4 sm:$0xff]  }
 0x63c   :  { %v10523_v11 = vadd.f32 %v10522_v40, %v24055_v25  ;;  %15691 = vmatpush1.bf16.msra.mxu0 %v22223_v1  ;;  %15722 = vmatprep.mubr.bf16.mxu0 %v24068_v10  ;;  %v22291_v1 = vld [vmem:[#allocation11 + $0x8c4] ss:$40 sps:$4 sm:$0xff]   ;;  %v22297_v40 = vld [vmem:[#allocation11 + $0x874] ss:$40 sps:$4 sm:$0xff]  }
 0x63d   :  { %v10524_v29 = vpop.f32.mrf.mxu0  ;;  %15738 = vmatpush1.bf16.msra.mxu1 %v22226_v15  ;;  %15692 = vmatprep.subr.bf16.mxu0 %v22231_v17  ;;  %v22294_v15 = vld [vmem:[#allocation11 + $0xcd4] ss:$40 sps:$4 sm:$0xff]   ;;  %v22289_v17 = vld [vmem:[#allocation11 + $0x8c0] ss:$40 sps:$4 sm:$0xff]  }
 0x63e   :  { %v24073_v18 = vadd.f32 %v10563_v60, %v10523_v11  ;;  %v10525_v36 = vadd.f32 %v10524_v29, %v24057_v6  ;;  %15739 = vmatprep.subr.bf16.mxu1 %v22234_v58  ;;  %v22249_v6 = vld [vmem:[#allocation11 + $0x5f4] ss:$40 sps:$4 sm:$0xff]   ;;  %v22268_v60 = vld [vmem:[#allocation11 + $0xe10] ss:$40 sps:$4 sm:$0xff]   ;;  %v22300_v11 = vld [vmem:[#allocation11 + $0xc84] ss:$40 sps:$4 sm:$0xff]  }
 0x63f   :  { %v10526_v32 = vpop.f32.mrf.mxu0  ;;  %v22292_v58 = vld [vmem:[#allocation11 + $0xcd0] ss:$40 sps:$4 sm:$0xff]   ;;  %v22298_v29 = vld [vmem:[#allocation11 + $0xc80] ss:$40 sps:$4 sm:$0xff]  }
 0x640   :  { %v24076_v57 = vadd.f32 %v10565_v37, %v10525_v36  ;;  %15693 = vmatpush1.bf16.msra.mxu0 %v22229_v49  ;;  %v22274_v37 = vld [vmem:[#allocation11 + $0xdc0] ss:$40 sps:$4 sm:$0xff]   ;;  %v22295_v49 = vld [vmem:[#allocation11 + $0x870] ss:$40 sps:$4 sm:$0xff]   ;;  %v22369_v36 = vld [vmem:[#allocation11 + $0x1634] ss:$40 sps:$4 sm:$0xff]  }
 0x641   :  { %v10527_v25 = vpop.f32.mrf.mxu0  ;;  %15740 = vmatpush1.bf16.msra.mxu1 %v22232_v14  ;;  %15694 = vmatprep.subr.bf16.mxu0 %v22237_v23  ;;  %v22303_v14 = vld [vmem:[#allocation11 + $0x824] ss:$40 sps:$4 sm:$0xff]   ;;  %v10779_v23 = vmax.f32 %v24036_v20, 0.0  ;;  %v22306_v32 = vld [vmem:[#allocation11 + $0x7d4] ss:$40 sps:$4 sm:$0xff]  }
 0x642   :  { %15741 = vmatprep.subr.bf16.mxu1 %v22240_v19  ;;  %v22301_v19 = vld [vmem:[#allocation11 + $0x820] ss:$40 sps:$4 sm:$0xff]  }
 0x643   :  { %v24079_v25 = vpack.c.bf16 %v10779_v23, %v10779_v23  ;;  %v22373_v20 = vld [vmem:[#allocation11 + $0x15e0] ss:$40 sps:$4 sm:$0xff]   ;;  %v22327_v23 = vld [vmem:[#allocation11 + $0xfa4] ss:$40 sps:$4 sm:$0xff]  }
 0x644   :  { %15695 = vmatpush1.bf16.msra.mxu0 %v22235_v50  ;;  %v22367_v50 = vld [vmem:[#allocation11 + $0x1630] ss:$40 sps:$4 sm:$0xff]  }
 0x645   :  { %15742 = vmatpush1.bf16.msra.mxu1 %v22238_v26  ;;  %15696 = vmatprep.subr.bf16.mxu0 %v22243_v47  ;;  %v22375_v26 = vld [vmem:[#allocation11 + $0x15e4] ss:$40 sps:$4 sm:$0xff]  }
 0x646   :  { %15743 = vmatprep.subr.bf16.mxu1 %v22246_v21  ;;  %v22304_v21 = vld [vmem:[#allocation11 + $0x7d0] ss:$40 sps:$4 sm:$0xff]  }
 0x648   :  { %15697 = vmatpush1.bf16.msra.mxu0 %v22241_v30  ;;  %v22309_v30 = vld [vmem:[#allocation11 + $0x784] ss:$40 sps:$4 sm:$0xff]  }
 0x649   :  { %15744 = vmatpush1.bf16.msra.mxu1 %v22244_v35  ;;  %15698 = vmatprep.subr.bf16.mxu0 %v22249_v6  ;;  %v22381_v6 = vld [vmem:[#allocation11 + $0x1594] ss:$40 sps:$4 sm:$0xff]  }
 0x64a   :  { %15745 = vmatprep.subr.bf16.mxu1 %v22252_v63  ;;  %v10777_v63 = vmax.f32 %v23999_v31, 0.0  ;;  %v22315_v31 = vld [vmem:[#allocation11 + $0x10e4] ss:$40 sps:$4 sm:$0xff]  }
 0x64c   :  { %15699 = vmatpush1.bf16.msra.mxu0 %v22247_v52 }
 0x64d   :  { %15746 = vmatpush1.bf16.msra.mxu1 %v22250_v34  ;;  %15700 = vmatprep.subr.bf16.mxu0 %v22255_v4  ;;  %v22307_v34 = vld [vmem:[#allocation11 + $0x780] ss:$40 sps:$4 sm:$0xff]   ;;  %v5697_v4 = vld [vmem:[#allocation10 + $0x8] sm:$0x3] }
 0x64e   :  { %15747 = vmatprep.subr.bf16.mxu1 %v22258_v0  ;;  %v22312_v0 = vld [vmem:[#allocation11 + $0x1134] ss:$40 sps:$4 sm:$0xff]  }
 0x650   :  { %15701 = vmatpush1.bf16.msra.mxu0 %v22253_v39  ;;  %v22379_v39 = vld [vmem:[#allocation11 + $0x1590] ss:$40 sps:$4 sm:$0xff]  }
 0x651   :  { %15748 = vmatpush2.bf16.msra.mxu1 %v22256_v53  ;;  %15702 = vmatprep.subr.bf16.mxu0 %v22261_v61  ;;  %v10782_v53 = vmax.f32 %v24076_v57, 0.0 }
 0x652   :  { %15749 = vmatprep.subr.bf16.mxu1 %v22264_v42  ;;  %v22387_v42 = vld [vmem:[#allocation11 + $0x1544] ss:$40 sps:$4 sm:$0xff]  }
 0x654   :  { %15703 = vmatpush1.bf16.msra.mxu0 %v22259_v43  ;;  %v5735_v43 = vrot.slane %v5697_v4, %v23788_v41 }
 0x655   :  { %15750 = vmatpush2.bf16.msra.mxu1 %v22262_v62  ;;  %15704 = vmatprep.subr.bf16.mxu0 %v22267_v48  ;;  %v22310_v62 = vld [vmem:[#allocation11 + $0x1130] ss:$40 sps:$4 sm:$0xff]   ;;  %v24085_v48 = vpack.c.bf16 %v10777_v63, %v10777_v63  ;;  %v22336_v63 = vld [vmem:[#allocation11 + $0x13b4] ss:$40 sps:$4 sm:$0xff]  }
 0x656   :  { %15751 = vmatprep.subr.bf16.mxu1 %v22270_v33  ;;  %v22385_v33 = vld [vmem:[#allocation11 + $0x1540] ss:$40 sps:$4 sm:$0xff]  }
 0x658   :  { %15705 = vmatpush1.bf16.msra.mxu0 %v22265_v56  ;;  %v24087_v56 = vpack.c.bf16 %v10782_v53, %v10782_v53  ;;  %v22441_v53 = vld [vmem:[#allocation11 + $0x1774] ss:$40 sps:$4 sm:$0xff]  }
 0x659   :  { %15752 = vmatpush2.bf16.msra.mxu1 %v22268_v60  ;;  %15706 = vmatprep.subr.bf16.mxu0 %v22273_v51  ;;  %v5739_v60 = vrot.slane %v5697_v4, %v23791_v44  ;;  %v22393_v51 = vld [vmem:[#allocation11 + $0x14f4] ss:$40 sps:$4 sm:$0xff]   ;;  %v22334_v4 = vld [vmem:[#allocation11 + $0x13b0] ss:$40 sps:$4 sm:$0xff]  }
 0x65a   :  { %15753 = vmatprep.subr.bf16.mxu1 %v22276_v28 }
 0x65c   :  { %15707 = vmatpush2.bf16.msra.mxu0 %v22271_v8  ;;  %v22313_v8 = vld [vmem:[#allocation11 + $0x10e0] ss:$40 sps:$4 sm:$0xff]  }
 0x65d   :  { %15754 = vmatpush2.bf16.msra.mxu1 %v22274_v37  ;;  %15708 = vmatprep.subr.bf16.mxu0 %v22279_v22  ;;  %v22318_v22 = vld [vmem:[#allocation11 + $0x1094] ss:$40 sps:$4 sm:$0xff]  }
 0x65e   :  { %15755 = vmatprep.subr.bf16.mxu1 %v22282_v55  ;;  %v22391_v55 = vld [vmem:[#allocation11 + $0x14f0] ss:$40 sps:$4 sm:$0xff]  }
 0x660   :  { %15709 = vmatpush2.bf16.msra.mxu0 %v22277_v27 }
 0x661   :  { %15756 = vmatpush2.bf16.msra.mxu1 %v22280_v16  ;;  %15710 = vmatprep.subr.bf16.mxu0 %v22285_v12  ;;  %v22399_v12 = vld [vmem:[#allocation11 + $0x14a4] ss:$40 sps:$4 sm:$0xff]  }
 0x662   :  { %15757 = vmatprep.subr.bf16.mxu1 %v22288_v2 }
 0x664   :  { %15711 = vmatpush2.bf16.msra.mxu0 %v22283_v9  ;;  %v22316_v9 = vld [vmem:[#allocation11 + $0x1090] ss:$40 sps:$4 sm:$0xff]  }
 0x665   :  { %15758 = vmatpush2.bf16.msra.mxu1 %v22286_v5  ;;  %15712 = vmatprep.subr.bf16.mxu0 %v22291_v1 }
 0x666   :  { %15759 = vmatprep.subr.bf16.mxu1 %v22294_v15  ;;  %v22321_v15 = vld [vmem:[#allocation11 + $0x1044] ss:$40 sps:$4 sm:$0xff]  }
 0x668   :  { %15713 = vmatpush2.bf16.msra.mxu0 %v22289_v17  ;;  %v22397_v17 = vld [vmem:[#allocation11 + $0x14a0] ss:$40 sps:$4 sm:$0xff]  }
 0x669   :  { %15760 = vmatpush2.bf16.msra.mxu1 %v22292_v58  ;;  %15714 = vmatprep.subr.bf16.mxu0 %v22297_v40  ;;  %v22405_v58 = vld [vmem:[#allocation11 + $0x1454] ss:$40 sps:$4 sm:$0xff]   ;;  %v22319_v40 = vld [vmem:[#allocation11 + $0x1040] ss:$40 sps:$4 sm:$0xff]  }
 0x66a   :  { %15761 = vmatprep.subr.bf16.mxu1 %v22300_v11  ;;  %v22324_v11 = vld [vmem:[#allocation11 + $0xff4] ss:$40 sps:$4 sm:$0xff]  }
 0x66c   :  { %15715 = vmatpush2.bf16.msra.mxu0 %v22295_v49  ;;  %v22403_v49 = vld [vmem:[#allocation11 + $0x1450] ss:$40 sps:$4 sm:$0xff]  }
 0x66d   :  { %15762 = vmatpush2.bf16.msra.mxu1 %v22298_v29  ;;  %15716 = vmatprep.subr.bf16.mxu0 %v22303_v14  ;;  %v22411_v29 = vld [vmem:[#allocation11 + $0x1404] ss:$40 sps:$4 sm:$0xff]   ;;  %v22322_v14 = vld [vmem:[#allocation11 + $0xff0] ss:$40 sps:$4 sm:$0xff]  }
 0x66e   :  { %15813 = vmatprep.subr.bf16.mxu1 %v22369_v36  ;;  %v22409_v36 = vld [vmem:[#allocation11 + $0x1400] ss:$40 sps:$4 sm:$0xff]  }
 0x670   :  { %v10645_v47 = vpop.f32.mrf.mxu1  ;;  %15717 = vmatpush2.bf16.msra.mxu0 %v22301_v19  ;;  %15764 = vmatmul.mubr.bf16.vlgmr.msra.gmra.mxu1 %v24079_v25  ;;  %v22417_v19 = vld [vmem:[#allocation11 + $0x18b4] ss:$40 sps:$4 sm:$0xff]  }
 0x671   :  { %15718 = vmatprep.subr.bf16.mxu0 %v22306_v32  ;;  %15814 = vmatpush1.bf16.msra.mxu1 %v22367_v50  ;;  %v22325_v32 = vld [vmem:[#allocation11 + $0xfa0] ss:$40 sps:$4 sm:$0xff]   ;;  %v22330_v50 = vld [vmem:[#allocation11 + $0xf54] ss:$40 sps:$4 sm:$0xff]  }
 0x672   :  { %v10647_v35 = vpop.f32.mrf.mxu1  ;;  %15815 = vmatprep.subr.bf16.mxu1 %v22375_v26  ;;  %v22415_v26 = vld [vmem:[#allocation11 + $0x18b0] ss:$40 sps:$4 sm:$0xff]  }
 0x674   :  { %v10649_v52 = vpop.f32.mrf.mxu1  ;;  %15719 = vmatpush2.bf16.msra.mxu0 %v22304_v21  ;;  %v22328_v21 = vld [vmem:[#allocation11 + $0xf50] ss:$40 sps:$4 sm:$0xff]  }
 0x675   :  { %15720 = vmatprep.subr.bf16.mxu0 %v22309_v30  ;;  %15816 = vmatpush1.bf16.msra.mxu1 %v22373_v20  ;;  %v22333_v30 = vld [vmem:[#allocation11 + $0xf04] ss:$40 sps:$4 sm:$0xff]   ;;  %v22421_v20 = vld [vmem:[#allocation11 + $0x1860] ss:$40 sps:$4 sm:$0xff]   ;;  %v22427_v52 = vld [vmem:[#allocation11 + $0x1810] ss:$40 sps:$4 sm:$0xff]  }
 0x676   :  { %v10650_v61 = vpop.f32.mrf.mxu1  ;;  %15817 = vmatprep.subr.bf16.mxu1 %v22381_v6  ;;  %v22331_v6 = vld [vmem:[#allocation11 + $0xf00] ss:$40 sps:$4 sm:$0xff]  }
 0x677   :  { %v22337_v61 = vld [vmem:[#allocation11 + $0x1360] ss:$40 sps:$4 sm:$0xff]  }
 0x678   :  { %15721 = vmatpush2.bf16.msra.mxu0 %v22307_v34  ;;  %v22435_v34 = vld [vmem:[#allocation11 + $0x17c4] ss:$40 sps:$4 sm:$0xff]  }
 0x679   :  { %15772 = vmatprep.subr.bf16.mxu0 %v22312_v0  ;;  %15818 = vmatpush1.bf16.msra.mxu1 %v22379_v39  ;;  %v22339_v0 = vld [vmem:[#allocation11 + $0x1364] ss:$40 sps:$4 sm:$0xff]   ;;  %v22433_v39 = vld [vmem:[#allocation11 + $0x17c0] ss:$40 sps:$4 sm:$0xff]  }
 0x67a   :  { %15819 = vmatprep.subr.bf16.mxu1 %v22387_v42  ;;  %v22342_v42 = vld [vmem:[#allocation11 + $0x1314] ss:$40 sps:$4 sm:$0xff]  }
 0x67b   :  { %v10604_v57 = vpop.f32.mrf.mxu0  ;;  %15723 = vmatmul.mubr.bf16.vlgmr.msra.gmra.mxu0 %v24085_v48 }
 0x67c   :  { %v10605_v28 = vadd.f32 %v10604_v57, %v5735_v43  ;;  %15773 = vmatpush1.bf16.msra.mxu0 %v22310_v62  ;;  %15804 = vmatprep.mubr.bf16.mxu0 %v24087_v56  ;;  %v22439_v43 = vld [vmem:[#allocation11 + $0x1770] ss:$40 sps:$4 sm:$0xff]   ;;  %v22447_v62 = vld [vmem:[#allocation11 + $0x1724] ss:$40 sps:$4 sm:$0xff]   ;;  %v22343_v57 = vld [vmem:[#allocation11 + $0x12c0] ss:$40 sps:$4 sm:$0xff]  }
 0x67d   :  { %v10606_v37 = vpop.f32.mrf.mxu0  ;;  %15774 = vmatprep.subr.bf16.mxu0 %v22315_v31  ;;  %15820 = vmatpush1.bf16.msra.mxu1 %v22385_v33  ;;  %v22340_v31 = vld [vmem:[#allocation11 + $0x1310] ss:$40 sps:$4 sm:$0xff]   ;;  %v22345_v33 = vld [vmem:[#allocation11 + $0x12c4] ss:$40 sps:$4 sm:$0xff]  }
 0x67e   :  { %v10607_v27 = vadd.f32 %v10606_v37, %v5739_v60  ;;  %v24092_v16 = vadd.f32 %v10645_v47, %v10605_v28  ;;  %15821 = vmatprep.subr.bf16.mxu1 %v22393_v51  ;;  %v22423_v47 = vld [vmem:[#allocation11 + $0x1864] ss:$40 sps:$4 sm:$0xff]   ;;  %v22445_v60 = vld [vmem:[#allocation11 + $0x1720] ss:$40 sps:$4 sm:$0xff]   ;;  %v22453_v51 = vld [vmem:[#allocation11 + $0x16d4] ss:$40 sps:$4 sm:$0xff]  }
 0x67f   :  { %v10608_v2 = vpop.f32.mrf.mxu0  ;;  %v22348_v28 = vld [vmem:[#allocation11 + $0x1274] ss:$40 sps:$4 sm:$0xff]   ;;  %v22459_v37 = vld [vmem:[#allocation11 + $0x1684] ss:$40 sps:$4 sm:$0xff]  }
 0x680   :  { %15775 = vmatpush1.bf16.msra.mxu0 %v22313_v8  ;;  %v24094_v5 = vadd.f32 %v10647_v35, %v10607_v27  ;;  %v22429_v35 = vld [vmem:[#allocation11 + $0x1814] ss:$40 sps:$4 sm:$0xff]   ;;  %v22451_v8 = vld [vmem:[#allocation11 + $0x16d0] ss:$40 sps:$4 sm:$0xff]   ;;  %v22457_v27 = vld [vmem:[#allocation11 + $0x1680] ss:$40 sps:$4 sm:$0xff]  }
 0x681   :  { %v10609_v1 = vpop.f32.mrf.mxu0  ;;  %15776 = vmatprep.subr.bf16.mxu0 %v22318_v22  ;;  %15822 = vmatpush1.bf16.msra.mxu1 %v22391_v55  ;;  %v22346_v22 = vld [vmem:[#allocation11 + $0x1270] ss:$40 sps:$4 sm:$0xff]   ;;  %v22351_v55 = vld [vmem:[#allocation11 + $0x1224] ss:$40 sps:$4 sm:$0xff]   ;;  %v22349_v2 = vld [vmem:[#allocation11 + $0x1220] ss:$40 sps:$4 sm:$0xff]  }
 0x682   :  { %15823 = vmatprep.subr.bf16.mxu1 %v22399_v12  ;;  %v22465_v12 = vld [vmem:[#allocation11 + $0x73c] ss:$40 sps:$4 sm:$0xff]  }
 0x684   :  { %15777 = vmatpush1.bf16.msra.mxu0 %v22316_v9  ;;  %v22354_v9 = vld [vmem:[#allocation11 + $0x11d4] ss:$40 sps:$4 sm:$0xff]  }
 0x685   :  { %15778 = vmatprep.subr.bf16.mxu0 %v22321_v15  ;;  %15824 = vmatpush1.bf16.msra.mxu1 %v22397_v17  ;;  %v22352_v15 = vld [vmem:[#allocation11 + $0x11d0] ss:$40 sps:$4 sm:$0xff]   ;;  %v22357_v17 = vld [vmem:[#allocation11 + $0x1184] ss:$40 sps:$4 sm:$0xff]  }
 0x686   :  { %15825 = vmatprep.subr.bf16.mxu1 %v22405_v58 }
 0x688   :  { %15779 = vmatpush1.bf16.msra.mxu0 %v22319_v40 }
 0x689   :  { %15780 = vmatprep.subr.bf16.mxu0 %v22324_v11  ;;  %15826 = vmatpush1.bf16.msra.mxu1 %v22403_v49  ;;  %v22355_v11 = vld [vmem:[#allocation11 + $0x1180] ss:$40 sps:$4 sm:$0xff]   ;;  %v10781_v49 = vmax.f32 %v24073_v18, 0.0  ;;  %v22366_v18 = vld [vmem:[#allocation11 + $0x19c] ss:$40 sps:$4 sm:$0xff]  }
 0x68a   :  { %15827 = vmatprep.subr.bf16.mxu1 %v22411_v29  ;;  %v22360_v29 = vld [vmem:[#allocation11 + $0x23c] ss:$40 sps:$4 sm:$0xff]  }
 0x68c   :  { %15781 = vmatpush1.bf16.msra.mxu0 %v22322_v14 }
 0x68d   :  { %15782 = vmatprep.subr.bf16.mxu0 %v22327_v23  ;;  %15828 = vmatpush1.bf16.msra.mxu1 %v22409_v36  ;;  %v22358_v23 = vld [vmem:[#allocation11 + $0x238] ss:$40 sps:$4 sm:$0xff]   ;;  %v24097_v36 = vpack.c.bf16 %v10781_v49, %v10781_v49  ;;  %v22456_v49 = vld [vmem:[#allocation11 + $0xbec] ss:$40 sps:$4 sm:$0xff]  }
 0x68e   :  { %15829 = vmatprep.subr.bf16.mxu1 %v22417_v19  ;;  %v22363_v19 = vld [vmem:[#allocation11 + $0x1ec] ss:$40 sps:$4 sm:$0xff]  }
 0x690   :  { %15783 = vmatpush1.bf16.msra.mxu0 %v22325_v32 }
 0x691   :  { %15784 = vmatprep.subr.bf16.mxu0 %v22330_v50  ;;  %15830 = vmatpush2.bf16.msra.mxu1 %v22415_v26  ;;  %v22361_v26 = vld [vmem:[#allocation11 + $0x1e8] ss:$40 sps:$4 sm:$0xff]  }
 0x692   :  { %15831 = vmatprep.subr.bf16.mxu1 %v22423_v47 }
 0x694   :  { %15785 = vmatpush1.bf16.msra.mxu0 %v22328_v21 }
 0x695   :  { %15786 = vmatprep.subr.bf16.mxu0 %v22333_v30  ;;  %15832 = vmatpush2.bf16.msra.mxu1 %v22421_v20 }
 0x696   :  { %15833 = vmatprep.subr.bf16.mxu1 %v22429_v35  ;;  %v22364_v35 = vld [vmem:[#allocation11 + $0x198] ss:$40 sps:$4 sm:$0xff]  }
 0x698   :  { %15787 = vmatpush1.bf16.msra.mxu0 %v22331_v6 }
 0x699   :  { %15788 = vmatprep.subr.bf16.mxu0 %v22336_v63  ;;  %15834 = vmatpush2.bf16.msra.mxu1 %v22427_v52  ;;  %v22372_v52 = vld [vmem:[#allocation11 + $0x14c] ss:$40 sps:$4 sm:$0xff]  }
 0x69a   :  { %15835 = vmatprep.subr.bf16.mxu1 %v22435_v34  ;;  %v22378_v34 = vld [vmem:[#allocation11 + $0xfc] ss:$40 sps:$4 sm:$0xff]  }
 0x69c   :  { %15789 = vmatpush2.bf16.msra.mxu0 %v22334_v4  ;;  %v22376_v4 = vld [vmem:[#allocation11 + $0xf8] ss:$40 sps:$4 sm:$0xff]  }
 0x69d   :  { %15790 = vmatprep.subr.bf16.mxu0 %v22339_v0  ;;  %15836 = vmatpush2.bf16.msra.mxu1 %v22433_v39  ;;  %v22384_v0 = vld [vmem:[#allocation11 + $0xac] ss:$40 sps:$4 sm:$0xff]   ;;  %v22390_v39 = vld [vmem:[#allocation11 + $0x5c] ss:$40 sps:$4 sm:$0xff]  }
 0x69e   :  { %15837 = vmatprep.subr.bf16.mxu1 %v22441_v53  ;;  %v22388_v53 = vld [vmem:[#allocation11 + $0x58] ss:$40 sps:$4 sm:$0xff]  }
 0x6a0   :  { %15791 = vmatpush2.bf16.msra.mxu0 %v22337_v61  ;;  %v22396_v61 = vld [vmem:[#allocation11 + $0xc] ss:$40 sps:$4 sm:$0xff]  }
 0x6a1   :  { %15792 = vmatprep.subr.bf16.mxu0 %v22342_v42  ;;  %15838 = vmatpush2.bf16.msra.mxu1 %v22439_v43  ;;  %v22394_v42 = vld [vmem:[#allocation11 + $0x8] ss:$40 sps:$4 sm:$0xff]   ;;  %v22402_v43 = vld [vmem:[#allocation11 + $0x4bc] ss:$40 sps:$4 sm:$0xff]  }
 0x6a2   :  { %15839 = vmatprep.subr.bf16.mxu1 %v22447_v62  ;;  %v22400_v62 = vld [vmem:[#allocation11 + $0x4b8] ss:$40 sps:$4 sm:$0xff]  }
 0x6a4   :  { %15793 = vmatpush2.bf16.msra.mxu0 %v22340_v31  ;;  %v22408_v31 = vld [vmem:[#allocation11 + $0x46c] ss:$40 sps:$4 sm:$0xff]  }
 0x6a5   :  { %15794 = vmatprep.subr.bf16.mxu0 %v22345_v33  ;;  %15840 = vmatpush2.bf16.msra.mxu1 %v22445_v60  ;;  %v22406_v33 = vld [vmem:[#allocation11 + $0x468] ss:$40 sps:$4 sm:$0xff]   ;;  %v22414_v60 = vld [vmem:[#allocation11 + $0x41c] ss:$40 sps:$4 sm:$0xff]  }
 0x6a6   :  { %15841 = vmatprep.subr.bf16.mxu1 %v22453_v51  ;;  %v22412_v51 = vld [vmem:[#allocation11 + $0x418] ss:$40 sps:$4 sm:$0xff]  }
 0x6a8   :  { %15795 = vmatpush2.bf16.msra.mxu0 %v22343_v57  ;;  %v22420_v57 = vld [vmem:[#allocation11 + $0x3cc] ss:$40 sps:$4 sm:$0xff]  }
 0x6a9   :  { %15796 = vmatprep.subr.bf16.mxu0 %v22348_v28  ;;  %15842 = vmatpush2.bf16.msra.mxu1 %v22451_v8  ;;  %v22418_v28 = vld [vmem:[#allocation11 + $0x3c8] ss:$40 sps:$4 sm:$0xff]   ;;  %v22426_v8 = vld [vmem:[#allocation11 + $0x37c] ss:$40 sps:$4 sm:$0xff]  }
 0x6aa   :  { %15843 = vmatprep.subr.bf16.mxu1 %v22459_v37  ;;  %v22424_v37 = vld [vmem:[#allocation11 + $0x378] ss:$40 sps:$4 sm:$0xff]  }
 0x6ac   :  { %15797 = vmatpush2.bf16.msra.mxu0 %v22346_v22  ;;  %v22432_v22 = vld [vmem:[#allocation11 + $0x32c] ss:$40 sps:$4 sm:$0xff]  }
 0x6ad   :  { %15798 = vmatprep.subr.bf16.mxu0 %v22351_v55  ;;  %15844 = vmatpush2.bf16.msra.mxu1 %v22457_v27  ;;  %v22430_v55 = vld [vmem:[#allocation11 + $0x328] ss:$40 sps:$4 sm:$0xff]   ;;  %v22438_v27 = vld [vmem:[#allocation11 + $0x2dc] ss:$40 sps:$4 sm:$0xff]  }
 0x6ae   :  { %15895 = vmatprep.subr.bf16.mxu1 %v22465_v12 }
 0x6b0   :  { %v10727_v1 = vpop.f32.mrf.mxu1  ;;  %15799 = vmatpush2.bf16.msra.mxu0 %v22349_v2  ;;  %v22436_v2 = vld [vmem:[#allocation11 + $0x2d8] ss:$40 sps:$4 sm:$0xff]  }
 0x6b1   :  { %15800 = vmatprep.subr.bf16.mxu0 %v22354_v9  ;;  %v22444_v9 = vld [vmem:[#allocation11 + $0x28c] ss:$40 sps:$4 sm:$0xff]  }
 0x6b2   :  { %v10729_v58 = vpop.f32.mrf.mxu1 }
 0x6b4   :  { %v10731_v40 = vpop.f32.mrf.mxu1  ;;  %15801 = vmatpush2.bf16.msra.mxu0 %v22352_v15 }
 0x6b5   :  { %15802 = vmatprep.subr.bf16.mxu0 %v22357_v17  ;;  %v22442_v17 = vld [vmem:[#allocation11 + $0x288] ss:$40 sps:$4 sm:$0xff]  }
 0x6b6   :  { %v10732_v14 = vpop.f32.mrf.mxu1 }
 0x6b8   :  { %15803 = vmatpush2.bf16.msra.mxu0 %v22355_v11  ;;  %v22448_v11 = vld [vmem:[#allocation11 + $0xc38] ss:$40 sps:$4 sm:$0xff]  }
 0x6b9   :  { %15854 = vmatprep.subr.bf16.mxu0 %v22360_v29 }
 0x6bb   :  { %v10686_v32 = vpop.f32.mrf.mxu0  ;;  %15805 = vmatmul.mubr.bf16.vlgmr.msra.gmra.mxu0 %v24097_v36 }
 0x6bc   :  { %v10687_v50 = vadd.f32 %v10686_v32, %v24092_v16  ;;  %15855 = vmatpush1.bf16.msra.mxu0 %v22358_v23  ;;  %15886 = vmatprep.mubr.bf16.mxu0 %v24043_v7  ;;  %v22370_v16 = vld [vmem:[#allocation11 + $0x148] ss:$40 sps:$4 sm:$0xff]   ;;  %v22462_v32 = vld [vmem:[#allocation11 + $0xb9c] ss:$40 sps:$4 sm:$0xff]  }
 0x6bd   :  { %v10688_v47 = vpop.f32.mrf.mxu0  ;;  %15856 = vmatprep.subr.bf16.mxu0 %v22363_v19  ;;  %v22454_v23 = vld [vmem:[#allocation11 + $0xbe8] ss:$40 sps:$4 sm:$0xff]  }
 0x6be   :  { %v10689_v21 = vadd.f32 %v10688_v47, %v24094_v5  ;;  %v24103_v30 = vadd.f32 %v10727_v1, %v10687_v50  ;;  %v22382_v5 = vld [vmem:[#allocation11 + $0xa8] ss:$40 sps:$4 sm:$0xff]  }
 0x6bf   :  { %v10690_v20 = vpop.f32.mrf.mxu0 }
 0x6c0   :  { %15857 = vmatpush1.bf16.msra.mxu0 %v22361_v26  ;;  %v24105_v6 = vadd.f32 %v10729_v58, %v10689_v21  ;;  %v22450_v58 = vld [vmem:[#allocation11 + $0xc3c] ss:$40 sps:$4 sm:$0xff]   ;;  %v22460_v21 = vld [vmem:[#allocation11 + $0xb98] ss:$40 sps:$4 sm:$0xff]  }
 0x6c1   :  { %v10691_v63 = vpop.f32.mrf.mxu0  ;;  %15858 = vmatprep.subr.bf16.mxu0 %v22366_v18 }
 0x6c4   :  { %15859 = vmatpush1.bf16.msra.mxu0 %v22364_v35  ;;  %v22468_v35 = vld [vmem:[#allocation11 + $0xb4c] ss:$40 sps:$4 sm:$0xff]  }
 0x6c5   :  { %15860 = vmatprep.subr.bf16.mxu0 %v22372_v52 }
 0x6c8   :  { %15861 = vmatpush1.bf16.msra.mxu0 %v22370_v16  ;;  %v22471_v16 = vld [vmem:[#allocation11 + $0x6ec] ss:$40 sps:$4 sm:$0xff]  }
 0x6c9   :  { %15862 = vmatprep.subr.bf16.mxu0 %v22378_v34  ;;  %v22466_v34 = vld [vmem:[#allocation11 + $0xb48] ss:$40 sps:$4 sm:$0xff]  }
 0x6cc   :  { %15863 = vmatpush1.bf16.msra.mxu0 %v22376_v4  ;;  %v22469_v4 = vld [vmem:[#allocation11 + $0x6e8] ss:$40 sps:$4 sm:$0xff]  }
 0x6cd   :  { %15864 = vmatprep.subr.bf16.mxu0 %v22384_v0  ;;  %v22477_v0 = vld [vmem:[#allocation11 + $0x69c] ss:$40 sps:$4 sm:$0xff]  }
 0x6d0   :  { %15865 = vmatpush1.bf16.msra.mxu0 %v22382_v5  ;;  %v22472_v5 = vld [vmem:[#allocation11 + $0xaf8] ss:$40 sps:$4 sm:$0xff]  }
 0x6d1   :  { %15866 = vmatprep.subr.bf16.mxu0 %v22390_v39  ;;  %v22480_v39 = vld [vmem:[#allocation11 + $0xaac] ss:$40 sps:$4 sm:$0xff]  }
 0x6d4   :  { %15867 = vmatpush1.bf16.msra.mxu0 %v22388_v53  ;;  %v22475_v53 = vld [vmem:[#allocation11 + $0x698] ss:$40 sps:$4 sm:$0xff]  }
 0x6d5   :  { %15868 = vmatprep.subr.bf16.mxu0 %v22396_v61  ;;  %v22483_v61 = vld [vmem:[#allocation11 + $0x64c] ss:$40 sps:$4 sm:$0xff]  }
 0x6d8   :  { %15869 = vmatpush1.bf16.msra.mxu0 %v22394_v42  ;;  %v22478_v42 = vld [vmem:[#allocation11 + $0xaa8] ss:$40 sps:$4 sm:$0xff]  }
 0x6d9   :  { %15870 = vmatprep.subr.bf16.mxu0 %v22402_v43  ;;  %v22486_v43 = vld [vmem:[#allocation11 + $0xa5c] ss:$40 sps:$4 sm:$0xff]  }
 0x6dc   :  { %15871 = vmatpush2.bf16.msra.mxu0 %v22400_v62  ;;  %v22481_v62 = vld [vmem:[#allocation11 + $0x648] ss:$40 sps:$4 sm:$0xff]  }
 0x6dd   :  { %15872 = vmatprep.subr.bf16.mxu0 %v22408_v31  ;;  %v22489_v31 = vld [vmem:[#allocation11 + $0x5fc] ss:$40 sps:$4 sm:$0xff]  }
 0x6e0   :  { %15873 = vmatpush2.bf16.msra.mxu0 %v22406_v33  ;;  %v22484_v33 = vld [vmem:[#allocation11 + $0xa58] ss:$40 sps:$4 sm:$0xff]  }
 0x6e1   :  { %15874 = vmatprep.subr.bf16.mxu0 %v22414_v60  ;;  %v22492_v60 = vld [vmem:[#allocation11 + $0xa0c] ss:$40 sps:$4 sm:$0xff]  }
 0x6e4   :  { %15875 = vmatpush2.bf16.msra.mxu0 %v22412_v51  ;;  %v22487_v51 = vld [vmem:[#allocation11 + $0x5f8] ss:$40 sps:$4 sm:$0xff]  }
 0x6e5   :  { %15876 = vmatprep.subr.bf16.mxu0 %v22420_v57  ;;  %v22495_v57 = vld [vmem:[#allocation11 + $0x5ac] ss:$40 sps:$4 sm:$0xff]  }
 0x6e8   :  { %15877 = vmatpush2.bf16.msra.mxu0 %v22418_v28  ;;  %v22490_v28 = vld [vmem:[#allocation11 + $0xa08] ss:$40 sps:$4 sm:$0xff]  }
 0x6e9   :  { %15878 = vmatprep.subr.bf16.mxu0 %v22426_v8  ;;  %v22498_v8 = vld [vmem:[#allocation11 + $0xebc] ss:$40 sps:$4 sm:$0xff]  }
 0x6ec   :  { %15879 = vmatpush2.bf16.msra.mxu0 %v22424_v37  ;;  %v22493_v37 = vld [vmem:[#allocation11 + $0x5a8] ss:$40 sps:$4 sm:$0xff]  }
 0x6ed   :  { %15880 = vmatprep.subr.bf16.mxu0 %v22432_v22  ;;  %v22501_v22 = vld [vmem:[#allocation11 + $0x55c] ss:$40 sps:$4 sm:$0xff]  }
 0x6f0   :  { %v24107_v12 = vpop.f32.mrf.mxu1  ;;  %15881 = vmatpush2.bf16.msra.mxu0 %v22430_v55  ;;  %v22496_v55 = vld [vmem:[#allocation11 + $0xeb8] ss:$40 sps:$4 sm:$0xff]  }
 0x6f1   :  { %15882 = vmatprep.subr.bf16.mxu0 %v22438_v27  ;;  %v22504_v27 = vld [vmem:[#allocation11 + $0xe6c] ss:$40 sps:$4 sm:$0xff]  }
 0x6f2   :  { %v24109_v1 = vpop.f32.mrf.mxu1 }
 0x6f4   :  { %v15687_v15 = vpop.f32.mrf.mxu1  ;;  %15883 = vmatpush2.bf16.msra.mxu0 %v22436_v2  ;;  %v22499_v2 = vld [vmem:[#allocation11 + $0x558] ss:$40 sps:$4 sm:$0xff]  }
 0x6f5   :  { %15884 = vmatprep.subr.bf16.mxu0 %v22444_v9  ;;  %v22507_v9 = vld [vmem:[#allocation11 + $0x50c] ss:$40 sps:$4 sm:$0xff]   ;;  %v22502_v15 = vld [vmem:[#allocation11 + $0xe68] ss:$40 sps:$4 sm:$0xff]  }
 0x6f6   :  { %v15688_v40 = vpop.f32.mrf.mxu1 }
 0x6f7   :  { %v22513_v40 = vld [vmem:[#allocation11 + $0x9bc] ss:$40 sps:$4 sm:$0xff]  }
 0x6f8   :  { %15885 = vmatpush2.bf16.msra.mxu0 %v22442_v17  ;;  %v22510_v17 = vld [vmem:[#allocation11 + $0xe1c] ss:$40 sps:$4 sm:$0xff]  }
 0x6f9   :  { %15936 = vmatprep.subr.bf16.mxu0 %v22450_v58  ;;  %v22505_v58 = vld [vmem:[#allocation11 + $0x508] ss:$40 sps:$4 sm:$0xff]  }
 0x6fb   :  { %v10768_v29 = vpop.f32.mrf.mxu0  ;;  %15887 = vmatmul.mubr.bf16.vlgmr.msra.gmra.mxu0 %v24061_v46 }
 0x6fc   :  { %v10769_v14 = vadd.f32 %v10768_v29, %v24103_v30  ;;  %15937 = vmatpush1.bf16.msra.mxu0 %v22448_v11  ;;  %15968 = vmatprep.mubr.bf16.mxu0 %v24063_v13  ;;  %v22463_v30 = vld [vmem:[#allocation11 + $0x738] ss:$40 sps:$4 sm:$0xff]  }
 0x6fd   :  { %v10770_v19 = vpop.f32.mrf.mxu0  ;;  %15938 = vmatprep.subr.bf16.mxu0 %v22456_v49  ;;  %v22508_v11 = vld [vmem:[#allocation11 + $0xe18] ss:$40 sps:$4 sm:$0xff]   ;;  %v22516_v49 = vld [vmem:[#allocation11 + $0xdcc] ss:$40 sps:$4 sm:$0xff]  }
 0x6fe   :  { %v10771_v50 = vadd.f32 %v10770_v19, %v24105_v6  ;;  %v10783_v26 = vmax.f32 %v10769_v14, 0.0  ;;  %v22474_v6 = vld [vmem:[#allocation11 + $0xafc] ss:$40 sps:$4 sm:$0xff]   ;;  %v22511_v29 = vld [vmem:[#allocation11 + $0x9b8] ss:$40 sps:$4 sm:$0xff]  }
 0x6ff   :  { %v10772_v47 = vpop.f32.mrf.mxu0  ;;  %v22519_v14 = vld [vmem:[#allocation11 + $0x96c] ss:$40 sps:$4 sm:$0xff]   ;;  %v22522_v19 = vld [vmem:[#allocation11 + $0xd7c] ss:$40 sps:$4 sm:$0xff]  }
 0x700   :  { %v10784_v18 = vmax.f32 %v10771_v50, 0.0  ;;  %15939 = vmatpush1.bf16.msra.mxu0 %v22454_v23  ;;  %v24117_v52 = vpack.c.bf16 %v10783_v26, %v10783_v26  ;;  %v22514_v23 = vld [vmem:[#allocation11 + $0xdc8] ss:$40 sps:$4 sm:$0xff]   ;;  %v22525_v50 = vld [vmem:[#allocation11 + $0x91c] ss:$40 sps:$4 sm:$0xff]  }
 0x701   :  { %v10773_v20 = vpop.f32.mrf.mxu0  ;;  %15940 = vmatprep.subr.bf16.mxu0 %v22462_v32  ;;  %v22517_v32 = vld [vmem:[#allocation11 + $0x968] ss:$40 sps:$4 sm:$0xff]   ;;  %v22520_v26 = vld [vmem:[#allocation11 + $0xd78] ss:$40 sps:$4 sm:$0xff]   ;;  %v22528_v47 = vld [vmem:[#allocation11 + $0xd2c] ss:$40 sps:$4 sm:$0xff]  }
 0x702   :  { %v24115_v63 = vpack.c.bf16 %v10784_v18, %v10784_v18  ;;  %v22523_v18 = vld [vmem:[#allocation11 + $0x918] ss:$40 sps:$4 sm:$0xff]   ;;  %v22526_v20 = vld [vmem:[#allocation11 + $0xd28] ss:$40 sps:$4 sm:$0xff]  }
 0x704   :  { %15845 = vmatprep.mubr.bf16.mxu1 %v24115_v63  ;;  %15941 = vmatpush1.bf16.msra.mxu0 %v22460_v21  ;;  %v22531_v21 = vld [vmem:[#allocation11 + $0x8cc] ss:$40 sps:$4 sm:$0xff]  }
 0x705   :  { %15846 = vmatmul.mubr.bf16.vlgmr.msra.gmra.mxu1 %v24117_v52  ;;  %15942 = vmatprep.subr.bf16.mxu0 %v22468_v35  ;;  %v22534_v35 = vld [vmem:[#allocation11 + $0xcdc] ss:$40 sps:$4 sm:$0xff]  }
 0x706   :  { %15896 = vmatpush1.bf16.msra.mxu1 %v22463_v30  ;;  %15927 = vmatprep.mubr.bf16.mxu1 %v24068_v10  ;;  %v22529_v30 = vld [vmem:[#allocation11 + $0x8c8] ss:$40 sps:$4 sm:$0xff]  }
 0x707   :  { %15897 = vmatprep.subr.bf16.mxu1 %v22471_v16  ;;  %v22537_v16 = vld [vmem:[#allocation11 + $0x87c] ss:$40 sps:$4 sm:$0xff]  }
 0x708   :  { %15943 = vmatpush1.bf16.msra.mxu0 %v22466_v34 }
 0x709   :  { %15944 = vmatprep.subr.bf16.mxu0 %v22474_v6  ;;  %v22532_v6 = vld [vmem:[#allocation11 + $0xcd8] ss:$40 sps:$4 sm:$0xff]  }
 0x70a   :  { %15898 = vmatpush1.bf16.msra.mxu1 %v22469_v4  ;;  %v22540_v4 = vld [vmem:[#allocation11 + $0xc8c] ss:$40 sps:$4 sm:$0xff]  }
 0x70b   :  { %15899 = vmatprep.subr.bf16.mxu1 %v22477_v0 }
 0x70c   :  { %15945 = vmatpush1.bf16.msra.mxu0 %v22472_v5  ;;  %v22535_v5 = vld [vmem:[#allocation11 + $0x878] ss:$40 sps:$4 sm:$0xff]  }
 0x70d   :  { %15946 = vmatprep.subr.bf16.mxu0 %v22480_v39  ;;  %v24122_v39 = vld [vmem:[#allocation13] sm:$0xff] }
 0x70e   :  { %15900 = vmatpush1.bf16.msra.mxu1 %v22475_v53  ;;  %v22543_v53 = vld [vmem:[#allocation11 + $0x82c] ss:$40 sps:$4 sm:$0xff]  }
 0x70f   :  { %15901 = vmatprep.subr.bf16.mxu1 %v22483_v61 }
 0x710   :  { %15947 = vmatpush1.bf16.msra.mxu0 %v22478_v42  ;;  %v22538_v42 = vld [vmem:[#allocation11 + $0xc88] ss:$40 sps:$4 sm:$0xff]  }
 0x711   :  { %15948 = vmatprep.subr.bf16.mxu0 %v22486_v43  ;;  %v22546_v43 = vld [vmem:[#allocation11 + $0x163c] ss:$40 sps:$4 sm:$0xff]  }
 0x712   :  { %15902 = vmatpush1.bf16.msra.mxu1 %v22481_v62  ;;  %v11602_v62 = vrot.slane %v24122_v39, %v23788_v41 }
 0x713   :  { %15903 = vmatprep.subr.bf16.mxu1 %v22489_v31 }
 0x714   :  { %15949 = vmatpush1.bf16.msra.mxu0 %v22484_v33  ;;  %v22541_v33 = vld [vmem:[#allocation11 + $0x828] ss:$40 sps:$4 sm:$0xff]  }
 0x715   :  { %15950 = vmatprep.subr.bf16.mxu0 %v22492_v60  ;;  %v22549_v60 = vld [vmem:[#allocation11 + $0x7dc] ss:$40 sps:$4 sm:$0xff]  }
 0x716   :  { %15904 = vmatpush1.bf16.msra.mxu1 %v22487_v51  ;;  %v11606_v51 = vrot.slane %v24122_v39, %v23791_v44 }
 0x717   :  { %15905 = vmatprep.subr.bf16.mxu1 %v22495_v57  ;;  %v22544_v57 = vld [vmem:[#allocation11 + $0x1638] ss:$40 sps:$4 sm:$0xff]  }
 0x718   :  { %15951 = vmatpush1.bf16.msra.mxu0 %v22490_v28  ;;  %v22552_v28 = vld [vmem:[#allocation11 + $0x15ec] ss:$40 sps:$4 sm:$0xff]  }
 0x719   :  { %15952 = vmatprep.subr.bf16.mxu0 %v22498_v8  ;;  %v15684_v8 = vadd.f32 %v24107_v12, %v11602_v62  ;;  %v22553_v12 = vld [vmem:[#allocation11 + $0x788] ss:$40 sps:$4 sm:$0xff]  }
 0x71a   :  { %15906 = vmatpush1.bf16.msra.mxu1 %v22493_v37  ;;  %v22547_v37 = vld [vmem:[#allocation11 + $0x7d8] ss:$40 sps:$4 sm:$0xff]   ;;  %v22589_v62 = vld [vmem:[#allocation11 + $0xfa8] ss:$40 sps:$4 sm:$0xff]  }
 0x71b   :  { %15907 = vmatprep.subr.bf16.mxu1 %v22501_v22 }
 0x71c   :  { %15953 = vmatpush2.bf16.msra.mxu0 %v22496_v55  ;;  %v22555_v55 = vld [vmem:[#allocation11 + $0x78c] ss:$40 sps:$4 sm:$0xff]  }
 0x71d   :  { %15954 = vmatprep.subr.bf16.mxu0 %v22504_v27  ;;  %v15686_v27 = vadd.f32 %v24109_v1, %v11606_v51  ;;  %v22595_v51 = vld [vmem:[#allocation11 + $0xf58] ss:$40 sps:$4 sm:$0xff]  }
 0x71e   :  { %15908 = vmatpush1.bf16.msra.mxu1 %v22499_v2 }
 0x71f   :  { %15909 = vmatprep.subr.bf16.mxu1 %v22507_v9  ;;  %v22550_v9 = vld [vmem:[#allocation11 + $0x15e8] ss:$40 sps:$4 sm:$0xff]  }
 0x720   :  { %15955 = vmatpush2.bf16.msra.mxu0 %v22502_v15 }
 0x721   :  { %15956 = vmatprep.subr.bf16.mxu0 %v22510_v17  ;;  %v22558_v17 = vld [vmem:[#allocation11 + $0x159c] ss:$40 sps:$4 sm:$0xff]  }
 0x722   :  { %15910 = vmatpush1.bf16.msra.mxu1 %v22505_v58 }
 0x723   :  { %15911 = vmatprep.subr.bf16.mxu1 %v22513_v40 }
 0x724   :  { %15957 = vmatpush2.bf16.msra.mxu0 %v22508_v11 }
 0x725   :  { %15958 = vmatprep.subr.bf16.mxu0 %v22516_v49  ;;  %v22561_v49 = vld [vmem:[#allocation11 + $0x113c] ss:$40 sps:$4 sm:$0xff]  }
 0x726   :  { %15912 = vmatpush2.bf16.msra.mxu1 %v22511_v29  ;;  %v22556_v29 = vld [vmem:[#allocation11 + $0x1598] ss:$40 sps:$4 sm:$0xff]  }
 0x727   :  { %15913 = vmatprep.subr.bf16.mxu1 %v22519_v14 }
 0x728   :  { %15959 = vmatpush2.bf16.msra.mxu0 %v22514_v23  ;;  %v22564_v23 = vld [vmem:[#allocation11 + $0x154c] ss:$40 sps:$4 sm:$0xff]  }
 0x729   :  { %15960 = vmatprep.subr.bf16.mxu0 %v22522_v19  ;;  %v22559_v19 = vld [vmem:[#allocation11 + $0x1138] ss:$40 sps:$4 sm:$0xff]  }
 0x72a   :  { %15914 = vmatpush2.bf16.msra.mxu1 %v22517_v32  ;;  %v22567_v32 = vld [vmem:[#allocation11 + $0x10ec] ss:$40 sps:$4 sm:$0xff]  }
 0x72b   :  { %15915 = vmatprep.subr.bf16.mxu1 %v22525_v50  ;;  %v22562_v50 = vld [vmem:[#allocation11 + $0x1548] ss:$40 sps:$4 sm:$0xff]  }
 0x72c   :  { %15961 = vmatpush2.bf16.msra.mxu0 %v22520_v26  ;;  %v22570_v26 = vld [vmem:[#allocation11 + $0x14fc] ss:$40 sps:$4 sm:$0xff]  }
 0x72d   :  { %15962 = vmatprep.subr.bf16.mxu0 %v22528_v47  ;;  %v22565_v47 = vld [vmem:[#allocation11 + $0x10e8] ss:$40 sps:$4 sm:$0xff]  }
 0x72e   :  { %15916 = vmatpush2.bf16.msra.mxu1 %v22523_v18  ;;  %v22573_v18 = vld [vmem:[#allocation11 + $0x109c] ss:$40 sps:$4 sm:$0xff]  }
 0x72f   :  { %15917 = vmatprep.subr.bf16.mxu1 %v22531_v21  ;;  %v22568_v21 = vld [vmem:[#allocation11 + $0x14f8] ss:$40 sps:$4 sm:$0xff]  }
 0x730   :  { %v15765_v34 = vpop.f32.mrf.mxu1  ;;  %15963 = vmatpush2.bf16.msra.mxu0 %v22526_v20  ;;  %v22576_v20 = vld [vmem:[#allocation11 + $0x14ac] ss:$40 sps:$4 sm:$0xff]  }
 0x731   :  { %15964 = vmatprep.subr.bf16.mxu0 %v22534_v35  ;;  %v22571_v35 = vld [vmem:[#allocation11 + $0x1098] ss:$40 sps:$4 sm:$0xff]  }
 0x732   :  { %15918 = vmatpush2.bf16.msra.mxu1 %v22529_v30  ;;  %v15767_v0 = vpop.f32.mrf.mxu1  ;;  %v22579_v30 = vld [vmem:[#allocation11 + $0x104c] ss:$40 sps:$4 sm:$0xff]  }
 0x733   :  { %15919 = vmatprep.subr.bf16.mxu1 %v22537_v16  ;;  %v22574_v16 = vld [vmem:[#allocation11 + $0x14a8] ss:$40 sps:$4 sm:$0xff]  }
 0x734   :  { %v15769_v61 = vpop.f32.mrf.mxu1  ;;  %15965 = vmatpush2.bf16.msra.mxu0 %v22532_v6  ;;  %v22577_v6 = vld [vmem:[#allocation11 + $0x1048] ss:$40 sps:$4 sm:$0xff]  }
 0x735   :  { %15966 = vmatprep.subr.bf16.mxu0 %v22540_v4  ;;  %v22585_v4 = vld [vmem:[#allocation11 + $0xffc] ss:$40 sps:$4 sm:$0xff]   ;;  %v22591_v61 = vld [vmem:[#allocation11 + $0xfac] ss:$40 sps:$4 sm:$0xff]  }
 0x736   :  { %15920 = vmatpush2.bf16.msra.mxu1 %v22535_v5  ;;  %v15770_v31 = vpop.f32.mrf.mxu1  ;;  %v22588_v5 = vld [vmem:[#allocation11 + $0x140c] ss:$40 sps:$4 sm:$0xff]  }
 0x737   :  { %15921 = vmatprep.subr.bf16.mxu1 %v22543_v53  ;;  %v22583_v53 = vld [vmem:[#allocation11 + $0xff8] ss:$40 sps:$4 sm:$0xff]   ;;  %v22597_v31 = vld [vmem:[#allocation11 + $0xf5c] ss:$40 sps:$4 sm:$0xff]  }
 0x738   :  { %15967 = vmatpush2.bf16.msra.mxu0 %v22538_v42  ;;  %v22586_v42 = vld [vmem:[#allocation11 + $0x1408] ss:$40 sps:$4 sm:$0xff]  }
 0x739   :  { %16018 = vmatprep.subr.bf16.mxu0 %v22546_v43  ;;  %v22594_v43 = vld [vmem:[#allocation11 + $0x18bc] ss:$40 sps:$4 sm:$0xff]  }
 0x73a   :  { %15922 = vmatpush2.bf16.msra.mxu1 %v22541_v33  ;;  %v22592_v33 = vld [vmem:[#allocation11 + $0x18b8] ss:$40 sps:$4 sm:$0xff]  }
 0x73b   :  { %v15724_v22 = vpop.f32.mrf.mxu0  ;;  %15969 = vmatmul.mubr.bf16.vlgmr.msra.gmra.mxu0 %v24079_v25  ;;  %15923 = vmatprep.subr.bf16.mxu1 %v22549_v60  ;;  %v22600_v60 = vld [vmem:[#allocation11 + $0x186c] ss:$40 sps:$4 sm:$0xff]  }
 0x73c   :  { %v15725_v2 = vadd.f32 %v15724_v22, %v15684_v8  ;;  %16019 = vmatpush1.bf16.msra.mxu0 %v22544_v57  ;;  %16050 = vmatprep.mubr.bf16.mxu0 %v24115_v63  ;;  %v22603_v57 = vld [vmem:[#allocation11 + $0xf0c] ss:$40 sps:$4 sm:$0xff]   ;;  %v22606_v8 = vld [vmem:[#allocation11 + $0x181c] ss:$40 sps:$4 sm:$0xff]  }
 0x73d   :  { %v15726_v15 = vpop.f32.mrf.mxu0  ;;  %16020 = vmatprep.subr.bf16.mxu0 %v22552_v28  ;;  %v22598_v28 = vld [vmem:[#allocation11 + $0x1868] ss:$40 sps:$4 sm:$0xff]   ;;  %v22609_v22 = vld [vmem:[#allocation11 + $0x13bc] ss:$40 sps:$4 sm:$0xff]  }
 0x73e   :  { %v15727_v58 = vadd.f32 %v15726_v15, %v15686_v27  ;;  %15924 = vmatpush2.bf16.msra.mxu1 %v22547_v37  ;;  %v24132_v40 = vadd.f32 %v15765_v34, %v15725_v2  ;;  %v22582_v34 = vld [vmem:[#allocation11 + $0x145c] ss:$40 sps:$4 sm:$0xff]   ;;  %v22601_v37 = vld [vmem:[#allocation11 + $0xf08] ss:$40 sps:$4 sm:$0xff]   ;;  %v22612_v27 = vld [vmem:[#allocation11 + $0x17cc] ss:$40 sps:$4 sm:$0xff]  }
 0x73f   :  { %v15728_v11 = vpop.f32.mrf.mxu0  ;;  %15925 = vmatprep.subr.bf16.mxu1 %v22555_v55  ;;  %v22604_v55 = vld [vmem:[#allocation11 + $0x1818] ss:$40 sps:$4 sm:$0xff]   ;;  %v22610_v15 = vld [vmem:[#allocation11 + $0x17c8] ss:$40 sps:$4 sm:$0xff]  }
 0x740   :  { %16021 = vmatpush1.bf16.msra.mxu0 %v22550_v9  ;;  %v24134_v14 = vadd.f32 %v15767_v0, %v15727_v58  ;;  %v22580_v0 = vld [vmem:[#allocation11 + $0x1458] ss:$40 sps:$4 sm:$0xff]   ;;  %v22615_v9 = vld [vmem:[#allocation11 + $0x136c] ss:$40 sps:$4 sm:$0xff]   ;;  %v22613_v58 = vld [vmem:[#allocation11 + $0x1368] ss:$40 sps:$4 sm:$0xff]  }
 0x741   :  { %v15729_v1 = vpop.f32.mrf.mxu0  ;;  %16022 = vmatprep.subr.bf16.mxu0 %v22558_v17  ;;  %v22607_v2 = vld [vmem:[#allocation11 + $0x13b8] ss:$40 sps:$4 sm:$0xff]   ;;  %v22618_v17 = vld [vmem:[#allocation11 + $0x177c] ss:$40 sps:$4 sm:$0xff]  }
 0x742   :  { %15926 = vmatpush2.bf16.msra.mxu1 %v22553_v12  ;;  %v22621_v12 = vld [vmem:[#allocation11 + $0x131c] ss:$40 sps:$4 sm:$0xff]   ;;  %v22616_v11 = vld [vmem:[#allocation11 + $0x1778] ss:$40 sps:$4 sm:$0xff]   ;;  %v22627_v1 = vld [vmem:[#allocation11 + $0x12cc] ss:$40 sps:$4 sm:$0xff]  }
 0x743   :  { %15977 = vmatprep.subr.bf16.mxu1 %v22561_v49  ;;  %v22624_v49 = vld [vmem:[#allocation11 + $0x172c] ss:$40 sps:$4 sm:$0xff]  }
 0x744   :  { %16023 = vmatpush1.bf16.msra.mxu0 %v22556_v29  ;;  %v22619_v29 = vld [vmem:[#allocation11 + $0x1318] ss:$40 sps:$4 sm:$0xff]  }
 0x745   :  { %15928 = vmatmul.mubr.bf16.vlgmr.msra.gmra.mxu1 %v24085_v48  ;;  %16024 = vmatprep.subr.bf16.mxu0 %v22564_v23  ;;  %v22622_v23 = vld [vmem:[#allocation11 + $0x1728] ss:$40 sps:$4 sm:$0xff]  }
 0x746   :  { %15978 = vmatpush1.bf16.msra.mxu1 %v22559_v19  ;;  %16009 = vmatprep.mubr.bf16.mxu1 %v24087_v56  ;;  %v22630_v19 = vld [vmem:[#allocation11 + $0x16dc] ss:$40 sps:$4 sm:$0xff]  }
 0x747   :  { %15979 = vmatprep.subr.bf16.mxu1 %v22567_v32  ;;  %v22625_v32 = vld [vmem:[#allocation11 + $0x12c8] ss:$40 sps:$4 sm:$0xff]  }
 0x748   :  { %16025 = vmatpush1.bf16.msra.mxu0 %v22562_v50  ;;  %v22633_v50 = vld [vmem:[#allocation11 + $0x127c] ss:$40 sps:$4 sm:$0xff]  }
 0x749   :  { %16026 = vmatprep.subr.bf16.mxu0 %v22570_v26  ;;  %v22628_v26 = vld [vmem:[#allocation11 + $0x16d8] ss:$40 sps:$4 sm:$0xff]  }
 0x74a   :  { %15980 = vmatpush1.bf16.msra.mxu1 %v22565_v47  ;;  %v22636_v47 = vld [vmem:[#allocation11 + $0x168c] ss:$40 sps:$4 sm:$0xff]  }
 0x74b   :  { %15981 = vmatprep.subr.bf16.mxu1 %v22573_v18  ;;  %v22631_v18 = vld [vmem:[#allocation11 + $0x1278] ss:$40 sps:$4 sm:$0xff]  }
 0x74c   :  { %16027 = vmatpush1.bf16.msra.mxu0 %v22568_v21  ;;  %v22639_v21 = vld [vmem:[#allocation11 + $0x122c] ss:$40 sps:$4 sm:$0xff]  }
 0x74d   :  { %16028 = vmatprep.subr.bf16.mxu0 %v22576_v20  ;;  %v22634_v20 = vld [vmem:[#allocation11 + $0x1688] ss:$40 sps:$4 sm:$0xff]  }
 0x74e   :  { %15982 = vmatpush1.bf16.msra.mxu1 %v22571_v35  ;;  %v22642_v35 = vld [vmem:[#allocation11 + $0x744] ss:$40 sps:$4 sm:$0xff]  }
 0x74f   :  { %15983 = vmatprep.subr.bf16.mxu1 %v22579_v30  ;;  %v22637_v30 = vld [vmem:[#allocation11 + $0x1228] ss:$40 sps:$4 sm:$0xff]  }
 0x750   :  { %16029 = vmatpush1.bf16.msra.mxu0 %v22574_v16  ;;  %v22645_v16 = vld [vmem:[#allocation11 + $0x11dc] ss:$40 sps:$4 sm:$0xff]  }
 0x751   :  { %16030 = vmatprep.subr.bf16.mxu0 %v22582_v34  ;;  %v22640_v34 = vld [vmem:[#allocation11 + $0x740] ss:$40 sps:$4 sm:$0xff]  }
 0x752   :  { %15984 = vmatpush1.bf16.msra.mxu1 %v22577_v6  ;;  %v22648_v6 = vld [vmem:[#allocation11 + $0x6f4] ss:$40 sps:$4 sm:$0xff]  }
 0x753   :  { %15985 = vmatprep.subr.bf16.mxu1 %v22585_v4  ;;  %v22643_v4 = vld [vmem:[#allocation11 + $0x11d8] ss:$40 sps:$4 sm:$0xff]  }
 0x754   :  { %16031 = vmatpush1.bf16.msra.mxu0 %v22580_v0 }
 0x755   :  { %16032 = vmatprep.subr.bf16.mxu0 %v22588_v5  ;;  %v22651_v5 = vld [vmem:[#allocation11 + $0x118c] ss:$40 sps:$4 sm:$0xff]  }
 0x756   :  { %15986 = vmatpush1.bf16.msra.mxu1 %v22583_v53 }
 0x757   :  { %15987 = vmatprep.subr.bf16.mxu1 %v22591_v61  ;;  %v22646_v61 = vld [vmem:[#allocation11 + $0x6f0] ss:$40 sps:$4 sm:$0xff]  }
 0x758   :  { %16033 = vmatpush1.bf16.msra.mxu0 %v22586_v42 }
 0x759   :  { %16034 = vmatprep.subr.bf16.mxu0 %v22594_v43  ;;  %v22654_v43 = vld [vmem:[#allocation11 + $0x6a4] ss:$40 sps:$4 sm:$0xff]  }
 0x75a   :  { %15988 = vmatpush1.bf16.msra.mxu1 %v22589_v62 }
 0x75b   :  { %15989 = vmatprep.subr.bf16.mxu1 %v22597_v31  ;;  %v22649_v31 = vld [vmem:[#allocation11 + $0x1188] ss:$40 sps:$4 sm:$0xff]  }
 0x75c   :  { %16035 = vmatpush2.bf16.msra.mxu0 %v22592_v33 }
 0x75d   :  { %16036 = vmatprep.subr.bf16.mxu0 %v22600_v60  ;;  %v22657_v60 = vld [vmem:[#allocation11 + $0x244] ss:$40 sps:$4 sm:$0xff]  }
 0x75e   :  { %15990 = vmatpush1.bf16.msra.mxu1 %v22595_v51  ;;  %v22652_v51 = vld [vmem:[#allocation11 + $0x6a0] ss:$40 sps:$4 sm:$0xff]  }
 0x75f   :  { %15991 = vmatprep.subr.bf16.mxu1 %v22603_v57 }
 0x760   :  { %16037 = vmatpush2.bf16.msra.mxu0 %v22598_v28  ;;  %v22655_v28 = vld [vmem:[#allocation11 + $0x240] ss:$40 sps:$4 sm:$0xff]  }
 0x761   :  { %16038 = vmatprep.subr.bf16.mxu0 %v22606_v8  ;;  %v22663_v8 = vld [vmem:[#allocation11 + $0x1f4] ss:$40 sps:$4 sm:$0xff]  }
 0x762   :  { %15992 = vmatpush1.bf16.msra.mxu1 %v22601_v37  ;;  %v22658_v37 = vld [vmem:[#allocation11 + $0x650] ss:$40 sps:$4 sm:$0xff]  }
 0x763   :  { %15993 = vmatprep.subr.bf16.mxu1 %v22609_v22  ;;  %v22661_v22 = vld [vmem:[#allocation11 + $0x1f0] ss:$40 sps:$4 sm:$0xff]  }
 0x764   :  { %16039 = vmatpush2.bf16.msra.mxu0 %v22604_v55  ;;  %v22669_v55 = vld [vmem:[#allocation11 + $0x1a4] ss:$40 sps:$4 sm:$0xff]  }
 0x765   :  { %16040 = vmatprep.subr.bf16.mxu0 %v22612_v27  ;;  %v22664_v27 = vld [vmem:[#allocation11 + $0x600] ss:$40 sps:$4 sm:$0xff]  }
 0x766   :  { %15994 = vmatpush2.bf16.msra.mxu1 %v22607_v2  ;;  %v22672_v2 = vld [vmem:[#allocation11 + $0x5b4] ss:$40 sps:$4 sm:$0xff]  }
 0x767   :  { %15995 = vmatprep.subr.bf16.mxu1 %v22615_v9  ;;  %v22667_v9 = vld [vmem:[#allocation11 + $0x1a0] ss:$40 sps:$4 sm:$0xff]  }
 0x768   :  { %16041 = vmatpush2.bf16.msra.mxu0 %v22610_v15  ;;  %v22675_v15 = vld [vmem:[#allocation11 + $0x154] ss:$40 sps:$4 sm:$0xff]  }
 0x769   :  { %16042 = vmatprep.subr.bf16.mxu0 %v22618_v17  ;;  %v22670_v17 = vld [vmem:[#allocation11 + $0x5b0] ss:$40 sps:$4 sm:$0xff]  }
 0x76a   :  { %15996 = vmatpush2.bf16.msra.mxu1 %v22613_v58  ;;  %v22678_v58 = vld [vmem:[#allocation11 + $0x564] ss:$40 sps:$4 sm:$0xff]  }
 0x76b   :  { %15997 = vmatprep.subr.bf16.mxu1 %v22621_v12  ;;  %v22673_v12 = vld [vmem:[#allocation11 + $0x150] ss:$40 sps:$4 sm:$0xff]  }
 0x76c   :  { %16043 = vmatpush2.bf16.msra.mxu0 %v22616_v11  ;;  %v22681_v11 = vld [vmem:[#allocation11 + $0x104] ss:$40 sps:$4 sm:$0xff]  }
 0x76d   :  { %16044 = vmatprep.subr.bf16.mxu0 %v22624_v49  ;;  %v22676_v49 = vld [vmem:[#allocation11 + $0x560] ss:$40 sps:$4 sm:$0xff]  }
 0x76e   :  { %15998 = vmatpush2.bf16.msra.mxu1 %v22619_v29  ;;  %v22684_v29 = vld [vmem:[#allocation11 + $0x514] ss:$40 sps:$4 sm:$0xff]  }
 0x76f   :  { %15999 = vmatprep.subr.bf16.mxu1 %v22627_v1  ;;  %v22679_v1 = vld [vmem:[#allocation11 + $0x100] ss:$40 sps:$4 sm:$0xff]  }
 0x770   :  { %16045 = vmatpush2.bf16.msra.mxu0 %v22622_v23  ;;  %v22687_v23 = vld [vmem:[#allocation11 + $0xb4] ss:$40 sps:$4 sm:$0xff]  }
 0x771   :  { %16046 = vmatprep.subr.bf16.mxu0 %v22630_v19  ;;  %v22682_v19 = vld [vmem:[#allocation11 + $0x510] ss:$40 sps:$4 sm:$0xff]  }
 0x772   :  { %16000 = vmatpush2.bf16.msra.mxu1 %v22625_v32  ;;  %v22690_v32 = vld [vmem:[#allocation11 + $0x9c4] ss:$40 sps:$4 sm:$0xff]  }
 0x773   :  { %16001 = vmatprep.subr.bf16.mxu1 %v22633_v50  ;;  %v22685_v50 = vld [vmem:[#allocation11 + $0xb0] ss:$40 sps:$4 sm:$0xff]  }
 0x774   :  { %16047 = vmatpush2.bf16.msra.mxu0 %v22628_v26  ;;  %v22693_v26 = vld [vmem:[#allocation11 + $0x64] ss:$40 sps:$4 sm:$0xff]  }
 0x775   :  { %16048 = vmatprep.subr.bf16.mxu0 %v22636_v47  ;;  %v22688_v47 = vld [vmem:[#allocation11 + $0x9c0] ss:$40 sps:$4 sm:$0xff]  }
 0x776   :  { %16002 = vmatpush2.bf16.msra.mxu1 %v22631_v18  ;;  %v22696_v18 = vld [vmem:[#allocation11 + $0x974] ss:$40 sps:$4 sm:$0xff]  }
 0x777   :  { %16003 = vmatprep.subr.bf16.mxu1 %v22639_v21  ;;  %v22691_v21 = vld [vmem:[#allocation11 + $0x60] ss:$40 sps:$4 sm:$0xff]  }
 0x778   :  { %16049 = vmatpush2.bf16.msra.mxu0 %v22634_v20  ;;  %v22699_v20 = vld [vmem:[#allocation11 + $0x14] ss:$40 sps:$4 sm:$0xff]  }
 0x779   :  { %16100 = vmatprep.subr.bf16.mxu0 %v22642_v35  ;;  %v22694_v35 = vld [vmem:[#allocation11 + $0x970] ss:$40 sps:$4 sm:$0xff]  }
 0x77a   :  { %16004 = vmatpush2.bf16.msra.mxu1 %v22637_v30  ;;  %v22702_v30 = vld [vmem:[#allocation11 + $0x924] ss:$40 sps:$4 sm:$0xff]  }
 0x77b   :  { %v15806_v0 = vpop.f32.mrf.mxu0  ;;  %16051 = vmatmul.mubr.bf16.vlgmr.msra.gmra.mxu0 %v24117_v52  ;;  %16005 = vmatprep.subr.bf16.mxu1 %v22645_v16  ;;  %v22697_v16 = vld [vmem:[#allocation11 + $0x10] ss:$40 sps:$4 sm:$0xff]  }
 0x77c   :  { %v24140_v53 = vadd.f32 %v15806_v0, %v24132_v40  ;;  %16101 = vmatpush1.bf16.msra.mxu0 %v22640_v34  ;;  %16132 = vmatprep.mubr.bf16.mxu0 %v24068_v10  ;;  %v22660_v40 = vld [vmem:[#allocation11 + $0x654] ss:$40 sps:$4 sm:$0xff]   ;;  %v22705_v34 = vld [vmem:[#allocation11 + $0x4c4] ss:$40 sps:$4 sm:$0xff]   ;;  %v22703_v0 = vld [vmem:[#allocation11 + $0x4c0] ss:$40 sps:$4 sm:$0xff]  }
 0x77d   :  { %v15808_v42 = vpop.f32.mrf.mxu0  ;;  %16102 = vmatprep.subr.bf16.mxu0 %v22648_v6  ;;  %v22700_v6 = vld [vmem:[#allocation11 + $0x920] ss:$40 sps:$4 sm:$0xff]  }
 0x77e   :  { %v24144_v62 = vadd.f32 %v15808_v42, %v24134_v14  ;;  %16006 = vmatpush2.bf16.msra.mxu1 %v22643_v4  ;;  %v22666_v14 = vld [vmem:[#allocation11 + $0x604] ss:$40 sps:$4 sm:$0xff]   ;;  %v22708_v4 = vld [vmem:[#allocation11 + $0x8d4] ss:$40 sps:$4 sm:$0xff]  }
 0x77f   :  { %v15810_v33 = vpop.f32.mrf.mxu0  ;;  %16007 = vmatprep.subr.bf16.mxu1 %v22651_v5  ;;  %v22711_v5 = vld [vmem:[#allocation11 + $0x474] ss:$40 sps:$4 sm:$0xff]   ;;  %v22714_v42 = vld [vmem:[#allocation11 + $0x884] ss:$40 sps:$4 sm:$0xff]  }
 0x780   :  { %16103 = vmatpush1.bf16.msra.mxu0 %v22646_v61  ;;  %v22706_v61 = vld [vmem:[#allocation11 + $0x8d0] ss:$40 sps:$4 sm:$0xff]   ;;  %v22712_v33 = vld [vmem:[#allocation11 + $0x880] ss:$40 sps:$4 sm:$0xff]  }
 0x781   :  { %v15811_v57 = vpop.f32.mrf.mxu0  ;;  %16104 = vmatprep.subr.bf16.mxu0 %v22654_v43  ;;  %v22709_v43 = vld [vmem:[#allocation11 + $0x470] ss:$40 sps:$4 sm:$0xff]  }
 0x782   :  { %16008 = vmatpush2.bf16.msra.mxu1 %v22649_v31  ;;  %v22717_v31 = vld [vmem:[#allocation11 + $0x424] ss:$40 sps:$4 sm:$0xff]   ;;  %v22723_v57 = vld [vmem:[#allocation11 + $0x3d4] ss:$40 sps:$4 sm:$0xff]  }
 0x783   :  { %16059 = vmatprep.subr.bf16.mxu1 %v22657_v60  ;;  %v22720_v60 = vld [vmem:[#allocation11 + $0x834] ss:$40 sps:$4 sm:$0xff]  }
 0x784   :  { %16105 = vmatpush1.bf16.msra.mxu0 %v22652_v51  ;;  %v22715_v51 = vld [vmem:[#allocation11 + $0x420] ss:$40 sps:$4 sm:$0xff]  }
 0x785   :  { %16010 = vmatmul.mubr.bf16.vlgmr.msra.gmra.mxu1 %v24097_v36  ;;  %16106 = vmatprep.subr.bf16.mxu0 %v22660_v40  ;;  %v22718_v40 = vld [vmem:[#allocation11 + $0x830] ss:$40 sps:$4 sm:$0xff]  }
 0x786   :  { %16060 = vmatpush1.bf16.msra.mxu1 %v22655_v28  ;;  %16091 = vmatprep.mubr.bf16.mxu1 %v24043_v7  ;;  %v22726_v28 = vld [vmem:[#allocation11 + $0x7e4] ss:$40 sps:$4 sm:$0xff]  }
 0x787   :  { %16061 = vmatprep.subr.bf16.mxu1 %v22663_v8  ;;  %v22721_v8 = vld [vmem:[#allocation11 + $0x3d0] ss:$40 sps:$4 sm:$0xff]  }
 0x788   :  { %16107 = vmatpush1.bf16.msra.mxu0 %v22658_v37  ;;  %v22729_v37 = vld [vmem:[#allocation11 + $0x384] ss:$40 sps:$4 sm:$0xff]  }
 0x789   :  { %16108 = vmatprep.subr.bf16.mxu0 %v22666_v14  ;;  %v22724_v14 = vld [vmem:[#allocation11 + $0x7e0] ss:$40 sps:$4 sm:$0xff]  }
 0x78a   :  { %16062 = vmatpush1.bf16.msra.mxu1 %v22661_v22  ;;  %v22732_v22 = vld [vmem:[#allocation11 + $0x794] ss:$40 sps:$4 sm:$0xff]  }
 0x78b   :  { %16063 = vmatprep.subr.bf16.mxu1 %v22669_v55  ;;  %v22727_v55 = vld [vmem:[#allocation11 + $0x380] ss:$40 sps:$4 sm:$0xff]  }
 0x78c   :  { %16109 = vmatpush1.bf16.msra.mxu0 %v22664_v27  ;;  %v22735_v27 = vld [vmem:[#allocation11 + $0x334] ss:$40 sps:$4 sm:$0xff]  }
 0x78d   :  { %16110 = vmatprep.subr.bf16.mxu0 %v22672_v2  ;;  %v22730_v2 = vld [vmem:[#allocation11 + $0x790] ss:$40 sps:$4 sm:$0xff]  }
 0x78e   :  { %16064 = vmatpush1.bf16.msra.mxu1 %v22667_v9  ;;  %v22738_v9 = vld [vmem:[#allocation11 + $0x1144] ss:$40 sps:$4 sm:$0xff]  }
 0x78f   :  { %16065 = vmatprep.subr.bf16.mxu1 %v22675_v15  ;;  %v22733_v15 = vld [vmem:[#allocation11 + $0x330] ss:$40 sps:$4 sm:$0xff]  }
 0x790   :  { %16111 = vmatpush1.bf16.msra.mxu0 %v22670_v17  ;;  %v22741_v17 = vld [vmem:[#allocation11 + $0x2e4] ss:$40 sps:$4 sm:$0xff]  }
 0x791   :  { %16112 = vmatprep.subr.bf16.mxu0 %v22678_v58  ;;  %v22736_v58 = vld [vmem:[#allocation11 + $0x1140] ss:$40 sps:$4 sm:$0xff]  }
 0x792   :  { %16066 = vmatpush1.bf16.msra.mxu1 %v22673_v12  ;;  %v22744_v12 = vld [vmem:[#allocation11 + $0x10f4] ss:$40 sps:$4 sm:$0xff]  }
 0x793   :  { %16067 = vmatprep.subr.bf16.mxu1 %v22681_v11  ;;  %v22739_v11 = vld [vmem:[#allocation11 + $0x2e0] ss:$40 sps:$4 sm:$0xff]  }
 0x794   :  { %16113 = vmatpush1.bf16.msra.mxu0 %v22676_v49 }
 0x795   :  { %16114 = vmatprep.subr.bf16.mxu0 %v22684_v29  ;;  %v22747_v29 = vld [vmem:[#allocation11 + $0x294] ss:$40 sps:$4 sm:$0xff]  }
 0x796   :  { %16068 = vmatpush1.bf16.msra.mxu1 %v22679_v1  ;;  %v22742_v1 = vld [vmem:[#allocation11 + $0x10f0] ss:$40 sps:$4 sm:$0xff]  }
 0x797   :  { %16069 = vmatprep.subr.bf16.mxu1 %v22687_v23 }
 0x798   :  { %16115 = vmatpush1.bf16.msra.mxu0 %v22682_v19  ;;  %v22750_v19 = vld [vmem:[#allocation11 + $0x10a4] ss:$40 sps:$4 sm:$0xff]  }
 0x799   :  { %16116 = vmatprep.subr.bf16.mxu0 %v22690_v32  ;;  %v22745_v32 = vld [vmem:[#allocation11 + $0x290] ss:$40 sps:$4 sm:$0xff]  }
 0x79a   :  { %16070 = vmatpush1.bf16.msra.mxu1 %v22685_v50 }
 0x79b   :  { %16071 = vmatprep.subr.bf16.mxu1 %v22693_v26  ;;  %v22753_v26 = vld [vmem:[#allocation11 + $0xc44] ss:$40 sps:$4 sm:$0xff]  }
 0x79c   :  { %16117 = vmatpush2.bf16.msra.mxu0 %v22688_v47  ;;  %v22748_v47 = vld [vmem:[#allocation11 + $0x10a0] ss:$40 sps:$4 sm:$0xff]  }
 0x79d   :  { %16118 = vmatprep.subr.bf16.mxu0 %v22696_v18 }
 0x79e   :  { %16072 = vmatpush1.bf16.msra.mxu1 %v22691_v21  ;;  %v22756_v21 = vld [vmem:[#allocation11 + $0x1054] ss:$40 sps:$4 sm:$0xff]  }
 0x79f   :  { %16073 = vmatprep.subr.bf16.mxu1 %v22699_v20  ;;  %v22751_v20 = vld [vmem:[#allocation11 + $0xc40] ss:$40 sps:$4 sm:$0xff]  }
 0x7a0   :  { %16119 = vmatpush2.bf16.msra.mxu0 %v22694_v35  ;;  %v22759_v35 = vld [vmem:[#allocation11 + $0xbf4] ss:$40 sps:$4 sm:$0xff]  }
 0x7a1   :  { %16120 = vmatprep.subr.bf16.mxu0 %v22702_v30  ;;  %v22754_v30 = vld [vmem:[#allocation11 + $0x1050] ss:$40 sps:$4 sm:$0xff]  }
 0x7a2   :  { %16074 = vmatpush1.bf16.msra.mxu1 %v22697_v16 }
 0x7a3   :  { %16075 = vmatprep.subr.bf16.mxu1 %v22705_v34  ;;  %v22762_v34 = vld [vmem:[#allocation11 + $0x1004] ss:$40 sps:$4 sm:$0xff]  }
 0x7a4   :  { %16121 = vmatpush2.bf16.msra.mxu0 %v22700_v6 }
 0x7a5   :  { %16122 = vmatprep.subr.bf16.mxu0 %v22708_v4  ;;  %v22757_v4 = vld [vmem:[#allocation11 + $0xbf0] ss:$40 sps:$4 sm:$0xff]  }
 0x7a6   :  { %16076 = vmatpush2.bf16.msra.mxu1 %v22703_v0 }
 0x7a7   :  { %16077 = vmatprep.subr.bf16.mxu1 %v22711_v5  ;;  %v22765_v5 = vld [vmem:[#allocation11 + $0xba4] ss:$40 sps:$4 sm:$0xff]  }
 0x7a8   :  { %16123 = vmatpush2.bf16.msra.mxu0 %v22706_v61 }
 0x7a9   :  { %16124 = vmatprep.subr.bf16.mxu0 %v22714_v42  ;;  %v22760_v42 = vld [vmem:[#allocation11 + $0x1000] ss:$40 sps:$4 sm:$0xff]  }
 0x7aa   :  { %16078 = vmatpush2.bf16.msra.mxu1 %v22709_v43 }
 0x7ab   :  { %16079 = vmatprep.subr.bf16.mxu1 %v22717_v31  ;;  %v22768_v31 = vld [vmem:[#allocation11 + $0xfb4] ss:$40 sps:$4 sm:$0xff]  }
 0x7ac   :  { %16125 = vmatpush2.bf16.msra.mxu0 %v22712_v33  ;;  %v22763_v33 = vld [vmem:[#allocation11 + $0xba0] ss:$40 sps:$4 sm:$0xff]  }
 0x7ad   :  { %16126 = vmatprep.subr.bf16.mxu0 %v22720_v60 }
 0x7ae   :  { %16080 = vmatpush2.bf16.msra.mxu1 %v22715_v51  ;;  %v22766_v51 = vld [vmem:[#allocation11 + $0xfb0] ss:$40 sps:$4 sm:$0xff]  }
 0x7af   :  { %16081 = vmatprep.subr.bf16.mxu1 %v22723_v57  ;;  %v22774_v57 = vld [vmem:[#allocation11 + $0xf64] ss:$40 sps:$4 sm:$0xff]  }
 0x7b0   :  { %16127 = vmatpush2.bf16.msra.mxu0 %v22718_v40  ;;  %v22769_v40 = vld [vmem:[#allocation11 + $0xb50] ss:$40 sps:$4 sm:$0xff]  }
 0x7b1   :  { %16128 = vmatprep.subr.bf16.mxu0 %v22726_v28  ;;  %v22777_v28 = vld [vmem:[#allocation11 + $0xb04] ss:$40 sps:$4 sm:$0xff]  }
 0x7b2   :  { %16082 = vmatpush2.bf16.msra.mxu1 %v22721_v8  ;;  %v22780_v8 = vld [vmem:[#allocation11 + $0xf14] ss:$40 sps:$4 sm:$0xff]  }
 0x7b3   :  { %16083 = vmatprep.subr.bf16.mxu1 %v22729_v37  ;;  %v22775_v37 = vld [vmem:[#allocation11 + $0xb00] ss:$40 sps:$4 sm:$0xff]  }
 0x7b4   :  { %16129 = vmatpush2.bf16.msra.mxu0 %v22724_v14  ;;  %v22783_v14 = vld [vmem:[#allocation11 + $0xab4] ss:$40 sps:$4 sm:$0xff]  }
 0x7b5   :  { %16130 = vmatprep.subr.bf16.mxu0 %v22732_v22  ;;  %v22778_v22 = vld [vmem:[#allocation11 + $0xf10] ss:$40 sps:$4 sm:$0xff]  }
 0x7b6   :  { %16084 = vmatpush2.bf16.msra.mxu1 %v22727_v55  ;;  %v22786_v55 = vld [vmem:[#allocation11 + $0x13c4] ss:$40 sps:$4 sm:$0xff]  }
 0x7b7   :  { %16085 = vmatprep.subr.bf16.mxu1 %v22735_v27  ;;  %v22781_v27 = vld [vmem:[#allocation11 + $0xab0] ss:$40 sps:$4 sm:$0xff]  }
 0x7b8   :  { %16131 = vmatpush2.bf16.msra.mxu0 %v22730_v2  ;;  %v22789_v2 = vld [vmem:[#allocation11 + $0xa64] ss:$40 sps:$4 sm:$0xff]  }
 0x7b9   :  { %16182 = vmatprep.subr.bf16.mxu0 %v22738_v9  ;;  %v22784_v9 = vld [vmem:[#allocation11 + $0x13c0] ss:$40 sps:$4 sm:$0xff]  }
 0x7ba   :  { %16086 = vmatpush2.bf16.msra.mxu1 %v22733_v15  ;;  %v22792_v15 = vld [vmem:[#allocation11 + $0x1374] ss:$40 sps:$4 sm:$0xff]  }
 0x7bb   :  { %v24148_v49 = vpop.f32.mrf.mxu0  ;;  %16133 = vmatmul.mubr.bf16.vlgmr.msra.gmra.mxu0 %v24085_v48  ;;  %16087 = vmatprep.subr.bf16.mxu1 %v22741_v17  ;;  %v22787_v17 = vld [vmem:[#allocation11 + $0xa60] ss:$40 sps:$4 sm:$0xff]  }
 0x7bc   :  { %16183 = vmatpush1.bf16.msra.mxu0 %v22736_v58  ;;  %16214 = vmatprep.mubr.bf16.mxu0 %v24087_v56  ;;  %v22795_v58 = vld [vmem:[#allocation11 + $0xa14] ss:$40 sps:$4 sm:$0xff]  }
 0x7bd   :  { %v24152_v23 = vpop.f32.mrf.mxu0  ;;  %16184 = vmatprep.subr.bf16.mxu0 %v22744_v12  ;;  %v22790_v12 = vld [vmem:[#allocation11 + $0x1370] ss:$40 sps:$4 sm:$0xff]  }
 0x7be   :  { %16088 = vmatpush2.bf16.msra.mxu1 %v22739_v11  ;;  %v22798_v11 = vld [vmem:[#allocation11 + $0x1324] ss:$40 sps:$4 sm:$0xff]  }
 0x7bf   :  { %v15892_v50 = vpop.f32.mrf.mxu0  ;;  %16089 = vmatprep.subr.bf16.mxu1 %v22747_v29  ;;  %v22793_v29 = vld [vmem:[#allocation11 + $0xa10] ss:$40 sps:$4 sm:$0xff]  }
 0x7c0   :  { %16185 = vmatpush1.bf16.msra.mxu0 %v22742_v1  ;;  %v22801_v1 = vld [vmem:[#allocation11 + $0xec4] ss:$40 sps:$4 sm:$0xff]   ;;  %v22799_v50 = vld [vmem:[#allocation11 + $0xec0] ss:$40 sps:$4 sm:$0xff]  }
 0x7c1   :  { %v15893_v18 = vpop.f32.mrf.mxu0  ;;  %16186 = vmatprep.subr.bf16.mxu0 %v22750_v19  ;;  %v22796_v19 = vld [vmem:[#allocation11 + $0x1320] ss:$40 sps:$4 sm:$0xff]  }
 0x7c2   :  { %16090 = vmatpush2.bf16.msra.mxu1 %v22745_v32  ;;  %v22804_v32 = vld [vmem:[#allocation11 + $0x12d4] ss:$40 sps:$4 sm:$0xff]   ;;  %v22810_v18 = vld [vmem:[#allocation11 + $0x1284] ss:$40 sps:$4 sm:$0xff]  }
 0x7c3   :  { %16141 = vmatprep.subr.bf16.mxu1 %v22753_v26  ;;  %v22807_v26 = vld [vmem:[#allocation11 + $0xe74] ss:$40 sps:$4 sm:$0xff]  }
 0x7c4   :  { %16187 = vmatpush1.bf16.msra.mxu0 %v22748_v47  ;;  %v22802_v47 = vld [vmem:[#allocation11 + $0x12d0] ss:$40 sps:$4 sm:$0xff]  }
 0x7c5   :  { %16092 = vmatmul.mubr.bf16.vlgmr.msra.gmra.mxu1 %v24061_v46  ;;  %v15847_v16 = vpop.f32.mrf.mxu1  ;;  %16188 = vmatprep.subr.bf16.mxu0 %v22756_v21  ;;  %v22805_v21 = vld [vmem:[#allocation11 + $0xe70] ss:$40 sps:$4 sm:$0xff]  }
 0x7c6   :  { %v24156_v6 = vadd.f32 %v15847_v16, %v24140_v53  ;;  %16142 = vmatpush1.bf16.msra.mxu1 %v22751_v20  ;;  %16173 = vmatprep.mubr.bf16.mxu1 %v24063_v13  ;;  %v22771_v53 = vld [vmem:[#allocation11 + $0xb54] ss:$40 sps:$4 sm:$0xff]   ;;  %v22813_v20 = vld [vmem:[#allocation11 + $0xe24] ss:$40 sps:$4 sm:$0xff]   ;;  %v22811_v16 = vld [vmem:[#allocation11 + $0xe20] ss:$40 sps:$4 sm:$0xff]  }
 0x7c7   :  { %v15849_v0 = vpop.f32.mrf.mxu1  ;;  %16143 = vmatprep.subr.bf16.mxu1 %v22759_v35  ;;  %v22808_v35 = vld [vmem:[#allocation11 + $0x1280] ss:$40 sps:$4 sm:$0xff]  }
 0x7c8   :  { %v24160_v61 = vadd.f32 %v15849_v0, %v24144_v62  ;;  %16189 = vmatpush1.bf16.msra.mxu0 %v22754_v30  ;;  %v22772_v62 = vld [vmem:[#allocation11 + $0xf60] ss:$40 sps:$4 sm:$0xff]   ;;  %v22816_v30 = vld [vmem:[#allocation11 + $0x1234] ss:$40 sps:$4 sm:$0xff]   ;;  %v22822_v0 = vld [vmem:[#allocation11 + $0x11e4] ss:$40 sps:$4 sm:$0xff]  }
 0x7c9   :  { %v15851_v43 = vpop.f32.mrf.mxu1  ;;  %16190 = vmatprep.subr.bf16.mxu0 %v22762_v34  ;;  %v22819_v34 = vld [vmem:[#allocation11 + $0xdd4] ss:$40 sps:$4 sm:$0xff]  }
 0x7ca   :  { %16144 = vmatpush1.bf16.msra.mxu1 %v22757_v4  ;;  %v22814_v4 = vld [vmem:[#allocation11 + $0x1230] ss:$40 sps:$4 sm:$0xff]   ;;  %v22820_v43 = vld [vmem:[#allocation11 + $0x11e0] ss:$40 sps:$4 sm:$0xff]  }
 0x7cb   :  { %v15852_v60 = vpop.f32.mrf.mxu1  ;;  %16145 = vmatprep.subr.bf16.mxu1 %v22765_v5  ;;  %v22817_v5 = vld [vmem:[#allocation11 + $0xdd0] ss:$40 sps:$4 sm:$0xff]  }
 0x7cc   :  { %16191 = vmatpush1.bf16.msra.mxu0 %v22760_v42  ;;  %v22825_v42 = vld [vmem:[#allocation11 + $0xd84] ss:$40 sps:$4 sm:$0xff]   ;;  %v22831_v60 = vld [vmem:[#allocation11 + $0xd34] ss:$40 sps:$4 sm:$0xff]  }
 0x7cd   :  { %16192 = vmatprep.subr.bf16.mxu0 %v22768_v31  ;;  %v22828_v31 = vld [vmem:[#allocation11 + $0x1194] ss:$40 sps:$4 sm:$0xff]  }
 0x7ce   :  { %16146 = vmatpush1.bf16.msra.mxu1 %v22763_v33  ;;  %v22823_v33 = vld [vmem:[#allocation11 + $0xd80] ss:$40 sps:$4 sm:$0xff]  }
 0x7cf   :  { %16147 = vmatprep.subr.bf16.mxu1 %v22771_v53  ;;  %v22826_v53 = vld [vmem:[#allocation11 + $0x1190] ss:$40 sps:$4 sm:$0xff]  }
 0x7d0   :  { %16193 = vmatpush1.bf16.msra.mxu0 %v22766_v51  ;;  %v22834_v51 = vld [vmem:[#allocation11 + $0x24c] ss:$40 sps:$4 sm:$0xff]  }
 0x7d1   :  { %16194 = vmatprep.subr.bf16.mxu0 %v22774_v57  ;;  %v22829_v57 = vld [vmem:[#allocation11 + $0xd30] ss:$40 sps:$4 sm:$0xff]  }
 0x7d2   :  { %16148 = vmatpush1.bf16.msra.mxu1 %v22769_v40  ;;  %v22837_v40 = vld [vmem:[#allocation11 + $0xce4] ss:$40 sps:$4 sm:$0xff]  }
 0x7d3   :  { %16149 = vmatprep.subr.bf16.mxu1 %v22777_v28  ;;  %v22832_v28 = vld [vmem:[#allocation11 + $0x248] ss:$40 sps:$4 sm:$0xff]  }
 0x7d4   :  { %16195 = vmatpush1.bf16.msra.mxu0 %v22772_v62  ;;  %v22840_v62 = vld [vmem:[#allocation11 + $0x1fc] ss:$40 sps:$4 sm:$0xff]  }
 0x7d5   :  { %16196 = vmatprep.subr.bf16.mxu0 %v22780_v8  ;;  %v22835_v8 = vld [vmem:[#allocation11 + $0xce0] ss:$40 sps:$4 sm:$0xff]  }
 0x7d6   :  { %16150 = vmatpush1.bf16.msra.mxu1 %v22775_v37 }
 0x7d7   :  { %16151 = vmatprep.subr.bf16.mxu1 %v22783_v14  ;;  %v22843_v14 = vld [vmem:[#allocation11 + $0xc94] ss:$40 sps:$4 sm:$0xff]  }
 0x7d8   :  { %16197 = vmatpush1.bf16.msra.mxu0 %v22778_v22  ;;  %v22838_v22 = vld [vmem:[#allocation11 + $0x1f8] ss:$40 sps:$4 sm:$0xff]  }
 0x7d9   :  { %16198 = vmatprep.subr.bf16.mxu0 %v22786_v55 }
 0x7da   :  { %16152 = vmatpush1.bf16.msra.mxu1 %v22781_v27  ;;  %v22846_v27 = vld [vmem:[#allocation11 + $0x1ac] ss:$40 sps:$4 sm:$0xff]  }
 0x7db   :  { %16153 = vmatprep.subr.bf16.mxu1 %v22789_v2  ;;  %v22841_v2 = vld [vmem:[#allocation11 + $0xc90] ss:$40 sps:$4 sm:$0xff]  }
 0x7dc   :  { %16199 = vmatpush2.bf16.msra.mxu0 %v22784_v9 }
 0x7dd   :  { %16200 = vmatprep.subr.bf16.mxu0 %v22792_v15  ;;  %v22849_v15 = vld [vmem:[#allocation11 + $0x1644] ss:$40 sps:$4 sm:$0xff]  }
 0x7de   :  { %16154 = vmatpush1.bf16.msra.mxu1 %v22787_v17  ;;  %v11610_v17 = vrot.slane %v24122_v39, %v23814_v38  ;;  %v22858_v38 = vld [vmem:[#allocation11 + $0x10c] ss:$40 sps:$4 sm:$0xff]  }
 0x7df   :  { %16155 = vmatprep.subr.bf16.mxu1 %v22795_v58  ;;  %v22844_v58 = vld [vmem:[#allocation11 + $0x1a8] ss:$40 sps:$4 sm:$0xff]  }
 0x7e0   :  { %16201 = vmatpush2.bf16.msra.mxu0 %v22790_v12 }
 0x7e1   :  { %16202 = vmatprep.subr.bf16.mxu0 %v22798_v11  ;;  %v22852_v11 = vld [vmem:[#allocation11 + $0x15c] ss:$40 sps:$4 sm:$0xff]  }
 0x7e2   :  { %16156 = vmatpush1.bf16.msra.mxu1 %v22793_v29  ;;  %v11614_v29 = vrot.slane %v24122_v39, %v23817_v45  ;;  %v22853_v45 = vld [vmem:[#allocation11 + $0x15f0] ss:$40 sps:$4 sm:$0xff]  }
 0x7e3   :  { %16157 = vmatprep.subr.bf16.mxu1 %v22801_v1  ;;  %v22847_v1 = vld [vmem:[#allocation11 + $0x1640] ss:$40 sps:$4 sm:$0xff]  }
 0x7e4   :  { %16203 = vmatpush2.bf16.msra.mxu0 %v22796_v19  ;;  %v22855_v19 = vld [vmem:[#allocation11 + $0x15f4] ss:$40 sps:$4 sm:$0xff]  }
 0x7e5   :  { %16204 = vmatprep.subr.bf16.mxu0 %v22804_v32  ;;  %v15889_v32 = vadd.f32 %v24148_v49, %v11610_v17  ;;  %v22856_v49 = vld [vmem:[#allocation11 + $0x108] ss:$40 sps:$4 sm:$0xff]   ;;  %v22900_v17 = vld [vmem:[#allocation11 + $0x3dc] ss:$40 sps:$4 sm:$0xff]  }
 0x7e6   :  { %16158 = vmatpush2.bf16.msra.mxu1 %v22799_v50  ;;  %v22850_v50 = vld [vmem:[#allocation11 + $0x158] ss:$40 sps:$4 sm:$0xff]  }
 0x7e7   :  { %16159 = vmatprep.subr.bf16.mxu1 %v22807_v26 }
 0x7e8   :  { %16205 = vmatpush2.bf16.msra.mxu0 %v22802_v47  ;;  %v15891_v47 = vadd.f32 %v24152_v23, %v11614_v29  ;;  %v22906_v29 = vld [vmem:[#allocation11 + $0x38c] ss:$40 sps:$4 sm:$0xff]  }
 0x7e9   :  { %16206 = vmatprep.subr.bf16.mxu0 %v22810_v18 }
 0x7ea   :  { %16160 = vmatpush2.bf16.msra.mxu1 %v22805_v21  ;;  %v22861_v21 = vld [vmem:[#allocation11 + $0x15a4] ss:$40 sps:$4 sm:$0xff]  }
 0x7eb   :  { %16161 = vmatprep.subr.bf16.mxu1 %v22813_v20 }
 0x7ec   :  { %16207 = vmatpush2.bf16.msra.mxu0 %v22808_v35 }
 0x7ed   :  { %16208 = vmatprep.subr.bf16.mxu0 %v22816_v30 }
 0x7ee   :  { %16162 = vmatpush2.bf16.msra.mxu1 %v22811_v16  ;;  %v22864_v16 = vld [vmem:[#allocation11 + $0xbc] ss:$40 sps:$4 sm:$0xff]  }
 0x7ef   :  { %16163 = vmatprep.subr.bf16.mxu1 %v22819_v34  ;;  %v22859_v34 = vld [vmem:[#allocation11 + $0x15a0] ss:$40 sps:$4 sm:$0xff]  }
 0x7f0   :  { %16209 = vmatpush2.bf16.msra.mxu0 %v22814_v4 }
 0x7f1   :  { %16210 = vmatprep.subr.bf16.mxu0 %v22822_v0  ;;  %v22867_v0 = vld [vmem:[#allocation11 + $0x1554] ss:$40 sps:$4 sm:$0xff]  }
 0x7f2   :  { %16164 = vmatpush2.bf16.msra.mxu1 %v22817_v5  ;;  %v22862_v5 = vld [vmem:[#allocation11 + $0xb8] ss:$40 sps:$4 sm:$0xff]  }
 0x7f3   :  { %16165 = vmatprep.subr.bf16.mxu1 %v22825_v42  ;;  %v22870_v42 = vld [vmem:[#allocation11 + $0x6c] ss:$40 sps:$4 sm:$0xff]  }
 0x7f4   :  { %16211 = vmatpush2.bf16.msra.mxu0 %v22820_v43  ;;  %v22865_v43 = vld [vmem:[#allocation11 + $0x1550] ss:$40 sps:$4 sm:$0xff]  }
 0x7f5   :  { %16212 = vmatprep.subr.bf16.mxu0 %v22828_v31  ;;  %v22873_v31 = vld [vmem:[#allocation11 + $0x1504] ss:$40 sps:$4 sm:$0xff]  }
 0x7f6   :  { %16166 = vmatpush2.bf16.msra.mxu1 %v22823_v33  ;;  %v22868_v33 = vld [vmem:[#allocation11 + $0x68] ss:$40 sps:$4 sm:$0xff]  }
 0x7f7   :  { %16167 = vmatprep.subr.bf16.mxu1 %v22831_v60  ;;  %v22876_v60 = vld [vmem:[#allocation11 + $0x1c] ss:$40 sps:$4 sm:$0xff]  }
 0x7f8   :  { %16213 = vmatpush2.bf16.msra.mxu0 %v22826_v53  ;;  %v22871_v53 = vld [vmem:[#allocation11 + $0x1500] ss:$40 sps:$4 sm:$0xff]  }
 0x7f9   :  { %16264 = vmatprep.subr.bf16.mxu0 %v22834_v51  ;;  %v22879_v51 = vld [vmem:[#allocation11 + $0x14b4] ss:$40 sps:$4 sm:$0xff]  }
 0x7fa   :  { %16168 = vmatpush2.bf16.msra.mxu1 %v22829_v57  ;;  %v22874_v57 = vld [vmem:[#allocation11 + $0x18] ss:$40 sps:$4 sm:$0xff]  }
 0x7fb   :  { %v15970_v37 = vpop.f32.mrf.mxu0  ;;  %16215 = vmatmul.mubr.bf16.vlgmr.msra.gmra.mxu0 %v24097_v36  ;;  %16169 = vmatprep.subr.bf16.mxu1 %v22837_v40  ;;  %v22882_v40 = vld [vmem:[#allocation11 + $0x4cc] ss:$40 sps:$4 sm:$0xff]  }
 0x7fc   :  { %16265 = vmatpush1.bf16.msra.mxu0 %v22832_v28  ;;  %16296 = vmatprep.mubr.bf16.mxu0 %v24043_v7  ;;  %v22877_v28 = vld [vmem:[#allocation11 + $0x14b0] ss:$40 sps:$4 sm:$0xff]  }
 0x7fd   :  { %v15972_v55 = vpop.f32.mrf.mxu0  ;;  %16266 = vmatprep.subr.bf16.mxu0 %v22840_v62  ;;  %v22885_v62 = vld [vmem:[#allocation11 + $0x1464] ss:$40 sps:$4 sm:$0xff]  }
 0x7fe   :  { %16170 = vmatpush2.bf16.msra.mxu1 %v22835_v8  ;;  %v22880_v8 = vld [vmem:[#allocation11 + $0x4c8] ss:$40 sps:$4 sm:$0xff]  }
 0x7ff   :  { %v15974_v9 = vpop.f32.mrf.mxu0  ;;  %16171 = vmatprep.subr.bf16.mxu1 %v22843_v14  ;;  %v22883_v14 = vld [vmem:[#allocation11 + $0x1460] ss:$40 sps:$4 sm:$0xff]  }
 0x800   :  { %16267 = vmatpush1.bf16.msra.mxu0 %v22838_v22  ;;  %v22891_v22 = vld [vmem:[#allocation11 + $0x1414] ss:$40 sps:$4 sm:$0xff]   ;;  %v22897_v9 = vld [vmem:[#allocation11 + $0x18c4] ss:$40 sps:$4 sm:$0xff]  }
 0x801   :  { %v15975_v12 = vpop.f32.mrf.mxu0  ;;  %16268 = vmatprep.subr.bf16.mxu0 %v22846_v27  ;;  %v22894_v27 = vld [vmem:[#allocation11 + $0x42c] ss:$40 sps:$4 sm:$0xff]  }
 0x802   :  { %16172 = vmatpush2.bf16.msra.mxu1 %v22841_v2  ;;  %v22889_v2 = vld [vmem:[#allocation11 + $0x1410] ss:$40 sps:$4 sm:$0xff]   ;;  %v22903_v12 = vld [vmem:[#allocation11 + $0x1874] ss:$40 sps:$4 sm:$0xff]  }
 0x803   :  { %16223 = vmatprep.subr.bf16.mxu1 %v22849_v15  ;;  %v22892_v15 = vld [vmem:[#allocation11 + $0x428] ss:$40 sps:$4 sm:$0xff]  }
 0x804   :  { %16269 = vmatpush1.bf16.msra.mxu0 %v22844_v58  ;;  %v22895_v58 = vld [vmem:[#allocation11 + $0x18c0] ss:$40 sps:$4 sm:$0xff]  }
 0x805   :  { %v15929_v26 = vpop.f32.mrf.mxu1  ;;  %16174 = vmatmul.mubr.bf16.vlgmr.msra.gmra.mxu1 %v24079_v25  ;;  %16270 = vmatprep.subr.bf16.mxu0 %v22852_v11  ;;  %v22898_v11 = vld [vmem:[#allocation11 + $0x3d8] ss:$40 sps:$4 sm:$0xff]  }
 0x806   :  { %v15930_v18 = vadd.f32 %v15929_v26, %v15889_v32  ;;  %16224 = vmatpush1.bf16.msra.mxu1 %v22847_v1  ;;  %16255 = vmatprep.mubr.bf16.mxu1 %v24115_v63  ;;  %v22901_v1 = vld [vmem:[#allocation11 + $0x1870] ss:$40 sps:$4 sm:$0xff]   ;;  %v22907_v26 = vld [vmem:[#allocation11 + $0x1820] ss:$40 sps:$4 sm:$0xff]  }
 0x807   :  { %v15931_v39 = vpop.f32.mrf.mxu1  ;;  %16225 = vmatprep.subr.bf16.mxu1 %v22855_v19  ;;  %v22909_v19 = vld [vmem:[#allocation11 + $0x1824] ss:$40 sps:$4 sm:$0xff]   ;;  %v22904_v32 = vld [vmem:[#allocation11 + $0x388] ss:$40 sps:$4 sm:$0xff]  }
 0x808   :  { %v15932_v20 = vadd.f32 %v15931_v39, %v15891_v47  ;;  %16271 = vmatpush1.bf16.msra.mxu0 %v22850_v50  ;;  %v24172_v35 = vadd.f32 %v15970_v37, %v15930_v18  ;;  %v22888_v37 = vld [vmem:[#allocation11 + $0x47c] ss:$40 sps:$4 sm:$0xff]   ;;  %v22910_v47 = vld [vmem:[#allocation11 + $0x338] ss:$40 sps:$4 sm:$0xff]   ;;  %v22918_v18 = vld [vmem:[#allocation11 + $0x2ec] ss:$40 sps:$4 sm:$0xff]  }
 0x809   :  { %v15933_v30 = vpop.f32.mrf.mxu1  ;;  %16272 = vmatprep.subr.bf16.mxu0 %v22858_v38  ;;  %v22912_v50 = vld [vmem:[#allocation11 + $0x33c] ss:$40 sps:$4 sm:$0xff]  }
 0x80a   :  { %16226 = vmatpush1.bf16.msra.mxu1 %v22853_v45  ;;  %v24174_v4 = vadd.f32 %v15972_v55, %v15932_v20  ;;  %v22886_v55 = vld [vmem:[#allocation11 + $0x478] ss:$40 sps:$4 sm:$0xff]   ;;  %v22915_v38 = vld [vmem:[#allocation11 + $0x17d4] ss:$40 sps:$4 sm:$0xff]   ;;  %v22921_v39 = vld [vmem:[#allocation11 + $0x1784] ss:$40 sps:$4 sm:$0xff]  }
 0x80b   :  { %v15934_v23 = vpop.f32.mrf.mxu1  ;;  %16227 = vmatprep.subr.bf16.mxu1 %v22861_v21  ;;  %v22913_v45 = vld [vmem:[#allocation11 + $0x17d0] ss:$40 sps:$4 sm:$0xff]   ;;  %v22924_v20 = vld [vmem:[#allocation11 + $0x29c] ss:$40 sps:$4 sm:$0xff]  }
 0x80c   :  { %16273 = vmatpush1.bf16.msra.mxu0 %v22856_v49  ;;  %v22916_v21 = vld [vmem:[#allocation11 + $0x2e8] ss:$40 sps:$4 sm:$0xff]   ;;  %v22927_v30 = vld [vmem:[#allocation11 + $0x1734] ss:$40 sps:$4 sm:$0xff]  }
 0x80d   :  { %16274 = vmatprep.subr.bf16.mxu0 %v22864_v16  ;;  %v22919_v49 = vld [vmem:[#allocation11 + $0x1780] ss:$40 sps:$4 sm:$0xff]   ;;  %v22925_v23 = vld [vmem:[#allocation11 + $0x1730] ss:$40 sps:$4 sm:$0xff]  }
 0x80e   :  { %16228 = vmatpush1.bf16.msra.mxu1 %v22859_v34  ;;  %v22922_v16 = vld [vmem:[#allocation11 + $0x298] ss:$40 sps:$4 sm:$0xff]   ;;  %v22930_v34 = vld [vmem:[#allocation11 + $0xc4c] ss:$40 sps:$4 sm:$0xff]  }
 0x80f   :  { %16229 = vmatprep.subr.bf16.mxu1 %v22867_v0  ;;  %v22933_v0 = vld [vmem:[#allocation11 + $0x16e4] ss:$40 sps:$4 sm:$0xff]  }
 0x810   :  { %16275 = vmatpush1.bf16.msra.mxu0 %v22862_v5  ;;  %v22928_v5 = vld [vmem:[#allocation11 + $0xc48] ss:$40 sps:$4 sm:$0xff]  }
 0x811   :  { %16276 = vmatprep.subr.bf16.mxu0 %v22870_v42  ;;  %v22936_v42 = vld [vmem:[#allocation11 + $0xbfc] ss:$40 sps:$4 sm:$0xff]  }
 0x812   :  { %16230 = vmatpush1.bf16.msra.mxu1 %v22865_v43  ;;  %v22931_v43 = vld [vmem:[#allocation11 + $0x16e0] ss:$40 sps:$4 sm:$0xff]  }
 0x813   :  { %16231 = vmatprep.subr.bf16.mxu1 %v22873_v31 }
 0x814   :  { %16277 = vmatpush1.bf16.msra.mxu0 %v22868_v33  ;;  %v22939_v33 = vld [vmem:[#allocation11 + $0x1694] ss:$40 sps:$4 sm:$0xff]  }
 0x815   :  { %16278 = vmatprep.subr.bf16.mxu0 %v22876_v60  ;;  %v22934_v60 = vld [vmem:[#allocation11 + $0xbf8] ss:$40 sps:$4 sm:$0xff]  }
 0x816   :  { %16232 = vmatpush1.bf16.msra.mxu1 %v22871_v53 }
 0x817   :  { %16233 = vmatprep.subr.bf16.mxu1 %v22879_v51  ;;  %v22942_v51 = vld [vmem:[#allocation11 + $0xbac] ss:$40 sps:$4 sm:$0xff]  }
 0x818   :  { %16279 = vmatpush1.bf16.msra.mxu0 %v22874_v57  ;;  %v22937_v57 = vld [vmem:[#allocation11 + $0x1690] ss:$40 sps:$4 sm:$0xff]  }
 0x819   :  { %16280 = vmatprep.subr.bf16.mxu0 %v22882_v40 }
 0x81a   :  { %16234 = vmatpush1.bf16.msra.mxu1 %v22877_v28  ;;  %v22945_v28 = vld [vmem:[#allocation11 + $0x74c] ss:$40 sps:$4 sm:$0xff]  }
 0x81b   :  { %16235 = vmatprep.subr.bf16.mxu1 %v22885_v62  ;;  %v22940_v62 = vld [vmem:[#allocation11 + $0xba8] ss:$40 sps:$4 sm:$0xff]  }
 0x81c   :  { %16281 = vmatpush2.bf16.msra.mxu0 %v22880_v8 }
 0x81d   :  { %16282 = vmatprep.subr.bf16.mxu0 %v22888_v37  ;;  %v22948_v37 = vld [vmem:[#allocation11 + $0xb5c] ss:$40 sps:$4 sm:$0xff]  }
 0x81e   :  { %16236 = vmatpush1.bf16.msra.mxu1 %v22883_v14  ;;  %v22943_v14 = vld [vmem:[#allocation11 + $0x748] ss:$40 sps:$4 sm:$0xff]  }
 0x81f   :  { %16237 = vmatprep.subr.bf16.mxu1 %v22891_v22  ;;  %v22951_v22 = vld [vmem:[#allocation11 + $0x6fc] ss:$40 sps:$4 sm:$0xff]  }
 0x820   :  { %16283 = vmatpush2.bf16.msra.mxu0 %v22886_v55  ;;  %v22946_v55 = vld [vmem:[#allocation11 + $0xb58] ss:$40 sps:$4 sm:$0xff]  }
 0x821   :  { %16284 = vmatprep.subr.bf16.mxu0 %v22894_v27 }
 0x822   :  { %16238 = vmatpush1.bf16.msra.mxu1 %v22889_v2  ;;  %v22954_v2 = vld [vmem:[#allocation11 + $0xb0c] ss:$40 sps:$4 sm:$0xff]  }
 0x823   :  { %16239 = vmatprep.subr.bf16.mxu1 %v22897_v9 }
 0x824   :  { %16285 = vmatpush2.bf16.msra.mxu0 %v22892_v15  ;;  %v22949_v15 = vld [vmem:[#allocation11 + $0x6f8] ss:$40 sps:$4 sm:$0xff]  }
 0x825   :  { %16286 = vmatprep.subr.bf16.mxu0 %v22900_v17 }
 0x826   :  { %16240 = vmatpush2.bf16.msra.mxu1 %v22895_v58  ;;  %v22957_v58 = vld [vmem:[#allocation11 + $0x6ac] ss:$40 sps:$4 sm:$0xff]  }
 0x827   :  { %16241 = vmatprep.subr.bf16.mxu1 %v22903_v12 }
 0x828   :  { %16287 = vmatpush2.bf16.msra.mxu0 %v22898_v11 }
 0x829   :  { %16288 = vmatprep.subr.bf16.mxu0 %v22906_v29  ;;  %v22952_v29 = vld [vmem:[#allocation11 + $0xb08] ss:$40 sps:$4 sm:$0xff]  }
 0x82a   :  { %16242 = vmatpush2.bf16.msra.mxu1 %v22901_v1 }
 0x82b   :  { %16243 = vmatprep.subr.bf16.mxu1 %v22909_v19  ;;  %v22960_v19 = vld [vmem:[#allocation11 + $0xabc] ss:$40 sps:$4 sm:$0xff]  }
 0x82c   :  { %16289 = vmatpush2.bf16.msra.mxu0 %v22904_v32 }
 0x82d   :  { %16290 = vmatprep.subr.bf16.mxu0 %v22912_v50 }
 0x82e   :  { %16244 = vmatpush2.bf16.msra.mxu1 %v22907_v26  ;;  %v22963_v26 = vld [vmem:[#allocation11 + $0x65c] ss:$40 sps:$4 sm:$0xff]  }
 0x82f   :  { %16245 = vmatprep.subr.bf16.mxu1 %v22915_v38  ;;  %v22958_v38 = vld [vmem:[#allocation11 + $0xab8] ss:$40 sps:$4 sm:$0xff]  }
 0x830   :  { %16291 = vmatpush2.bf16.msra.mxu0 %v22910_v47  ;;  %v22966_v47 = vld [vmem:[#allocation11 + $0xa6c] ss:$40 sps:$4 sm:$0xff]  }
 0x831   :  { %16292 = vmatprep.subr.bf16.mxu0 %v22918_v18  ;;  %v22961_v18 = vld [vmem:[#allocation11 + $0x658] ss:$40 sps:$4 sm:$0xff]  }
 0x832   :  { %16246 = vmatpush2.bf16.msra.mxu1 %v22913_v45  ;;  %v22964_v45 = vld [vmem:[#allocation11 + $0xa68] ss:$40 sps:$4 sm:$0xff]  }
 0x833   :  { %16247 = vmatprep.subr.bf16.mxu1 %v22921_v39  ;;  %v22972_v39 = vld [vmem:[#allocation11 + $0xa1c] ss:$40 sps:$4 sm:$0xff]  }
 0x834   :  { %16293 = vmatpush2.bf16.msra.mxu0 %v22916_v21  ;;  %v22967_v21 = vld [vmem:[#allocation11 + $0x608] ss:$40 sps:$4 sm:$0xff]  }
 0x835   :  { %16294 = vmatprep.subr.bf16.mxu0 %v22924_v20  ;;  %v22975_v20 = vld [vmem:[#allocation11 + $0x5bc] ss:$40 sps:$4 sm:$0xff]  }
 0x836   :  { %16248 = vmatpush2.bf16.msra.mxu1 %v22919_v49  ;;  %v22970_v49 = vld [vmem:[#allocation11 + $0xa18] ss:$40 sps:$4 sm:$0xff]  }
 0x837   :  { %16249 = vmatprep.subr.bf16.mxu1 %v22927_v30  ;;  %v22978_v30 = vld [vmem:[#allocation11 + $0xecc] ss:$40 sps:$4 sm:$0xff]  }
 0x838   :  { %16295 = vmatpush2.bf16.msra.mxu0 %v22922_v16  ;;  %v22973_v16 = vld [vmem:[#allocation11 + $0x5b8] ss:$40 sps:$4 sm:$0xff]  }
 0x839   :  { %16346 = vmatprep.subr.bf16.mxu0 %v22930_v34  ;;  %v22981_v34 = vld [vmem:[#allocation11 + $0x56c] ss:$40 sps:$4 sm:$0xff]  }
 0x83a   :  { %16250 = vmatpush2.bf16.msra.mxu1 %v22925_v23  ;;  %v22976_v23 = vld [vmem:[#allocation11 + $0xec8] ss:$40 sps:$4 sm:$0xff]  }
 0x83b   :  { %v16052_v31 = vpop.f32.mrf.mxu0  ;;  %16297 = vmatmul.mubr.bf16.vlgmr.msra.gmra.mxu0 %v24061_v46  ;;  %16251 = vmatprep.subr.bf16.mxu1 %v22933_v0  ;;  %v22984_v0 = vld [vmem:[#allocation11 + $0xe7c] ss:$40 sps:$4 sm:$0xff]  }
 0x83c   :  { %16347 = vmatpush1.bf16.msra.mxu0 %v22928_v5  ;;  %16378 = vmatprep.mubr.bf16.mxu0 %v24063_v13  ;;  %v22979_v5 = vld [vmem:[#allocation11 + $0x568] ss:$40 sps:$4 sm:$0xff]  }
 0x83d   :  { %v16054_v53 = vpop.f32.mrf.mxu0  ;;  %16348 = vmatprep.subr.bf16.mxu0 %v22936_v42  ;;  %v22987_v42 = vld [vmem:[#allocation11 + $0x51c] ss:$40 sps:$4 sm:$0xff]  }
 0x83e   :  { %16252 = vmatpush2.bf16.msra.mxu1 %v22931_v43  ;;  %v22982_v43 = vld [vmem:[#allocation11 + $0xe78] ss:$40 sps:$4 sm:$0xff]  }
 0x83f   :  { %v16056_v40 = vpop.f32.mrf.mxu0  ;;  %16253 = vmatprep.subr.bf16.mxu1 %v22939_v33  ;;  %v22985_v33 = vld [vmem:[#allocation11 + $0x518] ss:$40 sps:$4 sm:$0xff]  }
 0x840   :  { %16349 = vmatpush1.bf16.msra.mxu0 %v22934_v60  ;;  %v22993_v60 = vld [vmem:[#allocation11 + $0x9cc] ss:$40 sps:$4 sm:$0xff]   ;;  %v22999_v40 = vld [vmem:[#allocation11 + $0x97c] ss:$40 sps:$4 sm:$0xff]  }
 0x841   :  { %v16057_v8 = vpop.f32.mrf.mxu0  ;;  %16350 = vmatprep.subr.bf16.mxu0 %v22942_v51  ;;  %v22996_v51 = vld [vmem:[#allocation11 + $0xddc] ss:$40 sps:$4 sm:$0xff]  }
 0x842   :  { %16254 = vmatpush2.bf16.msra.mxu1 %v22937_v57  ;;  %v22991_v57 = vld [vmem:[#allocation11 + $0x9c8] ss:$40 sps:$4 sm:$0xff]   ;;  %v22997_v8 = vld [vmem:[#allocation11 + $0x978] ss:$40 sps:$4 sm:$0xff]  }
 0x843   :  { %16305 = vmatprep.subr.bf16.mxu1 %v22945_v28  ;;  %v22994_v28 = vld [vmem:[#allocation11 + $0xdd8] ss:$40 sps:$4 sm:$0xff]  }
 0x844   :  { %16351 = vmatpush1.bf16.msra.mxu0 %v22940_v62  ;;  %v23002_v62 = vld [vmem:[#allocation11 + $0xd8c] ss:$40 sps:$4 sm:$0xff]  }
 0x845   :  { %v16011_v27 = vpop.f32.mrf.mxu1  ;;  %16256 = vmatmul.mubr.bf16.vlgmr.msra.gmra.mxu1 %v24117_v52  ;;  %16352 = vmatprep.subr.bf16.mxu0 %v22948_v37  ;;  %v23005_v37 = vld [vmem:[#allocation11 + $0x92c] ss:$40 sps:$4 sm:$0xff]  }
 0x846   :  { %v16012_v9 = vadd.f32 %v16011_v27, %v24172_v35  ;;  %16306 = vmatpush1.bf16.msra.mxu1 %v22943_v14  ;;  %16337 = vmatprep.mubr.bf16.mxu1 %v24068_v10  ;;  %v22955_v35 = vld [vmem:[#allocation11 + $0x6a8] ss:$40 sps:$4 sm:$0xff]   ;;  %v23011_v27 = vld [vmem:[#allocation11 + $0x8dc] ss:$40 sps:$4 sm:$0xff]  }
 0x847   :  { %v16013_v17 = vpop.f32.mrf.mxu1  ;;  %16307 = vmatprep.subr.bf16.mxu1 %v22951_v22  ;;  %v23000_v14 = vld [vmem:[#allocation11 + $0xd88] ss:$40 sps:$4 sm:$0xff]   ;;  %v23008_v22 = vld [vmem:[#allocation11 + $0xd3c] ss:$40 sps:$4 sm:$0xff]  }
 0x848   :  { %v24181_v12 = vadd.f32 %v16052_v31, %v16012_v9  ;;  %v16014_v11 = vadd.f32 %v16013_v17, %v24174_v4  ;;  %16353 = vmatpush1.bf16.msra.mxu0 %v22946_v55  ;;  %v22969_v4 = vld [vmem:[#allocation11 + $0x60c] ss:$40 sps:$4 sm:$0xff]   ;;  %v23003_v55 = vld [vmem:[#allocation11 + $0x928] ss:$40 sps:$4 sm:$0xff]  }
 0x849   :  { %v16015_v1 = vpop.f32.mrf.mxu1  ;;  %16354 = vmatprep.subr.bf16.mxu0 %v22954_v2  ;;  %v22990_v31 = vld [vmem:[#allocation11 + $0xe2c] ss:$40 sps:$4 sm:$0xff]   ;;  %v23006_v2 = vld [vmem:[#allocation11 + $0xd38] ss:$40 sps:$4 sm:$0xff]  }
 0x84a   :  { %v24184_v32 = vadd.f32 %v16054_v53, %v16014_v11  ;;  %16308 = vmatpush1.bf16.msra.mxu1 %v22949_v15  ;;  %v22988_v53 = vld [vmem:[#allocation11 + $0xe28] ss:$40 sps:$4 sm:$0xff]   ;;  %v23014_v9 = vld [vmem:[#allocation11 + $0xcec] ss:$40 sps:$4 sm:$0xff]   ;;  %v23009_v15 = vld [vmem:[#allocation11 + $0x8d8] ss:$40 sps:$4 sm:$0xff]  }
 0x84b   :  { %v16016_v50 = vpop.f32.mrf.mxu1  ;;  %16309 = vmatprep.subr.bf16.mxu1 %v22957_v58  ;;  %v23017_v17 = vld [vmem:[#allocation11 + $0x88c] ss:$40 sps:$4 sm:$0xff]   ;;  %v23012_v58 = vld [vmem:[#allocation11 + $0xce8] ss:$40 sps:$4 sm:$0xff]   ;;  %v23020_v11 = vld [vmem:[#allocation11 + $0xc9c] ss:$40 sps:$4 sm:$0xff]  }
 0x84c   :  { %16355 = vmatpush1.bf16.msra.mxu0 %v22952_v29  ;;  %v23015_v29 = vld [vmem:[#allocation11 + $0x888] ss:$40 sps:$4 sm:$0xff]   ;;  %v23023_v1 = vld [vmem:[#allocation11 + $0x83c] ss:$40 sps:$4 sm:$0xff]   ;;  %v23021_v50 = vld [vmem:[#allocation11 + $0x838] ss:$40 sps:$4 sm:$0xff]  }
 0x84d   :  { %16356 = vmatprep.subr.bf16.mxu0 %v22960_v19  ;;  %v23018_v19 = vld [vmem:[#allocation11 + $0xc98] ss:$40 sps:$4 sm:$0xff]  }
 0x84e   :  { %16310 = vmatpush1.bf16.msra.mxu1 %v22955_v35  ;;  %v23026_v35 = vld [vmem:[#allocation11 + $0x164c] ss:$40 sps:$4 sm:$0xff]  }
 0x84f   :  { %16311 = vmatprep.subr.bf16.mxu1 %v22963_v26  ;;  %v23029_v26 = vld [vmem:[#allocation11 + $0x7ec] ss:$40 sps:$4 sm:$0xff]  }
 0x850   :  { %16357 = vmatpush1.bf16.msra.mxu0 %v22958_v38  ;;  %v23024_v38 = vld [vmem:[#allocation11 + $0x1648] ss:$40 sps:$4 sm:$0xff]  }
 0x851   :  { %16358 = vmatprep.subr.bf16.mxu0 %v22966_v47  ;;  %v23032_v47 = vld [vmem:[#allocation11 + $0x15fc] ss:$40 sps:$4 sm:$0xff]  }
 0x852   :  { %16312 = vmatpush1.bf16.msra.mxu1 %v22961_v18  ;;  %v23027_v18 = vld [vmem:[#allocation11 + $0x7e8] ss:$40 sps:$4 sm:$0xff]  }
 0x853   :  { %16313 = vmatprep.subr.bf16.mxu1 %v22969_v4 }
 0x854   :  { %16359 = vmatpush1.bf16.msra.mxu0 %v22964_v45  ;;  %v23035_v45 = vld [vmem:[#allocation11 + $0x79c] ss:$40 sps:$4 sm:$0xff]  }
 0x855   :  { %16360 = vmatprep.subr.bf16.mxu0 %v22972_v39  ;;  %v23030_v39 = vld [vmem:[#allocation11 + $0x15f8] ss:$40 sps:$4 sm:$0xff]  }
 0x856   :  { %16314 = vmatpush1.bf16.msra.mxu1 %v22967_v21 }
 0x857   :  { %16315 = vmatprep.subr.bf16.mxu1 %v22975_v20  ;;  %v23038_v20 = vld [vmem:[#allocation11 + $0x15ac] ss:$40 sps:$4 sm:$0xff]  }
 0x858   :  { %16361 = vmatpush1.bf16.msra.mxu0 %v22970_v49  ;;  %v23033_v49 = vld [vmem:[#allocation11 + $0x798] ss:$40 sps:$4 sm:$0xff]  }
 0x859   :  { %16362 = vmatprep.subr.bf16.mxu0 %v22978_v30 }
 0x85a   :  { %16316 = vmatpush1.bf16.msra.mxu1 %v22973_v16  ;;  %v23041_v16 = vld [vmem:[#allocation11 + $0x114c] ss:$40 sps:$4 sm:$0xff]  }
 0x85b   :  { %16317 = vmatprep.subr.bf16.mxu1 %v22981_v34  ;;  %v23036_v34 = vld [vmem:[#allocation11 + $0x15a8] ss:$40 sps:$4 sm:$0xff]  }
 0x85c   :  { %16363 = vmatpush2.bf16.msra.mxu0 %v22976_v23 }
 0x85d   :  { %16364 = vmatprep.subr.bf16.mxu0 %v22984_v0  ;;  %v23044_v0 = vld [vmem:[#allocation11 + $0x155c] ss:$40 sps:$4 sm:$0xff]  }
 0x85e   :  { %16318 = vmatpush1.bf16.msra.mxu1 %v22979_v5  ;;  %v24188_v5 = vld [vmem:[#allocation13] sm:$0xff] }
 0x85f   :  { %16319 = vmatprep.subr.bf16.mxu1 %v22987_v42  ;;  %v11618_v42 = vrot.slane %v24188_v5, %v23840_v54  ;;  %v23053_v54 = vld [vmem:[#allocation11 + $0x10ac] ss:$40 sps:$4 sm:$0xff]  }
 0x860   :  { %16365 = vmatpush2.bf16.msra.mxu0 %v22982_v43  ;;  %v23039_v43 = vld [vmem:[#allocation11 + $0x1148] ss:$40 sps:$4 sm:$0xff]  }
 0x861   :  { %16366 = vmatprep.subr.bf16.mxu0 %v22990_v31  ;;  %v23047_v31 = vld [vmem:[#allocation11 + $0x10fc] ss:$40 sps:$4 sm:$0xff]  }
 0x862   :  { %16320 = vmatpush1.bf16.msra.mxu1 %v22985_v33  ;;  %v11622_v33 = vrot.slane %v24188_v5, %v23843_v59 }
 0x863   :  { %16321 = vmatprep.subr.bf16.mxu1 %v22993_v60  ;;  %v23042_v60 = vld [vmem:[#allocation11 + $0x1558] ss:$40 sps:$4 sm:$0xff]  }
 0x864   :  { %16367 = vmatpush2.bf16.msra.mxu0 %v22988_v53 }
 0x865   :  { %16368 = vmatprep.subr.bf16.mxu0 %v22996_v51  ;;  %v23050_v51 = vld [vmem:[#allocation11 + $0x150c] ss:$40 sps:$4 sm:$0xff]  }
 0x866   :  { %16322 = vmatpush2.bf16.msra.mxu1 %v22991_v57 }
 0x867   :  { %16323 = vmatprep.subr.bf16.mxu1 %v22999_v40  ;;  %v23045_v40 = vld [vmem:[#allocation11 + $0x10f8] ss:$40 sps:$4 sm:$0xff]  }
 0x868   :  { %16369 = vmatpush2.bf16.msra.mxu0 %v22994_v28 }
 0x869   :  { %16370 = vmatprep.subr.bf16.mxu0 %v23002_v62 }
 0x86a   :  { %16324 = vmatpush2.bf16.msra.mxu1 %v22997_v8  ;;  %v23048_v8 = vld [vmem:[#allocation11 + $0x1508] ss:$40 sps:$4 sm:$0xff]  }
 0x86b   :  { %16325 = vmatprep.subr.bf16.mxu1 %v23005_v37 }
 0x86c   :  { %16371 = vmatpush2.bf16.msra.mxu0 %v23000_v14  ;;  %v23056_v14 = vld [vmem:[#allocation11 + $0x14bc] ss:$40 sps:$4 sm:$0xff]  }
 0x86d   :  { %16372 = vmatprep.subr.bf16.mxu0 %v23008_v22  ;;  %v23051_v22 = vld [vmem:[#allocation11 + $0x10a8] ss:$40 sps:$4 sm:$0xff]  }
 0x86e   :  { %16326 = vmatpush2.bf16.msra.mxu1 %v23003_v55 }
 0x86f   :  { %16327 = vmatprep.subr.bf16.mxu1 %v23011_v27 }
 0x870   :  { %16373 = vmatpush2.bf16.msra.mxu0 %v23006_v2  ;;  %v23059_v2 = vld [vmem:[#allocation11 + $0x105c] ss:$40 sps:$4 sm:$0xff]  }
 0x871   :  { %16374 = vmatprep.subr.bf16.mxu0 %v23014_v9  ;;  %v23054_v9 = vld [vmem:[#allocation11 + $0x14b8] ss:$40 sps:$4 sm:$0xff]  }
 0x872   :  { %16328 = vmatpush2.bf16.msra.mxu1 %v23009_v15  ;;  %v23062_v15 = vld [vmem:[#allocation11 + $0x146c] ss:$40 sps:$4 sm:$0xff]  }
 0x873   :  { %16329 = vmatprep.subr.bf16.mxu1 %v23017_v17  ;;  %v23057_v17 = vld [vmem:[#allocation11 + $0x1058] ss:$40 sps:$4 sm:$0xff]  }
 0x874   :  { %16375 = vmatpush2.bf16.msra.mxu0 %v23012_v58  ;;  %v23065_v58 = vld [vmem:[#allocation11 + $0x100c] ss:$40 sps:$4 sm:$0xff]  }
 0x875   :  { %16376 = vmatprep.subr.bf16.mxu0 %v23020_v11  ;;  %v23060_v11 = vld [vmem:[#allocation11 + $0x1468] ss:$40 sps:$4 sm:$0xff]  }
 0x876   :  { %16330 = vmatpush2.bf16.msra.mxu1 %v23015_v29  ;;  %v23068_v29 = vld [vmem:[#allocation11 + $0x141c] ss:$40 sps:$4 sm:$0xff]  }
 0x877   :  { %16331 = vmatprep.subr.bf16.mxu1 %v23023_v1  ;;  %v23063_v1 = vld [vmem:[#allocation11 + $0x1008] ss:$40 sps:$4 sm:$0xff]  }
 0x878   :  { %16377 = vmatpush2.bf16.msra.mxu0 %v23018_v19  ;;  %v23071_v19 = vld [vmem:[#allocation11 + $0xfbc] ss:$40 sps:$4 sm:$0xff]  }
 0x879   :  { %16428 = vmatprep.subr.bf16.mxu0 %v23026_v35  ;;  %v23066_v35 = vld [vmem:[#allocation11 + $0x1418] ss:$40 sps:$4 sm:$0xff]  }
 0x87a   :  { %16332 = vmatpush2.bf16.msra.mxu1 %v23021_v50  ;;  %v23074_v50 = vld [vmem:[#allocation11 + $0x18cc] ss:$40 sps:$4 sm:$0xff]  }
 0x87b   :  { %v16134_v4 = vpop.f32.mrf.mxu0  ;;  %16379 = vmatmul.mubr.bf16.vlgmr.msra.gmra.mxu0 %v24079_v25  ;;  %16333 = vmatprep.subr.bf16.mxu1 %v23029_v26  ;;  %v23069_v26 = vld [vmem:[#allocation11 + $0xfb8] ss:$40 sps:$4 sm:$0xff]  }
 0x87c   :  { %16429 = vmatpush1.bf16.msra.mxu0 %v23024_v38  ;;  %16460 = vmatprep.mubr.bf16.mxu0 %v24115_v63  ;;  %v23077_v38 = vld [vmem:[#allocation11 + $0xf6c] ss:$40 sps:$4 sm:$0xff]  }
 0x87d   :  { %v16136_v21 = vpop.f32.mrf.mxu0  ;;  %16430 = vmatprep.subr.bf16.mxu0 %v23032_v47  ;;  %v23072_v47 = vld [vmem:[#allocation11 + $0x18c8] ss:$40 sps:$4 sm:$0xff]  }
 0x87e   :  { %16334 = vmatpush2.bf16.msra.mxu1 %v23027_v18  ;;  %v23080_v18 = vld [vmem:[#allocation11 + $0x187c] ss:$40 sps:$4 sm:$0xff]  }
 0x87f   :  { %v16138_v30 = vpop.f32.mrf.mxu0  ;;  %16335 = vmatprep.subr.bf16.mxu1 %v23035_v45  ;;  %v23083_v45 = vld [vmem:[#allocation11 + $0xf1c] ss:$40 sps:$4 sm:$0xff]  }
 0x880   :  { %16431 = vmatpush1.bf16.msra.mxu0 %v23030_v39  ;;  %v23078_v39 = vld [vmem:[#allocation11 + $0x1878] ss:$40 sps:$4 sm:$0xff]   ;;  %v23084_v30 = vld [vmem:[#allocation11 + $0x1828] ss:$40 sps:$4 sm:$0xff]  }
 0x881   :  { %v16139_v23 = vpop.f32.mrf.mxu0  ;;  %16432 = vmatprep.subr.bf16.mxu0 %v23038_v20  ;;  %v23081_v20 = vld [vmem:[#allocation11 + $0xf18] ss:$40 sps:$4 sm:$0xff]  }
 0x882   :  { %16336 = vmatpush2.bf16.msra.mxu1 %v23033_v49  ;;  %v23089_v49 = vld [vmem:[#allocation11 + $0x13cc] ss:$40 sps:$4 sm:$0xff]   ;;  %v23095_v23 = vld [vmem:[#allocation11 + $0x137c] ss:$40 sps:$4 sm:$0xff]  }
 0x883   :  { %16387 = vmatprep.subr.bf16.mxu1 %v23041_v16  ;;  %v23092_v16 = vld [vmem:[#allocation11 + $0x17dc] ss:$40 sps:$4 sm:$0xff]  }
 0x884   :  { %16433 = vmatpush1.bf16.msra.mxu0 %v23036_v34  ;;  %v23087_v34 = vld [vmem:[#allocation11 + $0x13c8] ss:$40 sps:$4 sm:$0xff]  }
 0x885   :  { %v16093_v53 = vpop.f32.mrf.mxu1  ;;  %16338 = vmatmul.mubr.bf16.vlgmr.msra.gmra.mxu1 %v24085_v48  ;;  %16434 = vmatprep.subr.bf16.mxu0 %v23044_v0  ;;  %v23090_v0 = vld [vmem:[#allocation11 + $0x17d8] ss:$40 sps:$4 sm:$0xff]  }
 0x886   :  { %v16094_v57 = vadd.f32 %v16093_v53, %v11618_v42  ;;  %16388 = vmatpush1.bf16.msra.mxu1 %v23039_v43  ;;  %16419 = vmatprep.mubr.bf16.mxu1 %v24087_v56  ;;  %v23098_v42 = vld [vmem:[#allocation11 + $0x178c] ss:$40 sps:$4 sm:$0xff]   ;;  %v23093_v43 = vld [vmem:[#allocation11 + $0x1378] ss:$40 sps:$4 sm:$0xff]   ;;  %v23099_v53 = vld [vmem:[#allocation11 + $0x1328] ss:$40 sps:$4 sm:$0xff]  }
 0x887   :  { %v16095_v28 = vpop.f32.mrf.mxu1  ;;  %16389 = vmatprep.subr.bf16.mxu1 %v23047_v31  ;;  %v23101_v31 = vld [vmem:[#allocation11 + $0x132c] ss:$40 sps:$4 sm:$0xff]  }
 0x888   :  { %v16096_v62 = vadd.f32 %v16095_v28, %v11622_v33  ;;  %16435 = vmatpush1.bf16.msra.mxu0 %v23042_v60  ;;  %v24196_v37 = vadd.f32 %v16134_v4, %v16094_v57  ;;  %v23075_v4 = vld [vmem:[#allocation11 + $0xf68] ss:$40 sps:$4 sm:$0xff]   ;;  %v23104_v60 = vld [vmem:[#allocation11 + $0x173c] ss:$40 sps:$4 sm:$0xff]   ;;  %v23102_v57 = vld [vmem:[#allocation11 + $0x1738] ss:$40 sps:$4 sm:$0xff]  }
 0x889   :  { %v16097_v59 = vpop.f32.mrf.mxu1  ;;  %16436 = vmatprep.subr.bf16.mxu0 %v23050_v51  ;;  %v23096_v33 = vld [vmem:[#allocation11 + $0x1788] ss:$40 sps:$4 sm:$0xff]   ;;  %v23107_v51 = vld [vmem:[#allocation11 + $0x12dc] ss:$40 sps:$4 sm:$0xff]   ;;  %v23105_v28 = vld [vmem:[#allocation11 + $0x12d8] ss:$40 sps:$4 sm:$0xff]  }
 0x88a   :  { %16390 = vmatpush1.bf16.msra.mxu1 %v23045_v40  ;;  %v24198_v55 = vadd.f32 %v16136_v21, %v16096_v62  ;;  %v23086_v21 = vld [vmem:[#allocation11 + $0x182c] ss:$40 sps:$4 sm:$0xff]   ;;  %v23108_v62 = vld [vmem:[#allocation11 + $0x16e8] ss:$40 sps:$4 sm:$0xff]  }
 0x88b   :  { %v16098_v27 = vpop.f32.mrf.mxu1  ;;  %16391 = vmatprep.subr.bf16.mxu1 %v23053_v54  ;;  %v23110_v40 = vld [vmem:[#allocation11 + $0x16ec] ss:$40 sps:$4 sm:$0xff]   ;;  %v23111_v59 = vld [vmem:[#allocation11 + $0x1288] ss:$40 sps:$4 sm:$0xff]  }
 0x88c   :  { %16437 = vmatpush1.bf16.msra.mxu0 %v23048_v8  ;;  %v23113_v54 = vld [vmem:[#allocation11 + $0x128c] ss:$40 sps:$4 sm:$0xff]   ;;  %v23116_v8 = vld [vmem:[#allocation11 + $0x169c] ss:$40 sps:$4 sm:$0xff]  }
 0x88d   :  { %16438 = vmatprep.subr.bf16.mxu0 %v23056_v14  ;;  %v23119_v14 = vld [vmem:[#allocation11 + $0x123c] ss:$40 sps:$4 sm:$0xff]  }
 0x88e   :  { %16392 = vmatpush1.bf16.msra.mxu1 %v23051_v22  ;;  %v23114_v22 = vld [vmem:[#allocation11 + $0x1698] ss:$40 sps:$4 sm:$0xff]   ;;  %v23122_v27 = vld [vmem:[#allocation11 + $0x754] ss:$40 sps:$4 sm:$0xff]  }
 0x88f   :  { %16393 = vmatprep.subr.bf16.mxu1 %v23059_v2  ;;  %v23117_v2 = vld [vmem:[#allocation11 + $0x1238] ss:$40 sps:$4 sm:$0xff]  }
 0x890   :  { %16439 = vmatpush1.bf16.msra.mxu0 %v23054_v9  ;;  %v23125_v9 = vld [vmem:[#allocation11 + $0x11ec] ss:$40 sps:$4 sm:$0xff]  }
 0x891   :  { %16440 = vmatprep.subr.bf16.mxu0 %v23062_v15  ;;  %v23120_v15 = vld [vmem:[#allocation11 + $0x750] ss:$40 sps:$4 sm:$0xff]  }
 0x892   :  { %16394 = vmatpush1.bf16.msra.mxu1 %v23057_v17  ;;  %v23128_v17 = vld [vmem:[#allocation11 + $0x704] ss:$40 sps:$4 sm:$0xff]  }
 0x893   :  { %16395 = vmatprep.subr.bf16.mxu1 %v23065_v58  ;;  %v23123_v58 = vld [vmem:[#allocation11 + $0x11e8] ss:$40 sps:$4 sm:$0xff]  }
 0x894   :  { %16441 = vmatpush1.bf16.msra.mxu0 %v23060_v11 }
 0x895   :  { %16442 = vmatprep.subr.bf16.mxu0 %v23068_v29  ;;  %v23131_v29 = vld [vmem:[#allocation11 + $0x119c] ss:$40 sps:$4 sm:$0xff]  }
 0x896   :  { %16396 = vmatpush1.bf16.msra.mxu1 %v23063_v1  ;;  %v23126_v1 = vld [vmem:[#allocation11 + $0x700] ss:$40 sps:$4 sm:$0xff]  }
 0x897   :  { %16397 = vmatprep.subr.bf16.mxu1 %v23071_v19 }
 0x898   :  { %16443 = vmatpush1.bf16.msra.mxu0 %v23066_v35  ;;  %v23134_v35 = vld [vmem:[#allocation11 + $0x6b4] ss:$40 sps:$4 sm:$0xff]  }
 0x899   :  { %16444 = vmatprep.subr.bf16.mxu0 %v23074_v50  ;;  %v23129_v50 = vld [vmem:[#allocation11 + $0x1198] ss:$40 sps:$4 sm:$0xff]  }
 0x89a   :  { %16398 = vmatpush1.bf16.msra.mxu1 %v23069_v26 }
 0x89b   :  { %16399 = vmatprep.subr.bf16.mxu1 %v23077_v38  ;;  %v23137_v38 = vld [vmem:[#allocation11 + $0x254] ss:$40 sps:$4 sm:$0xff]  }
 0x89c   :  { %16445 = vmatpush2.bf16.msra.mxu0 %v23072_v47  ;;  %v23132_v47 = vld [vmem:[#allocation11 + $0x6b0] ss:$40 sps:$4 sm:$0xff]  }
 0x89d   :  { %16446 = vmatprep.subr.bf16.mxu0 %v23080_v18 }
 0x89e   :  { %16400 = vmatpush1.bf16.msra.mxu1 %v23075_v4  ;;  %v23140_v4 = vld [vmem:[#allocation11 + $0x664] ss:$40 sps:$4 sm:$0xff]  }
 0x89f   :  { %16401 = vmatprep.subr.bf16.mxu1 %v23083_v45  ;;  %v23135_v45 = vld [vmem:[#allocation11 + $0x250] ss:$40 sps:$4 sm:$0xff]  }
 0x8a0   :  { %16447 = vmatpush2.bf16.msra.mxu0 %v23078_v39  ;;  %v23143_v39 = vld [vmem:[#allocation11 + $0x204] ss:$40 sps:$4 sm:$0xff]  }
 0x8a1   :  { %16448 = vmatprep.subr.bf16.mxu0 %v23086_v21 }
 0x8a2   :  { %16402 = vmatpush1.bf16.msra.mxu1 %v23081_v20  ;;  %v23146_v20 = vld [vmem:[#allocation11 + $0x614] ss:$40 sps:$4 sm:$0xff]  }
 0x8a3   :  { %16403 = vmatprep.subr.bf16.mxu1 %v23089_v49 }
 0x8a4   :  { %16449 = vmatpush2.bf16.msra.mxu0 %v23084_v30  ;;  %v23141_v30 = vld [vmem:[#allocation11 + $0x200] ss:$40 sps:$4 sm:$0xff]  }
 0x8a5   :  { %16450 = vmatprep.subr.bf16.mxu0 %v23092_v16 }
 0x8a6   :  { %16404 = vmatpush2.bf16.msra.mxu1 %v23087_v34  ;;  %v23149_v34 = vld [vmem:[#allocation11 + $0x1b4] ss:$40 sps:$4 sm:$0xff]  }
 0x8a7   :  { %16405 = vmatprep.subr.bf16.mxu1 %v23095_v23 }
 0x8a8   :  { %16451 = vmatpush2.bf16.msra.mxu0 %v23090_v0  ;;  %v23144_v0 = vld [vmem:[#allocation11 + $0x610] ss:$40 sps:$4 sm:$0xff]  }
 0x8a9   :  { %16452 = vmatprep.subr.bf16.mxu0 %v23098_v42 }
 0x8aa   :  { %16406 = vmatpush2.bf16.msra.mxu1 %v23093_v43 }
 0x8ab   :  { %16407 = vmatprep.subr.bf16.mxu1 %v23101_v31  ;;  %v23152_v31 = vld [vmem:[#allocation11 + $0x5c4] ss:$40 sps:$4 sm:$0xff]  }
 0x8ac   :  { %16453 = vmatpush2.bf16.msra.mxu0 %v23096_v33  ;;  %v23147_v33 = vld [vmem:[#allocation11 + $0x1b0] ss:$40 sps:$4 sm:$0xff]  }
 0x8ad   :  { %16454 = vmatprep.subr.bf16.mxu0 %v23104_v60 }
 0x8ae   :  { %16408 = vmatpush2.bf16.msra.mxu1 %v23099_v53  ;;  %v23150_v53 = vld [vmem:[#allocation11 + $0x5c0] ss:$40 sps:$4 sm:$0xff]  }
 0x8af   :  { %16409 = vmatprep.subr.bf16.mxu1 %v23107_v51  ;;  %v23158_v51 = vld [vmem:[#allocation11 + $0x574] ss:$40 sps:$4 sm:$0xff]  }
 0x8b0   :  { %16455 = vmatpush2.bf16.msra.mxu0 %v23102_v57  ;;  %v23161_v57 = vld [vmem:[#allocation11 + $0x114] ss:$40 sps:$4 sm:$0xff]  }
 0x8b1   :  { %16456 = vmatprep.subr.bf16.mxu0 %v23110_v40  ;;  %v23156_v40 = vld [vmem:[#allocation11 + $0x570] ss:$40 sps:$4 sm:$0xff]  }
 0x8b2   :  { %16410 = vmatpush2.bf16.msra.mxu1 %v23105_v28  ;;  %v23164_v28 = vld [vmem:[#allocation11 + $0x524] ss:$40 sps:$4 sm:$0xff]  }
 0x8b3   :  { %16411 = vmatprep.subr.bf16.mxu1 %v23113_v54  ;;  %v23159_v54 = vld [vmem:[#allocation11 + $0x110] ss:$40 sps:$4 sm:$0xff]  }
 0x8b4   :  { %16457 = vmatpush2.bf16.msra.mxu0 %v23108_v62  ;;  %v23167_v62 = vld [vmem:[#allocation11 + $0xc4] ss:$40 sps:$4 sm:$0xff]  }
 0x8b5   :  { %16458 = vmatprep.subr.bf16.mxu0 %v23116_v8  ;;  %v23162_v8 = vld [vmem:[#allocation11 + $0x520] ss:$40 sps:$4 sm:$0xff]  }
 0x8b6   :  { %16412 = vmatpush2.bf16.msra.mxu1 %v23111_v59  ;;  %v23170_v59 = vld [vmem:[#allocation11 + $0x9d4] ss:$40 sps:$4 sm:$0xff]  }
 0x8b7   :  { %16413 = vmatprep.subr.bf16.mxu1 %v23119_v14  ;;  %v23165_v14 = vld [vmem:[#allocation11 + $0xc0] ss:$40 sps:$4 sm:$0xff]  }
 0x8b8   :  { %16459 = vmatpush2.bf16.msra.mxu0 %v23114_v22  ;;  %v23173_v22 = vld [vmem:[#allocation11 + $0x74] ss:$40 sps:$4 sm:$0xff]  }
 0x8b9   :  { %16510 = vmatprep.subr.bf16.mxu0 %v23122_v27  ;;  %v23168_v27 = vld [vmem:[#allocation11 + $0x9d0] ss:$40 sps:$4 sm:$0xff]  }
 0x8ba   :  { %16414 = vmatpush2.bf16.msra.mxu1 %v23117_v2  ;;  %v23176_v2 = vld [vmem:[#allocation11 + $0x984] ss:$40 sps:$4 sm:$0xff]  }
 0x8bb   :  { %v16216_v11 = vpop.f32.mrf.mxu0  ;;  %16461 = vmatmul.mubr.bf16.vlgmr.msra.gmra.mxu0 %v24117_v52  ;;  %16415 = vmatprep.subr.bf16.mxu1 %v23125_v9  ;;  %v23171_v9 = vld [vmem:[#allocation11 + $0x70] ss:$40 sps:$4 sm:$0xff]  }
 0x8bc   :  { %16511 = vmatpush1.bf16.msra.mxu0 %v23120_v15  ;;  %16542 = vmatprep.mubr.bf16.mxu0 %v24068_v10  ;;  %v23138_v10 = vld [vmem:[#allocation11 + $0x660] ss:$40 sps:$4 sm:$0xff]   ;;  %v23179_v15 = vld [vmem:[#allocation11 + $0x24] ss:$40 sps:$4 sm:$0xff]  }
 0x8bd   :  { %v16218_v19 = vpop.f32.mrf.mxu0  ;;  %16512 = vmatprep.subr.bf16.mxu0 %v23128_v17  ;;  %v23174_v17 = vld [vmem:[#allocation11 + $0x980] ss:$40 sps:$4 sm:$0xff]  }
 0x8be   :  { %16416 = vmatpush2.bf16.msra.mxu1 %v23123_v58  ;;  %v23182_v58 = vld [vmem:[#allocation11 + $0x934] ss:$40 sps:$4 sm:$0xff]  }
 0x8bf   :  { %v16220_v26 = vpop.f32.mrf.mxu0  ;;  %16417 = vmatprep.subr.bf16.mxu1 %v23131_v29  ;;  %v23185_v29 = vld [vmem:[#allocation11 + $0x4d4] ss:$40 sps:$4 sm:$0xff]  }
 0x8c0   :  { %16513 = vmatpush1.bf16.msra.mxu0 %v23126_v1  ;;  %v23180_v1 = vld [vmem:[#allocation11 + $0x930] ss:$40 sps:$4 sm:$0xff]   ;;  %v23186_v26 = vld [vmem:[#allocation11 + $0x8e0] ss:$40 sps:$4 sm:$0xff]  }
 0x8c1   :  { %v16221_v18 = vpop.f32.mrf.mxu0  ;;  %16514 = vmatprep.subr.bf16.mxu0 %v23134_v35  ;;  %v23183_v35 = vld [vmem:[#allocation11 + $0x4d0] ss:$40 sps:$4 sm:$0xff]  }
 0x8c2   :  { %16418 = vmatpush2.bf16.msra.mxu1 %v23129_v50  ;;  %v23191_v50 = vld [vmem:[#allocation11 + $0x484] ss:$40 sps:$4 sm:$0xff]   ;;  %v23197_v18 = vld [vmem:[#allocation11 + $0x434] ss:$40 sps:$4 sm:$0xff]  }
 0x8c3   :  { %16469 = vmatprep.subr.bf16.mxu1 %v23137_v38  ;;  %v23194_v38 = vld [vmem:[#allocation11 + $0x894] ss:$40 sps:$4 sm:$0xff]  }
 0x8c4   :  { %16515 = vmatpush1.bf16.msra.mxu0 %v23132_v47  ;;  %v23189_v47 = vld [vmem:[#allocation11 + $0x480] ss:$40 sps:$4 sm:$0xff]  }
 0x8c5   :  { %v16175_v21 = vpop.f32.mrf.mxu1  ;;  %16420 = vmatmul.mubr.bf16.vlgmr.msra.gmra.mxu1 %v24097_v36  ;;  %16516 = vmatprep.subr.bf16.mxu0 %v23140_v4  ;;  %v23192_v4 = vld [vmem:[#allocation11 + $0x890] ss:$40 sps:$4 sm:$0xff]  }
 0x8c6   :  { %v16176_v49 = vadd.f32 %v16175_v21, %v24196_v37  ;;  %16470 = vmatpush1.bf16.msra.mxu1 %v23135_v45  ;;  %16501 = vmatprep.mubr.bf16.mxu1 %v24043_v7  ;;  %v23155_v7 = vld [vmem:[#allocation11 + $0x164] ss:$40 sps:$4 sm:$0xff]   ;;  %v23198_v21 = vld [vmem:[#allocation11 + $0x840] ss:$40 sps:$4 sm:$0xff]  }
 0x8c7   :  { %v16177_v16 = vpop.f32.mrf.mxu1  ;;  %16471 = vmatprep.subr.bf16.mxu1 %v23143_v39  ;;  %v23200_v45 = vld [vmem:[#allocation11 + $0x844] ss:$40 sps:$4 sm:$0xff]   ;;  %v23195_v39 = vld [vmem:[#allocation11 + $0x430] ss:$40 sps:$4 sm:$0xff]  }
 0x8c8   :  { %v16178_v23 = vadd.f32 %v16177_v16, %v24198_v55  ;;  %16517 = vmatpush1.bf16.msra.mxu0 %v23138_v10  ;;  %v24206_v42 = vadd.f32 %v16216_v11, %v16176_v49  ;;  %v23153_v55 = vld [vmem:[#allocation11 + $0x160] ss:$40 sps:$4 sm:$0xff]   ;;  %v23203_v10 = vld [vmem:[#allocation11 + $0x3e4] ss:$40 sps:$4 sm:$0xff]   ;;  %v23204_v16 = vld [vmem:[#allocation11 + $0x7f0] ss:$40 sps:$4 sm:$0xff]  }
 0x8c9   :  { %v16179_v43 = vpop.f32.mrf.mxu1  ;;  %16518 = vmatprep.subr.bf16.mxu0 %v23146_v20  ;;  %v23177_v11 = vld [vmem:[#allocation11 + $0x20] ss:$40 sps:$4 sm:$0xff]   ;;  %v23206_v20 = vld [vmem:[#allocation11 + $0x7f4] ss:$40 sps:$4 sm:$0xff]  }
 0x8ca   :  { %16472 = vmatpush1.bf16.msra.mxu1 %v23141_v30  ;;  %v24208_v60 = vadd.f32 %v16218_v19, %v16178_v23  ;;  %v23188_v19 = vld [vmem:[#allocation11 + $0x8e4] ss:$40 sps:$4 sm:$0xff]   ;;  %v23201_v49 = vld [vmem:[#allocation11 + $0x3e0] ss:$40 sps:$4 sm:$0xff]   ;;  %v23209_v30 = vld [vmem:[#allocation11 + $0x394] ss:$40 sps:$4 sm:$0xff]  }
 0x8cb   :  { %v16180_v37 = vpop.f32.mrf.mxu1  ;;  %16473 = vmatprep.subr.bf16.mxu1 %v23149_v34  ;;  %v23212_v34 = vld [vmem:[#allocation11 + $0x7a4] ss:$40 sps:$4 sm:$0xff]   ;;  %v23207_v23 = vld [vmem:[#allocation11 + $0x390] ss:$40 sps:$4 sm:$0xff]   ;;  %v23210_v43 = vld [vmem:[#allocation11 + $0x7a0] ss:$40 sps:$4 sm:$0xff]  }
 0x8cc   :  { %16519 = vmatpush1.bf16.msra.mxu0 %v23144_v0  ;;  %v23215_v0 = vld [vmem:[#allocation11 + $0x344] ss:$40 sps:$4 sm:$0xff]   ;;  %v23221_v37 = vld [vmem:[#allocation11 + $0x2f4] ss:$40 sps:$4 sm:$0xff]  }
 0x8cd   :  { %16520 = vmatprep.subr.bf16.mxu0 %v23152_v31  ;;  %v23218_v31 = vld [vmem:[#allocation11 + $0x1154] ss:$40 sps:$4 sm:$0xff]  }
 0x8ce   :  { %16474 = vmatpush1.bf16.msra.mxu1 %v23147_v33  ;;  %v23213_v33 = vld [vmem:[#allocation11 + $0x340] ss:$40 sps:$4 sm:$0xff]  }
 0x8cf   :  { %16475 = vmatprep.subr.bf16.mxu1 %v23155_v7  ;;  %v23216_v7 = vld [vmem:[#allocation11 + $0x1150] ss:$40 sps:$4 sm:$0xff]  }
 0x8d0   :  { %16521 = vmatpush1.bf16.msra.mxu0 %v23150_v53  ;;  %v23224_v53 = vld [vmem:[#allocation11 + $0x1104] ss:$40 sps:$4 sm:$0xff]  }
 0x8d1   :  { %16522 = vmatprep.subr.bf16.mxu0 %v23158_v51  ;;  %v23219_v51 = vld [vmem:[#allocation11 + $0x2f0] ss:$40 sps:$4 sm:$0xff]  }
 0x8d2   :  { %16476 = vmatpush1.bf16.msra.mxu1 %v23153_v55 }
 0x8d3   :  { %16477 = vmatprep.subr.bf16.mxu1 %v23161_v57  ;;  %v23227_v57 = vld [vmem:[#allocation11 + $0x2a4] ss:$40 sps:$4 sm:$0xff]  }
 0x8d4   :  { %16523 = vmatpush1.bf16.msra.mxu0 %v23156_v40  ;;  %v23222_v40 = vld [vmem:[#allocation11 + $0x1100] ss:$40 sps:$4 sm:$0xff]  }
 0x8d5   :  { %16524 = vmatprep.subr.bf16.mxu0 %v23164_v28 }
 0x8d6   :  { %16478 = vmatpush1.bf16.msra.mxu1 %v23159_v54  ;;  %v23230_v54 = vld [vmem:[#allocation11 + $0x10b4] ss:$40 sps:$4 sm:$0xff]  }
 0x8d7   :  { %16479 = vmatprep.subr.bf16.mxu1 %v23167_v62  ;;  %v23225_v62 = vld [vmem:[#allocation11 + $0x2a0] ss:$40 sps:$4 sm:$0xff]  }
 0x8d8   :  { %16525 = vmatpush1.bf16.msra.mxu0 %v23162_v8 }
 0x8d9   :  { %16526 = vmatprep.subr.bf16.mxu0 %v23170_v59  ;;  %v23233_v59 = vld [vmem:[#allocation11 + $0xc54] ss:$40 sps:$4 sm:$0xff]  }
 0x8da   :  { %16480 = vmatpush1.bf16.msra.mxu1 %v23165_v14  ;;  %v23228_v14 = vld [vmem:[#allocation11 + $0x10b0] ss:$40 sps:$4 sm:$0xff]  }
 0x8db   :  { %16481 = vmatprep.subr.bf16.mxu1 %v23173_v22 }
 0x8dc   :  { %16527 = vmatpush2.bf16.msra.mxu0 %v23168_v27  ;;  %v23231_v27 = vld [vmem:[#allocation11 + $0xc50] ss:$40 sps:$4 sm:$0xff]  }
 0x8dd   :  { %16528 = vmatprep.subr.bf16.mxu0 %v23176_v2  ;;  %v23239_v2 = vld [vmem:[#allocation11 + $0xc04] ss:$40 sps:$4 sm:$0xff]  }
 0x8de   :  { %16482 = vmatpush1.bf16.msra.mxu1 %v23171_v9 }
 0x8df   :  { %16483 = vmatprep.subr.bf16.mxu1 %v23179_v15  ;;  %v23242_v15 = vld [vmem:[#allocation11 + $0x1014] ss:$40 sps:$4 sm:$0xff]  }
 0x8e0   :  { %16529 = vmatpush2.bf16.msra.mxu0 %v23174_v17 }
 0x8e1   :  { %16530 = vmatprep.subr.bf16.mxu0 %v23182_v58  ;;  %v23237_v58 = vld [vmem:[#allocation11 + $0xc00] ss:$40 sps:$4 sm:$0xff]  }
 0x8e2   :  { %16484 = vmatpush1.bf16.msra.mxu1 %v23177_v11 }
 0x8e3   :  { %16485 = vmatprep.subr.bf16.mxu1 %v23185_v29  ;;  %v23245_v29 = vld [vmem:[#allocation11 + $0xbb4] ss:$40 sps:$4 sm:$0xff]  }
 0x8e4   :  { %16531 = vmatpush2.bf16.msra.mxu0 %v23180_v1 }
 0x8e5   :  { %16532 = vmatprep.subr.bf16.mxu0 %v23188_v19  ;;  %v23240_v19 = vld [vmem:[#allocation11 + $0x1010] ss:$40 sps:$4 sm:$0xff]  }
 0x8e6   :  { %16486 = vmatpush2.bf16.msra.mxu1 %v23183_v35 }
 0x8e7   :  { %16487 = vmatprep.subr.bf16.mxu1 %v23191_v50  ;;  %v23243_v50 = vld [vmem:[#allocation11 + $0xbb0] ss:$40 sps:$4 sm:$0xff]  }
 0x8e8   :  { %16533 = vmatpush2.bf16.msra.mxu0 %v23186_v26 }
 0x8e9   :  { %16534 = vmatprep.subr.bf16.mxu0 %v23194_v38  ;;  %v23246_v38 = vld [vmem:[#allocation11 + $0xfc0] ss:$40 sps:$4 sm:$0xff]  }
 0x8ea   :  { %16488 = vmatpush2.bf16.msra.mxu1 %v23189_v47  ;;  %v23249_v47 = vld [vmem:[#allocation11 + $0xb60] ss:$40 sps:$4 sm:$0xff]  }
 0x8eb   :  { %16489 = vmatprep.subr.bf16.mxu1 %v23197_v18  ;;  %v23257_v18 = vld [vmem:[#allocation11 + $0xb14] ss:$40 sps:$4 sm:$0xff]  }
 0x8ec   :  { %16535 = vmatpush2.bf16.msra.mxu0 %v23192_v4  ;;  %v23260_v4 = vld [vmem:[#allocation11 + $0xf24] ss:$40 sps:$4 sm:$0xff]  }
 0x8ed   :  { %16536 = vmatprep.subr.bf16.mxu0 %v23200_v45  ;;  %v23255_v45 = vld [vmem:[#allocation11 + $0xb10] ss:$40 sps:$4 sm:$0xff]  }
 0x8ee   :  { %16490 = vmatpush2.bf16.msra.mxu1 %v23195_v39  ;;  %v23263_v39 = vld [vmem:[#allocation11 + $0xac4] ss:$40 sps:$4 sm:$0xff]  }
 0x8ef   :  { %16491 = vmatprep.subr.bf16.mxu1 %v23203_v10  ;;  %v23258_v10 = vld [vmem:[#allocation11 + $0xf20] ss:$40 sps:$4 sm:$0xff]  }
 0x8f0   :  { %16537 = vmatpush2.bf16.msra.mxu0 %v23198_v21  ;;  %v23266_v21 = vld [vmem:[#allocation11 + $0x13d4] ss:$40 sps:$4 sm:$0xff]  }
 0x8f1   :  { %16538 = vmatprep.subr.bf16.mxu0 %v23206_v20  ;;  %v23261_v20 = vld [vmem:[#allocation11 + $0xac0] ss:$40 sps:$4 sm:$0xff]  }
 0x8f2   :  { %16492 = vmatpush2.bf16.msra.mxu1 %v23201_v49  ;;  %v23269_v49 = vld [vmem:[#allocation11 + $0xa74] ss:$40 sps:$4 sm:$0xff]  }
 0x8f3   :  { %16493 = vmatprep.subr.bf16.mxu1 %v23209_v30  ;;  %v23264_v30 = vld [vmem:[#allocation11 + $0x13d0] ss:$40 sps:$4 sm:$0xff]  }
 0x8f4   :  { %16539 = vmatpush2.bf16.msra.mxu0 %v23204_v16  ;;  %v23272_v16 = vld [vmem:[#allocation11 + $0x1384] ss:$40 sps:$4 sm:$0xff]  }
 0x8f5   :  { %16540 = vmatprep.subr.bf16.mxu0 %v23212_v34  ;;  %v23267_v34 = vld [vmem:[#allocation11 + $0xa70] ss:$40 sps:$4 sm:$0xff]  }
 0x8f6   :  { %16494 = vmatpush2.bf16.msra.mxu1 %v23207_v23  ;;  %v23275_v23 = vld [vmem:[#allocation11 + $0xa24] ss:$40 sps:$4 sm:$0xff]  }
 0x8f7   :  { %16495 = vmatprep.subr.bf16.mxu1 %v23215_v0  ;;  %v23270_v0 = vld [vmem:[#allocation11 + $0x1380] ss:$40 sps:$4 sm:$0xff]  }
 0x8f8   :  { %16541 = vmatpush2.bf16.msra.mxu0 %v23210_v43  ;;  %v23278_v43 = vld [vmem:[#allocation11 + $0x1334] ss:$40 sps:$4 sm:$0xff]  }
 0x8f9   :  { %16592 = vmatprep.subr.bf16.mxu0 %v23218_v31  ;;  %v23273_v31 = vld [vmem:[#allocation11 + $0xa20] ss:$40 sps:$4 sm:$0xff]  }
 0x8fa   :  { %16496 = vmatpush2.bf16.msra.mxu1 %v23213_v33  ;;  %v23281_v33 = vld [vmem:[#allocation11 + $0xed4] ss:$40 sps:$4 sm:$0xff]  }
 0x8fb   :  { %v24210_v55 = vpop.f32.mrf.mxu0  ;;  %16543 = vmatmul.mubr.bf16.vlgmr.msra.gmra.mxu0 %v24085_v48  ;;  %16497 = vmatprep.subr.bf16.mxu1 %v23221_v37  ;;  %v23236_v48 = vld [vmem:[#allocation11 + $0x1064] ss:$40 sps:$4 sm:$0xff]   ;;  %v23276_v37 = vld [vmem:[#allocation11 + $0x1330] ss:$40 sps:$4 sm:$0xff]  }
 0x8fc   :  { %16593 = vmatpush1.bf16.msra.mxu0 %v23216_v7  ;;  %16624 = vmatprep.mubr.bf16.mxu0 %v24087_v56  ;;  %v23234_v56 = vld [vmem:[#allocation11 + $0x1060] ss:$40 sps:$4 sm:$0xff]   ;;  %v23284_v7 = vld [vmem:[#allocation11 + $0x12e4] ss:$40 sps:$4 sm:$0xff]  }
 0x8fd   :  { %v24214_v28 = vpop.f32.mrf.mxu0  ;;  %16594 = vmatprep.subr.bf16.mxu0 %v23224_v53  ;;  %v23279_v53 = vld [vmem:[#allocation11 + $0xed0] ss:$40 sps:$4 sm:$0xff]  }
 0x8fe   :  { %16498 = vmatpush2.bf16.msra.mxu1 %v23219_v51  ;;  %v23287_v51 = vld [vmem:[#allocation11 + $0xe84] ss:$40 sps:$4 sm:$0xff]  }
 0x8ff   :  { %v16302_v8 = vpop.f32.mrf.mxu0  ;;  %16499 = vmatprep.subr.bf16.mxu1 %v23227_v57  ;;  %v23282_v57 = vld [vmem:[#allocation11 + $0x12e0] ss:$40 sps:$4 sm:$0xff]  }
 0x900   :  { %16595 = vmatpush1.bf16.msra.mxu0 %v23222_v40  ;;  %v23290_v40 = vld [vmem:[#allocation11 + $0x1294] ss:$40 sps:$4 sm:$0xff]   ;;  %v23288_v8 = vld [vmem:[#allocation11 + $0x1290] ss:$40 sps:$4 sm:$0xff]  }
 0x901   :  { %v16303_v22 = vpop.f32.mrf.mxu0  ;;  %16596 = vmatprep.subr.bf16.mxu0 %v23230_v54  ;;  %v23285_v54 = vld [vmem:[#allocation11 + $0xe80] ss:$40 sps:$4 sm:$0xff]  }
 0x902   :  { %16500 = vmatpush2.bf16.msra.mxu1 %v23225_v62  ;;  %v23293_v62 = vld [vmem:[#allocation11 + $0xe34] ss:$40 sps:$4 sm:$0xff]   ;;  %v23299_v22 = vld [vmem:[#allocation11 + $0xde4] ss:$40 sps:$4 sm:$0xff]  }
 0x903   :  { %16551 = vmatprep.subr.bf16.mxu1 %v23233_v59  ;;  %v23296_v59 = vld [vmem:[#allocation11 + $0x1244] ss:$40 sps:$4 sm:$0xff]  }
 0x904   :  { %16597 = vmatpush1.bf16.msra.mxu0 %v23228_v14  ;;  %v23291_v14 = vld [vmem:[#allocation11 + $0xe30] ss:$40 sps:$4 sm:$0xff]  }
 0x905   :  { %v16257_v9 = vpop.f32.mrf.mxu1  ;;  %16502 = vmatmul.mubr.bf16.vlgmr.msra.gmra.mxu1 %v24061_v46  ;;  %16598 = vmatprep.subr.bf16.mxu0 %v23236_v48  ;;  %v23248_v46 = vld [vmem:[#allocation11 + $0xfc4] ss:$40 sps:$4 sm:$0xff]   ;;  %v23294_v48 = vld [vmem:[#allocation11 + $0x1240] ss:$40 sps:$4 sm:$0xff]  }
 0x906   :  { %v24218_v17 = vadd.f32 %v16257_v9, %v24206_v42  ;;  %16552 = vmatpush1.bf16.msra.mxu1 %v23231_v27  ;;  %16583 = vmatprep.mubr.bf16.mxu1 %v24063_v13  ;;  %v23251_v42 = vld [vmem:[#allocation11 + $0xb64] ss:$40 sps:$4 sm:$0xff]   ;;  %v23254_v13 = vld [vmem:[#allocation11 + $0xf74] ss:$40 sps:$4 sm:$0xff]   ;;  %v23300_v9 = vld [vmem:[#allocation11 + $0x11f0] ss:$40 sps:$4 sm:$0xff]  }
 0x907   :  { %v16259_v11 = vpop.f32.mrf.mxu1  ;;  %16553 = vmatprep.subr.bf16.mxu1 %v23239_v2  ;;  %v23302_v27 = vld [vmem:[#allocation11 + $0x11f4] ss:$40 sps:$4 sm:$0xff]   ;;  %v23297_v2 = vld [vmem:[#allocation11 + $0xde0] ss:$40 sps:$4 sm:$0xff]  }
 0x908   :  { %v24222_v1 = vadd.f32 %v16259_v11, %v24208_v60  ;;  %16599 = vmatpush1.bf16.msra.mxu0 %v23234_v56  ;;  %v23252_v60 = vld [vmem:[#allocation11 + $0xf70] ss:$40 sps:$4 sm:$0xff]   ;;  %v23305_v56 = vld [vmem:[#allocation11 + $0xd94] ss:$40 sps:$4 sm:$0xff]   ;;  %v23311_v11 = vld [vmem:[#allocation11 + $0xd44] ss:$40 sps:$4 sm:$0xff]  }
 0x909   :  { %v16261_v35 = vpop.f32.mrf.mxu1  ;;  %16600 = vmatprep.subr.bf16.mxu0 %v23242_v15  ;;  %v23308_v15 = vld [vmem:[#allocation11 + $0x11a4] ss:$40 sps:$4 sm:$0xff]  }
 0x90a   :  { %16554 = vmatpush1.bf16.msra.mxu1 %v23237_v58  ;;  %v23303_v58 = vld [vmem:[#allocation11 + $0xd90] ss:$40 sps:$4 sm:$0xff]   ;;  %v16675_v35 = vmax.f32 %v24160_v61, 0.0 }
 0x90b   :  { %v16262_v26 = vpop.f32.mrf.mxu1  ;;  %16555 = vmatprep.subr.bf16.mxu1 %v23245_v29  ;;  %v23306_v29 = vld [vmem:[#allocation11 + $0x11a0] ss:$40 sps:$4 sm:$0xff]  }
 0x90c   :  { %16601 = vmatpush1.bf16.msra.mxu0 %v23240_v19  ;;  %v23312_v19 = vld [vmem:[#allocation14 + $0x78] sm:$0xff]  }
 0x90d   :  { %16602 = vmatprep.subr.bf16.mxu0 %v23248_v46  ;;  %v23309_v46 = vld [vmem:[#allocation11 + $0xd40] ss:$40 sps:$4 sm:$0xff]  }
 0x90e   :  { %16556 = vmatpush1.bf16.msra.mxu1 %v23243_v50  ;;  %v23315_v50 = vld [vmem:[#allocation11 + $0xcf4] ss:$40 sps:$4 sm:$0xff]   ;;  %v23316_v26 = vld [vmem:[#allocation14 + $0x38] sm:$0xff]  }
 0x90f   :  { %16557 = vmatprep.subr.bf16.mxu1 %v23251_v42  ;;  %v23317_v42 = vld [vmem:[#allocation14 + $0x70] sm:$0xff]  }
 0x910   :  { %16603 = vmatpush1.bf16.msra.mxu0 %v23246_v38  ;;  %v16685_v38 = vpack.c.bf16 %v16675_v35, %v16675_v35  ;;  %v23357_v35 = vld [vmem:[#allocation14 + $0x170] sm:$0xff]  }
 0x911   :  { %16604 = vmatprep.subr.bf16.mxu0 %v23254_v13  ;;  %v23313_v13 = vld [vmem:[#allocation11 + $0xcf0] ss:$40 sps:$4 sm:$0xff]  }
 0x912   :  { %16558 = vmatpush1.bf16.msra.mxu1 %v23249_v47 }
 0x913   :  { %16559 = vmatprep.subr.bf16.mxu1 %v23257_v18  ;;  %v23320_v18 = vld [vmem:[#allocation11 + $0xca4] ss:$40 sps:$4 sm:$0xff]  }
 0x914   :  { %16605 = vmatpush1.bf16.msra.mxu0 %v23252_v60  ;;  %v23321_v60 = vld [vmem:[#allocation14 + $0x30] sm:$0xff]  }
 0x915   :  { %16606 = vmatprep.subr.bf16.mxu0 %v23260_v4  ;;  %v23322_v4 = vld [vmem:[#allocation14 + $0x68] sm:$0xff]  }
 0x916   :  { %16560 = vmatpush1.bf16.msra.mxu1 %v23255_v45  ;;  %v23318_v45 = vld [vmem:[#allocation11 + $0xca0] ss:$40 sps:$4 sm:$0xff]  }
 0x917   :  { %16561 = vmatprep.subr.bf16.mxu1 %v23263_v39 }
 0x918   :  { %16607 = vmatpush1.bf16.msra.mxu0 %v23258_v10  ;;  %v23325_v10 = vld [vmem:[#allocation11 + $0x1654] ss:$40 sps:$4 sm:$0xff]  }
 0x919   :  { %16608 = vmatprep.subr.bf16.mxu0 %v23266_v21  ;;  %v11626_v21 = vrot.slane %v24188_v5, %v23866_v24  ;;  %v23332_v24 = vld [vmem:[#allocation14 + $0x58] sm:$0xff]  }
 0x91a   :  { %16562 = vmatpush1.bf16.msra.mxu1 %v23261_v20  ;;  %v23326_v20 = vld [vmem:[#allocation14 + $0x28] sm:$0xff]  }
 0x91b   :  { %16563 = vmatprep.subr.bf16.mxu1 %v23269_v49 }
 0x91c   :  { %16609 = vmatpush2.bf16.msra.mxu0 %v23264_v30  ;;  %v11630_v30 = vrot.slane %v24188_v5, %v23889_v3  ;;  %v23328_v3 = vld [vmem:[#allocation11 + $0x1600] ss:$40 sps:$4 sm:$0xff]  }
 0x91d   :  { %16610 = vmatprep.subr.bf16.mxu0 %v23272_v16  ;;  %v23323_v16 = vld [vmem:[#allocation11 + $0x1650] ss:$40 sps:$4 sm:$0xff]  }
 0x91e   :  { %16564 = vmatpush1.bf16.msra.mxu1 %v23267_v34  ;;  %v23330_v34 = vld [vmem:[#allocation11 + $0x1604] ss:$40 sps:$4 sm:$0xff]  }
 0x91f   :  { %16565 = vmatprep.subr.bf16.mxu1 %v23275_v23  ;;  %v16299_v23 = vadd.f32 %v24210_v55, %v11626_v21  ;;  %v23336_v55 = vld [vmem:[#allocation14 + $0x18] sm:$0xff]   ;;  %v23377_v21 = vld [vmem:[#allocation14 + $0x150] sm:$0xff]  }
 0x920   :  { %16611 = vmatpush2.bf16.msra.mxu0 %v23270_v0  ;;  %v23331_v0 = vld [vmem:[#allocation14 + $0x20] sm:$0xff]  }
 0x921   :  { %16612 = vmatprep.subr.bf16.mxu0 %v23278_v43 }
 0x922   :  { %16566 = vmatpush1.bf16.msra.mxu1 %v23273_v31  ;;  %v16301_v31 = vadd.f32 %v24214_v28, %v11630_v30  ;;  %v23382_v30 = vld [vmem:[#allocation14 + $0x148] sm:$0xff]  }
 0x923   :  { %16567 = vmatprep.subr.bf16.mxu1 %v23281_v33 }
 0x924   :  { %16613 = vmatpush2.bf16.msra.mxu0 %v23276_v37  ;;  %v23335_v37 = vld [vmem:[#allocation11 + $0x15b4] ss:$40 sps:$4 sm:$0xff]  }
 0x925   :  { %16614 = vmatprep.subr.bf16.mxu0 %v23284_v7 }
 0x926   :  { %16568 = vmatpush2.bf16.msra.mxu1 %v23279_v53 }
 0x927   :  { %16569 = vmatprep.subr.bf16.mxu1 %v23287_v51 }
 0x928   :  { %16615 = vmatpush2.bf16.msra.mxu0 %v23282_v57  ;;  %v23333_v57 = vld [vmem:[#allocation11 + $0x15b0] ss:$40 sps:$4 sm:$0xff]  }
 0x929   :  { %16616 = vmatprep.subr.bf16.mxu0 %v23290_v40 }
 0x92a   :  { %16570 = vmatpush2.bf16.msra.mxu1 %v23285_v54  ;;  %v23340_v54 = vld [vmem:[#allocation11 + $0x1564] ss:$40 sps:$4 sm:$0xff]  }
 0x92b   :  { %16571 = vmatprep.subr.bf16.mxu1 %v23293_v62  ;;  %v23342_v62 = vld [vmem:[#allocation14 + $0x48] sm:$0xff]  }
 0x92c   :  { %16617 = vmatpush2.bf16.msra.mxu0 %v23288_v8  ;;  %v23338_v8 = vld [vmem:[#allocation11 + $0x1560] ss:$40 sps:$4 sm:$0xff]  }
 0x92d   :  { %16618 = vmatprep.subr.bf16.mxu0 %v23296_v59  ;;  %v23345_v59 = vld [vmem:[#allocation11 + $0x1514] ss:$40 sps:$4 sm:$0xff]  }
 0x92e   :  { %16572 = vmatpush2.bf16.msra.mxu1 %v23291_v14  ;;  %v23346_v14 = vld [vmem:[#allocation14 + $0x8] sm:$0xff]  }
 0x92f   :  { %16573 = vmatprep.subr.bf16.mxu1 %v23299_v22  ;;  %v23347_v22 = vld [vmem:[#allocation14 + $0x40] sm:$0xff]  }
 0x930   :  { %16619 = vmatpush2.bf16.msra.mxu0 %v23294_v48  ;;  %v23343_v48 = vld [vmem:[#allocation11 + $0x1510] ss:$40 sps:$4 sm:$0xff]  }
 0x931   :  { %16620 = vmatprep.subr.bf16.mxu0 %v23302_v27  ;;  %v23350_v27 = vld [vmem:[#allocation11 + $0x14c4] ss:$40 sps:$4 sm:$0xff]  }
 0x932   :  { %16574 = vmatpush2.bf16.msra.mxu1 %v23297_v2  ;;  %v23351_v2 = vld [vmem:[#allocation14] sm:$0xff]  }
 0x933   :  { %16575 = vmatprep.subr.bf16.mxu1 %v23305_v56  ;;  %v16674_v56 = vmax.f32 %v24156_v6, 0.0  ;;  %v23361_v6 = vld [vmem:[#allocation14 + $0x130] sm:$0xff]  }
 0x934   :  { %16621 = vmatpush2.bf16.msra.mxu0 %v23300_v9  ;;  %v23352_v9 = vld [vmem:[#allocation14 + $0x178] sm:$0xff]  }
 0x935   :  { %16622 = vmatprep.subr.bf16.mxu0 %v23308_v15  ;;  %v16679_v15 = vmax.f32 %v24222_v1, 0.0  ;;  %v23362_v1 = vld [vmem:[#allocation14 + $0x168] sm:$0xff]  }
 0x936   :  { %16576 = vmatpush2.bf16.msra.mxu1 %v23303_v58  ;;  %v23348_v58 = vld [vmem:[#allocation11 + $0x14c0] ss:$40 sps:$4 sm:$0xff]  }
 0x937   :  { %16577 = vmatprep.subr.bf16.mxu1 %v23311_v11  ;;  %v23355_v11 = vld [vmem:[#allocation11 + $0x1474] ss:$40 sps:$4 sm:$0xff]  }
 0x938   :  { %16623 = vmatpush2.bf16.msra.mxu0 %v23306_v29  ;;  %v23356_v29 = vld [vmem:[#allocation14 + $0x138] sm:$0xff]  }
 0x939   :  { %19882 = vmatprep.subr.bf16.mxu0 %v23312_v19  ;;  %v16684_v19 = vpack.c.bf16 %v16674_v56, %v16674_v56 }
 0x93a   :  { %16578 = vmatpush2.bf16.msra.mxu1 %v23309_v46  ;;  %v16689_v46 = vpack.c.bf16 %v16679_v15, %v16679_v15 }
 0x93b   :  { %v16380_v47 = vpop.f32.mrf.mxu0  ;;  %16625 = vmatmul.mubr.bf16.vlgmr.msra.gmra.mxu0 %v24097_v36  ;;  %16579 = vmatprep.subr.bf16.mxu1 %v23315_v50  ;;  %v23327_v36 = vld [vmem:[#allocation14 + $0x60] sm:$0xff]  }
 0x93c   :  { %19883 = vmatpush3.bf16.msra.mxu0 %v23316_v26  ;;  %17373 = vmatprep.mubr.bf16.mxu0 %v16685_v38  ;;  %v23353_v50 = vld [vmem:[#allocation11 + $0x1470] ss:$40 sps:$4 sm:$0xff]   ;;  %v23360_v26 = vld [vmem:[#allocation11 + $0x1424] ss:$40 sps:$4 sm:$0xff]   ;;  %v23365_v38 = vld [vmem:[#allocation11 + $0x18d4] ss:$40 sps:$4 sm:$0xff]  }
 0x93d   :  { %v16382_v61 = vpop.f32.mrf.mxu0  ;;  %19884 = vmatprep.subr.bf16.mxu0 %v23317_v42  ;;  %v23358_v42 = vld [vmem:[#allocation11 + $0x1420] ss:$40 sps:$4 sm:$0xff]  }
 0x93e   :  { %16580 = vmatpush2.bf16.msra.mxu1 %v23313_v13  ;;  %v23366_v13 = vld [vmem:[#allocation14 + $0x128] sm:$0xff]  }
 0x93f   :  { %v16384_v39 = vpop.f32.mrf.mxu0  ;;  %16581 = vmatprep.subr.bf16.mxu1 %v23320_v18  ;;  %v23363_v18 = vld [vmem:[#allocation11 + $0x18d0] ss:$40 sps:$4 sm:$0xff]  }
 0x940   :  { %19885 = vmatpush3.bf16.msra.mxu0 %v23321_v60  ;;  %v23370_v60 = vld [vmem:[#allocation11 + $0x1884] ss:$40 sps:$4 sm:$0xff]   ;;  %v23375_v39 = vld [vmem:[#allocation11 + $0x1834] ss:$40 sps:$4 sm:$0xff]  }
 0x941   :  { %v16385_v49 = vpop.f32.mrf.mxu0  ;;  %19886 = vmatprep.subr.bf16.mxu0 %v23322_v4  ;;  %v23372_v4 = vld [vmem:[#allocation14 + $0x158] sm:$0xff]  }
 0x942   :  { %16582 = vmatpush2.bf16.msra.mxu1 %v23318_v45  ;;  %v23368_v45 = vld [vmem:[#allocation11 + $0x1880] ss:$40 sps:$4 sm:$0xff]   ;;  %v23380_v49 = vld [vmem:[#allocation11 + $0x17e4] ss:$40 sps:$4 sm:$0xff]  }
 0x943   :  { %16633 = vmatprep.subr.bf16.mxu1 %v23325_v10  ;;  %v23376_v10 = vld [vmem:[#allocation14 + $0x118] sm:$0xff]  }
 0x944   :  { %19887 = vmatpush3.bf16.msra.mxu0 %v23326_v20  ;;  %v23373_v20 = vld [vmem:[#allocation11 + $0x1830] ss:$40 sps:$4 sm:$0xff]  }
 0x945   :  { %v16339_v43 = vpop.f32.mrf.mxu1  ;;  %16584 = vmatmul.mubr.bf16.vlgmr.msra.gmra.mxu1 %v24079_v25  ;;  %19888 = vmatprep.subr.bf16.mxu0 %v23327_v36  ;;  %v23337_v25 = vld [vmem:[#allocation14 + $0x50] sm:$0xff]  }
 0x946   :  { %v16340_v33 = vadd.f32 %v16339_v43, %v16299_v23  ;;  %16634 = vmatpush1.bf16.msra.mxu1 %v23323_v16  ;;  %16665 = vmatprep.mubr.bf16.mxu1 %v24115_v63  ;;  %v23341_v63 = vld [vmem:[#allocation14 + $0x10] sm:$0xff]   ;;  %v23386_v23 = vld [vmem:[#allocation14 + $0x108] sm:$0xff]  }
 0x947   :  { %v16341_v5 = vpop.f32.mrf.mxu1  ;;  %16635 = vmatprep.subr.bf16.mxu1 %v23330_v34  ;;  %v23381_v36 = vld [vmem:[#allocation14 + $0x110] sm:$0xff]  }
 0x948   :  { %v16342_v7 = vadd.f32 %v16341_v5, %v16301_v31  ;;  %19889 = vmatpush3.bf16.msra.mxu0 %v23331_v0  ;;  %v24234_v53 = vadd.f32 %v16380_v47, %v16340_v33  ;;  %v23367_v47 = vld [vmem:[#allocation14 + $0x160] sm:$0xff]   ;;  %v23385_v34 = vld [vmem:[#allocation11 + $0x1794] ss:$40 sps:$4 sm:$0xff]   ;;  %v16678_v33 = vmax.f32 %v24218_v17, 0.0  ;;  %v16677_v17 = vmax.f32 %v24184_v32, 0.0 }
 0x949   :  { %v16343_v51 = vpop.f32.mrf.mxu1  ;;  %19890 = vmatprep.subr.bf16.mxu0 %v23332_v24  ;;  %v23378_v16 = vld [vmem:[#allocation11 + $0x17e0] ss:$40 sps:$4 sm:$0xff]   ;;  %v23383_v43 = vld [vmem:[#allocation11 + $0x1790] ss:$40 sps:$4 sm:$0xff]   ;;  %v23390_v24 = vld [vmem:[#allocation11 + $0x1744] ss:$40 sps:$4 sm:$0xff]  }
 0x94a   :  { %16636 = vmatpush1.bf16.msra.mxu1 %v23328_v3  ;;  %v24236_v40 = vadd.f32 %v16382_v61, %v16342_v7  ;;  %v23371_v61 = vld [vmem:[#allocation14 + $0x120] sm:$0xff]   ;;  %v23394_v5 = vld [vmem:[#allocation11 + $0x16f4] ss:$40 sps:$4 sm:$0xff]  }
 0x94b   :  { %v16344_v28 = vpop.f32.mrf.mxu1  ;;  %16637 = vmatprep.subr.bf16.mxu1 %v23335_v37  ;;  %v23387_v0 = vld [vmem:[#allocation14 + $0x140] sm:$0xff]   ;;  %v16688_v37 = vpack.c.bf16 %v16678_v33, %v16678_v33 }
 0x94c   :  { %19891 = vmatpush3.bf16.msra.mxu0 %v23336_v55  ;;  %v23391_v31 = vld [vmem:[#allocation14 + $0x100] sm:$0xff]  }
 0x94d   :  { %19892 = vmatprep.subr.bf16.mxu0 %v23337_v25  ;;  %v23388_v3 = vld [vmem:[#allocation11 + $0x1740] ss:$40 sps:$4 sm:$0xff]   ;;  %v23392_v7 = vld [vmem:[#allocation11 + $0x16f0] ss:$40 sps:$4 sm:$0xff]   ;;  %v23397_v51 = vld [vmem:[#allocation11 + $0x16a4] ss:$40 sps:$4 sm:$0xff]  }
 0x94e   :  { %16638 = vmatpush1.bf16.msra.mxu1 %v23333_v57  ;;  %v23395_v57 = vld [vmem:[#allocation11 + $0x16a0] ss:$40 sps:$4 sm:$0xff]  }
 0x94f   :  { %16639 = vmatprep.subr.bf16.mxu1 %v23340_v54  ;;  %v23398_v54 = vld [vmem:[#allocation14 + $0xf8] sm:$0xff]   ;;  %v23437_v33 = vld [vmem:[#allocation14 + $0x220] sm:$0xff]  }
 0x950   :  { %19893 = vmatpush3.bf16.msra.mxu0 %v23341_v63 }
 0x951   :  { %19894 = vmatprep.subr.bf16.mxu0 %v23342_v62  ;;  %v23399_v62 = vld [vmem:[#allocation14 + $0xb8] sm:$0xff]  }
 0x952   :  { %16640 = vmatpush1.bf16.msra.mxu1 %v23338_v8  ;;  %v23400_v8 = vld [vmem:[#allocation14 + $0xf0] sm:$0xff]  }
 0x953   :  { %16641 = vmatprep.subr.bf16.mxu1 %v23345_v59  ;;  %v16687_v59 = vpack.c.bf16 %v16677_v17, %v16677_v17  ;;  %v23440_v17 = vld [vmem:[#allocation14 + $0x250] sm:$0xff]  }
 0x954   :  { %19895 = vmatpush3.bf16.msra.mxu0 %v23346_v14 }
 0x955   :  { %19896 = vmatprep.subr.bf16.mxu0 %v23347_v22 }
 0x956   :  { %16642 = vmatpush1.bf16.msra.mxu1 %v23343_v48  ;;  %v23401_v48 = vld [vmem:[#allocation14 + $0xb0] sm:$0xff]  }
 0x957   :  { %16643 = vmatprep.subr.bf16.mxu1 %v23350_v27 }
 0x958   :  { %19897 = vmatpush3.bf16.msra.mxu0 %v23351_v2  ;;  %v23402_v2 = vld [vmem:[#allocation14 + $0xe8] sm:$0xff]  }
 0x959   :  { %19926 = vmatprep.subr.bf16.mxu0 %v23352_v9  ;;  %v23403_v9 = vld [vmem:[#allocation14 + $0xa8] sm:$0xff]  }
 0x95a   :  { %16644 = vmatpush1.bf16.msra.mxu1 %v23348_v58  ;;  %v23404_v58 = vld [vmem:[#allocation14 + $0xe0] sm:$0xff]  }
 0x95b   :  { %17374 = vmatmul.mubr.bf16.vlgmr.msra.gmra.mxu0 %v16684_v19  ;;  %16645 = vmatprep.subr.bf16.mxu1 %v23355_v11  ;;  %v23405_v11 = vld [vmem:[#allocation14 + $0xa0] sm:$0xff]   ;;  %v23409_v19 = vld [vmem:[#allocation14 + $0x90] sm:$0xff]  }
 0x95c   :  { %19927 = vmatpush3.bf16.msra.mxu0 %v23356_v29  ;;  %17453 = vmatprep.mubr.bf16.mxu0 %v16689_v46  ;;  %v23408_v29 = vld [vmem:[#allocation14 + $0xd0] sm:$0xff]  }
 0x95d   :  { %19928 = vmatprep.subr.bf16.mxu0 %v23357_v35  ;;  %v23410_v35 = vld [vmem:[#allocation14 + $0xc8] sm:$0xff]  }
 0x95e   :  { %16646 = vmatpush1.bf16.msra.mxu1 %v23353_v50  ;;  %v23411_v50 = vld [vmem:[#allocation14 + $0x88] sm:$0xff]  }
 0x95f   :  { %16647 = vmatprep.subr.bf16.mxu1 %v23360_v26  ;;  %v23412_v26 = vld [vmem:[#allocation14 + $0xc0] sm:$0xff]  }
 0x960   :  { %19929 = vmatpush3.bf16.msra.mxu0 %v23361_v6 }
 0x961   :  { %19930 = vmatprep.subr.bf16.mxu0 %v23362_v1  ;;  %v23413_v1 = vld [vmem:[#allocation14 + $0x80] sm:$0xff]  }
 0x962   :  { %16648 = vmatpush1.bf16.msra.mxu1 %v23358_v42  ;;  %v16676_v42 = vmax.f32 %v24181_v12, 0.0  ;;  %v23417_v12 = vld [vmem:[#allocation14 + $0x1b0] sm:$0xff]  }
 0x963   :  { %16649 = vmatprep.subr.bf16.mxu1 %v23365_v38  ;;  %v23414_v38 = vld [vmem:[#allocation14 + $0x1f8] sm:$0xff]  }
 0x964   :  { %19931 = vmatpush3.bf16.msra.mxu0 %v23366_v13 }
 0x965   :  { %19932 = vmatprep.subr.bf16.mxu0 %v23367_v47  ;;  %v23430_v47 = vld [vmem:[#allocation14 + $0x278] sm:$0xff]  }
 0x966   :  { %16650 = vmatpush2.bf16.msra.mxu1 %v23363_v18  ;;  %v23431_v18 = vld [vmem:[#allocation14 + $0x238] sm:$0xff]  }
 0x967   :  { %16651 = vmatprep.subr.bf16.mxu1 %v23370_v60  ;;  %v23432_v60 = vld [vmem:[#allocation14 + $0x270] sm:$0xff]  }
 0x968   :  { %19933 = vmatpush3.bf16.msra.mxu0 %v23371_v61  ;;  %v23415_v61 = vld [vmem:[#allocation14 + $0x1b8] sm:$0xff]  }
 0x969   :  { %19934 = vmatprep.subr.bf16.mxu0 %v23372_v4  ;;  %v16686_v4 = vpack.c.bf16 %v16676_v42, %v16676_v42 }
 0x96a   :  { %16652 = vmatpush2.bf16.msra.mxu1 %v23368_v45 }
 0x96b   :  { %16653 = vmatprep.subr.bf16.mxu1 %v23375_v39  ;;  %v23433_v39 = vld [vmem:[#allocation14 + $0x230] sm:$0xff]  }
 0x96c   :  { %19935 = vmatpush3.bf16.msra.mxu0 %v23376_v10  ;;  %v23434_v10 = vld [vmem:[#allocation14 + $0x268] sm:$0xff]  }
 0x96d   :  { %19936 = vmatprep.subr.bf16.mxu0 %v23377_v21  ;;  %v23418_v21 = vld [vmem:[#allocation14 + $0x1e8] sm:$0xff]  }
 0x96e   :  { %16654 = vmatpush2.bf16.msra.mxu1 %v23373_v20  ;;  %v23435_v20 = vld [vmem:[#allocation14 + $0x228] sm:$0xff]  }
 0x96f   :  { %16655 = vmatprep.subr.bf16.mxu1 %v23380_v49  ;;  %v23436_v49 = vld [vmem:[#allocation14 + $0x260] sm:$0xff]  }
 0x970   :  { %19937 = vmatpush3.bf16.msra.mxu0 %v23381_v36  ;;  %v23419_v36 = vld [vmem:[#allocation14 + $0x1a8] sm:$0xff]  }
 0x971   :  { %19938 = vmatprep.subr.bf16.mxu0 %v23382_v30  ;;  %v23420_v30 = vld [vmem:[#allocation14 + $0x1e0] sm:$0xff]  }
 0x972   :  { %16656 = vmatpush2.bf16.msra.mxu1 %v23378_v16  ;;  %v23421_v16 = vld [vmem:[#allocation14 + $0x1a0] sm:$0xff]  }
 0x973   :  { %16657 = vmatprep.subr.bf16.mxu1 %v23385_v34  ;;  %v23422_v34 = vld [vmem:[#allocation14 + $0x1d8] sm:$0xff]  }
 0x974   :  { %19939 = vmatpush3.bf16.msra.mxu0 %v23386_v23  ;;  %v23423_v23 = vld [vmem:[#allocation14 + $0x198] sm:$0xff]  }
 0x975   :  { %19940 = vmatprep.subr.bf16.mxu0 %v23387_v0  ;;  %v23424_v0 = vld [vmem:[#allocation14 + $0x1d0] sm:$0xff]  }
 0x976   :  { %16658 = vmatpush2.bf16.msra.mxu1 %v23383_v43  ;;  %v23425_v43 = vld [vmem:[#allocation14 + $0x190] sm:$0xff]  }
 0x977   :  { %16659 = vmatprep.subr.bf16.mxu1 %v23390_v24  ;;  %v23426_v24 = vld [vmem:[#allocation14 + $0x1c8] sm:$0xff]  }
 0x978   :  { %19941 = vmatpush3.bf16.msra.mxu0 %v23391_v31  ;;  %v23427_v31 = vld [vmem:[#allocation14 + $0x188] sm:$0xff]  }
 0x979   :  { %19970 = vmatprep.subr.bf16.mxu0 %v23430_v47 }
 0x97a   :  { %16660 = vmatpush2.bf16.msra.mxu1 %v23388_v3 }
 0x97b   :  { %v16462_v55 = vpop.f32.mrf.mxu0  ;;  %17454 = vmatmul.mubr.bf16.vlgmr.msra.gmra.mxu0 %v16688_v37  ;;  %16661 = vmatprep.subr.bf16.mxu1 %v23394_v5  ;;  %v23428_v5 = vld [vmem:[#allocation14 + $0x1c0] sm:$0xff]  }
 0x97c   :  { %19971 = vmatpush3.bf16.msra.mxu0 %v23431_v18 }
 0x97d   :  { %v16464_v25 = vpop.f32.mrf.mxu0  ;;  %19972 = vmatprep.subr.bf16.mxu0 %v23432_v60 }
 0x97e   :  { %16662 = vmatpush2.bf16.msra.mxu1 %v23392_v7  ;;  %v23438_v7 = vld [vmem:[#allocation14 + $0x258] sm:$0xff]  }
 0x97f   :  { %v16466_v28 = vpop.f32.mrf.mxu0  ;;  %16663 = vmatprep.subr.bf16.mxu1 %v23397_v51  ;;  %v23439_v51 = vld [vmem:[#allocation14 + $0x218] sm:$0xff]  }
 0x980   :  { %19973 = vmatpush3.bf16.msra.mxu0 %v23433_v39  ;;  %v11596_v28 = vld [vmem:[#allocation13 + $0x8] sm:$0x3] }
 0x981   :  { %v16467_v63 = vpop.f32.mrf.mxu0  ;;  %19974 = vmatprep.subr.bf16.mxu0 %v23434_v10 }
 0x982   :  { %16664 = vmatpush2.bf16.msra.mxu1 %v23395_v57  ;;  %v23441_v63 = vld [vmem:[#allocation14 + $0x210] sm:$0xff]  }
 0x983   :  { %19904 = vmatprep.subr.bf16.mxu1 %v23398_v54 }
 0x984   :  { %19975 = vmatpush3.bf16.msra.mxu0 %v23435_v20 }
 0x985   :  { %v16421_v14 = vpop.f32.mrf.mxu1  ;;  %16666 = vmatmul.mubr.bf16.vlgmr.msra.gmra.mxu1 %v24117_v52  ;;  %v23406_v52 = vld [vmem:[#allocation14 + $0xd8] sm:$0xff]   ;;  %19976 = vmatprep.subr.bf16.mxu0 %v23436_v49 }
 0x986   :  { %v16422_v22 = vadd.f32 %v16421_v14, %v24234_v53  ;;  %19905 = vmatpush3.bf16.msra.mxu1 %v23399_v62  ;;  %17413 = vmatprep.mubr.bf16.mxu1 %v16687_v59  ;;  %v23407_v53 = vld [vmem:[#allocation14 + $0x98] sm:$0xff]   ;;  %v11634_v62 = vrot.slane %v11596_v28, %v23788_v41  ;;  %v11638_v59 = vrot.slane %v11596_v28, %v23791_v44 }
 0x987   :  { %v16423_v27 = vpop.f32.mrf.mxu1  ;;  %19906 = vmatprep.subr.bf16.mxu1 %v23400_v8 }
 0x988   :  { %v24244_v56 = vadd.f32 %v16462_v55, %v16422_v22  ;;  %v16424_v46 = vadd.f32 %v16423_v27, %v24236_v40  ;;  %v23416_v40 = vld [vmem:[#allocation14 + $0x1f0] sm:$0xff]   ;;  %19977 = vmatpush3.bf16.msra.mxu0 %v23437_v33  ;;  %v23429_v55 = vld [vmem:[#allocation14 + $0x180] sm:$0xff]   ;;  %v23442_v22 = vld [vmem:[#allocation14 + $0x248] sm:$0xff]  }
 0x989   :  { %v16425_v32 = vpop.f32.mrf.mxu1  ;;  %19978 = vmatprep.subr.bf16.mxu0 %v23438_v7  ;;  %v23443_v27 = vld [vmem:[#allocation14 + $0x208] sm:$0xff]  }
 0x98a   :  { %19907 = vmatpush3.bf16.msra.mxu1 %v23401_v48  ;;  %v16465_v6 = vadd.f32 %v16464_v25, %v16424_v46  ;;  %v16680_v25 = vmax.f32 %v24244_v56, 0.0 }
 0x98b   :  { %v16426_v15 = vpop.f32.mrf.mxu1  ;;  %19908 = vmatprep.subr.bf16.mxu1 %v23402_v2 }
 0x98c   :  { %v16681_v13 = vmax.f32 %v16465_v6, 0.0  ;;  %19979 = vmatpush3.bf16.msra.mxu0 %v23439_v51  ;;  %v16690_v8 = vpack.c.bf16 %v16680_v25, %v16680_v25  ;;  %v23444_v15 = vld [vmem:[#allocation14 + $0x240] sm:$0xff]  }
 0x98d   :  { %19980 = vmatprep.subr.bf16.mxu0 %v23440_v17 }
 0x98e   :  { %19909 = vmatpush3.bf16.msra.mxu1 %v23403_v9  ;;  %v16691_v45 = vpack.c.bf16 %v16681_v13, %v16681_v13 }
 0x98f   :  { %19910 = vmatprep.subr.bf16.mxu1 %v23404_v58 }
 0x990   :  { %19981 = vmatpush3.bf16.msra.mxu0 %v23441_v63 }
 0x991   :  { %19982 = vmatprep.subr.bf16.mxu0 %v23442_v22 }
 0x992   :  { %19911 = vmatpush3.bf16.msra.mxu1 %v23405_v11  ;;  %v23445_v11 = vld [vmem:[#allocation14 + $0x200] sm:$0xff]  }
 0x993   :  { %19912 = vmatprep.subr.bf16.mxu1 %v23406_v52 }
 0x994   :  { %19983 = vmatpush3.bf16.msra.mxu0 %v23443_v27 }
 0x995   :  { %19984 = vmatprep.subr.bf16.mxu0 %v23444_v15 }
 0x996   :  { %19913 = vmatpush3.bf16.msra.mxu1 %v23407_v53 }
 0x997   :  { %19914 = vmatprep.subr.bf16.mxu1 %v23408_v29 }
 0x998   :  { %19985 = vmatpush3.bf16.msra.mxu0 %v23445_v11 }
 0x99a   :  { %19915 = vmatpush3.bf16.msra.mxu1 %v23409_v19 }
 0x99b   :  { %19916 = vmatprep.subr.bf16.mxu1 %v23410_v35 }
 0x99e   :  { %19917 = vmatpush3.bf16.msra.mxu1 %v23411_v50 }
 0x99f   :  { %19918 = vmatprep.subr.bf16.mxu1 %v23412_v26 }
 0x9a2   :  { %19919 = vmatpush3.bf16.msra.mxu1 %v23413_v1 }
 0x9a3   :  { %19948 = vmatprep.subr.bf16.mxu1 %v23414_v38 }
 0x9a5   :  { %17414 = vmatmul.mubr.bf16.vlgmr.msra.gmra.mxu1 %v16686_v4 }
 0x9a6   :  { %19949 = vmatpush3.bf16.msra.mxu1 %v23415_v61  ;;  %17493 = vmatprep.mubr.bf16.mxu1 %v16691_v45 }
 0x9a7   :  { %19950 = vmatprep.subr.bf16.mxu1 %v23416_v40 }
 0x9aa   :  { %19951 = vmatpush3.bf16.msra.mxu1 %v23417_v12 }
 0x9ab   :  { %19952 = vmatprep.subr.bf16.mxu1 %v23418_v21 }
 0x9ae   :  { %19953 = vmatpush3.bf16.msra.mxu1 %v23419_v36 }
 0x9af   :  { %19954 = vmatprep.subr.bf16.mxu1 %v23420_v30 }
 0x9b2   :  { %19955 = vmatpush3.bf16.msra.mxu1 %v23421_v16 }
 0x9b3   :  { %19956 = vmatprep.subr.bf16.mxu1 %v23422_v34 }
 0x9b6   :  { %19957 = vmatpush3.bf16.msra.mxu1 %v23423_v23 }
 0x9b7   :  { %19958 = vmatprep.subr.bf16.mxu1 %v23424_v0  ;;  %v19801_v0 = vld [vmem:[#allocation16] ss:$0 sm:$0xff] }
 0x9ba   :  { %19959 = vmatpush3.bf16.msra.mxu1 %v23425_v43 }
 0x9bb   :  { %v16544_v3 = vpop.f32.mrf.mxu0  ;;  %19960 = vmatprep.subr.bf16.mxu1 %v23426_v24 }
 0x9bd   :  { %v16546_v37 = vpop.f32.mrf.mxu0 }
 0x9be   :  { %19961 = vmatpush3.bf16.msra.mxu1 %v23427_v31 }
 0x9bf   :  { %v16548_v57 = vpop.f32.mrf.mxu0  ;;  %19962 = vmatprep.subr.bf16.mxu1 %v23428_v5 }
 0x9c1   :  { %v16549_v54 = vpop.f32.mrf.mxu0 }
 0x9c2   :  { %19963 = vmatpush3.bf16.msra.mxu1 %v23429_v55 }
 0x9c5   :  { %v16503_v14 = vpop.f32.mrf.mxu1  ;;  %17494 = vmatmul.mubr.bf16.vlgmr.msra.gmra.mxu1 %v16690_v8 }
 0x9c6   :  { %v16504_v48 = vadd.f32 %v16503_v14, %v11634_v62 }
 0x9c7   :  { %v16505_v2 = vpop.f32.mrf.mxu1 }
 0x9c8   :  { %v16506_v56 = vadd.f32 %v16505_v2, %v11638_v59  ;;  %v16545_v32 = vadd.f32 %v16544_v3, %v16504_v48 }
 0x9c9   :  { %v16507_v9 = vpop.f32.mrf.mxu1 }
 0x9ca   :  { %v16547_v58 = vadd.f32 %v16546_v37, %v16506_v56 }
 0x9cb   :  { %v16508_v41 = vpop.f32.mrf.mxu1 }
 0x9fb   :  { %v16626_v52 = vpop.f32.mrf.mxu0 }
 0x9fd   :  { %v16628_v44 = vpop.f32.mrf.mxu0 }
 0x9ff   :  { %v16630_v53 = vpop.f32.mrf.mxu0 }
 0xa01   :  { %v16631_v29 = vpop.f32.mrf.mxu0 }
 0xa05   :  { %v16585_v19 = vpop.f32.mrf.mxu1 }
 0xa06   :  { %v16586_v35 = vadd.f32 %v16585_v19, %v16545_v32 }
 0xa07   :  { %v16587_v46 = vpop.f32.mrf.mxu1 }
 0xa08   :  { %v16588_v50 = vadd.f32 %v16587_v46, %v16547_v58  ;;  %v16627_v26 = vadd.f32 %v16626_v52, %v16586_v35 }
 0xa09   :  { %v16589_v6 = vpop.f32.mrf.mxu1 }
 0xa0a   :  { %v16629_v1 = vadd.f32 %v16628_v44, %v16588_v50 }
 0xa0b   :  { %v16590_v42 = vpop.f32.mrf.mxu1 }
 0xa1b   :  { %v19898_v38 = vpop.f32.mrf.mxu0 }
 0xa1d   :  { %v19899_v13 = vpop.f32.mrf.mxu0 }
 0xa1e   :  { %v19900_v47 = vadd.f32 %v19899_v13, %v19898_v38 }
 0xa1f   :  { %v19901_v18 = vpop.f32.mrf.mxu0 }
 0xa20   :  { %v17376_v31 = vadd.f32 %v19900_v47, %v19801_v0 }
 0xa21   :  { %v19902_v60 = vpop.f32.mrf.mxu0 }
 0xa3b   :  { %v19942_v61 = vpop.f32.mrf.mxu0 }
 0xa3d   :  { %v19943_v4 = vpop.f32.mrf.mxu0 }
 0xa3e   :  { %v19944_v40 = vadd.f32 %v19943_v4, %v19942_v61 }
 0xa3f   :  { %v19945_v45 = vpop.f32.mrf.mxu0 }
 0xa41   :  { %v19946_v39 = vpop.f32.mrf.mxu0 }
 0xa45   :  { %v16667_v10 = vpop.f32.mrf.mxu1 }
 0xa46   :  { %v16668_v12 = vadd.f32 %v16667_v10, %v16627_v26 }
 0xa47   :  { %v16669_v21 = vpop.f32.mrf.mxu1 }
 0xa48   :  { %v16670_v20 = vadd.f32 %v16669_v21, %v16629_v1  ;;  %v16682_v49 = vmax.f32 %v16668_v12, 0.0 }
 0xa49   :  { %v16671_v36 = vpop.f32.mrf.mxu1 }
 0xa4a   :  { %v16683_v30 = vmax.f32 %v16670_v20, 0.0  ;;  %v16692_v23 = vpack.c.bf16 %v16682_v49, %v16682_v49 }
 0xa4b   :  { %v16672_v16 = vpop.f32.mrf.mxu1 }
 0xa4c   :  { %v16693_v34 = vpack.c.bf16 %v16683_v30, %v16683_v30 }
 0xa4e   :  { %17533 = vmatprep.mubr.bf16.mxu0 %v16693_v34 }
 0xa4f   :  { %17534 = vmatmul.mubr.bf16.vlgmr.msra.gmra.mxu0 %v16692_v23 }
 0xa65   :  { %v19920_v43 = vpop.f32.mrf.mxu1 }
 0xa67   :  { %v19921_v24 = vpop.f32.mrf.mxu1 }
 0xa68   :  { %v19922_v33 = vadd.f32 %v19921_v24, %v19920_v43 }
 0xa69   :  { %v19923_v3 = vpop.f32.mrf.mxu1 }
 0xa6a   :  { %v17416_v5 = vadd.f32 %v19922_v33, %v17376_v31 }
 0xa6b   :  { %v19924_v37 = vpop.f32.mrf.mxu1 }
 0xa6c   :  { %v17456_v7 = vadd.f32 %v19944_v40, %v17416_v5 }
 0xa85   :  { %v19964_v55 = vpop.f32.mrf.mxu1 }
 0xa87   :  { %v19965_v51 = vpop.f32.mrf.mxu1 }
 0xa88   :  { %v19966_v25 = vadd.f32 %v19965_v51, %v19964_v55 }
 0xa89   :  { %v19967_v57 = vpop.f32.mrf.mxu1 }
 0xa8a   :  { %v17496_v28 = vadd.f32 %v19966_v25, %v17456_v7 }
 0xa8b   :  { %v19968_v54 = vpop.f32.mrf.mxu1 }
 0xb0f   :  { %v19986_v17 = vpop.f32.mrf.mxu0 }
 0xb11   :  { %v19987_v63 = vpop.f32.mrf.mxu0 }
 0xb12   :  { %v19988_v62 = vadd.f32 %v19987_v63, %v19986_v17 }
 0xb13   :  { %v19989_v8 = vpop.f32.mrf.mxu0 }
 0xb14   :  { %v17536_v59 = vadd.f32 %v19988_v62, %v17496_v28 }
 0xb15   :  { %v19990_v14 = vpop.f32.mrf.mxu0 }
 0xb16   :  { %17541 = vst [vmem:[#allocation17] sm:$0xff] %v17536_v59 }
 0xb17   :  { %23643 = shalt.err (!%p23640_p7)
}
 0xb18   :  { %17551 = dma.vmem_to_hbm [thread:$0]  %s17549_s8, 128, %s24263_s9, [#allocation4]  }
 0xb19   :  { %23662 = dma.done.wait [#allocation4], 128  }
 0xb1a   :  { %23663 = vsyncadd [#allocation4], 4294967168 }
 0xb1b   :  { %17555 = vsyncpa [#allocation3], 1 }
 0xb1c   :  { %17556 = vsyncpa [#allocation6], 1 }
 0xb1d   :  { %17557 = vsyncpa [#allocation9], 1 }
 0xb1e   :  { %17558 = vsyncpa [#allocation12], 1 }
 0xb1f   :  { %17559 = vsyncpa [#allocation15], 1 }
 0xb20   :  { %17560 = vsyncpa [#allocation4], 1 }

</bundles_post_ra>
